<compile_context>
chip_gen: v5e
topology: v5e:2x2
jax: 0.10.0
libtpu: 0.0.40
codegen_flags: <defaults>
</compile_context>

<pallas_src>
import functools

import jax
import jax.numpy as jnp
from jax.experimental import pallas as pl
from jax.experimental.pallas import tpu as pltpu

_TARGET_TILE_BYTES = 1 << 20   # ~1 MiB input tile per buffer


def _point_shuffle_kernel(x_ref, o_ref, *, r, c2, sub):
    """x_ref, o_ref: (tn, r*c2) tiles.  o[n, j*c2 + i] = x[n, i*r + j]."""
    tn = x_ref.shape[0]
    rc = r * c2
    # Static (fully unrolled) chunk loop: keeps the r-minor intermediate of
    # the reshape/transpose to a handful of vregs regardless of tile size.
    for s in range(0, tn, sub):
        rows = pl.ds(s, sub)                      # static start, static size
        x = x_ref[rows, :]                        # (sub, r*c2)  dense lanes
        x = x.reshape(sub, c2, r)                 # channels viewed as (c2, r)
        x = jnp.transpose(x, (0, 2, 1))           # (sub, r, c2)
        o_ref[rows, :] = x.reshape(sub, rc)       # j-major, lane-dense store


def _pick_row_tile(n, rc, itemsize, sub):
    """Largest row tile ~1 MiB of input, multiple of `sub`, >= 2 grid steps."""
    tn = max(sub, (_TARGET_TILE_BYTES // (rc * itemsize)) // sub * sub)
    if n >= 2 * sub:
        # keep at least two grid steps so both v7x TensorCores get work
        tn = min(tn, pl.cdiv(n, 2 * sub) * sub)
    tn = min(tn, pl.cdiv(n, sub) * sub)           # never exceed (padded) N
    return int(tn)


def point_shuffle(x, r, *, tn=None, batch=None):
    """Shuffles [N, r*C2] -> [r*N, C2] (PointShuffleOld.forward).

    `batch` is accepted for API parity; for equal-sized graphs the batched
    path of the original module is mathematically identical to this one.
    """
    del batch  # see TODO(synk) above for the ragged case
    n, rc = x.shape
    assert rc % r == 0, "channel dim must be divisible by r"
    c2 = rc // r
    itemsize = jnp.dtype(x.dtype).itemsize
    sub = 8 * max(1, 4 // itemsize)               # 8 rows f32, 16 bf16, 32 int8
    if tn is None:
        tn = _pick_row_tile(n, rc, itemsize, sub)
    tn = max(sub, (int(tn) // sub) * sub)         # sublane-aligned row tile
    grid = (pl.cdiv(n, tn),)

    kernel = functools.partial(_point_shuffle_kernel, r=r, c2=c2, sub=sub)
    out = pl.pallas_call(
        kernel,
        out_shape=jax.ShapeDtypeStruct((n, rc), x.dtype),
        grid_spec=pltpu.PrefetchScalarGridSpec(
            num_scalar_prefetch=0,
            grid=grid,
            in_specs=[pl.BlockSpec((tn, rc), lambda i: (i, 0))],
            out_specs=pl.BlockSpec((tn, rc), lambda i: (i, 0)),
        ),
        compiler_params=pltpu.CompilerParams(
            dimension_semantics=("parallel",)),
        cost_estimate=pl.CostEstimate(
            flops=0, transcendentals=0,
            bytes_accessed=2 * n * rc * itemsize),
    )(x)
    # Free row-major reshape: (N, r*C2) with j-major rows == (N*r, C2).
    return out.reshape(n * r, c2)


if __name__ == "__main__":
    key = jax.random.PRNGKey(0)
    N, r, c2 = 64, 2, 128              # x: [64, 256] -> out: [128, 128]
    x = jax.random.normal(key, (N, r * c2), dtype=jnp.float32)

    out = jax.block_until_ready(point_shuffle(x, r))

    # pure-JAX reference of the torch reshape/permute chain
    ref = jnp.transpose(x.reshape(N, c2, r), (0, 2, 1)).reshape(N * r, c2)

    assert out.shape == (N * r, c2), out.shape
    assert jnp.array_equal(out, ref), "mismatch vs reference"
    print("KERNEL_OK")
</pallas_src>

<mosaic_0001>
module attributes {stable_mosaic.version = 11 : i64} {
  func.func @_point_shuffle_kernel(%arg0: i32, %arg1: memref<32x256xf32, #tpu.memory_space<vmem>>, %arg2: memref<32x256xf32, #tpu.memory_space<vmem>>) attributes {dimension_semantics = [#tpu.dimension_semantics<parallel>], iteration_bounds = array<i64: 2>, scalar_prefetch = 0 : i64, scratch_operands = 0 : i64, tpu.core_type = #tpu.core_type<tc>, window_params = [{transform_indices = @transform_0, window_bounds = array<i64: 32, 256>}, {transform_indices = @transform_1, window_bounds = array<i64: 32, 256>}]} {
    %c0 = arith.constant 0 : index
    %c0_0 = arith.constant 0 : index
    %0 = vector.load %arg1[%c0, %c0_0] : memref<32x256xf32, #tpu.memory_space<vmem>>, vector<8x256xf32>
    %1 = vector.shape_cast %0 : vector<8x256xf32> to vector<8x128x2xf32>
    %2 = tpu.transpose %1, [0, 2, 1] : vector<8x128x2xf32> -> vector<8x2x128xf32>
    %3 = vector.shape_cast %2 : vector<8x2x128xf32> to vector<8x256xf32>
    %c0_1 = arith.constant 0 : index
    %c0_2 = arith.constant 0 : index
    %4 = vector.load %arg2[%c0_1, %c0_2] : memref<32x256xf32, #tpu.memory_space<vmem>>, vector<8x256xf32>
    tpu.vector_store %arg2[%c0_1, %c0_2], %3 {strides = array<i32>} : memref<32x256xf32, #tpu.memory_space<vmem>>, vector<8x256xf32>,
    %c8 = arith.constant 8 : index
    %c0_3 = arith.constant 0 : index
    %5 = vector.load %arg1[%c8, %c0_3] : memref<32x256xf32, #tpu.memory_space<vmem>>, vector<8x256xf32>
    %6 = vector.shape_cast %5 : vector<8x256xf32> to vector<8x128x2xf32>
    %7 = tpu.transpose %6, [0, 2, 1] : vector<8x128x2xf32> -> vector<8x2x128xf32>
    %8 = vector.shape_cast %7 : vector<8x2x128xf32> to vector<8x256xf32>
    %c8_4 = arith.constant 8 : index
    %c0_5 = arith.constant 0 : index
    %9 = vector.load %arg2[%c8_4, %c0_5] : memref<32x256xf32, #tpu.memory_space<vmem>>, vector<8x256xf32>
    tpu.vector_store %arg2[%c8_4, %c0_5], %8 {strides = array<i32>} : memref<32x256xf32, #tpu.memory_space<vmem>>, vector<8x256xf32>,
    %c16 = arith.constant 16 : index
    %c0_6 = arith.constant 0 : index
    %10 = vector.load %arg1[%c16, %c0_6] : memref<32x256xf32, #tpu.memory_space<vmem>>, vector<8x256xf32>
    %11 = vector.shape_cast %10 : vector<8x256xf32> to vector<8x128x2xf32>
    %12 = tpu.transpose %11, [0, 2, 1] : vector<8x128x2xf32> -> vector<8x2x128xf32>
    %13 = vector.shape_cast %12 : vector<8x2x128xf32> to vector<8x256xf32>
    %c16_7 = arith.constant 16 : index
    %c0_8 = arith.constant 0 : index
    %14 = vector.load %arg2[%c16_7, %c0_8] : memref<32x256xf32, #tpu.memory_space<vmem>>, vector<8x256xf32>
    tpu.vector_store %arg2[%c16_7, %c0_8], %13 {strides = array<i32>} : memref<32x256xf32, #tpu.memory_space<vmem>>, vector<8x256xf32>,
    %c24 = arith.constant 24 : index
    %c0_9 = arith.constant 0 : index
    %15 = vector.load %arg1[%c24, %c0_9] : memref<32x256xf32, #tpu.memory_space<vmem>>, vector<8x256xf32>
    %16 = vector.shape_cast %15 : vector<8x256xf32> to vector<8x128x2xf32>
    %17 = tpu.transpose %16, [0, 2, 1] : vector<8x128x2xf32> -> vector<8x2x128xf32>
    %18 = vector.shape_cast %17 : vector<8x2x128xf32> to vector<8x256xf32>
    %c24_10 = arith.constant 24 : index
    %c0_11 = arith.constant 0 : index
    %19 = vector.load %arg2[%c24_10, %c0_11] : memref<32x256xf32, #tpu.memory_space<vmem>>, vector<8x256xf32>
    tpu.vector_store %arg2[%c24_10, %c0_11], %18 {strides = array<i32>} : memref<32x256xf32, #tpu.memory_space<vmem>>, vector<8x256xf32>,
    return
  }
  func.func @transform_0(%arg0: i32) -> (i32, i32) {
    %c0_i32 = arith.constant 0 : i32
    %c0_i32_0 = arith.constant 0 : i32
    return %arg0, %c0_i32 : i32, i32
  }
  func.func @transform_1(%arg0: i32) -> (i32, i32) {
    %c0_i32 = arith.constant 0 : i32
    %c0_i32_0 = arith.constant 0 : i32
    return %arg0, %c0_i32 : i32, i32
  }
}

</mosaic_0001>

<bundles_post_ra>
// kernel: tpu_custom_call.1
= control target key start
LH: loop header
LB: loop body
LE: loop exit
PB: predicated region body
PF: predicated region fallthrough
CT: control target
= control target key end

     0   :  { %s17884_s0 = inlined_call_operand.hbm [shape: f32[64,256], index: 0, kind: input, shape index: {}]   ;;  %s17885_s1 = inlined_call_operand.hbm [shape: f32[64,256], index: 1, kind: output, shape index: {}]  }
   0x1   :  { %18492 = sst [smem:[#allocation553_spill]] %s17884_s0 }
   0x2   :  { %18493 = sst [smem:[#allocation554_spill]] %s17885_s1 }
   0x3   :  { %6 = vsyncpa [#allocation3], 0 }
   0x4   :  { %8 = vsyncpa [#allocation3 + $0x1], 0 }
   0x5   :  { %9 = vsyncpa [#allocation4], 0 }
   0x6   :  { %11 = vsyncpa [#allocation4 + $0x1], 0  ;;  %s10441_s6 = smov 0   ;;  %s10443_s7 = smov 0  }
   0x7   :  { %s10445_s8 = smov 0   ;;  %s10447_s9 = smov 0  }
   0x8 LB: > { %18494 = sst [smem:[#allocation8_spill]] %s10349_s6  ;;  %s10462_s10 = sadd.s32 4294967295, %s10361_s9   ;;  %s10361_s9 = sphi %s10447_s9, %s20142_s9   ;;  %s10357_s8 = sphi %s10445_s8, %s20145_s8   ;;  %s10353_s7 = sphi %s10443_s7, %s20144_s7   ;;  %s10349_s6 = sphi %s10441_s6, %s20143_s6  }
   0x9   : > { %18495 = sst [smem:[#allocation9_spill]] %s10353_s7  ;;  %s10119_s11 = sadd.s32 4294967294, %s10361_s9  }
   0xa   : > { %18496 = sst [smem:[#allocation10_spill]] %s10357_s8  ;;  %s10466_s12 = sadd.s32 1, %s10361_s9  }
   0xb   : > { %18497 = sst [smem:[#allocation11_spill]] %s10361_s9  ;;  %s24_s13 = sadd.s32 1, %s10357_s8 }
   0xc   : > { %18498 = sst [smem:[#allocation12_spill]] %s10462_s10  ;;  %s21_s14 = ssub.s32 %s10361_s9, %s10466_s12 }
   0xd   : > { %18499 = sst [smem:[#allocation13_spill]] %s10466_s12  ;;  %p31_p0 = scmp.ne.s32.totalorder %s10357_s8, %s10353_s7 }
   0xe   : > { %p22_p1 = scmp.eq.s32.totalorder %s21_s14, 0  ;;  %p32_p2 = scmp.eq.s32.totalorder %s10361_s9, 0 }
   0xf   : > { %p37_p3 = scmp.ne.s32.totalorder %s10353_s7, %s10349_s6  ;;  %p38_p4 = scmp.eq.s32.totalorder %s10462_s10, 0 }
  0x10   : > { %s10478_s15 = scalar_select %p22_p1, %s10357_s8, %s24_s13  }
  0x11   : > { %p10480_p5 = por %p32_p2, %p31_p0  ;;  %p10484_p6 = por %p38_p4, %p37_p3 }
  0x12   : > { %18500 = sst [smem:[#allocation14_spill]] %s10478_s15  ;;  %p61_p7 = scmp.eq.s32.totalorder %s10462_s10, 1 }
  0x13   : > { %p67_p8 = scmp.eq.s32.totalorder %s10119_s11, 1  ;;  %p10151_p10 = scmp.lt.s32.totalorder %s10361_s9, 2 }
  0x14   : > { %p10491_p11 = por %p61_p7, %p31_p0  ;;  %s87_s20 = sand.u32 1, %s10357_s8  }
  0x15   : > { %p10495_p12 = por %p67_p8, %p37_p3  ;;  %s10136_s21 = sshll.u32 %s10361_s9, 6 }
  0x16   : > { %s18503_s18 = scalar_select %p10491_p11, 1, 0 }
  0x17   : > { %s18505_s19 = scalar_select %p10495_p12, 1, 0 }
  0x18   : > { %18504 = sst [smem:[#allocation15_spill]] %s18503_s18  ;;  %s10122_s22 = sshll.u32 %s87_s20, 6 }
  0x19   : > { %18506 = sst [smem:[#allocation16_spill]] %s18505_s19  ;;  %s91_s27 = scalar_lea.vmem [#allocation2], %s10122_s22 }
  0x1a   : > { %s18507_s0 = sld [smem:[#allocation553_spill]]  ;;  %s100_s28 = sshll.u32 %s91_s27, 4  ;;  %s101_s28 = int_to_ptr.vmem [resolvable:$true] %s100_s28 }
  0x1b   : > { %p10506_p13 = pnand %p10151_p10, %p10480_p5  ;;  %p10126_p0 = scmp.ge.s32.totalorder %s10361_s9, 1 }
  0x1c   : > { %p108_p1 = scmp.lt.s32.totalorder %s10361_s9, 3  ;;  %s88_s30 = scalar_lea.sflag [#allocation3], %s87_s20 }
  0x1d   : > { %p10269_p3 = pneg %p10506_p13 }
  0x20   : > { %s97_s25 = scalar_lea.hbm %s18507_s0, %s10136_s21  ;;  %s10272_s11 = scalar_lea.hbm %s18507_s0, 128 }
  0x21   : > { %s98_s26 = sshll.u32 %s97_s25, 4  ;;  %s99_s26 = int_to_ptr.hbm [resolvable:$true] %s98_s26 }
  0x22   : > { %s10265_s2 = sshra.s32 %s99_s26, 4  ;;  %s10266_s2 = int_to_ptr.hbm [resolvable:$true] %s10265_s2 }
  0x23   : > { %s10267_s3 = scalar_lea.hbm %s10266_s2, 64  ;;  %p10273_p5 = scmp.lt.s32.totalorder %s10266_s2, %s18507_s0 }
  0x24   : > { %p10268_p2 = scmp.ne.s32.totalorder %s10266_s2, %s10267_s3  ;;  %p10274_p8 = scmp.lt.s32.totalorder %s10272_s11, %s10267_s3 }
  0x26   : > { %p10270_p4 = pnand %p10269_p3, %p10268_p2  ;;  %p10275_p10 = por %p10274_p8, %p10273_p5 }
  0x28   : > { %p10271_p7 = pneg %p10270_p4 }
  0x2a   : > { %p10276_p9 = pnand %p10275_p10, %p10271_p7 }
  0x2c   : > { %10279 = shalt.err (!%p10276_p9)
}
  0x2d   : > { %s10363_s16 = smov 256   ;;  %s10364_s20 = smov 16  }
  0x2e   : > { %10146 = dma.hbm_to_vmem [thread:$0]  (!%p10506_p13), %s99_s26, 1024, %s101_s28, %s88_s30, %s10363_s16, %s10363_s16, %s10364_s20  }
  0x2f   : > { %p109_p2 = pnand %p10126_p0, %p108_p1 }
  0x31   : > { %112 = sbr.rel (%p109_p2) target bundleno = 2890 (0xb4a), region = 24 }
  0x36   : > { %s10527_s21 = sand.u32 1, %s10353_s7  }
  0x37   : > { %18509 = sst [smem:[#allocation17_spill]] %s10527_s21  ;;  %s17886_s22 = sshll.u32 %s10527_s21, 6 }
  0x38   : > { %s115_s23 = scalar_lea.sflag [#allocation3], %s10527_s21  ;;  %s10533_s24 = scalar_lea.vmem [#allocation2], %s17886_s22 }
  0x39   : > { %10340 = dma.done.wait (%p10484_p6), %s115_s23, 1024  }
  0x3a   : > { %10342 = vsyncadd (%p10484_p6), %s115_s23, 4294966272  ;;  %v10540_v0 = vld [vmem:[%s10533_s24] sm:$0xff]  ;;  %s17995_s25 = smov 118   ;;  %s17991_s26 = smov 122   ;;  %v10410_v7 = vmov 1983009808  }
  0x3b   : > { %155 = vrot.lane.b32.xlu2 %v10540_v0, %s17995_s25  ;;  %149 = vrot.lane.b32.xlu1 %v10540_v0, %s17991_s26  ;;  %s17997_s27 = smov 126   ;;  %s17999_s28 = smov 116   ;;  %v528_v8 = vunpack.c.l.s4 %v10410_v7  ;;  %v525_v10 = vrot.slane %v10540_v0, 4  ;;  %vm523_vm0 = vcmask 1047556   ;;  %v10414_v25 = vmov 1934713408  }
  0x3c   : > { %143 = vrot.lane.b32.xlu0 %v10540_v0, %s17997_s27  ;;  %s17989_s17 = smov 120   ;;  %s17993_s29 = smov 124   ;;  %v576_v26 = vunpack.c.l.s4 %v10414_v25 }
  0x3d   : > { %s17983_s30 = smov 110   ;;  %s17985_s2 = smov 112   ;;  %v10647_v13 = vunpack.c.0.s8 %v528_v8 }
  0x3e   : > { %s17987_s3 = smov 114   ;;  %s17977_s4 = smov 104   ;;  %v10671_v37 = vunpack.c.0.s8 %v576_v26 }
  0x3f   : > { %s17979_s5 = smov 106   ;;  %s17981_s11 = smov 108  }
  0x40   : > { %s17887_s13 = smov 98   ;;  %s17889_s14 = smov 100  }
  0x41   : > { %s17891_s16 = smov 102   ;;  %s17893_s20 = smov 92  }
  0x42   : > { %s17895_s23 = smov 94   ;;  %s17897_s22 = smov 96  }
  0x43   : > { %158 = vrot.lane.b32.xlu2 %v10540_v0, %s17999_s28  ;;  %152 = vrot.lane.b32.xlu1 %v10540_v0, %s17989_s17  ;;  %s18587_s0 = smov 62   ;;  %s18589_s15 = smov 64  }
  0x44   : > { %146 = vrot.lane.b32.xlu0 %v10540_v0, %s17993_s29  ;;  %s18590_s8 = smov 66   ;;  %s18597_s7 = smov 56  }
  0x45   : > { %s18598_s12 = smov 58   ;;  %s18599_s9 = smov 60  }
  0x46   : > { %s18601_s19 = smov 50   ;;  %s18602_s6 = smov 52  }
  0x47   : > { %s18603_s18 = smov 54   ;;  %s18611_s1 = smov 44  }
  0x48   : > { %s18613_s10 = smov 46   ;;  %s18614_s21 = smov 48  }
  0x4b   : > { %167 = vrot.lane.b32.xlu2 %v10540_v0, %s17983_s30  ;;  %164 = vrot.lane.b32.xlu1 %v10540_v0, %s17985_s2 }
  0x4c   : > { %161 = vrot.lane.b32.xlu0 %v10540_v0, %s17987_s3 }
  0x53   : > { %176 = vrot.lane.b32.xlu2 %v10540_v0, %s17977_s4  ;;  %173 = vrot.lane.b32.xlu1 %v10540_v0, %s17979_s5 }
  0x54   : > { %170 = vrot.lane.b32.xlu0 %v10540_v0, %s17981_s11 }
  0x5b   : > { %185 = vrot.lane.b32.xlu2 %v10540_v0, %s17887_s13  ;;  %182 = vrot.lane.b32.xlu1 %v10540_v0, %s17889_s14  ;;  %s17899_s13 = smov 86   ;;  %s17901_s14 = smov 88  }
  0x5c   : > { %179 = vrot.lane.b32.xlu0 %v10540_v0, %s17891_s16  ;;  %s17903_s16 = smov 90  }
  0x63   : > { %194 = vrot.lane.b32.xlu2 %v10540_v0, %s17893_s20  ;;  %191 = vrot.lane.b32.xlu1 %v10540_v0, %s17895_s23  ;;  %s17905_s20 = smov 80   ;;  %s17907_s23 = smov 82  }
  0x64   : > { %188 = vrot.lane.b32.xlu0 %v10540_v0, %s17897_s22  ;;  %s17909_s22 = smov 84  }
  0x6b   : > { %203 = vrot.lane.b32.xlu2 %v10540_v0, %s17899_s13  ;;  %200 = vrot.lane.b32.xlu1 %v10540_v0, %s17901_s14  ;;  %s17911_s13 = smov 74   ;;  %s17913_s14 = smov 76  }
  0x6c   : > { %197 = vrot.lane.b32.xlu0 %v10540_v0, %s17903_s16  ;;  %s17915_s16 = smov 78  }
  0x73   : > { %212 = vrot.lane.b32.xlu2 %v10540_v0, %s17905_s20  ;;  %209 = vrot.lane.b32.xlu1 %v10540_v0, %s17907_s23  ;;  %s17917_s20 = smov 68   ;;  %s17919_s23 = smov 70  }
  0x74   : > { %206 = vrot.lane.b32.xlu0 %v10540_v0, %s17909_s22  ;;  %s17921_s22 = smov 72  }
  0x7b   : > { %221 = vrot.lane.b32.xlu2 %v10540_v0, %s17911_s13  ;;  %218 = vrot.lane.b32.xlu1 %v10540_v0, %s17913_s14  ;;  %s17923_s13 = smov 62   ;;  %s17925_s14 = smov 64  }
  0x7c   : > { %215 = vrot.lane.b32.xlu0 %v10540_v0, %s17915_s16  ;;  %s17927_s16 = smov 66  }
  0x83   : > { %230 = vrot.lane.b32.xlu2 %v10540_v0, %s17917_s20  ;;  %227 = vrot.lane.b32.xlu1 %v10540_v0, %s17919_s23  ;;  %s17933_s20 = smov 56   ;;  %s17929_s23 = smov 58  }
  0x84   : > { %224 = vrot.lane.b32.xlu0 %v10540_v0, %s17921_s22  ;;  %s17931_s22 = smov 60  }
  0x8b   : > { %239 = vrot.lane.b32.xlu2 %v10540_v0, %s17923_s13  ;;  %236 = vrot.lane.b32.xlu1 %v10540_v0, %s17925_s14  ;;  %s17939_s13 = smov 50   ;;  %s17935_s14 = smov 52  }
  0x8c   : > { %233 = vrot.lane.b32.xlu0 %v10540_v0, %s17927_s16  ;;  %s17937_s16 = smov 54  }
  0x93   : > { %248 = vrot.lane.b32.xlu2 %v10540_v0, %s17933_s20  ;;  %245 = vrot.lane.b32.xlu1 %v10540_v0, %s17929_s23  ;;  %s18012_s23 = smov 44   ;;  %s17941_s20 = smov 48  }
  0x94   : > { %242 = vrot.lane.b32.xlu0 %v10540_v0, %s17931_s22  ;;  %s18010_s22 = smov 46  }
  0x95   : > { %v10614_v1 = vpop.permute.xlu2 %155 }
  0x96   : > { %v561_v34 = vrot.slane %v10614_v1, 4 }
  0x9b   : > { %257 = vrot.lane.b32.xlu2 %v10540_v0, %s17939_s13  ;;  %254 = vrot.lane.b32.xlu1 %v10540_v0, %s17935_s14  ;;  %s18008_s14 = smov 38   ;;  %s17945_s13 = smov 42  }
  0x9c   : > { %251 = vrot.lane.b32.xlu0 %v10540_v0, %s17937_s16  ;;  %s17943_s16 = smov 40  }
  0x9d   : > { %v159_v2 = vpop.permute.xlu2 %158 }
  0x9e   : > { %v547_v20 = vrot.slane %v159_v2, 4 }
  0xa3   : > { %266 = vrot.lane.b32.xlu2 %v10540_v0, %s18012_s23  ;;  %263 = vrot.lane.b32.xlu1 %v10540_v0, %s18010_s22  ;;  %s18581_s22 = smov 70   ;;  %s18582_s23 = smov 72  }
  0xa4   : > { %260 = vrot.lane.b32.xlu0 %v10540_v0, %s17941_s20  ;;  %s17951_s20 = smov 32  }
  0xa5   : > { %v10628_v3 = vpop.permute.xlu2 %167 }
  0xa6   : > { %v649_v59 = vrot.slane %v10628_v3, 4 }
  0xab   : > { %275 = vrot.lane.b32.xlu2 %v10540_v0, %s18008_s14  ;;  %272 = vrot.lane.b32.xlu1 %v10540_v0, %s17943_s16  ;;  %s17949_s16 = smov 34   ;;  %s18580_s14 = smov 68  }
  0xac   : > { %269 = vrot.lane.b32.xlu0 %v10540_v0, %s17945_s13  ;;  %s17947_s13 = smov 36  }
  0xad   : > { %v10636_v4 = vpop.permute.xlu2 %176  ;;  %v150_v5 = vpop.permute.xlu1 %149 }
  0xae   : > { %v144_v6 = vpop.permute.xlu0 %143  ;;  %v535_v9 = vrot.slane %v150_v5, 4 }
  0xaf   : > { %v537_v11 = vrot.slane %v144_v6, 4 }
  0xb0   : > { %v536_v16 = vsel %vm523_vm0, %v535_v9, %v144_v6 }
  0xb1   : > { %v538_v21 = vsel %vm523_vm0, %v150_v5, %v537_v11  ;;  %v542_v27 = vperm.slane %v536_v16, %v10647_v13 }
  0xb2   : > { %v546_v31 = vperm.slane %v538_v21, %v10647_v13 }
  0xb3   : > { %284 = vrot.lane.b32.xlu2 %v10540_v0, %s17951_s20  ;;  %281 = vrot.lane.b32.xlu1 %v10540_v0, %s17949_s16  ;;  %s17955_s16 = smov 28   ;;  %s17953_s20 = smov 30   ;;  %v571_v39 = vrot.slane %v542_v27, 4 }
  0xb4   : > { %278 = vrot.lane.b32.xlu0 %v10540_v0, %s17947_s13  ;;  %s17957_s13 = smov 26   ;;  %v583_v55 = vrot.slane %v546_v31, 4 }
  0xb5   : > { %v10645_v12 = vpop.permute.xlu2 %185  ;;  %v153_v14 = vpop.permute.xlu1 %152 }
  0xb6   : > { %v147_v15 = vpop.permute.xlu0 %146  ;;  %v549_v17 = vrot.slane %v153_v14, 4  ;;  %v548_v28 = vsel %vm523_vm0, %v547_v20, %v153_v14 }
  0xb7   : > { %v522_v18 = vrot.slane %v147_v15, 4  ;;  %v526_v19 = vsel %vm523_vm0, %v147_v15, %v525_v10  ;;  %v554_v35 = vperm.slane %v548_v28, %v10647_v13 }
  0xb8   : > { %v534_v22 = vperm.slane %v526_v19, %v10647_v13  ;;  %v550_v23 = vsel %vm523_vm0, %v159_v2, %v549_v17 }
  0xb9   : > { %v524_v24 = vsel %vm523_vm0, %v522_v18, %v10540_v0  ;;  %v558_v32 = vperm.slane %v550_v23, %v10647_v13  ;;  %v597_v48 = vrot.slane %v554_v35, 4 }
  0xba   : > { %v530_v29 = vperm.slane %v524_v24, %v10647_v13  ;;  %v585_v30 = vrot.slane %v534_v22, 4  ;;  %v584_v2 = vsel %vm523_vm0, %v583_v55, %v534_v22 }
  0xbb   : > { %293 = vrot.lane.b32.xlu2 %v10540_v0, %s17957_s13  ;;  %290 = vrot.lane.b32.xlu1 %v10540_v0, %s17955_s16  ;;  %v609_v46 = vrot.slane %v558_v32, 4  ;;  %s17961_s16 = smov 22   ;;  %s17959_s13 = smov 24   ;;  %v10715_v20 = vperm.slane %v584_v2, %v10671_v37 }
  0xbc   : > { %v573_v33 = vrot.slane %v530_v29, 4  ;;  %287 = vrot.lane.b32.xlu0 %v10540_v0, %s17953_s20  ;;  %v586_v38 = vsel %vm523_vm0, %v546_v31, %v585_v30  ;;  %v572_v50 = vsel %vm523_vm0, %v571_v39, %v530_v29  ;;  %s17963_s20 = smov 20  }
  0xbd   : > { %v10669_v36 = vpop.permute.xlu2 %194  ;;  %v165_v40 = vpop.permute.xlu1 %164  ;;  %v594_v45 = vperm.slane %v586_v38, %v10671_v37  ;;  %v10698_v63 = vperm.slane %v572_v50, %v10671_v37  ;;  %18514 = vst [vmem:[#allocation22_spill] sm:$0xff] %v10715_v20 }
  0xbe   : > { %v162_v41 = vpop.permute.xlu0 %161  ;;  %v574_v44 = vsel %vm523_vm0, %v542_v27, %v573_v33  ;;  %v637_v56 = vrot.slane %v165_v40, 4  ;;  %v629_v33 = vrot.slane %v10715_v20, 4 }
  0xbf   : > { %v559_v42 = vrot.slane %v162_v41, 4  ;;  %v562_v43 = vsel %vm523_vm0, %v162_v41, %v561_v34  ;;  %v10684_v54 = vperm.slane %v574_v44, %v10671_v37  ;;  %v633_v58 = vrot.slane %v594_v45, 4  ;;  %18511 = vst [vmem:[#allocation19_spill] sm:$0xff] %v10698_v63 }
  0xc0   : > { %v570_v47 = vperm.slane %v562_v43, %v10647_v13  ;;  %v621_v29 = vrot.slane %v10698_v63, 4  ;;  %v661_v34 = vrot.slane %v10636_v4, 4 }
  0xc1   : > { %v560_v49 = vsel %vm523_vm0, %v559_v42, %v10614_v1  ;;  %18510 = vst [vmem:[#allocation18_spill] sm:$0xff] %v10684_v54  ;;  %v625_v9 = vrot.slane %v10684_v54, 4 }
  0xc2   : > { %v566_v51 = vperm.slane %v560_v49, %v10647_v13  ;;  %v607_v52 = vrot.slane %v570_v47, 4  ;;  %v610_v53 = vsel %vm523_vm0, %v570_v47, %v609_v46 }
  0xc3   : > { %302 = vrot.lane.b32.xlu2 %v10540_v0, %s17963_s20  ;;  %v618_v57 = vperm.slane %v610_v53, %v10671_v37  ;;  %299 = vrot.lane.b32.xlu1 %v10540_v0, %s17961_s16  ;;  %s17967_s16 = smov 16   ;;  %s17965_s20 = smov 18  }
  0xc4   : > { %v595_v60 = vrot.slane %v566_v51, 4  ;;  %296 = vrot.lane.b32.xlu0 %v10540_v0, %s17959_s13  ;;  %v598_v61 = vsel %vm523_vm0, %v566_v51, %v597_v48  ;;  %v608_v10 = vsel %vm523_vm0, %v607_v52, %v558_v32  ;;  %s17969_s13 = smov 14  }
  0xc5   : > { %v10695_v62 = vpop.permute.xlu2 %203  ;;  %v10701_v1 = vperm.slane %v598_v61, %v10671_v37  ;;  %v10705_v5 = vsel %vm523_vm0, %v618_v57, %v633_v58  ;;  %v174_v6 = vpop.permute.xlu1 %173  ;;  %v631_v11 = vrot.slane %v618_v57, 4  ;;  %v10730_v28 = vperm.slane %v608_v10, %v10671_v37 }
  0xc6   : > { %18513 = vst [vmem:[#allocation21_spill] sm:$0xff] %v10705_v5  ;;  %v171_v7 = vpop.permute.xlu0 %170  ;;  %v596_v8 = vsel %vm523_vm0, %v595_v60, %v554_v35  ;;  %v647_v14 = vrot.slane %v174_v6, 4  ;;  %v650_v15 = vsel %vm523_vm0, %v174_v6, %v649_v59  ;;  %v671_v35 = vrot.slane %v10645_v12, 4 }
  0xc7   : > { %18512 = vst [vmem:[#allocation20_spill] sm:$0xff] %v10701_v1  ;;  %v635_v16 = vrot.slane %v171_v7, 4  ;;  %v638_v17 = vsel %vm523_vm0, %v171_v7, %v637_v56  ;;  %v658_v18 = vperm.slane %v650_v15, %v10647_v13  ;;  %v10721_v23 = vperm.slane %v596_v8, %v10671_v37 }
  0xc8   : > { %v646_v19 = vperm.slane %v638_v17, %v10647_v13  ;;  %v648_v21 = vsel %vm523_vm0, %v647_v14, %v10628_v3  ;;  %v10725_v24 = vsel %vm523_vm0, %v10701_v1, %v625_v9  ;;  %18517 = vst [vmem:[#allocation25_spill] sm:$0xff] %v10730_v28  ;;  %v10735_v3 = vsel %vm523_vm0, %v631_v11, %v594_v45 }
  0xc9   : > { %v636_v22 = vsel %vm523_vm0, %v635_v16, %v165_v40  ;;  %18515 = vst [vmem:[#allocation23_spill] sm:$0xff] %v10721_v23  ;;  %v654_v25 = vperm.slane %v648_v21, %v10647_v13  ;;  %v695_v38 = vrot.slane %v658_v18, 4  ;;  %v10750_v40 = vsel %vm523_vm0, %v10721_v23, %v621_v29 }
  0xca   : > { %18516 = vst [vmem:[#allocation24_spill] sm:$0xff] %v10725_v24  ;;  %v642_v26 = vperm.slane %v636_v22, %v10647_v13  ;;  %v697_v27 = vrot.slane %v646_v19, 4  ;;  %v10754_v43 = vsel %vm523_vm0, %v10730_v28, %v629_v33 }
  0xcb   : > { %311 = vrot.lane.b32.xlu2 %v10540_v0, %s17969_s13  ;;  %18518 = vst [vmem:[#allocation26_spill] sm:$0xff] %v10735_v3  ;;  %v683_v30 = vrot.slane %v654_v25, 4  ;;  %308 = vrot.lane.b32.xlu1 %v10540_v0, %s17967_s16  ;;  %v696_v55 = vsel %vm523_vm0, %v695_v38, %v646_v19  ;;  %s17973_s16 = smov 10   ;;  %s17971_s13 = smov 12  }
  0xcc   : > { %v685_v31 = vrot.slane %v642_v26, 4  ;;  %305 = vrot.lane.b32.xlu0 %v10540_v0, %s17965_s20  ;;  %v698_v32 = vsel %vm523_vm0, %v658_v18, %v697_v27  ;;  %18519 = vst [vmem:[#allocation27_spill] sm:$0xff] %v10750_v40  ;;  %s17975_s20 = smov 8   ;;  %v10790_v10 = vperm.slane %v696_v55, %v10671_v37 }
  0xcd   : > { %v10746_v39 = vpop.permute.xlu2 %212  ;;  %v183_v41 = vpop.permute.xlu1 %182  ;;  %18520 = vst [vmem:[#allocation28_spill] sm:$0xff] %v10754_v43  ;;  %v684_v50 = vsel %vm523_vm0, %v683_v30, %v642_v26 }
  0xce   : > { %v180_v42 = vpop.permute.xlu0 %179  ;;  %v659_v44 = vrot.slane %v183_v41, 4  ;;  %v662_v45 = vsel %vm523_vm0, %v183_v41, %v661_v34  ;;  %v686_v51 = vsel %vm523_vm0, %v654_v25, %v685_v31  ;;  %v10772_v60 = vperm.slane %v684_v50, %v10671_v37  ;;  %18524 = vst [vmem:[#allocation32_spill] sm:$0xff] %v10790_v10  ;;  %v10839_v50 = vld [vmem:[%s10533_s24 + $0x8] sm:$0xff] }
  0xcf   : > { %v672_v46 = vsel %vm523_vm0, %v671_v35, %v180_v42  ;;  %v673_v47 = vrot.slane %v180_v42, 4  ;;  %v670_v48 = vperm.slane %v662_v45, %v10647_v13  ;;  %v747_v42 = vrot.slane %v10669_v36, 4 }
  0xd0   : > { %v678_v49 = vperm.slane %v672_v46, %v10647_v13  ;;  %v660_v52 = vsel %vm523_vm0, %v659_v44, %v10636_v4  ;;  %18521 = vst [vmem:[#allocation29_spill] sm:$0xff] %v10772_v60  ;;  %v10775_v4 = vperm.slane %v686_v51, %v10671_v37  ;;  %v733_v21 = vrot.slane %v10772_v60, 4 }
  0xd1   : > { %v674_v53 = vsel %vm523_vm0, %v10645_v12, %v673_v47  ;;  %v666_v56 = vperm.slane %v660_v52, %v10647_v13  ;;  %v721_v57 = vrot.slane %v670_v48, 4  ;;  %v706_v12 = vperm.slane %v698_v32, %v10671_v37 }
  0xd2   : > { %v682_v58 = vperm.slane %v674_v53, %v10647_v13  ;;  %v707_v59 = vrot.slane %v678_v49, 4  ;;  %18522 = vst [vmem:[#allocation30_spill] sm:$0xff] %v10775_v4  ;;  %v737_v25 = vrot.slane %v10775_v4, 4  ;;  %v741_v32 = vrot.slane %v10790_v10, 4 }
  0xd3   : > { %320 = vrot.lane.b32.xlu2 %v10540_v0, %s17975_s20  ;;  %v709_v61 = vrot.slane %v666_v56, 4  ;;  %317 = vrot.lane.b32.xlu1 %v10540_v0, %s17973_s16  ;;  %v745_v19 = vrot.slane %v706_v12, 4  ;;  %s18003_s16 = smov 4   ;;  %s18001_s20 = smov 6  }
  0xd4   : > { %v719_v2 = vrot.slane %v682_v58, 4  ;;  %314 = vrot.lane.b32.xlu0 %v10540_v0, %s17971_s13  ;;  %v708_v6 = vsel %vm523_vm0, %v707_v59, %v666_v56  ;;  %v722_v7 = vsel %vm523_vm0, %v682_v58, %v721_v57  ;;  %s18005_s13 = smov 2   ;;  %v785_v56 = vrot.slane %v10695_v62, 4 }
  0xd5   : > { %v10784_v8 = vpop.permute.xlu2 %221  ;;  %v10787_v9 = vperm.slane %v708_v6, %v10671_v37  ;;  %v730_v11 = vperm.slane %v722_v7, %v10671_v37  ;;  %v710_v14 = vsel %vm523_vm0, %v678_v49, %v709_v61  ;;  %v192_v15 = vpop.permute.xlu1 %191 }
  0xd6   : > { %v189_v16 = vpop.permute.xlu0 %188  ;;  %v720_v17 = vsel %vm523_vm0, %v719_v2, %v670_v48  ;;  %v10797_v22 = vperm.slane %v710_v14, %v10671_v37  ;;  %v761_v34 = vrot.slane %v192_v15, 4 }
  0xd7   : > { %18523 = vst [vmem:[#allocation31_spill] sm:$0xff] %v10787_v9  ;;  %v749_v18 = vrot.slane %v189_v16, 4  ;;  %v10801_v26 = vperm.slane %v720_v17, %v10671_v37  ;;  %v743_v27 = vrot.slane %v730_v11, 4  ;;  %v10806_v30 = vsel %vm523_vm0, %v730_v11, %v745_v19 }
  0xd8   : > { %18525 = vst [vmem:[#allocation33_spill] sm:$0xff] %v10797_v22  ;;  %v10810_v31 = vsel %vm523_vm0, %v10787_v9, %v733_v21  ;;  %v10815_v33 = vsel %vm523_vm0, %v10797_v22, %v737_v25  ;;  %v748_v47 = vsel %vm523_vm0, %v747_v42, %v189_v16 }
  0xd9   : > { %18526 = vst [vmem:[#allocation34_spill] sm:$0xff] %v10801_v26  ;;  %v750_v29 = vsel %vm523_vm0, %v10669_v36, %v749_v18  ;;  %v10820_v35 = vsel %vm523_vm0, %v743_v27, %v706_v12  ;;  %v10824_v38 = vsel %vm523_vm0, %v10801_v26, %v741_v32  ;;  %v754_v53 = vperm.slane %v748_v47, %v10647_v13 }
  0xda   : > { %18527 = vst [vmem:[#allocation35_spill] sm:$0xff] %v10806_v30  ;;  %v10827_v41 = vperm.slane %v750_v29, %v10647_v13 }
  0xdb   : > { %18528 = vst [vmem:[#allocation36_spill] sm:$0xff] %v10810_v31  ;;  %329 = vrot.lane.b32.xlu2 %v10540_v0, %s18005_s13  ;;  %326 = vrot.lane.b32.xlu1 %v10540_v0, %s18003_s16  ;;  %v797_v59 = vrot.slane %v754_v53, 4  ;;  %s18578_s16 = smov 76   ;;  %s18579_s13 = smov 78  }
  0xdc   : > { %18529 = vst [vmem:[#allocation37_spill] sm:$0xff] %v10815_v33  ;;  %323 = vrot.lane.b32.xlu0 %v10540_v0, %s18001_s20  ;;  %v809_v51 = vrot.slane %v10827_v41, 4  ;;  %s18577_s20 = smov 74  }
  0xdd   : > { %18530 = vst [vmem:[#allocation38_spill] sm:$0xff] %v10820_v35  ;;  %v10834_v44 = vpop.permute.xlu2 %230  ;;  %v201_v45 = vpop.permute.xlu1 %200 }
  0xde   : > { %18531 = vst [vmem:[#allocation39_spill] sm:$0xff] %v10824_v38  ;;  %v198_v46 = vpop.permute.xlu0 %197  ;;  %v773_v55 = vrot.slane %v201_v45, 4 }
  0xdf   : > { %v759_v48 = vrot.slane %v198_v46, 4  ;;  %v762_v49 = vsel %vm523_vm0, %v198_v46, %v761_v34  ;;  %v861_v34 = vrot.slane %v10746_v39, 4 }
  0xe0   : > { %v770_v52 = vperm.slane %v762_v49, %v10647_v13 }
  0xe1   : > { %v760_v0 = vsel %vm523_vm0, %v759_v48, %v192_v15 }
  0xe2   : > { %v810_v36 = vsel %vm523_vm0, %v770_v52, %v809_v51  ;;  %v766_v57 = vperm.slane %v760_v0, %v10647_v13  ;;  %v807_v29 = vrot.slane %v770_v52, 4 }
  0xe3   : > { %339 = vrot.lane.b32.xlu2 %v10839_v50, %s17991_s26  ;;  %336 = vrot.lane.b32.xlu1 %v10839_v50, %s17993_s29  ;;  %v818_v0 = vperm.slane %v810_v36, %v10671_v37  ;;  %s18563_s26 = smov 88   ;;  %s18564_s29 = smov 90  }
  0xe4   : > { %333 = vrot.lane.b32.xlu0 %v10839_v50, %s17997_s27  ;;  %v798_v17 = vsel %vm523_vm0, %v766_v57, %v797_v59  ;;  %v795_v27 = vrot.slane %v766_v57, 4  ;;  %s18575_s27 = smov 82  }
  0xe5   : > { %v10854_v58 = vpop.permute.xlu2 %239  ;;  %v210_v12 = vpop.permute.xlu1 %209  ;;  %v10877_v46 = vperm.slane %v798_v17, %v10671_v37 }
  0xe6   : > { %v207_v61 = vpop.permute.xlu0 %206  ;;  %v783_v2 = vrot.slane %v210_v12, 4  ;;  %v786_v6 = vsel %vm523_vm0, %v210_v12, %v785_v56  ;;  %v796_v59 = vsel %vm523_vm0, %v795_v27, %v754_v53 }
  0xe7   : > { %v771_v7 = vrot.slane %v207_v61, 4  ;;  %v774_v11 = vsel %vm523_vm0, %v207_v61, %v773_v55  ;;  %v794_v19 = vperm.slane %v786_v6, %v10647_v13  ;;  %18532 = vst [vmem:[#allocation40_spill] sm:$0xff] %v10877_v46  ;;  %v10902_v17 = vperm.slane %v796_v59, %v10671_v37 }
  0xe8   : > { %v782_v14 = vperm.slane %v774_v11, %v10647_v13  ;;  %v784_v15 = vsel %vm523_vm0, %v783_v2, %v10695_v62  ;;  %v808_v2 = vsel %vm523_vm0, %v807_v29, %v10827_v41 }
  0xe9   : > { %v772_v16 = vsel %vm523_vm0, %v771_v7, %v201_v45  ;;  %v790_v18 = vperm.slane %v784_v15, %v10647_v13  ;;  %v831_v48 = vrot.slane %v794_v19, 4  ;;  %v849_v7 = vrot.slane %v10877_v46, 4  ;;  %18534 = vst [vmem:[#allocation42_spill] sm:$0xff] %v10902_v17 }
  0xea   : > { %v778_v21 = vperm.slane %v772_v16, %v10647_v13  ;;  %v833_v25 = vrot.slane %v782_v14, 4 }
  0xeb   : > { %348 = vrot.lane.b32.xlu2 %v10839_v50, %s17999_s28  ;;  %345 = vrot.lane.b32.xlu1 %v10839_v50, %s17995_s25  ;;  %v819_v42 = vrot.slane %v790_v18, 4  ;;  %v832_v15 = vsel %vm523_vm0, %v831_v48, %v782_v14  ;;  %v10913_v14 = vperm.slane %v808_v2, %v10671_v37  ;;  %s18572_s25 = smov 80   ;;  %s18576_s28 = smov 84  }
  0xec   : > { %v821_v32 = vrot.slane %v778_v21, 4  ;;  %342 = vrot.lane.b32.xlu0 %v10839_v50, %s17989_s17  ;;  %v834_v62 = vsel %vm523_vm0, %v794_v19, %v833_v25  ;;  %v857_v19 = vrot.slane %v818_v0, 4  ;;  %v10929_v29 = vperm.slane %v832_v15, %v10671_v37  ;;  %s18560_s17 = smov 86  }
  0xed   : > { %v10874_v45 = vpop.permute.xlu2 %248  ;;  %v842_v47 = vperm.slane %v834_v62, %v10671_v37  ;;  %v219_v49 = vpop.permute.xlu1 %218  ;;  %v820_v36 = vsel %vm523_vm0, %v819_v42, %v778_v21  ;;  %18536 = vst [vmem:[#allocation44_spill] sm:$0xff] %v10913_v14  ;;  %v871_v21 = vrot.slane %v10784_v8, 4 }
  0xee   : > { %v216_v51 = vpop.permute.xlu0 %215  ;;  %v822_v52 = vsel %vm523_vm0, %v790_v18, %v821_v32  ;;  %v859_v55 = vrot.slane %v219_v49, 4  ;;  %v862_v56 = vsel %vm523_vm0, %v219_v49, %v861_v34  ;;  %18539 = vst [vmem:[#allocation47_spill] sm:$0xff] %v10929_v29  ;;  %v845_v49 = vrot.slane %v10902_v17, 4 }
  0xef   : > { %v873_v57 = vrot.slane %v216_v51, 4  ;;  %v10885_v12 = vperm.slane %v862_v56, %v10647_v13  ;;  %v10888_v61 = vperm.slane %v822_v52, %v10671_v37  ;;  %v855_v11 = vrot.slane %v842_v47, 4 }
  0xf0   : > { %v860_v41 = vsel %vm523_vm0, %v859_v55, %v10746_v39  ;;  %v10921_v39 = vperm.slane %v820_v36, %v10671_v37  ;;  %v10932_v32 = vsel %vm523_vm0, %v842_v47, %v857_v19  ;;  %v872_v62 = vsel %vm523_vm0, %v871_v21, %v216_v51 }
  0xf1   : > { %18533 = vst [vmem:[#allocation41_spill] sm:$0xff] %v10888_v61  ;;  %v874_v6 = vsel %vm523_vm0, %v10784_v8, %v873_v57  ;;  %v921_v53 = vrot.slane %v10885_v12, 4  ;;  %v10910_v18 = vsel %vm523_vm0, %v10888_v61, %v849_v7  ;;  %v10924_v25 = vsel %vm523_vm0, %v855_v11, %v818_v0 }
  0xf2   : > { %v10899_v16 = vperm.slane %v874_v6, %v10647_v13  ;;  %18535 = vst [vmem:[#allocation43_spill] sm:$0xff] %v10910_v18  ;;  %v866_v8 = vperm.slane %v860_v41, %v10647_v13  ;;  %v853_v0 = vrot.slane %v10913_v14, 4  ;;  %v10942_v55 = vsel %vm523_vm0, %v10921_v39, %v845_v49 }
  0xf3   : > { %357 = vrot.lane.b32.xlu2 %v10839_v50, %s17983_s30  ;;  %354 = vrot.lane.b32.xlu1 %v10839_v50, %s17985_s2  ;;  %18537 = vst [vmem:[#allocation45_spill] sm:$0xff] %v10921_v39  ;;  %v883_v47 = vrot.slane %v10834_v44, 4  ;;  %v878_v56 = vperm.slane %v872_v62, %v10647_v13  ;;  %s18554_s30 = smov 92   ;;  %s18556_s2 = smov 94  }
  0xf4   : > { %351 = vrot.lane.b32.xlu0 %v10839_v50, %s17987_s3  ;;  %18538 = vst [vmem:[#allocation46_spill] sm:$0xff] %v10924_v25  ;;  %v922_v48 = vsel %vm523_vm0, %v10899_v16, %v921_v53  ;;  %v10950_v57 = vsel %vm523_vm0, %v10929_v29, %v853_v0  ;;  %v909_v59 = vrot.slane %v866_v8, 4  ;;  %s18557_s3 = smov 96  }
  0xf5   : > { %v10926_v27 = vpop.permute.xlu2 %257  ;;  %18540 = vst [vmem:[#allocation48_spill] sm:$0xff] %v10932_v32  ;;  %v228_v34 = vpop.permute.xlu1 %227  ;;  %v930_v62 = vperm.slane %v922_v48, %v10671_v37 }
  0xf6   : > { %v225_v42 = vpop.permute.xlu0 %224  ;;  %18541 = vst [vmem:[#allocation49_spill] sm:$0xff] %v10942_v55  ;;  %v897_v2 = vrot.slane %v228_v34, 4  ;;  %v910_v41 = vsel %vm523_vm0, %v878_v56, %v909_v59 }
  0xf7   : > { %v885_v52 = vrot.slane %v225_v42, 4  ;;  %18542 = vst [vmem:[#allocation50_spill] sm:$0xff] %v10950_v57  ;;  %v884_v6 = vsel %vm523_vm0, %v883_v47, %v225_v42 }
  0xf8   : > { %v890_v11 = vperm.slane %v884_v6, %v10647_v13 }
  0xf9   : > { %v886_v51 = vsel %vm523_vm0, %v10834_v44, %v885_v52  ;;  %v907_v44 = vrot.slane %v878_v56, 4  ;;  %v919_v52 = vrot.slane %v10899_v16, 4  ;;  %v969_v16 = vrot.slane %v930_v62, 4 }
  0xfa   : > { %v894_v36 = vperm.slane %v886_v51, %v10647_v13  ;;  %v10971_v51 = vperm.slane %v910_v41, %v10671_v37  ;;  %v933_v6 = vrot.slane %v890_v11, 4 }
  0xfb   : > { %366 = vrot.lane.b32.xlu2 %v10839_v50, %s17977_s4  ;;  %363 = vrot.lane.b32.xlu1 %v10839_v50, %s17979_s5  ;;  %v908_v47 = vsel %vm523_vm0, %v907_v44, %v866_v8  ;;  %s18544_s4 = smov 98   ;;  %s18545_s5 = smov 100  }
  0xfc   : > { %360 = vrot.lane.b32.xlu0 %v10839_v50, %s17981_s11  ;;  %v945_v42 = vrot.slane %v894_v36, 4  ;;  %18543 = vst [vmem:[#allocation51_spill] sm:$0xff] %v10971_v51  ;;  %s18546_s11 = smov 102   ;;  %v10987_v41 = vperm.slane %v908_v47, %v10671_v37 }
  0xfd   : > { %v10960_v7 = vpop.permute.xlu2 %266  ;;  %v237_v15 = vpop.permute.xlu1 %236 }
  0xfe   : > { %v234_v53 = vpop.permute.xlu0 %233  ;;  %18547 = vst [vmem:[#allocation52_spill] sm:$0xff] %v10987_v41 }
  0xff   : > { %v895_v19 = vrot.slane %v234_v53, 4  ;;  %v898_v21 = vsel %vm523_vm0, %v234_v53, %v897_v2  ;;  %v973_v53 = vrot.slane %v237_v15, 4 }
 0x100   : > { %v906_v49 = vperm.slane %v898_v21, %v10647_v13 }
 0x101   : > { %v896_v0 = vsel %vm523_vm0, %v895_v19, %v228_v34  ;;  %v985_v34 = vrot.slane %v10854_v58, 4 }
 0x102   : > { %v902_v56 = vperm.slane %v896_v0, %v10647_v13  ;;  %v943_v59 = vrot.slane %v906_v49, 4  ;;  %v946_v2 = vsel %vm523_vm0, %v906_v49, %v945_v42  ;;  %v920_v42 = vsel %vm523_vm0, %v919_v52, %v10885_v12 }
 0x103   : > { %375 = vrot.lane.b32.xlu2 %v10839_v50, %s18544_s4  ;;  %v954_v48 = vperm.slane %v946_v2, %v10671_v37  ;;  %372 = vrot.lane.b32.xlu1 %v10839_v50, %s18545_s5 }
 0x104   : > { %v931_v19 = vrot.slane %v902_v56, 4  ;;  %369 = vrot.lane.b32.xlu0 %v10839_v50, %s18546_s11  ;;  %v934_v8 = vsel %vm523_vm0, %v902_v56, %v933_v6  ;;  %v961_v6 = vrot.slane %v10971_v51, 4  ;;  %v944_v56 = vsel %vm523_vm0, %v943_v59, %v894_v36 }
 0x105   : > { %v10984_v44 = vpop.permute.xlu2 %275  ;;  %v10990_v21 = vperm.slane %v934_v8, %v10671_v37  ;;  %v10995_v49 = vsel %vm523_vm0, %v954_v48, %v969_v16  ;;  %v246_v0 = vpop.permute.xlu1 %245  ;;  %v967_v38 = vrot.slane %v954_v48, 4  ;;  %v11005_v16 = vperm.slane %v920_v42, %v10671_v37 }
 0x106   : > { %18549 = vst [vmem:[#allocation54_spill] sm:$0xff] %v10995_v49  ;;  %v243_v2 = vpop.permute.xlu0 %242  ;;  %v932_v57 = vsel %vm523_vm0, %v931_v19, %v890_v11  ;;  %v983_v47 = vrot.slane %v246_v0, 4  ;;  %v986_v43 = vsel %vm523_vm0, %v246_v0, %v985_v34  ;;  %v11020_v48 = vperm.slane %v944_v56, %v10671_v37 }
 0x107   : > { %18548 = vst [vmem:[#allocation53_spill] sm:$0xff] %v10990_v21  ;;  %v971_v8 = vrot.slane %v243_v2, 4  ;;  %v974_v55 = vsel %vm523_vm0, %v243_v2, %v973_v53  ;;  %v994_v12 = vperm.slane %v986_v43, %v10647_v13  ;;  %v11011_v36 = vperm.slane %v932_v57, %v10671_v37 }
 0x108   : > { %v982_v52 = vperm.slane %v974_v55, %v10647_v13  ;;  %18550 = vst [vmem:[#allocation55_spill] sm:$0xff] %v11005_v16  ;;  %v984_v11 = vsel %vm523_vm0, %v983_v47, %v10854_v58  ;;  %v11015_v59 = vsel %vm523_vm0, %v10990_v21, %v961_v6  ;;  %v11025_v58 = vsel %vm523_vm0, %v967_v38, %v930_v62 }
 0x109   : > { %v972_v19 = vsel %vm523_vm0, %v971_v8, %v237_v15  ;;  %18551 = vst [vmem:[#allocation56_spill] sm:$0xff] %v11011_v36  ;;  %v990_v53 = vperm.slane %v984_v11, %v10647_v13  ;;  %v957_v57 = vrot.slane %v10987_v41, 4  ;;  %v965_v0 = vrot.slane %v11005_v16, 4 }
 0x10a   : > { %18552 = vst [vmem:[#allocation57_spill] sm:$0xff] %v11015_v59  ;;  %v978_v43 = vperm.slane %v972_v19, %v10647_v13  ;;  %v1033_v55 = vrot.slane %v982_v52, 4  ;;  %v997_v2 = vrot.slane %v10874_v45, 4  ;;  %v1007_v6 = vrot.slane %v10926_v27, 4 }
 0x10b   : > { %18553 = vst [vmem:[#allocation58_spill] sm:$0xff] %v11020_v48  ;;  %384 = vrot.lane.b32.xlu2 %v10839_v50, %s18554_s30  ;;  %v1019_v15 = vrot.slane %v990_v53, 4  ;;  %381 = vrot.lane.b32.xlu1 %v10839_v50, %s18556_s2  ;;  %v1031_v38 = vrot.slane %v994_v12, 4  ;;  %v11040_v56 = vsel %vm523_vm0, %v11011_v36, %v957_v57  ;;  %v11044_v11 = vsel %vm523_vm0, %v11020_v48, %v965_v0  ;;  %s18650_s30 = smov 16   ;;  %s18651_s2 = smov 18  }
 0x10c   : > { %18555 = vst [vmem:[#allocation59_spill] sm:$0xff] %v11025_v58  ;;  %v1021_v34 = vrot.slane %v978_v43, 4  ;;  %378 = vrot.lane.b32.xlu0 %v10839_v50, %s18557_s3  ;;  %v1034_v42 = vsel %vm523_vm0, %v994_v12, %v1033_v55  ;;  %s18657_s3 = smov 10  }
 0x10d   : > { %v11036_v62 = vpop.permute.xlu2 %284  ;;  %18558 = vst [vmem:[#allocation60_spill] sm:$0xff] %v11040_v56  ;;  %v255_v47 = vpop.permute.xlu1 %254  ;;  %v1020_v58 = vsel %vm523_vm0, %v1019_v15, %v978_v43 }
 0x10e   : > { %v252_v8 = vpop.permute.xlu0 %251  ;;  %18559 = vst [vmem:[#allocation61_spill] sm:$0xff] %v11044_v11  ;;  %v995_v19 = vrot.slane %v255_v47, 4  ;;  %v998_v55 = vsel %vm523_vm0, %v255_v47, %v997_v2  ;;  %v1022_v57 = vsel %vm523_vm0, %v990_v53, %v1021_v34  ;;  %v1032_v11 = vsel %vm523_vm0, %v1031_v38, %v982_v52 }
 0x10f   : > { %v1008_v31 = vsel %vm523_vm0, %v1007_v6, %v252_v8  ;;  %v1009_v40 = vrot.slane %v252_v8, 4  ;;  %v1006_v12 = vperm.slane %v998_v55, %v10647_v13  ;;  %v11065_v53 = vperm.slane %v1022_v57, %v10671_v37 }
 0x110   : > { %v1014_v49 = vperm.slane %v1008_v31, %v10647_v13  ;;  %v996_v56 = vsel %vm523_vm0, %v995_v19, %v10874_v45  ;;  %v11062_v31 = vperm.slane %v1020_v58, %v10671_v37  ;;  %v1042_v45 = vperm.slane %v1034_v42, %v10671_v37 }
 0x111   : > { %v1010_v0 = vsel %vm523_vm0, %v10926_v27, %v1009_v40  ;;  %v1002_v2 = vperm.slane %v996_v56, %v10647_v13  ;;  %v1057_v6 = vrot.slane %v1006_v12, 4  ;;  %18562 = vst [vmem:[#allocation63_spill] sm:$0xff] %v11065_v53  ;;  %v11080_v34 = vperm.slane %v1032_v11, %v10671_v37 }
 0x112   : > { %v1018_v47 = vperm.slane %v1010_v0, %v10647_v13  ;;  %v1043_v8 = vrot.slane %v1014_v49, 4  ;;  %18561 = vst [vmem:[#allocation62_spill] sm:$0xff] %v11062_v31  ;;  %v1081_v0 = vrot.slane %v1042_v45, 4 }
 0x113   : > { %393 = vrot.lane.b32.xlu2 %v10839_v50, %s18560_s17  ;;  %v1045_v40 = vrot.slane %v1002_v2, 4  ;;  %390 = vrot.lane.b32.xlu1 %v10839_v50, %s18563_s26  ;;  %18566 = vst [vmem:[#allocation65_spill] sm:$0xff] %v11080_v34  ;;  %s18639_s26 = smov 22  }
 0x114   : > { %v1055_v27 = vrot.slane %v1018_v47, 4  ;;  %387 = vrot.lane.b32.xlu0 %v10839_v50, %s18564_s29  ;;  %v1044_v52 = vsel %vm523_vm0, %v1043_v8, %v1002_v2  ;;  %v1058_v43 = vsel %vm523_vm0, %v1018_v47, %v1057_v6  ;;  %v1069_v2 = vrot.slane %v11062_v31, 4  ;;  %s18640_s29 = smov 24  }
 0x115   : > { %v11074_v15 = vpop.permute.xlu2 %293  ;;  %v11077_v58 = vperm.slane %v1044_v52, %v10671_v37  ;;  %v1066_v42 = vperm.slane %v1058_v43, %v10671_v37  ;;  %v1046_v38 = vsel %vm523_vm0, %v1014_v49, %v1045_v40  ;;  %v264_v56 = vpop.permute.xlu1 %263  ;;  %v1073_v47 = vrot.slane %v11065_v53, 4 }
 0x116   : > { %v261_v19 = vpop.permute.xlu0 %260  ;;  %v1056_v55 = vsel %vm523_vm0, %v1055_v27, %v1006_v12  ;;  %v11087_v6 = vperm.slane %v1046_v38, %v10671_v37  ;;  %v1077_v27 = vrot.slane %v11080_v34, 4  ;;  %v1097_v43 = vrot.slane %v264_v56, 4 }
 0x117   : > { %18565 = vst [vmem:[#allocation64_spill] sm:$0xff] %v11077_v58  ;;  %v1085_v57 = vrot.slane %v261_v19, 4  ;;  %v11091_v11 = vperm.slane %v1056_v55, %v10671_v37  ;;  %v1079_v8 = vrot.slane %v1066_v42, 4  ;;  %v11096_v40 = vsel %vm523_vm0, %v1066_v42, %v1081_v0 }
 0x118   : > { %18567 = vst [vmem:[#allocation66_spill] sm:$0xff] %v11087_v6  ;;  %v11100_v12 = vsel %vm523_vm0, %v11077_v58, %v1069_v2  ;;  %v11105_v52 = vsel %vm523_vm0, %v11087_v6, %v1073_v47 }
 0x119   : > { %18568 = vst [vmem:[#allocation67_spill] sm:$0xff] %v11091_v11  ;;  %v1086_v49 = vsel %vm523_vm0, %v10960_v7, %v1085_v57  ;;  %v11110_v38 = vsel %vm523_vm0, %v1079_v8, %v1042_v45  ;;  %v11114_v42 = vsel %vm523_vm0, %v11091_v11, %v1077_v27  ;;  %v1083_v57 = vrot.slane %v10960_v7, 4 }
 0x11a   : > { %18569 = vst [vmem:[#allocation68_spill] sm:$0xff] %v11096_v40  ;;  %v1094_v55 = vperm.slane %v1086_v49, %v10647_v13  ;;  %v1121_v7 = vrot.slane %v10984_v44, 4 }
 0x11b   : > { %18570 = vst [vmem:[#allocation69_spill] sm:$0xff] %v11100_v12  ;;  %402 = vrot.lane.b32.xlu2 %v10839_v50, %s18572_s25  ;;  %399 = vrot.lane.b32.xlu1 %v10839_v50, %s18575_s27  ;;  %v1084_v45 = vsel %vm523_vm0, %v1083_v57, %v261_v19  ;;  %s18636_s27 = smov 30  }
 0x11c   : > { %18571 = vst [vmem:[#allocation70_spill] sm:$0xff] %v11105_v52  ;;  %396 = vrot.lane.b32.xlu0 %v10839_v50, %s18576_s28  ;;  %v1090_v12 = vperm.slane %v1084_v45, %v10647_v13 }
 0x11d   : > { %18573 = vst [vmem:[#allocation71_spill] sm:$0xff] %v11110_v38  ;;  %v11122_v0 = vpop.permute.xlu2 %302  ;;  %v273_v2 = vpop.permute.xlu1 %272 }
 0x11e   : > { %18574 = vst [vmem:[#allocation72_spill] sm:$0xff] %v11114_v42  ;;  %v270_v47 = vpop.permute.xlu0 %269  ;;  %v1145_v42 = vrot.slane %v1094_v55, 4  ;;  %v1109_v32 = vrot.slane %v273_v2, 4  ;;  %v1133_v57 = vrot.slane %v1090_v12, 4 }
 0x11f   : > { %v1095_v8 = vrot.slane %v270_v47, 4  ;;  %v1098_v27 = vsel %vm523_vm0, %v270_v47, %v1097_v43 }
 0x120   : > { %v1106_v49 = vperm.slane %v1098_v27, %v10647_v13 }
 0x121   : > { %v1096_v40 = vsel %vm523_vm0, %v1095_v8, %v264_v56 }
 0x122   : > { %v1146_v38 = vsel %vm523_vm0, %v1106_v49, %v1145_v42  ;;  %v1102_v19 = vperm.slane %v1096_v40, %v10647_v13  ;;  %v1143_v25 = vrot.slane %v1106_v49, 4 }
 0x123   : > { %411 = vrot.lane.b32.xlu2 %v10839_v50, %s18577_s20  ;;  %408 = vrot.lane.b32.xlu1 %v10839_v50, %s18578_s16  ;;  %s18635_s16 = smov 28  }
 0x124   : > { %405 = vrot.lane.b32.xlu0 %v10839_v50, %s18579_s13  ;;  %v1131_v35 = vrot.slane %v1102_v19, 4  ;;  %v1134_v3 = vsel %vm523_vm0, %v1102_v19, %v1133_v57 }
 0x125   : > { %v11138_v43 = vpop.permute.xlu2 %311  ;;  %v282_v56 = vpop.permute.xlu1 %281  ;;  %v11162_v57 = vperm.slane %v1134_v3, %v10671_v37 }
 0x126   : > { %v279_v47 = vpop.permute.xlu0 %278  ;;  %v1119_v42 = vrot.slane %v282_v56, 4  ;;  %v1122_v45 = vsel %vm523_vm0, %v282_v56, %v1121_v7  ;;  %v1132_v19 = vsel %vm523_vm0, %v1131_v35, %v1090_v12 }
 0x127   : > { %v1107_v8 = vrot.slane %v279_v47, 4  ;;  %v1110_v27 = vsel %vm523_vm0, %v279_v47, %v1109_v32  ;;  %v1130_v52 = vperm.slane %v1122_v45, %v10647_v13  ;;  %v1197_v32 = vrot.slane %v11036_v62, 4  ;;  %18583 = vst [vmem:[#allocation73_spill] sm:$0xff] %v11162_v57 }
 0x128   : > { %v1118_v30 = vperm.slane %v1110_v27, %v10647_v13  ;;  %v1120_v5 = vsel %vm523_vm0, %v1119_v42, %v10984_v44  ;;  %v1144_v27 = vsel %vm523_vm0, %v1143_v25, %v1094_v55  ;;  %v11173_v3 = vperm.slane %v1132_v19, %v10671_v37 }
 0x129   : > { %v1108_v40 = vsel %vm523_vm0, %v1107_v8, %v273_v2  ;;  %v1126_v34 = vperm.slane %v1120_v5, %v10647_v13  ;;  %v1167_v11 = vrot.slane %v1130_v52, 4  ;;  %v1207_v55 = vrot.slane %v11074_v15, 4 }
 0x12a   : > { %v1114_v7 = vperm.slane %v1108_v40, %v10647_v13  ;;  %v1169_v56 = vrot.slane %v1118_v30, 4  ;;  %v1154_v40 = vperm.slane %v1146_v38, %v10671_v37  ;;  %18584 = vst [vmem:[#allocation74_spill] sm:$0xff] %v11173_v3 }
 0x12b   : > { %420 = vrot.lane.b32.xlu2 %v10839_v50, %s18580_s14  ;;  %417 = vrot.lane.b32.xlu1 %v10839_v50, %s18581_s22  ;;  %v1155_v5 = vrot.slane %v1126_v34, 4  ;;  %s18627_s22 = smov 36  }
 0x12c   : > { %v1157_v49 = vrot.slane %v1114_v7, 4  ;;  %414 = vrot.lane.b32.xlu0 %v10839_v50, %s18582_s23  ;;  %v1170_v44 = vsel %vm523_vm0, %v1130_v52, %v1169_v56  ;;  %v1185_v52 = vrot.slane %v11162_v57, 4 }
 0x12d   : > { %v11158_v2 = vpop.permute.xlu2 %320  ;;  %v1178_v47 = vperm.slane %v1170_v44, %v10671_v37  ;;  %v291_v42 = vpop.permute.xlu1 %290  ;;  %v1156_v25 = vsel %vm523_vm0, %v1155_v5, %v1114_v7  ;;  %v1193_v7 = vrot.slane %v1154_v40, 4  ;;  %v1181_v5 = vrot.slane %v11173_v3, 4 }
 0x12e   : > { %v288_v45 = vpop.permute.xlu0 %287  ;;  %v1158_v8 = vsel %vm523_vm0, %v1126_v34, %v1157_v49  ;;  %v1195_v56 = vrot.slane %v291_v42, 4  ;;  %v1198_v16 = vsel %vm523_vm0, %v291_v42, %v1197_v32  ;;  %v11184_v32 = vperm.slane %v1144_v27, %v10671_v37 }
 0x12f   : > { %v1209_v59 = vrot.slane %v288_v45, 4  ;;  %v11170_v35 = vperm.slane %v1198_v16, %v10647_v13  ;;  %v11176_v12 = vperm.slane %v1158_v8, %v10671_v37  ;;  %v1191_v38 = vrot.slane %v1178_v47, 4 }
 0x130   : > { %18586 = vst [vmem:[#allocation76_spill] sm:$0xff] %v11184_v32  ;;  %v1168_v16 = vsel %vm523_vm0, %v1167_v11, %v1118_v30  ;;  %v1196_v49 = vsel %vm523_vm0, %v1195_v56, %v11036_v62  ;;  %v11202_v30 = vperm.slane %v1156_v25, %v10671_v37  ;;  %v1208_v42 = vsel %vm523_vm0, %v1207_v55, %v288_v45 }
 0x131   : > { %18585 = vst [vmem:[#allocation75_spill] sm:$0xff] %v11176_v12  ;;  %v1210_v34 = vsel %vm523_vm0, %v11074_v15, %v1209_v59  ;;  %v11193_v59 = vsel %vm523_vm0, %v11176_v12, %v1185_v52  ;;  %v1257_v44 = vrot.slane %v11170_v35, 4  ;;  %v11205_v62 = vsel %vm523_vm0, %v1191_v38, %v1154_v40 }
 0x132   : > { %18588 = vst [vmem:[#allocation77_spill] sm:$0xff] %v11193_v59  ;;  %v1218_v15 = vperm.slane %v1210_v34, %v10647_v13  ;;  %v1202_v19 = vperm.slane %v1196_v49, %v10647_v13  ;;  %v11213_v56 = vperm.slane %v1168_v16, %v10671_v37  ;;  %v11216_v34 = vsel %vm523_vm0, %v1178_v47, %v1193_v7 }
 0x133   : > { %429 = vrot.lane.b32.xlu2 %v10839_v50, %s18587_s0  ;;  %426 = vrot.lane.b32.xlu1 %v10839_v50, %s18589_s15  ;;  %18591 = vst [vmem:[#allocation78_spill] sm:$0xff] %v11202_v30  ;;  %v11221_v52 = vsel %vm523_vm0, %v11202_v30, %v1181_v5  ;;  %v1189_v38 = vrot.slane %v11184_v32, 4  ;;  %v1219_v49 = vrot.slane %v11122_v0, 4  ;;  %v1214_v45 = vperm.slane %v1208_v42, %v10647_v13  ;;  %s18626_s15 = smov 34  }
 0x134   : > { %423 = vrot.lane.b32.xlu0 %v10839_v50, %s18590_s8  ;;  %18592 = vst [vmem:[#allocation79_spill] sm:$0xff] %v11205_v62  ;;  %v1258_v40 = vsel %vm523_vm0, %v1218_v15, %v1257_v44  ;;  %v1245_v16 = vrot.slane %v1202_v19, 4  ;;  %v1255_v32 = vrot.slane %v1218_v15, 4 }
 0x135   : > { %v11207_v11 = vpop.permute.xlu2 %329  ;;  %v300_v8 = vpop.permute.xlu1 %299  ;;  %18593 = vst [vmem:[#allocation80_spill] sm:$0xff] %v11213_v56  ;;  %v11230_v47 = vsel %vm523_vm0, %v11213_v56, %v1189_v38 }
 0x136   : > { %v297_v27 = vpop.permute.xlu0 %296  ;;  %18594 = vst [vmem:[#allocation81_spill] sm:$0xff] %v11216_v34  ;;  %v1233_v7 = vrot.slane %v300_v8, 4 }
 0x137   : > { %v1221_v25 = vrot.slane %v297_v27, 4  ;;  %18595 = vst [vmem:[#allocation82_spill] sm:$0xff] %v11221_v52  ;;  %v1220_v44 = vsel %vm523_vm0, %v1219_v49, %v297_v27  ;;  %v1246_v27 = vsel %vm523_vm0, %v1214_v45, %v1245_v16 }
 0x138   : > { %18596 = vst [vmem:[#allocation83_spill] sm:$0xff] %v11230_v47  ;;  %v11250_v48 = vperm.slane %v1246_v27, %v10671_v37 }
 0x139   : > { %v1222_v55 = vsel %vm523_vm0, %v11122_v0, %v1221_v25  ;;  %v1243_v0 = vrot.slane %v1214_v45, 4  ;;  %v1226_v25 = vperm.slane %v1220_v44, %v10647_v13 }
 0x13a   : > { %v1230_v5 = vperm.slane %v1222_v55, %v10647_v13  ;;  %v1266_v55 = vperm.slane %v1258_v40, %v10671_v37  ;;  %18600 = vst [vmem:[#allocation84_spill] sm:$0xff] %v11250_v48 }
 0x13b   : > { %438 = vrot.lane.b32.xlu2 %v10839_v50, %s18597_s7  ;;  %435 = vrot.lane.b32.xlu1 %v10839_v50, %s18598_s12  ;;  %v1244_v56 = vsel %vm523_vm0, %v1243_v0, %v1202_v19  ;;  %v1269_v44 = vrot.slane %v1226_v25, 4  ;;  %s18619_s12 = smov 42  }
 0x13c   : > { %432 = vrot.lane.b32.xlu0 %v10839_v50, %s18599_s9  ;;  %v1281_v34 = vrot.slane %v1230_v5, 4  ;;  %v1305_v15 = vrot.slane %v1266_v55, 4 }
 0x13d   : > { %v11240_v42 = vpop.permute.xlu2 %339  ;;  %v309_v38 = vpop.permute.xlu1 %308 }
 0x13e   : > { %v306_v47 = vpop.permute.xlu0 %305 }
 0x13f   : > { %v1231_v49 = vrot.slane %v306_v47, 4  ;;  %v1234_v52 = vsel %vm523_vm0, %v306_v47, %v1233_v7  ;;  %v1309_v47 = vrot.slane %v309_v38, 4  ;;  %v1256_v7 = vsel %vm523_vm0, %v1255_v32, %v11170_v35 }
 0x140   : > { %v1242_v62 = vperm.slane %v1234_v52, %v10647_v13  ;;  %v11283_v32 = vperm.slane %v1256_v7, %v10671_v37 }
 0x141   : > { %v1232_v59 = vsel %vm523_vm0, %v1231_v49, %v300_v8  ;;  %v1321_v8 = vrot.slane %v11138_v43, 4 }
 0x142   : > { %v1238_v14 = vperm.slane %v1232_v59, %v10647_v13  ;;  %v1279_v45 = vrot.slane %v1242_v62, 4  ;;  %v1282_v16 = vsel %vm523_vm0, %v1242_v62, %v1281_v34  ;;  %v11266_v62 = vperm.slane %v1244_v56, %v10671_v37  ;;  %18607 = vst [vmem:[#allocation88_spill] sm:$0xff] %v11283_v32 }
 0x143   : > { %447 = vrot.lane.b32.xlu2 %v10839_v50, %s18601_s19  ;;  %v1290_v40 = vperm.slane %v1282_v16, %v10671_v37  ;;  %444 = vrot.lane.b32.xlu1 %v10839_v50, %s18602_s6  ;;  %v1301_v7 = vrot.slane %v11283_v32, 4  ;;  %s18618_s6 = smov 40  }
 0x144   : > { %v1267_v52 = vrot.slane %v1238_v14, 4  ;;  %441 = vrot.lane.b32.xlu0 %v10839_v50, %s18603_s18  ;;  %v1270_v59 = vsel %vm523_vm0, %v1238_v14, %v1269_v44  ;;  %18604 = vst [vmem:[#allocation85_spill] sm:$0xff] %v11266_v62  ;;  %v1297_v14 = vrot.slane %v11250_v48, 4  ;;  %v1280_v44 = vsel %vm523_vm0, %v1279_v45, %v1230_v5 }
 0x145   : > { %v11263_v19 = vpop.permute.xlu2 %348  ;;  %v11269_v34 = vperm.slane %v1270_v59, %v10671_v37  ;;  %v11274_v0 = vsel %vm523_vm0, %v1290_v40, %v1305_v15  ;;  %v318_v27 = vpop.permute.xlu1 %317  ;;  %v1303_v18 = vrot.slane %v1290_v40, 4 }
 0x146   : > { %18606 = vst [vmem:[#allocation87_spill] sm:$0xff] %v11274_v0  ;;  %v315_v49 = vpop.permute.xlu0 %314  ;;  %v1268_v16 = vsel %vm523_vm0, %v1267_v52, %v1226_v25  ;;  %v1319_v56 = vrot.slane %v318_v27, 4  ;;  %v1322_v29 = vsel %vm523_vm0, %v318_v27, %v1321_v8  ;;  %v1293_v52 = vrot.slane %v11266_v62, 4 }
 0x147   : > { %18605 = vst [vmem:[#allocation86_spill] sm:$0xff] %v11269_v34  ;;  %v1307_v59 = vrot.slane %v315_v49, 4  ;;  %v1310_v10 = vsel %vm523_vm0, %v315_v49, %v1309_v47  ;;  %v11287_v25 = vperm.slane %v1268_v16, %v10671_v37  ;;  %v11291_v5 = vsel %vm523_vm0, %v11269_v34, %v1297_v14 }
 0x148   : > { %v1318_v35 = vperm.slane %v1310_v10, %v10647_v13  ;;  %18609 = vst [vmem:[#allocation90_spill] sm:$0xff] %v11291_v5  ;;  %v1330_v45 = vperm.slane %v1322_v29, %v10647_v13  ;;  %v11296_v47 = vperm.slane %v1280_v44, %v10671_v37  ;;  %v1320_v10 = vsel %vm523_vm0, %v1319_v56, %v11138_v43 }
 0x149   : > { %v1308_v15 = vsel %vm523_vm0, %v1307_v59, %v309_v38  ;;  %18608 = vst [vmem:[#allocation89_spill] sm:$0xff] %v11287_v25  ;;  %v11303_v38 = vsel %vm523_vm0, %v1303_v18, %v1266_v55  ;;  %v1333_v43 = vrot.slane %v11158_v2, 4  ;;  %v1343_v27 = vrot.slane %v11207_v11, 4 }
 0x14a   : > { %v1314_v40 = vperm.slane %v1308_v15, %v10647_v13  ;;  %v1369_v8 = vrot.slane %v1318_v35, 4  ;;  %18610 = vst [vmem:[#allocation91_spill] sm:$0xff] %v11296_v47  ;;  %v11318_v18 = vsel %vm523_vm0, %v11287_v25, %v1293_v52  ;;  %v1326_v55 = vperm.slane %v1320_v10, %v10647_v13 }
 0x14b   : > { %456 = vrot.lane.b32.xlu2 %v10839_v50, %s18611_s1  ;;  %18612 = vst [vmem:[#allocation92_spill] sm:$0xff] %v11303_v38  ;;  %453 = vrot.lane.b32.xlu1 %v10839_v50, %s18613_s10  ;;  %v11323_v56 = vsel %vm523_vm0, %v11296_v47, %v1301_v7  ;;  %s18617_s10 = smov 38  }
 0x14c   : > { %450 = vrot.lane.b32.xlu0 %v10839_v50, %s18614_s21  ;;  %v1370_v29 = vsel %vm523_vm0, %v1330_v45, %v1369_v8  ;;  %18615 = vst [vmem:[#allocation93_spill] sm:$0xff] %v11318_v18  ;;  %v1357_v16 = vrot.slane %v1314_v40, 4 }
 0x14d   : > { %v11314_v49 = vpop.permute.xlu2 %357  ;;  %v327_v14 = vpop.permute.xlu1 %326  ;;  %18616 = vst [vmem:[#allocation94_spill] sm:$0xff] %v11323_v56 }
 0x14e   : > { %v324_v44 = vpop.permute.xlu0 %323  ;;  %v1331_v59 = vrot.slane %v327_v14, 4  ;;  %v1334_v15 = vsel %vm523_vm0, %v327_v14, %v1333_v43  ;;  %v1358_v43 = vsel %vm523_vm0, %v1326_v55, %v1357_v16  ;;  %v1355_v14 = vrot.slane %v1326_v55, 4 }
 0x14f   : > { %v1344_v8 = vsel %vm523_vm0, %v1343_v27, %v324_v44  ;;  %v1345_v0 = vrot.slane %v324_v44, 4  ;;  %v1342_v38 = vperm.slane %v1334_v15, %v10647_v13  ;;  %v1421_v27 = vrot.slane %v10839_v50, 4 }
 0x150   : > { %v1332_v52 = vsel %vm523_vm0, %v1331_v59, %v11158_v2  ;;  %v1350_v18 = vperm.slane %v1344_v8, %v10647_v13  ;;  %v1367_v44 = vrot.slane %v1330_v45, 4  ;;  %v11347_v55 = vperm.slane %v1358_v43, %v10671_v37 }
 0x151   : > { %v1346_v10 = vsel %vm523_vm0, %v11207_v11, %v1345_v0  ;;  %v1338_v32 = vperm.slane %v1332_v52, %v10647_v13  ;;  %v1393_v7 = vrot.slane %v1342_v38, 4 }
 0x152   : > { %v1354_v56 = vperm.slane %v1346_v10, %v10647_v13  ;;  %v1379_v0 = vrot.slane %v1350_v18, 4  ;;  %18620 = vst [vmem:[#allocation95_spill] sm:$0xff] %v11347_v55  ;;  %v1378_v10 = vperm.slane %v1370_v29, %v10671_v37  ;;  %v1409_v29 = vrot.slane %v11347_v55, 4 }
 0x153   : > { %465 = vrot.lane.b32.xlu2 %v10839_v50, %s18617_s10  ;;  %v1381_v2 = vrot.slane %v1338_v32, 4  ;;  %462 = vrot.lane.b32.xlu1 %v10839_v50, %s18618_s6  ;;  %s18623_s6 = smov 32  }
 0x154   : > { %459 = vrot.lane.b32.xlu0 %v10839_v50, %s18619_s12  ;;  %v1394_v11 = vsel %vm523_vm0, %v1354_v56, %v1393_v7  ;;  %v1391_v45 = vrot.slane %v1354_v56, 4  ;;  %v1356_v7 = vsel %vm523_vm0, %v1355_v14, %v1314_v40  ;;  %v1380_v56 = vsel %vm523_vm0, %v1379_v0, %v1338_v32 }
 0x155   : > { %v11344_v59 = vpop.permute.xlu2 %366  ;;  %v1402_v16 = vperm.slane %v1394_v11, %v10671_v37  ;;  %v1382_v15 = vsel %vm523_vm0, %v1350_v18, %v1381_v2  ;;  %v337_v8 = vpop.permute.xlu1 %336  ;;  %v1368_v11 = vsel %vm523_vm0, %v1367_v44, %v1318_v35  ;;  %v1417_v44 = vrot.slane %v1378_v10, 4 }
 0x156   : > { %v334_v52 = vpop.permute.xlu0 %333  ;;  %v1419_v5 = vrot.slane %v337_v8, 4  ;;  %v1422_v47 = vsel %vm523_vm0, %v337_v8, %v1421_v27  ;;  %v11358_v43 = vperm.slane %v1382_v15, %v10671_v37  ;;  %v1392_v14 = vsel %vm523_vm0, %v1391_v45, %v1342_v38 }
 0x157   : > { %v1433_v33 = vrot.slane %v334_v52, 4  ;;  %v11355_v26 = vperm.slane %v1422_v47, %v10647_v13  ;;  %v1415_v2 = vrot.slane %v1402_v16, 4  ;;  %v11370_v47 = vperm.slane %v1356_v7, %v10671_v37 }
 0x158   : > { %18621 = vst [vmem:[#allocation96_spill] sm:$0xff] %v11358_v43  ;;  %v1420_v35 = vsel %vm523_vm0, %v1419_v5, %v10839_v50  ;;  %v11382_v32 = vperm.slane %v1368_v11, %v10671_v37  ;;  %v1431_v0 = vrot.slane %v11240_v42, 4  ;;  %v11390_v5 = vperm.slane %v1380_v56, %v10671_v37 }
 0x159   : > { %v1434_v18 = vsel %vm523_vm0, %v11240_v42, %v1433_v33  ;;  %v1481_v27 = vrot.slane %v11355_v26, 4  ;;  %18622 = vst [vmem:[#allocation97_spill] sm:$0xff] %v11370_v47  ;;  %v11379_v33 = vsel %vm523_vm0, %v11358_v43, %v1409_v29  ;;  %v11393_v38 = vsel %vm523_vm0, %v1415_v2, %v1378_v10 }
 0x15a   : > { %v11367_v40 = vperm.slane %v1434_v18, %v10647_v13  ;;  %18624 = vst [vmem:[#allocation98_spill] sm:$0xff] %v11379_v33  ;;  %v11398_v45 = vperm.slane %v1392_v14, %v10671_v37  ;;  %v11401_v8 = vsel %vm523_vm0, %v1402_v16, %v1417_v44  ;;  %v1426_v42 = vperm.slane %v1420_v35, %v10647_v13 }
 0x15b   : > { %474 = vrot.lane.b32.xlu2 %v10839_v50, %s18623_s6  ;;  %18625 = vst [vmem:[#allocation99_spill] sm:$0xff] %v11382_v32  ;;  %471 = vrot.lane.b32.xlu1 %v10839_v50, %s18626_s15  ;;  %v1432_v7 = vsel %vm523_vm0, %v1431_v0, %v334_v52  ;;  %v1405_v10 = vrot.slane %v11370_v47, 4  ;;  %v1413_v2 = vrot.slane %v11382_v32, 4  ;;  %v1443_v16 = vrot.slane %v11263_v19, 4  ;;  %s18634_s15 = smov 26  }
 0x15c   : > { %468 = vrot.lane.b32.xlu0 %v10839_v50, %s18627_s22  ;;  %18628 = vst [vmem:[#allocation100_spill] sm:$0xff] %v11390_v5  ;;  %v1482_v56 = vsel %vm523_vm0, %v11367_v40, %v1481_v27  ;;  %v1438_v35 = vperm.slane %v1432_v7, %v10647_v13  ;;  %v1469_v27 = vrot.slane %v1426_v42, 4  ;;  %v1479_v33 = vrot.slane %v11367_v40, 4 }
 0x15d   : > { %18629 = vst [vmem:[#allocation101_spill] sm:$0xff] %v11393_v38  ;;  %v11395_v15 = vpop.permute.xlu2 %375  ;;  %v346_v11 = vpop.permute.xlu1 %345  ;;  %v11411_v14 = vsel %vm523_vm0, %v11390_v5, %v1405_v10  ;;  %v11419_v44 = vsel %vm523_vm0, %v11398_v45, %v1413_v2 }
 0x15e   : > { %18630 = vst [vmem:[#allocation102_spill] sm:$0xff] %v11398_v45  ;;  %v343_v18 = vpop.permute.xlu0 %342  ;;  %v1457_v0 = vrot.slane %v346_v11, 4 }
 0x15f   : > { %18631 = vst [vmem:[#allocation103_spill] sm:$0xff] %v11401_v8  ;;  %v1445_v29 = vrot.slane %v343_v18, 4  ;;  %v1444_v8 = vsel %vm523_vm0, %v1443_v16, %v343_v18  ;;  %v1470_v18 = vsel %vm523_vm0, %v1438_v35, %v1469_v27 }
 0x160   : > { %18632 = vst [vmem:[#allocation104_spill] sm:$0xff] %v11411_v14 }
 0x161   : > { %v1446_v52 = vsel %vm523_vm0, %v11263_v19, %v1445_v29  ;;  %18633 = vst [vmem:[#allocation105_spill] sm:$0xff] %v11419_v44  ;;  %v1467_v19 = vrot.slane %v1438_v35, 4  ;;  %v1450_v29 = vperm.slane %v1444_v8, %v10647_v13  ;;  %v11440_v8 = vperm.slane %v1470_v18, %v10671_v37 }
 0x162   : > { %v1454_v10 = vperm.slane %v1446_v52, %v10647_v13  ;;  %v1490_v52 = vperm.slane %v1482_v56, %v10671_v37 }
 0x163   : > { %483 = vrot.lane.b32.xlu2 %v10839_v50, %s18634_s15  ;;  %480 = vrot.lane.b32.xlu1 %v10839_v50, %s18635_s16  ;;  %v1468_v20 = vsel %vm523_vm0, %v1467_v19, %v1426_v42  ;;  %18637 = vst [vmem:[#allocation106_spill] sm:$0xff] %v11440_v8  ;;  %v1493_v24 = vrot.slane %v1450_v29, 4  ;;  %s18638_s16 = smov 20   ;;  %v1480_v19 = vsel %vm523_vm0, %v1479_v33, %v11355_v26 }
 0x164   : > { %477 = vrot.lane.b32.xlu0 %v10839_v50, %s18636_s27  ;;  %v1505_v38 = vrot.slane %v1454_v10, 4  ;;  %v1529_v40 = vrot.slane %v1490_v52, 4 }
 0x165   : > { %v11429_v7 = vpop.permute.xlu2 %384  ;;  %v355_v2 = vpop.permute.xlu1 %354 }
 0x166   : > { %v352_v44 = vpop.permute.xlu0 %351 }
 0x167   : > { %v1455_v16 = vrot.slane %v352_v44, 4  ;;  %v1458_v14 = vsel %vm523_vm0, %v352_v44, %v1457_v0  ;;  %v1533_v0 = vrot.slane %v355_v2, 4 }
 0x168   : > { %v1466_v32 = vperm.slane %v1458_v14, %v10647_v13 }
 0x169   : > { %v1456_v45 = vsel %vm523_vm0, %v1455_v16, %v346_v11  ;;  %v1545_v11 = vrot.slane %v11314_v49, 4 }
 0x16a   : > { %v1462_v35 = vperm.slane %v1456_v45, %v10647_v13  ;;  %v1503_v27 = vrot.slane %v1466_v32, 4  ;;  %v1506_v44 = vsel %vm523_vm0, %v1466_v32, %v1505_v38  ;;  %v11456_v32 = vperm.slane %v1468_v20, %v10671_v37 }
 0x16b   : > { %492 = vrot.lane.b32.xlu2 %v10839_v50, %s18638_s16  ;;  %v1514_v56 = vperm.slane %v1506_v44, %v10671_v37  ;;  %489 = vrot.lane.b32.xlu1 %v10839_v50, %s18639_s26  ;;  %s18648_s26 = smov 14  }
 0x16c   : > { %v1491_v14 = vrot.slane %v1462_v35, 4  ;;  %486 = vrot.lane.b32.xlu0 %v10839_v50, %s18640_s29  ;;  %v1494_v45 = vsel %vm523_vm0, %v1462_v35, %v1493_v24  ;;  %18641 = vst [vmem:[#allocation107_spill] sm:$0xff] %v11456_v32  ;;  %v1521_v24 = vrot.slane %v11440_v8, 4  ;;  %v1504_v35 = vsel %vm523_vm0, %v1503_v27, %v1454_v10 }
 0x16d   : > { %v11453_v42 = vpop.permute.xlu2 %393  ;;  %v11459_v38 = vperm.slane %v1494_v45, %v10671_v37  ;;  %v11464_v18 = vsel %vm523_vm0, %v1514_v56, %v1529_v40  ;;  %v364_v16 = vpop.permute.xlu1 %363  ;;  %v1527_v28 = vrot.slane %v1514_v56, 4  ;;  %v11474_v40 = vperm.slane %v1480_v19, %v10671_v37  ;;  %v11492_v19 = vld [vmem:[%s10533_s24 + $0x8] sm:$0xff] }
 0x16e   : > { %18643 = vst [vmem:[#allocation109_spill] sm:$0xff] %v11464_v18  ;;  %v361_v44 = vpop.permute.xlu0 %360  ;;  %v1492_v50 = vsel %vm523_vm0, %v1491_v14, %v1450_v29  ;;  %v1543_v20 = vrot.slane %v364_v16, 4  ;;  %v1546_v45 = vsel %vm523_vm0, %v364_v16, %v1545_v11  ;;  %v11489_v14 = vperm.slane %v1504_v35, %v10671_v37 }
 0x16f   : > { %18642 = vst [vmem:[#allocation108_spill] sm:$0xff] %v11459_v38  ;;  %v1531_v55 = vrot.slane %v361_v44, 4  ;;  %v1534_v43 = vsel %vm523_vm0, %v361_v44, %v1533_v0  ;;  %v1554_v26 = vperm.slane %v1546_v45, %v10647_v13  ;;  %v11480_v27 = vperm.slane %v1492_v50, %v10671_v37 }
 0x170   : > { %v1542_v33 = vperm.slane %v1534_v43, %v10647_v13  ;;  %18644 = vst [vmem:[#allocation110_spill] sm:$0xff] %v11474_v40  ;;  %v1544_v29 = vsel %vm523_vm0, %v1543_v20, %v11314_v49  ;;  %v11484_v56 = vsel %vm523_vm0, %v11459_v38, %v1521_v24  ;;  %v11497_v49 = vsel %vm523_vm0, %v1527_v28, %v1490_v52 }
 0x171   : > { %v1532_v10 = vsel %vm523_vm0, %v1531_v55, %v355_v2  ;;  %18645 = vst [vmem:[#allocation111_spill] sm:$0xff] %v11480_v27  ;;  %v1550_v0 = vperm.slane %v1544_v29, %v10647_v13  ;;  %v1517_v55 = vrot.slane %v11456_v32, 4  ;;  %v1525_v50 = vrot.slane %v11474_v40, 4 }
 0x172   : > { %18646 = vst [vmem:[#allocation112_spill] sm:$0xff] %v11484_v56  ;;  %v1538_v11 = vperm.slane %v1532_v10, %v10647_v13  ;;  %v1593_v43 = vrot.slane %v1542_v33, 4  ;;  %v1557_v24 = vrot.slane %v11344_v59, 4  ;;  %v1567_v35 = vrot.slane %v11395_v15, 4 }
 0x173   : > { %18647 = vst [vmem:[#allocation113_spill] sm:$0xff] %v11489_v14  ;;  %501 = vrot.lane.b32.xlu2 %v11492_v19, %s18648_s26  ;;  %v1579_v2 = vrot.slane %v1550_v0, 4  ;;  %498 = vrot.lane.b32.xlu1 %v11492_v19, %s18650_s30  ;;  %v1591_v28 = vrot.slane %v1554_v26, 4  ;;  %v11512_v20 = vsel %vm523_vm0, %v11480_v27, %v1517_v55  ;;  %v11516_v10 = vsel %vm523_vm0, %v11489_v14, %v1525_v50  ;;  %s18654_s30 = smov 8   ;;  %s18658_s26 = smov 12  }
 0x174   : > { %18649 = vst [vmem:[#allocation114_spill] sm:$0xff] %v11497_v49  ;;  %v1581_v16 = vrot.slane %v1538_v11, 4  ;;  %495 = vrot.lane.b32.xlu0 %v11492_v19, %s18651_s2  ;;  %v1594_v44 = vsel %vm523_vm0, %v1554_v26, %v1593_v43 }
 0x175   : > { %v11508_v52 = vpop.permute.xlu2 %402  ;;  %18652 = vst [vmem:[#allocation115_spill] sm:$0xff] %v11512_v20  ;;  %v373_v45 = vpop.permute.xlu1 %372  ;;  %v1580_v8 = vsel %vm523_vm0, %v1579_v2, %v1538_v11 }
 0x176   : > { %v370_v29 = vpop.permute.xlu0 %369  ;;  %18653 = vst [vmem:[#allocation116_spill] sm:$0xff] %v11516_v10  ;;  %v1555_v43 = vrot.slane %v373_v45, 4  ;;  %v1558_v18 = vsel %vm523_vm0, %v373_v45, %v1557_v24  ;;  %v1582_v55 = vsel %vm523_vm0, %v1550_v0, %v1581_v16  ;;  %v1592_v10 = vsel %vm523_vm0, %v1591_v28, %v1542_v33 }
 0x177   : > { %v1568_v49 = vsel %vm523_vm0, %v1567_v35, %v370_v29  ;;  %v1569_v56 = vrot.slane %v370_v29, 4  ;;  %v1566_v26 = vperm.slane %v1558_v18, %v10647_v13  ;;  %v11534_v11 = vperm.slane %v1580_v8, %v10671_v37 }
 0x178   : > { %v1574_v40 = vperm.slane %v1568_v49, %v10647_v13  ;;  %v1556_v20 = vsel %vm523_vm0, %v1555_v43, %v11344_v59  ;;  %v11537_v0 = vperm.slane %v1582_v55, %v10671_v37  ;;  %v1602_v59 = vperm.slane %v1594_v44, %v10671_v37 }
 0x179   : > { %v1570_v50 = vsel %vm523_vm0, %v11395_v15, %v1569_v56  ;;  %v1562_v24 = vperm.slane %v1556_v20, %v10647_v13  ;;  %v1617_v35 = vrot.slane %v1566_v26, 4  ;;  %18655 = vst [vmem:[#allocation117_spill] sm:$0xff] %v11534_v11  ;;  %v11552_v16 = vperm.slane %v1592_v10, %v10671_v37 }
 0x17a   : > { %v1578_v45 = vperm.slane %v1570_v50, %v10647_v13  ;;  %v1603_v18 = vrot.slane %v1574_v40, 4  ;;  %18656 = vst [vmem:[#allocation118_spill] sm:$0xff] %v11537_v0  ;;  %v1641_v50 = vrot.slane %v1602_v59, 4 }
 0x17b   : > { %510 = vrot.lane.b32.xlu2 %v11492_v19, %s18654_s30  ;;  %v1605_v15 = vrot.slane %v1562_v24, 4  ;;  %507 = vrot.lane.b32.xlu1 %v11492_v19, %s18657_s3  ;;  %18660 = vst [vmem:[#allocation120_spill] sm:$0xff] %v11552_v16  ;;  %s18666_s3 = smov 2   ;;  %s18669_s30 = smov 4  }
 0x17c   : > { %v1615_v56 = vrot.slane %v1578_v45, 4  ;;  %504 = vrot.lane.b32.xlu0 %v11492_v19, %s18658_s26  ;;  %v1604_v33 = vsel %vm523_vm0, %v1603_v18, %v1562_v24  ;;  %v1618_v49 = vsel %vm523_vm0, %v1578_v45, %v1617_v35  ;;  %v1629_v24 = vrot.slane %v11534_v11, 4  ;;  %s18670_s26 = smov 6  }
 0x17d   : > { %v11546_v2 = vpop.permute.xlu2 %411  ;;  %v11549_v8 = vperm.slane %v1604_v33, %v10671_v37  ;;  %v1626_v44 = vperm.slane %v1618_v49, %v10671_v37  ;;  %v1606_v28 = vsel %vm523_vm0, %v1574_v40, %v1605_v15  ;;  %v382_v20 = vpop.permute.xlu1 %381  ;;  %v1633_v45 = vrot.slane %v11537_v0, 4 }
 0x17e   : > { %v379_v29 = vpop.permute.xlu0 %378  ;;  %v1616_v43 = vsel %vm523_vm0, %v1615_v56, %v1566_v26  ;;  %v11559_v35 = vperm.slane %v1606_v28, %v10671_v37  ;;  %v1637_v56 = vrot.slane %v11552_v16, 4  ;;  %v1657_v49 = vrot.slane %v382_v20, 4 }
 0x17f   : > { %18659 = vst [vmem:[#allocation119_spill] sm:$0xff] %v11549_v8  ;;  %v1645_v55 = vrot.slane %v379_v29, 4  ;;  %v11563_v10 = vperm.slane %v1616_v43, %v10671_v37  ;;  %v1639_v18 = vrot.slane %v1626_v44, 4  ;;  %v11568_v15 = vsel %vm523_vm0, %v1626_v44, %v1641_v50 }
 0x180   : > { %18661 = vst [vmem:[#allocation121_spill] sm:$0xff] %v11559_v35  ;;  %v11572_v26 = vsel %vm523_vm0, %v11549_v8, %v1629_v24  ;;  %v11577_v33 = vsel %vm523_vm0, %v11559_v35, %v1633_v45 }
 0x181   : > { %18662 = vst [vmem:[#allocation122_spill] sm:$0xff] %v11563_v10  ;;  %v1646_v40 = vsel %vm523_vm0, %v11429_v7, %v1645_v55  ;;  %v11582_v28 = vsel %vm523_vm0, %v1639_v18, %v1602_v59  ;;  %v11586_v44 = vsel %vm523_vm0, %v11563_v10, %v1637_v56  ;;  %v1643_v55 = vrot.slane %v11429_v7, 4 }
 0x182   : > { %18663 = vst [vmem:[#allocation123_spill] sm:$0xff] %v11568_v15  ;;  %v1654_v43 = vperm.slane %v1646_v40, %v10647_v13 }
 0x183   : > { %18664 = vst [vmem:[#allocation124_spill] sm:$0xff] %v11572_v26  ;;  %519 = vrot.lane.b32.xlu2 %v11492_v19, %s18666_s3  ;;  %516 = vrot.lane.b32.xlu1 %v11492_v19, %s18669_s30  ;;  %v1644_v59 = vsel %vm523_vm0, %v1643_v55, %v379_v29  ;;  %s18671_s30 = smov 116   ;;  %s18672_s3 = smov 126   ;;  %v1681_v29 = vrot.slane %v11453_v42, 4 }
 0x184   : > { %18665 = vst [vmem:[#allocation125_spill] sm:$0xff] %v11577_v33  ;;  %513 = vrot.lane.b32.xlu0 %v11492_v19, %s18670_s26  ;;  %v1705_v40 = vrot.slane %v1654_v43, 4  ;;  %v1650_v15 = vperm.slane %v1644_v59, %v10647_v13  ;;  %s18673_s26 = smov 118  }
 0x185   : > { %18667 = vst [vmem:[#allocation126_spill] sm:$0xff] %v11582_v28  ;;  %v11594_v50 = vpop.permute.xlu2 %420  ;;  %v391_v24 = vpop.permute.xlu1 %390 }
 0x186   : > { %18668 = vst [vmem:[#allocation127_spill] sm:$0xff] %v11586_v44  ;;  %v388_v45 = vpop.permute.xlu0 %387  ;;  %v11599_v44 = vld [vmem:[%s10533_s24 + $0x10] sm:$0xff]  ;;  %v1669_v28 = vrot.slane %v391_v24, 4 }
 0x187   : > { %v1655_v18 = vrot.slane %v388_v45, 4  ;;  %v1658_v56 = vsel %vm523_vm0, %v388_v45, %v1657_v49  ;;  %v1693_v45 = vrot.slane %v1650_v15, 4 }
 0x188   : > { %v1666_v26 = vperm.slane %v1658_v56, %v10647_v13 }
 0x189   : > { %v1656_v19 = vsel %vm523_vm0, %v1655_v18, %v382_v20 }
 0x18a   : > { %v1706_v7 = vsel %vm523_vm0, %v1666_v26, %v1705_v40  ;;  %v1662_v49 = vperm.slane %v1656_v19, %v10647_v13 }
 0x18b   : > { %2631 = vrot.lane.b32.xlu2 %v11599_v44, %s18671_s30  ;;  %2616 = vrot.lane.b32.xlu1 %v11599_v44, %s18672_s3 }
 0x18c   : > { %2628 = vrot.lane.b32.xlu0 %v11599_v44, %s18673_s26  ;;  %v1694_v19 = vsel %vm523_vm0, %v1662_v49, %v1693_v45  ;;  %s18674_s26 = smov 124  }
 0x18d   : > { %v11613_v55 = vpop.permute.xlu2 %429  ;;  %v400_v20 = vpop.permute.xlu1 %399 }
 0x18e   : > { %v397_v59 = vpop.permute.xlu0 %396  ;;  %v1679_v18 = vrot.slane %v400_v20, 4  ;;  %v1682_v56 = vsel %vm523_vm0, %v400_v20, %v1681_v29  ;;  %v1691_v29 = vrot.slane %v1662_v49, 4 }
 0x18f   : > { %v1667_v40 = vrot.slane %v397_v59, 4  ;;  %v1670_v33 = vsel %vm523_vm0, %v397_v59, %v1669_v28  ;;  %v1690_v11 = vperm.slane %v1682_v56, %v10647_v13  ;;  %v1703_v28 = vrot.slane %v1666_v26, 4 }
 0x190   : > { %v1678_v16 = vperm.slane %v1670_v33, %v10647_v13  ;;  %v1680_v10 = vsel %vm523_vm0, %v1679_v18, %v11453_v42  ;;  %v1714_v56 = vperm.slane %v1706_v7, %v10671_v37  ;;  %v1692_v38 = vsel %vm523_vm0, %v1691_v29, %v1650_v15 }
 0x191   : > { %v1668_v14 = vsel %vm523_vm0, %v1667_v40, %v391_v24  ;;  %v1686_v0 = vperm.slane %v1680_v10, %v10647_v13  ;;  %v1757_v10 = vrot.slane %v11508_v52, 4  ;;  %v1727_v26 = vrot.slane %v1690_v11, 4 }
 0x192   : > { %v1674_v35 = vperm.slane %v1668_v14, %v10647_v13  ;;  %v1729_v8 = vrot.slane %v1678_v16, 4  ;;  %v11636_v14 = vperm.slane %v1694_v19, %v10671_v37 }
 0x193   : > { %2676 = vrot.lane.b32.xlu2 %v11599_v44, %s18560_s17  ;;  %2619 = vrot.lane.b32.xlu1 %v11599_v44, %s18674_s26  ;;  %v1715_v24 = vrot.slane %v1686_v0, 4  ;;  %s18680_s26 = smov 122  }
 0x194   : > { %v1717_v33 = vrot.slane %v1674_v35, 4  ;;  %2679 = vrot.lane.b32.xlu0 %v11599_v44, %s18576_s28  ;;  %v1730_v42 = vsel %vm523_vm0, %v1690_v11, %v1729_v8  ;;  %18675 = vst [vmem:[#allocation128_spill] sm:$0xff] %v11636_v14  ;;  %v1704_v11 = vsel %vm523_vm0, %v1703_v28, %v1654_v43  ;;  %v1745_v7 = vrot.slane %v11636_v14, 4 }
 0x195   : > { %v11633_v45 = vpop.permute.xlu2 %438  ;;  %v1738_v49 = vperm.slane %v1730_v42, %v10671_v37  ;;  %v409_v20 = vpop.permute.xlu1 %408  ;;  %v1767_v28 = vrot.slane %v11546_v2, 4 }
 0x196   : > { %v406_v59 = vpop.permute.xlu0 %405  ;;  %v1718_v18 = vsel %vm523_vm0, %v1686_v0, %v1717_v33  ;;  %v1755_v40 = vrot.slane %v409_v20, 4  ;;  %v1758_v8 = vsel %vm523_vm0, %v409_v20, %v1757_v10  ;;  %v1716_v0 = vsel %vm523_vm0, %v1715_v24, %v1674_v35 }
 0x197   : > { %v1769_v32 = vrot.slane %v406_v59, 4  ;;  %v11644_v27 = vperm.slane %v1758_v8, %v10647_v13  ;;  %v11647_v19 = vperm.slane %v1718_v18, %v10671_v37  ;;  %v1751_v33 = vrot.slane %v1738_v49, 4 }
 0x198   : > { %v1728_v10 = vsel %vm523_vm0, %v1727_v26, %v1678_v16  ;;  %v11660_v20 = vperm.slane %v1692_v38, %v10671_v37  ;;  %v1756_v43 = vsel %vm523_vm0, %v1755_v40, %v11508_v52  ;;  %v11671_v16 = vperm.slane %v1704_v11, %v10671_v37 }
 0x199   : > { %18676 = vst [vmem:[#allocation129_spill] sm:$0xff] %v11647_v19  ;;  %v1770_v42 = vsel %vm523_vm0, %v11546_v2, %v1769_v32  ;;  %v1817_v15 = vrot.slane %v11644_v27, 4  ;;  %v11668_v32 = vsel %vm523_vm0, %v11647_v19, %v1745_v7  ;;  %v1753_v35 = vrot.slane %v1714_v56, 4 }
 0x19a   : > { %v11657_v29 = vperm.slane %v1770_v42, %v10647_v13  ;;  %18677 = vst [vmem:[#allocation130_spill] sm:$0xff] %v11660_v20  ;;  %v11679_v38 = vperm.slane %v1716_v0, %v10671_v37  ;;  %v11682_v52 = vsel %vm523_vm0, %v1751_v33, %v1714_v56  ;;  %v11687_v26 = vperm.slane %v1728_v10, %v10671_v37 }
 0x19b   : > { %2685 = vrot.lane.b32.xlu2 %v11599_v44, %s18572_s25  ;;  %18678 = vst [vmem:[#allocation131_spill] sm:$0xff] %v11668_v32  ;;  %2622 = vrot.lane.b32.xlu1 %v11599_v44, %s18680_s26  ;;  %v11690_v18 = vsel %vm523_vm0, %v1738_v49, %v1753_v35  ;;  %v1762_v2 = vperm.slane %v1756_v43, %v10647_v13  ;;  %v1741_v56 = vrot.slane %v11660_v20, 4  ;;  %v1749_v7 = vrot.slane %v11671_v16, 4 }
 0x19c   : > { %18679 = vst [vmem:[#allocation132_spill] sm:$0xff] %v11671_v16  ;;  %2688 = vrot.lane.b32.xlu0 %v11599_v44, %s18579_s13  ;;  %v1768_v40 = vsel %vm523_vm0, %v1767_v28, %v406_v59  ;;  %v1818_v42 = vsel %vm523_vm0, %v11657_v29, %v1817_v15  ;;  %v1779_v49 = vrot.slane %v11594_v50, 4  ;;  %s18687_s13 = smov 120   ;;  %v1815_v16 = vrot.slane %v11657_v29, 4 }
 0x19d   : > { %18681 = vst [vmem:[#allocation133_spill] sm:$0xff] %v11679_v38  ;;  %v11684_v24 = vpop.permute.xlu2 %447  ;;  %v418_v8 = vpop.permute.xlu1 %417  ;;  %v11700_v33 = vsel %vm523_vm0, %v11679_v38, %v1741_v56  ;;  %v1774_v10 = vperm.slane %v1768_v40, %v10647_v13  ;;  %v11708_v43 = vsel %vm523_vm0, %v11687_v26, %v1749_v7  ;;  %v1805_v15 = vrot.slane %v1762_v2, 4 }
 0x19e   : > { %18682 = vst [vmem:[#allocation134_spill] sm:$0xff] %v11682_v52  ;;  %v415_v11 = vpop.permute.xlu0 %414  ;;  %v1793_v35 = vrot.slane %v418_v8, 4 }
 0x19f   : > { %18683 = vst [vmem:[#allocation135_spill] sm:$0xff] %v11687_v26  ;;  %v1781_v0 = vrot.slane %v415_v11, 4  ;;  %v1780_v28 = vsel %vm523_vm0, %v1779_v49, %v415_v11  ;;  %v1806_v11 = vsel %vm523_vm0, %v1774_v10, %v1805_v15 }
 0x1a0   : > { %18684 = vst [vmem:[#allocation136_spill] sm:$0xff] %v11690_v18 }
 0x1a1   : > { %18685 = vst [vmem:[#allocation137_spill] sm:$0xff] %v11700_v33  ;;  %v1782_v59 = vsel %vm523_vm0, %v11594_v50, %v1781_v0  ;;  %v1803_v50 = vrot.slane %v1774_v10, 4  ;;  %v1786_v0 = vperm.slane %v1780_v28, %v10647_v13  ;;  %v11729_v28 = vperm.slane %v1806_v11, %v10671_v37 }
 0x1a2   : > { %18686 = vst [vmem:[#allocation138_spill] sm:$0xff] %v11708_v43  ;;  %v1790_v56 = vperm.slane %v1782_v59, %v10647_v13  ;;  %v1826_v59 = vperm.slane %v1818_v42, %v10671_v37 }
 0x1a3   : > { %2694 = vrot.lane.b32.xlu2 %v11599_v44, %s18577_s20  ;;  %2625 = vrot.lane.b32.xlu1 %v11599_v44, %s18687_s13  ;;  %v1804_v26 = vsel %vm523_vm0, %v1803_v50, %v1762_v2  ;;  %18688 = vst [vmem:[#allocation139_spill] sm:$0xff] %v11729_v28  ;;  %v1829_v14 = vrot.slane %v1786_v0, 4  ;;  %v1816_v50 = vsel %vm523_vm0, %v1815_v16, %v11644_v27 }
 0x1a4   : > { %2697 = vrot.lane.b32.xlu0 %v11599_v44, %s18582_s23  ;;  %v1841_v18 = vrot.slane %v1790_v56, 4  ;;  %v1865_v29 = vrot.slane %v1826_v59, 4  ;;  %s18689_s23 = smov 114  }
 0x1a5   : > { %v11718_v40 = vpop.permute.xlu2 %456  ;;  %v427_v7 = vpop.permute.xlu1 %426 }
 0x1a6   : > { %v424_v43 = vpop.permute.xlu0 %423 }
 0x1a7   : > { %v1791_v49 = vrot.slane %v424_v43, 4  ;;  %v1794_v33 = vsel %vm523_vm0, %v424_v43, %v1793_v35  ;;  %v1869_v35 = vrot.slane %v427_v7, 4 }
 0x1a8   : > { %v1802_v52 = vperm.slane %v1794_v33, %v10647_v13 }
 0x1a9   : > { %v1792_v32 = vsel %vm523_vm0, %v1791_v49, %v418_v8  ;;  %v1881_v8 = vrot.slane %v11613_v55, 4 }
 0x1aa   : > { %v1798_v10 = vperm.slane %v1792_v32, %v10647_v13  ;;  %v1839_v15 = vrot.slane %v1802_v52, 4  ;;  %v1842_v43 = vsel %vm523_vm0, %v1802_v52, %v1841_v18  ;;  %v11745_v52 = vperm.slane %v1804_v26, %v10671_v37 }
 0x1ab   : > { %2703 = vrot.lane.b32.xlu2 %v11599_v44, %s18580_s14  ;;  %v1850_v42 = vperm.slane %v1842_v43, %v10671_v37  ;;  %2634 = vrot.lane.b32.xlu1 %v11599_v44, %s18689_s23 }
 0x1ac   : > { %v1827_v33 = vrot.slane %v1798_v10, 4  ;;  %2706 = vrot.lane.b32.xlu0 %v11599_v44, %s18590_s8  ;;  %v1830_v32 = vsel %vm523_vm0, %v1798_v10, %v1829_v14  ;;  %18690 = vst [vmem:[#allocation140_spill] sm:$0xff] %v11745_v52  ;;  %v1857_v14 = vrot.slane %v11729_v28, 4  ;;  %v1840_v10 = vsel %vm523_vm0, %v1839_v15, %v1790_v56  ;;  %s18698_s8 = smov 112  }
 0x1ad   : > { %v11742_v2 = vpop.permute.xlu2 %465  ;;  %v11748_v18 = vperm.slane %v1830_v32, %v10671_v37  ;;  %v11753_v11 = vsel %vm523_vm0, %v1850_v42, %v1865_v29  ;;  %v436_v49 = vpop.permute.xlu1 %435  ;;  %v1863_v19 = vrot.slane %v1850_v42, 4  ;;  %v11763_v29 = vperm.slane %v1816_v50, %v10671_v37 }
 0x1ae   : > { %18692 = vst [vmem:[#allocation142_spill] sm:$0xff] %v11753_v11  ;;  %v433_v43 = vpop.permute.xlu0 %432  ;;  %v1828_v20 = vsel %vm523_vm0, %v1827_v33, %v1786_v0  ;;  %v1879_v26 = vrot.slane %v436_v49, 4  ;;  %v1882_v38 = vsel %vm523_vm0, %v436_v49, %v1881_v8  ;;  %v11778_v42 = vperm.slane %v1840_v10, %v10671_v37 }
 0x1af   : > { %18691 = vst [vmem:[#allocation141_spill] sm:$0xff] %v11748_v18  ;;  %v1867_v32 = vrot.slane %v433_v43, 4  ;;  %v1870_v47 = vsel %vm523_vm0, %v433_v43, %v1869_v35  ;;  %v1890_v27 = vperm.slane %v1882_v38, %v10647_v13  ;;  %v11769_v56 = vperm.slane %v1828_v20, %v10671_v37 }
 0x1b0   : > { %v1878_v16 = vperm.slane %v1870_v47, %v10647_v13  ;;  %18693 = vst [vmem:[#allocation143_spill] sm:$0xff] %v11763_v29  ;;  %v1880_v0 = vsel %vm523_vm0, %v1879_v26, %v11613_v55  ;;  %v11773_v15 = vsel %vm523_vm0, %v11748_v18, %v1857_v14  ;;  %v11783_v55 = vsel %vm523_vm0, %v1863_v19, %v1826_v59 }
 0x1b1   : > { %v1868_v33 = vsel %vm523_vm0, %v1867_v32, %v427_v7  ;;  %18694 = vst [vmem:[#allocation144_spill] sm:$0xff] %v11769_v56  ;;  %v1886_v35 = vperm.slane %v1880_v0, %v10647_v13  ;;  %v1853_v20 = vrot.slane %v11745_v52, 4  ;;  %v1861_v49 = vrot.slane %v11763_v29, 4 }
 0x1b2   : > { %18695 = vst [vmem:[#allocation145_spill] sm:$0xff] %v11773_v15  ;;  %v1874_v38 = vperm.slane %v1868_v33, %v10647_v13  ;;  %v1929_v47 = vrot.slane %v1878_v16, 4  ;;  %v1893_v43 = vrot.slane %v11633_v45, 4  ;;  %v1903_v14 = vrot.slane %v11684_v24, 4 }
 0x1b3   : > { %18696 = vst [vmem:[#allocation146_spill] sm:$0xff] %v11778_v42  ;;  %2712 = vrot.lane.b32.xlu2 %v11599_v44, %s18587_s0  ;;  %v1915_v7 = vrot.slane %v1886_v35, 4  ;;  %2637 = vrot.lane.b32.xlu1 %v11599_v44, %s18698_s8  ;;  %v1927_v19 = vrot.slane %v1890_v27, 4  ;;  %v11798_v10 = vsel %vm523_vm0, %v11769_v56, %v1853_v20  ;;  %v11802_v0 = vsel %vm523_vm0, %v11778_v42, %v1861_v49  ;;  %s18703_s8 = smov 110  }
 0x1b4   : > { %18697 = vst [vmem:[#allocation147_spill] sm:$0xff] %v11783_v55  ;;  %v1917_v8 = vrot.slane %v1874_v38, 4  ;;  %2715 = vrot.lane.b32.xlu0 %v11599_v44, %s18599_s9  ;;  %v1930_v50 = vsel %vm523_vm0, %v1890_v27, %v1929_v47 }
 0x1b5   : > { %v11794_v59 = vpop.permute.xlu2 %474  ;;  %18699 = vst [vmem:[#allocation148_spill] sm:$0xff] %v11798_v10  ;;  %v445_v26 = vpop.permute.xlu1 %444  ;;  %v1916_v15 = vsel %vm523_vm0, %v1915_v7, %v1874_v38 }
 0x1b6   : > { %v442_v32 = vpop.permute.xlu0 %441  ;;  %18700 = vst [vmem:[#allocation149_spill] sm:$0xff] %v11802_v0  ;;  %v1891_v33 = vrot.slane %v445_v26, 4  ;;  %v1894_v47 = vsel %vm523_vm0, %v445_v26, %v1893_v43  ;;  %v1918_v20 = vsel %vm523_vm0, %v1886_v35, %v1917_v8  ;;  %v1928_v0 = vsel %vm523_vm0, %v1927_v19, %v1878_v16 }
 0x1b7   : > { %v1904_v11 = vsel %vm523_vm0, %v1903_v14, %v442_v32  ;;  %v1905_v55 = vrot.slane %v442_v32, 4  ;;  %v1902_v27 = vperm.slane %v1894_v47, %v10647_v13  ;;  %v11823_v35 = vperm.slane %v1918_v20, %v10671_v37 }
 0x1b8   : > { %v1910_v29 = vperm.slane %v1904_v11, %v10647_v13  ;;  %v1892_v10 = vsel %vm523_vm0, %v1891_v33, %v11633_v45  ;;  %v11820_v11 = vperm.slane %v1916_v15, %v10671_v37  ;;  %v1938_v45 = vperm.slane %v1930_v50, %v10671_v37 }
 0x1b9   : > { %v1906_v49 = vsel %vm523_vm0, %v11684_v24, %v1905_v55  ;;  %v1898_v43 = vperm.slane %v1892_v10, %v10647_v13  ;;  %v1953_v14 = vrot.slane %v1902_v27, 4  ;;  %18702 = vst [vmem:[#allocation151_spill] sm:$0xff] %v11823_v35  ;;  %v11838_v8 = vperm.slane %v1928_v0, %v10671_v37 }
 0x1ba   : > { %v1914_v26 = vperm.slane %v1906_v49, %v10647_v13  ;;  %v1939_v32 = vrot.slane %v1910_v29, 4  ;;  %18701 = vst [vmem:[#allocation150_spill] sm:$0xff] %v11820_v11  ;;  %v1977_v49 = vrot.slane %v1938_v45, 4 }
 0x1bb   : > { %2721 = vrot.lane.b32.xlu2 %v11599_v44, %s18597_s7  ;;  %v1941_v24 = vrot.slane %v1898_v43, 4  ;;  %2640 = vrot.lane.b32.xlu1 %v11599_v44, %s18703_s8  ;;  %18705 = vst [vmem:[#allocation153_spill] sm:$0xff] %v11838_v8 }
 0x1bc   : > { %v1951_v38 = vrot.slane %v1914_v26, 4  ;;  %2724 = vrot.lane.b32.xlu0 %v11599_v44, %s18603_s18  ;;  %v1940_v16 = vsel %vm523_vm0, %v1939_v32, %v1898_v43  ;;  %v1954_v55 = vsel %vm523_vm0, %v1914_v26, %v1953_v14  ;;  %v1965_v43 = vrot.slane %v11820_v11, 4  ;;  %s18713_s18 = smov 108  }
 0x1bd   : > { %v11832_v7 = vpop.permute.xlu2 %483  ;;  %v11835_v15 = vperm.slane %v1940_v16, %v10671_v37  ;;  %v1962_v50 = vperm.slane %v1954_v55, %v10671_v37  ;;  %v1942_v19 = vsel %vm523_vm0, %v1910_v29, %v1941_v24  ;;  %v454_v10 = vpop.permute.xlu1 %453  ;;  %v1969_v26 = vrot.slane %v11823_v35, 4 }
 0x1be   : > { %v451_v33 = vpop.permute.xlu0 %450  ;;  %v1952_v47 = vsel %vm523_vm0, %v1951_v38, %v1902_v27  ;;  %v11845_v14 = vperm.slane %v1942_v19, %v10671_v37  ;;  %v1973_v38 = vrot.slane %v11838_v8, 4  ;;  %v1993_v55 = vrot.slane %v454_v10, 4 }
 0x1bf   : > { %18704 = vst [vmem:[#allocation152_spill] sm:$0xff] %v11835_v15  ;;  %v1981_v20 = vrot.slane %v451_v33, 4  ;;  %v11849_v0 = vperm.slane %v1952_v47, %v10671_v37  ;;  %v1975_v32 = vrot.slane %v1962_v50, 4  ;;  %v11854_v24 = vsel %vm523_vm0, %v1962_v50, %v1977_v49 }
 0x1c0   : > { %18706 = vst [vmem:[#allocation154_spill] sm:$0xff] %v11845_v14  ;;  %v11858_v27 = vsel %vm523_vm0, %v11835_v15, %v1965_v43  ;;  %v11863_v16 = vsel %vm523_vm0, %v11845_v14, %v1969_v26 }
 0x1c1   : > { %18707 = vst [vmem:[#allocation155_spill] sm:$0xff] %v11849_v0  ;;  %v1982_v29 = vsel %vm523_vm0, %v11718_v40, %v1981_v20  ;;  %v11868_v19 = vsel %vm523_vm0, %v1975_v32, %v1938_v45  ;;  %v11872_v50 = vsel %vm523_vm0, %v11849_v0, %v1973_v38  ;;  %v1979_v20 = vrot.slane %v11718_v40, 4 }
 0x1c2   : > { %18708 = vst [vmem:[#allocation156_spill] sm:$0xff] %v11854_v24  ;;  %v1990_v47 = vperm.slane %v1982_v29, %v10647_v13  ;;  %v2017_v40 = vrot.slane %v11742_v2, 4 }
 0x1c3   : > { %18709 = vst [vmem:[#allocation157_spill] sm:$0xff] %v11858_v27  ;;  %2730 = vrot.lane.b32.xlu2 %v11599_v44, %s18601_s19  ;;  %2643 = vrot.lane.b32.xlu1 %v11599_v44, %s18713_s18  ;;  %v1980_v45 = vsel %vm523_vm0, %v1979_v20, %v451_v33 }
 0x1c4   : > { %18710 = vst [vmem:[#allocation158_spill] sm:$0xff] %v11863_v16  ;;  %2733 = vrot.lane.b32.xlu0 %v11599_v44, %s18614_s21  ;;  %v1986_v27 = vperm.slane %v1980_v45, %v10647_v13  ;;  %s18714_s21 = smov 106  }
 0x1c5   : > { %18711 = vst [vmem:[#allocation159_spill] sm:$0xff] %v11868_v19  ;;  %v11880_v49 = vpop.permute.xlu2 %492  ;;  %v463_v43 = vpop.permute.xlu1 %462 }
 0x1c6   : > { %18712 = vst [vmem:[#allocation160_spill] sm:$0xff] %v11872_v50  ;;  %v460_v26 = vpop.permute.xlu0 %459  ;;  %v2041_v50 = vrot.slane %v1990_v47, 4  ;;  %v2005_v16 = vrot.slane %v463_v43, 4  ;;  %v2029_v20 = vrot.slane %v1986_v27, 4 }
 0x1c7   : > { %v1991_v32 = vrot.slane %v460_v26, 4  ;;  %v1994_v38 = vsel %vm523_vm0, %v460_v26, %v1993_v55 }
 0x1c8   : > { %v2002_v29 = vperm.slane %v1994_v38, %v10647_v13 }
 0x1c9   : > { %v1992_v24 = vsel %vm523_vm0, %v1991_v32, %v454_v10 }
 0x1ca   : > { %v2042_v19 = vsel %vm523_vm0, %v2002_v29, %v2041_v50  ;;  %v1998_v33 = vperm.slane %v1992_v24, %v10647_v13 }
 0x1cb   : > { %2739 = vrot.lane.b32.xlu2 %v11599_v44, %s18611_s1  ;;  %2646 = vrot.lane.b32.xlu1 %v11599_v44, %s18714_s21  ;;  %s18715_s21 = smov 104  }
 0x1cc   : > { %2742 = vrot.lane.b32.xlu0 %v11599_v44, %s18619_s12  ;;  %v2030_v24 = vsel %vm523_vm0, %v1998_v33, %v2029_v20 }
 0x1cd   : > { %v11896_v55 = vpop.permute.xlu2 %501  ;;  %v472_v10 = vpop.permute.xlu1 %471 }
 0x1ce   : > { %v469_v26 = vpop.permute.xlu0 %468  ;;  %v2015_v50 = vrot.slane %v472_v10, 4  ;;  %v2018_v45 = vsel %vm523_vm0, %v472_v10, %v2017_v40  ;;  %v2027_v40 = vrot.slane %v1998_v33, 4 }
 0x1cf   : > { %v2003_v32 = vrot.slane %v469_v26, 4  ;;  %v2006_v38 = vsel %vm523_vm0, %v469_v26, %v2005_v16  ;;  %v2026_v11 = vperm.slane %v2018_v45, %v10647_v13  ;;  %v2039_v16 = vrot.slane %v2002_v29, 4 }
 0x1d0   : > { %v2014_v8 = vperm.slane %v2006_v38, %v10647_v13  ;;  %v2016_v0 = vsel %vm523_vm0, %v2015_v50, %v11742_v2  ;;  %v2028_v52 = vsel %vm523_vm0, %v2027_v40, %v1986_v27 }
 0x1d1   : > { %v2004_v42 = vsel %vm523_vm0, %v2003_v32, %v463_v43  ;;  %v2022_v35 = vperm.slane %v2016_v0, %v10647_v13  ;;  %v2093_v0 = vrot.slane %v11794_v59, 4  ;;  %v2063_v29 = vrot.slane %v2026_v11, 4 }
 0x1d2   : > { %v2010_v14 = vperm.slane %v2004_v42, %v10647_v13  ;;  %v2065_v15 = vrot.slane %v2014_v8, 4  ;;  %v11919_v42 = vperm.slane %v2030_v24, %v10671_v37  ;;  %v2050_v32 = vperm.slane %v2042_v19, %v10671_v37 }
 0x1d3   : > { %2748 = vrot.lane.b32.xlu2 %v11599_v44, %s18617_s10  ;;  %2649 = vrot.lane.b32.xlu1 %v11599_v44, %s18715_s21  ;;  %v2051_v43 = vrot.slane %v2022_v35, 4  ;;  %v11938_v40 = vperm.slane %v2028_v52, %v10671_v37 }
 0x1d4   : > { %v2053_v10 = vrot.slane %v2010_v14, 4  ;;  %2751 = vrot.lane.b32.xlu0 %v11599_v44, %s18627_s22  ;;  %v2066_v2 = vsel %vm523_vm0, %v2026_v11, %v2065_v15  ;;  %18716 = vst [vmem:[#allocation161_spill] sm:$0xff] %v11919_v42  ;;  %v2081_v19 = vrot.slane %v11919_v42, 4 }
 0x1d5   : > { %v11916_v20 = vpop.permute.xlu2 %510  ;;  %v2074_v33 = vperm.slane %v2066_v2, %v10671_v37  ;;  %v481_v26 = vpop.permute.xlu1 %480  ;;  %v2040_v2 = vsel %vm523_vm0, %v2039_v16, %v1990_v47  ;;  %18718 = vst [vmem:[#allocation163_spill] sm:$0xff] %v11938_v40  ;;  %v2103_v47 = vrot.slane %v11832_v7, 4 }
 0x1d6   : > { %v478_v50 = vpop.permute.xlu0 %477  ;;  %v2054_v45 = vsel %vm523_vm0, %v2022_v35, %v2053_v10  ;;  %v2091_v38 = vrot.slane %v481_v26, 4  ;;  %v2094_v15 = vsel %vm523_vm0, %v481_v26, %v2093_v0  ;;  %v2052_v35 = vsel %vm523_vm0, %v2051_v43, %v2010_v14 }
 0x1d7   : > { %v2105_v28 = vrot.slane %v478_v50, 4  ;;  %v2102_v18 = vperm.slane %v2094_v15, %v10647_v13  ;;  %v11928_v24 = vperm.slane %v2054_v45, %v10671_v37  ;;  %v2087_v10 = vrot.slane %v2074_v33, 4 }
 0x1d8   : > { %v2064_v0 = vsel %vm523_vm0, %v2063_v29, %v2014_v8  ;;  %v2092_v45 = vsel %vm523_vm0, %v2091_v38, %v11794_v59  ;;  %v11949_v14 = vperm.slane %v2040_v2, %v10671_v37  ;;  %v2089_v8 = vrot.slane %v2050_v32, 4 }
 0x1d9   : > { %18717 = vst [vmem:[#allocation162_spill] sm:$0xff] %v11928_v24  ;;  %v2106_v11 = vsel %vm523_vm0, %v11832_v7, %v2105_v28  ;;  %v2153_v26 = vrot.slane %v2102_v18, 4  ;;  %v11946_v28 = vsel %vm523_vm0, %v11928_v24, %v2081_v19  ;;  %v11957_v52 = vperm.slane %v2052_v35, %v10671_v37 }
 0x1da   : > { %v2114_v27 = vperm.slane %v2106_v11, %v10647_v13  ;;  %18719 = vst [vmem:[#allocation164_spill] sm:$0xff] %v11946_v28  ;;  %v11960_v59 = vsel %vm523_vm0, %v2087_v10, %v2050_v32  ;;  %v11965_v43 = vperm.slane %v2064_v0, %v10671_v37  ;;  %v11968_v29 = vsel %vm523_vm0, %v2074_v33, %v2089_v8 }
 0x1db   : > { %2757 = vrot.lane.b32.xlu2 %v11599_v44, %s18623_s6  ;;  %18720 = vst [vmem:[#allocation165_spill] sm:$0xff] %v11949_v14  ;;  %2652 = vrot.lane.b32.xlu1 %v11599_v44, %s18546_s11  ;;  %v2098_v7 = vperm.slane %v2092_v45, %v10647_v13  ;;  %v2104_v38 = vsel %vm523_vm0, %v2103_v47, %v478_v50  ;;  %v2077_v35 = vrot.slane %v11938_v40, 4  ;;  %v2085_v19 = vrot.slane %v11949_v14, 4 }
 0x1dc   : > { %2760 = vrot.lane.b32.xlu0 %v11599_v44, %s18636_s27  ;;  %18721 = vst [vmem:[#allocation166_spill] sm:$0xff] %v11957_v52  ;;  %v2154_v11 = vsel %vm523_vm0, %v2114_v27, %v2153_v26  ;;  %v2115_v33 = vrot.slane %v11880_v49, 4  ;;  %v2110_v0 = vperm.slane %v2104_v38, %v10647_v13  ;;  %v2151_v38 = vrot.slane %v2114_v27, 4 }
 0x1dd   : > { %18722 = vst [vmem:[#allocation167_spill] sm:$0xff] %v11960_v59  ;;  %v11962_v16 = vpop.permute.xlu2 %519  ;;  %v490_v15 = vpop.permute.xlu1 %489  ;;  %v11977_v10 = vsel %vm523_vm0, %v11957_v52, %v2077_v35  ;;  %v11985_v45 = vsel %vm523_vm0, %v11965_v43, %v2085_v19  ;;  %v2141_v26 = vrot.slane %v2098_v7, 4 }
 0x1de   : > { %18723 = vst [vmem:[#allocation168_spill] sm:$0xff] %v11965_v43  ;;  %v487_v2 = vpop.permute.xlu0 %486  ;;  %v2129_v8 = vrot.slane %v490_v15, 4 }
 0x1df   : > { %18724 = vst [vmem:[#allocation169_spill] sm:$0xff] %v11968_v29  ;;  %v2117_v32 = vrot.slane %v487_v2, 4  ;;  %v2116_v47 = vsel %vm523_vm0, %v2115_v33, %v487_v2  ;;  %v2142_v2 = vsel %vm523_vm0, %v2110_v0, %v2141_v26 }
 0x1e0   : > { %18725 = vst [vmem:[#allocation170_spill] sm:$0xff] %v11977_v10  ;;  %v2122_v19 = vperm.slane %v2116_v47, %v10647_v13  ;;  %v12005_v43 = vperm.slane %v2142_v2, %v10671_v37  ;;  %v2152_v47 = vsel %vm523_vm0, %v2151_v38, %v2102_v18 }
 0x1e1   : > { %v2118_v50 = vsel %vm523_vm0, %v11880_v49, %v2117_v32  ;;  %18726 = vst [vmem:[#allocation171_spill] sm:$0xff] %v11985_v45  ;;  %v2139_v49 = vrot.slane %v2110_v0, 4 }
 0x1e2   : > { %v2126_v35 = vperm.slane %v2118_v50, %v10647_v13  ;;  %v2162_v50 = vperm.slane %v2154_v11, %v10671_v37  ;;  %18727 = vst [vmem:[#allocation172_spill] sm:$0xff] %v12005_v43  ;;  %v2165_v42 = vrot.slane %v2122_v19, 4 }
 0x1e3   : > { %2766 = vrot.lane.b32.xlu2 %v11599_v44, %s18634_s15  ;;  %2655 = vrot.lane.b32.xlu1 %v11599_v44, %s18545_s5  ;;  %v2140_v27 = vsel %vm523_vm0, %v2139_v49, %v2098_v7  ;;  %v2217_v7 = vrot.slane %v11896_v55, 4  ;;  %v12028_v49 = vperm.slane %v2152_v47, %v10671_v37  ;;  %s18735_s5 = smov 14  }
 0x1e4   : > { %2769 = vrot.lane.b32.xlu0 %v11599_v44, %s18640_s29  ;;  %v2177_v59 = vrot.slane %v2126_v35, 4  ;;  %s18746_s29 = smov 6  }
 0x1e5   : > { %v11995_v32 = vpop.permute.xlu2 %2631  ;;  %v499_v45 = vpop.permute.xlu1 %498  ;;  %18730 = vst [vmem:[#allocation175_spill] sm:$0xff] %v12028_v49 }
 0x1e6   : > { %v496_v10 = vpop.permute.xlu0 %495 }
 0x1e7   : > { %v2127_v33 = vrot.slane %v496_v10, 4  ;;  %v2130_v29 = vsel %vm523_vm0, %v496_v10, %v2129_v8  ;;  %v2205_v8 = vrot.slane %v499_v45, 4 }
 0x1e8   : > { %v2138_v14 = vperm.slane %v2130_v29, %v10647_v13 }
 0x1e9   : > { %v2128_v28 = vsel %vm523_vm0, %v2127_v33, %v490_v15  ;;  %v2201_v15 = vrot.slane %v2162_v50, 4 }
 0x1ea   : > { %v2134_v0 = vperm.slane %v2128_v28, %v10647_v13  ;;  %v2175_v26 = vrot.slane %v2138_v14, 4  ;;  %v2178_v10 = vsel %vm523_vm0, %v2138_v14, %v2177_v59  ;;  %v12022_v14 = vperm.slane %v2140_v27, %v10671_v37 }
 0x1eb   : > { %2775 = vrot.lane.b32.xlu2 %v11599_v44, %s18638_s16  ;;  %v2186_v29 = vperm.slane %v2178_v10, %v10671_v37  ;;  %2658 = vrot.lane.b32.xlu1 %v11599_v44, %s18544_s4  ;;  %s18738_s16 = smov 12  }
 0x1ec   : > { %v2163_v11 = vrot.slane %v2134_v0, 4  ;;  %2778 = vrot.lane.b32.xlu0 %v11599_v44, %s18651_s2  ;;  %v2166_v18 = vsel %vm523_vm0, %v2134_v0, %v2165_v42  ;;  %18728 = vst [vmem:[#allocation173_spill] sm:$0xff] %v12022_v14  ;;  %v2193_v42 = vrot.slane %v12005_v43, 4  ;;  %v2176_v0 = vsel %vm523_vm0, %v2175_v26, %v2126_v35  ;;  %s18737_s2 = smov 96  }
 0x1ed   : > { %v12019_v28 = vpop.permute.xlu2 %2676  ;;  %v12025_v59 = vperm.slane %v2166_v18, %v10671_v37  ;;  %v12031_v38 = vsel %vm523_vm0, %v2186_v29, %v2201_v15  ;;  %v508_v2 = vpop.permute.xlu1 %507  ;;  %v2199_v40 = vrot.slane %v2186_v29, 4 }
 0x1ee   : > { %18731 = vst [vmem:[#allocation176_spill] sm:$0xff] %v12031_v38  ;;  %v505_v33 = vpop.permute.xlu0 %504  ;;  %v2164_v10 = vsel %vm523_vm0, %v2163_v11, %v2122_v19  ;;  %v2215_v27 = vrot.slane %v508_v2, 4  ;;  %v2218_v24 = vsel %vm523_vm0, %v508_v2, %v2217_v7 }
 0x1ef   : > { %18729 = vst [vmem:[#allocation174_spill] sm:$0xff] %v12025_v59  ;;  %v2203_v18 = vrot.slane %v505_v33, 4  ;;  %v2206_v52 = vsel %vm523_vm0, %v505_v33, %v2205_v8  ;;  %v2226_v47 = vperm.slane %v2218_v24, %v10647_v13  ;;  %v12044_v11 = vperm.slane %v2164_v10, %v10671_v37 }
 0x1f0   : > { %v2214_v15 = vperm.slane %v2206_v52, %v10647_v13  ;;  %v2216_v38 = vsel %vm523_vm0, %v2215_v27, %v11896_v55  ;;  %v12048_v35 = vsel %vm523_vm0, %v12025_v59, %v2193_v42  ;;  %v12053_v24 = vperm.slane %v2176_v0, %v10671_v37 }
 0x1f1   : > { %v2204_v19 = vsel %vm523_vm0, %v2203_v18, %v499_v45  ;;  %18732 = vst [vmem:[#allocation177_spill] sm:$0xff] %v12044_v11  ;;  %v2222_v26 = vperm.slane %v2216_v38, %v10647_v13  ;;  %v12058_v55 = vsel %vm523_vm0, %v2199_v40, %v2162_v50  ;;  %v2189_v52 = vrot.slane %v12022_v14, 4 }
 0x1f2   : > { %18733 = vst [vmem:[#allocation178_spill] sm:$0xff] %v12048_v35  ;;  %v2210_v8 = vperm.slane %v2204_v19, %v10647_v13  ;;  %v2265_v29 = vrot.slane %v2214_v15, 4  ;;  %v2197_v45 = vrot.slane %v12028_v49, 4  ;;  %v2263_v2 = vrot.slane %v2226_v47, 4 }
 0x1f3   : > { %18734 = vst [vmem:[#allocation179_spill] sm:$0xff] %v12053_v24  ;;  %2784 = vrot.lane.b32.xlu2 %v11599_v44, %s18735_s5  ;;  %v2251_v7 = vrot.slane %v2222_v26, 4  ;;  %2661 = vrot.lane.b32.xlu1 %v11599_v44, %s18737_s2  ;;  %v2229_v10 = vrot.slane %v11916_v20, 4  ;;  %v2239_v40 = vrot.slane %v11962_v16, 4  ;;  %v12073_v42 = vsel %vm523_vm0, %v12044_v11, %v2189_v52  ;;  %s18745_s5 = smov 94  }
 0x1f4   : > { %18736 = vst [vmem:[#allocation180_spill] sm:$0xff] %v12058_v55  ;;  %v2253_v33 = vrot.slane %v2210_v8, 4  ;;  %2787 = vrot.lane.b32.xlu0 %v11599_v44, %s18738_s16  ;;  %v2266_v38 = vsel %vm523_vm0, %v2226_v47, %v2265_v29  ;;  %v12078_v19 = vsel %vm523_vm0, %v12053_v24, %v2197_v45  ;;  %s18742_s16 = smov 8  }
 0x1f5   : > { %v12069_v50 = vpop.permute.xlu2 %2685  ;;  %18739 = vst [vmem:[#allocation181_spill] sm:$0xff] %v12073_v42  ;;  %v517_v0 = vpop.permute.xlu1 %516  ;;  %v2252_v18 = vsel %vm523_vm0, %v2251_v7, %v2210_v8  ;;  %v2264_v42 = vsel %vm523_vm0, %v2263_v2, %v2214_v15 }
 0x1f6   : > { %v514_v27 = vpop.permute.xlu0 %513  ;;  %18740 = vst [vmem:[#allocation182_spill] sm:$0xff] %v12078_v19  ;;  %v2227_v55 = vrot.slane %v517_v0, 4  ;;  %v2230_v47 = vsel %vm523_vm0, %v517_v0, %v2229_v10  ;;  %v2254_v52 = vsel %vm523_vm0, %v2222_v26, %v2253_v33  ;;  %v12091_v7 = vperm.slane %v2252_v18, %v10671_v37 }
 0x1f7   : > { %v2240_v29 = vsel %vm523_vm0, %v2239_v40, %v514_v27  ;;  %v2241_v49 = vrot.slane %v514_v27, 4  ;;  %v2238_v35 = vperm.slane %v2230_v47, %v10647_v13  ;;  %v2274_v10 = vperm.slane %v2266_v38, %v10671_v37 }
 0x1f8   : > { %v2246_v43 = vperm.slane %v2240_v29, %v10647_v13  ;;  %v2228_v8 = vsel %vm523_vm0, %v2227_v55, %v11916_v20  ;;  %18741 = vst [vmem:[#allocation183_spill] sm:$0xff] %v12091_v7  ;;  %v12099_v15 = vperm.slane %v2254_v52, %v10671_v37  ;;  %v12102_v20 = vperm.slane %v2264_v42, %v10671_v37 }
 0x1f9   : > { %v2242_v45 = vsel %vm523_vm0, %v11962_v16, %v2241_v49  ;;  %v2234_v40 = vperm.slane %v2228_v8, %v10647_v13  ;;  %v2289_v0 = vrot.slane %v2238_v35, 4  ;;  %v2313_v8 = vrot.slane %v2274_v10, 4 }
 0x1fa   : > { %v2250_v27 = vperm.slane %v2242_v45, %v10647_v13  ;;  %v2275_v47 = vrot.slane %v2246_v43, 4  ;;  %18743 = vst [vmem:[#allocation184_spill] sm:$0xff] %v12099_v15  ;;  %v2301_v45 = vrot.slane %v12091_v7, 4 }
 0x1fb   : > { %2793 = vrot.lane.b32.xlu2 %v11599_v44, %s18742_s16  ;;  %18744 = vst [vmem:[#allocation185_spill] sm:$0xff] %v12102_v20  ;;  %v2277_v16 = vrot.slane %v2234_v40, 4  ;;  %2664 = vrot.lane.b32.xlu1 %v11599_v44, %s18745_s5  ;;  %s18755_s5 = smov 2  }
 0x1fc   : > { %v2287_v49 = vrot.slane %v2250_v27, 4  ;;  %2796 = vrot.lane.b32.xlu0 %v11599_v44, %s18746_s29  ;;  %v2276_v26 = vsel %vm523_vm0, %v2275_v47, %v2234_v40  ;;  %v2290_v55 = vsel %vm523_vm0, %v2250_v27, %v2289_v0  ;;  %v2305_v0 = vrot.slane %v12099_v15, 4  ;;  %s18756_s29 = smov 92  }
 0x1fd   : > { %v12110_v2 = vpop.permute.xlu2 %2694  ;;  %v12113_v33 = vperm.slane %v2276_v26, %v10671_v37  ;;  %v2298_v38 = vperm.slane %v2290_v55, %v10671_v37  ;;  %v2278_v42 = vsel %vm523_vm0, %v2246_v43, %v2277_v16  ;;  %v2617_v18 = vpop.permute.xlu1 %2616  ;;  %v2309_v27 = vrot.slane %v12102_v20, 4  ;;  %v12137_v16 = vld [vmem:[%s10533_s24 + $0x18] sm:$0xff] }
 0x1fe   : > { %v12117_v29 = vpop.permute.xlu0 %2628  ;;  %v2288_v52 = vsel %vm523_vm0, %v2287_v49, %v2238_v35  ;;  %v12122_v40 = vperm.slane %v2278_v42, %v10671_v37 }
 0x1ff   : > { %18747 = vst [vmem:[#allocation186_spill] sm:$0xff] %v12113_v33  ;;  %v12127_v47 = vperm.slane %v2288_v52, %v10671_v37  ;;  %v2311_v26 = vrot.slane %v2298_v38, 4  ;;  %v12130_v43 = vsel %vm523_vm0, %v2298_v38, %v2313_v8  ;;  %v12134_v35 = vsel %vm523_vm0, %v12113_v33, %v2301_v45 }
 0x200   : > { %18748 = vst [vmem:[#allocation187_spill] sm:$0xff] %v12122_v40  ;;  %v12141_v49 = vsel %vm523_vm0, %v12122_v40, %v2305_v0  ;;  %v2997_v38 = vrot.slane %v11599_v44, 4  ;;  %v3009_v0 = vrot.slane %v2617_v18, 4  ;;  %v3033_v33 = vrot.slane %v12117_v29, 4 }
 0x201   : > { %18749 = vst [vmem:[#allocation188_spill] sm:$0xff] %v12127_v47  ;;  %v12144_v55 = vsel %vm523_vm0, %v2311_v26, %v2274_v10  ;;  %v12148_v42 = vsel %vm523_vm0, %v12127_v47, %v2309_v27 }
 0x202   : > { %18750 = vst [vmem:[#allocation189_spill] sm:$0xff] %v12130_v43 }
 0x203   : > { %18751 = vst [vmem:[#allocation190_spill] sm:$0xff] %v12134_v35  ;;  %2802 = vrot.lane.b32.xlu2 %v11599_v44, %s18755_s5  ;;  %2667 = vrot.lane.b32.xlu1 %v11599_v44, %s18756_s29  ;;  %s18757_s5 = smov 90  }
 0x204   : > { %18752 = vst [vmem:[#allocation191_spill] sm:$0xff] %v12141_v49  ;;  %2806 = vrot.lane.b32.xlu0 %v12137_v16, %s18672_s3  ;;  %s18785_s3 = smov 22  }
 0x205   : > { %18753 = vst [vmem:[#allocation192_spill] sm:$0xff] %v12144_v55  ;;  %v12157_v52 = vpop.permute.xlu2 %2703  ;;  %v2620_v8 = vpop.permute.xlu1 %2619 }
 0x206   : > { %18754 = vst [vmem:[#allocation193_spill] sm:$0xff] %v12148_v42  ;;  %v12159_v10 = vpop.permute.xlu0 %2679  ;;  %v2998_v45 = vsel %vm523_vm0, %v2620_v8, %v2997_v38  ;;  %v2995_v26 = vrot.slane %v2620_v8, 4 }
 0x207   : > { %v3006_v27 = vperm.slane %v2998_v45, %v10647_v13 }
 0x208   : > { %v2996_v20 = vsel %vm523_vm0, %v2995_v26, %v11599_v44 }
 0x209   : > { %v3057_v43 = vrot.slane %v3006_v27, 4  ;;  %v3002_v47 = vperm.slane %v2996_v20, %v10647_v13 }
 0x20b   : > { %2812 = vrot.lane.b32.xlu2 %v12137_v16, %s18680_s26  ;;  %2670 = vrot.lane.b32.xlu1 %v11599_v44, %s18757_s5  ;;  %s18758_s26 = smov 88  }
 0x20c   : > { %2815 = vrot.lane.b32.xlu0 %v12137_v16, %s18687_s13 }
 0x20d   : > { %v12169_v42 = vpop.permute.xlu2 %2712  ;;  %v2623_v19 = vpop.permute.xlu1 %2622 }
 0x20e   : > { %v12171_v35 = vpop.permute.xlu0 %2688  ;;  %v3007_v38 = vrot.slane %v2623_v19, 4  ;;  %v3010_v55 = vsel %vm523_vm0, %v2623_v19, %v3009_v0 }
 0x20f   : > { %v3018_v45 = vperm.slane %v3010_v55, %v10647_v13 }
 0x210   : > { %v3008_v49 = vsel %vm523_vm0, %v3007_v38, %v2617_v18  ;;  %v3045_v38 = vrot.slane %v3002_v47, 4 }
 0x211   : > { %v3058_v8 = vsel %vm523_vm0, %v3018_v45, %v3057_v43  ;;  %v3014_v19 = vperm.slane %v3008_v49, %v10647_v13  ;;  %v3055_v24 = vrot.slane %v3018_v45, 4  ;;  %v3019_v43 = vrot.slane %v11995_v32, 4 }
 0x213   : > { %2821 = vrot.lane.b32.xlu2 %v12137_v16, %s18671_s30  ;;  %2673 = vrot.lane.b32.xlu1 %v11599_v44, %s18758_s26  ;;  %v3043_v15 = vrot.slane %v3014_v19, 4  ;;  %v3046_v45 = vsel %vm523_vm0, %v3014_v19, %v3045_v38  ;;  %v3056_v40 = vsel %vm523_vm0, %v3055_v24, %v3006_v27 }
 0x214   : > { %2824 = vrot.lane.b32.xlu0 %v12137_v16, %s18689_s23  ;;  %s18759_s23 = smov 82   ;;  %v12214_v19 = vperm.slane %v3046_v45, %v10671_v37  ;;  %v12217_v24 = vperm.slane %v3056_v40, %v10671_v37 }
 0x215   : > { %v12187_v55 = vpop.permute.xlu2 %2721  ;;  %v2626_v0 = vpop.permute.xlu1 %2625 }
 0x216   : > { %v12189_v26 = vpop.permute.xlu0 %2697  ;;  %v3021_v18 = vrot.slane %v2626_v0, 4  ;;  %v3020_v7 = vsel %vm523_vm0, %v3019_v43, %v2626_v0  ;;  %v3044_v0 = vsel %vm523_vm0, %v3043_v15, %v3002_v47  ;;  %18760 = vst [vmem:[#allocation194_spill] sm:$0xff] %v12214_v19  ;;  %v3097_v40 = vrot.slane %v12214_v19, 4 }
 0x217   : > { %v3026_v43 = vperm.slane %v3020_v7, %v10647_v13  ;;  %18761 = vst [vmem:[#allocation195_spill] sm:$0xff] %v12217_v24  ;;  %v12221_v15 = vperm.slane %v3044_v0, %v10671_v37  ;;  %v3101_v0 = vrot.slane %v12217_v24, 4 }
 0x218   : > { %v3022_v20 = vsel %vm523_vm0, %v11995_v32, %v3021_v18  ;;  %v3066_v18 = vperm.slane %v3058_v8, %v10671_v37 }
 0x219   : > { %v3030_v49 = vperm.slane %v3022_v20, %v10647_v13  ;;  %18762 = vst [vmem:[#allocation196_spill] sm:$0xff] %v12221_v15  ;;  %v3069_v8 = vrot.slane %v3026_v43, 4 }
 0x21a   : > { %v3105_v47 = vrot.slane %v3066_v18, 4 }
 0x21b   : > { %2830 = vrot.lane.b32.xlu2 %v12137_v16, %s18703_s8  ;;  %2682 = vrot.lane.b32.xlu1 %v11599_v44, %s18759_s23  ;;  %v3081_v27 = vrot.slane %v3030_v49, 4  ;;  %s18763_s8 = smov 76  }
 0x21c   : > { %2833 = vrot.lane.b32.xlu0 %v12137_v16, %s18713_s18  ;;  %s18780_s18 = smov 66  }
 0x21d   : > { %v12205_v32 = vpop.permute.xlu2 %2730  ;;  %v2635_v20 = vpop.permute.xlu1 %2634 }
 0x21e   : > { %v12210_v14 = vpop.permute.xlu0 %2706  ;;  %v3031_v59 = vrot.slane %v2635_v20, 4  ;;  %v3034_v11 = vsel %vm523_vm0, %v2635_v20, %v3033_v33 }
 0x21f   : > { %v3042_v38 = vperm.slane %v3034_v11, %v10647_v13 }
 0x220   : > { %v3032_v7 = vsel %vm523_vm0, %v3031_v59, %v12117_v29 }
 0x221   : > { %v3038_v56 = vperm.slane %v3032_v7, %v10647_v13  ;;  %v3079_v33 = vrot.slane %v3042_v38, 4  ;;  %v3082_v45 = vsel %vm523_vm0, %v3042_v38, %v3081_v27  ;;  %v3093_v27 = vrot.slane %v12221_v15, 4 }
 0x222   : > { %v3090_v11 = vperm.slane %v3082_v45, %v10671_v37 }
 0x223   : > { %2839 = vrot.lane.b32.xlu2 %v12137_v16, %s18715_s21  ;;  %v3067_v20 = vrot.slane %v3038_v56, 4  ;;  %2691 = vrot.lane.b32.xlu1 %v11599_v44, %s18763_s8  ;;  %v3070_v59 = vsel %vm523_vm0, %v3038_v56, %v3069_v8  ;;  %v3080_v29 = vsel %vm523_vm0, %v3079_v33, %v3030_v49  ;;  %s18772_s21 = smov 70  }
 0x224   : > { %2842 = vrot.lane.b32.xlu0 %v12137_v16, %s18546_s11  ;;  %v12242_v7 = vperm.slane %v3070_v59, %v10671_v37  ;;  %v12245_v45 = vperm.slane %v3080_v29, %v10671_v37  ;;  %v3103_v24 = vrot.slane %v3090_v11, 4  ;;  %v12248_v44 = vsel %vm523_vm0, %v3090_v11, %v3105_v47  ;;  %s18773_s11 = smov 64  }
 0x225   : > { %v12239_v38 = vpop.permute.xlu2 %2739  ;;  %18766 = vst [vmem:[#allocation199_spill] sm:$0xff] %v12248_v44  ;;  %v12250_v19 = vpop.permute.xlu1 %2637  ;;  %v3068_v49 = vsel %vm523_vm0, %v3067_v20, %v3026_v43  ;;  %v12276_v43 = vld [vmem:[%s10533_s24 + $0x10] sm:$0xff] }
 0x226   : > { %18764 = vst [vmem:[#allocation197_spill] sm:$0xff] %v12242_v7  ;;  %v12252_v56 = vpop.permute.xlu0 %2715  ;;  %v12256_v8 = vperm.slane %v3068_v49, %v10671_v37  ;;  %v12260_v33 = vsel %vm523_vm0, %v12242_v7, %v3097_v40  ;;  %v12263_v59 = vsel %vm523_vm0, %v3103_v24, %v3066_v18  ;;  %v12267_v47 = vsel %vm523_vm0, %v12245_v45, %v3101_v0 }
 0x227   : > { %18765 = vst [vmem:[#allocation198_spill] sm:$0xff] %v12245_v45  ;;  %v3109_v22 = vrot.slane %v12250_v19, 4 }
 0x228   : > { %18767 = vst [vmem:[#allocation200_spill] sm:$0xff] %v12256_v8  ;;  %v12271_v11 = vsel %vm523_vm0, %v12256_v8, %v3093_v27 }
 0x229   : > { %18768 = vst [vmem:[#allocation201_spill] sm:$0xff] %v12260_v33 }
 0x22a   : > { %18769 = vst [vmem:[#allocation202_spill] sm:$0xff] %v12263_v59 }
 0x22b   : > { %18770 = vst [vmem:[#allocation203_spill] sm:$0xff] %v12267_v47  ;;  %2848 = vrot.lane.b32.xlu2 %v12137_v16, %s18544_s4  ;;  %2700 = vrot.lane.b32.xlu1 %v12276_v43, %s18772_s21  ;;  %s18774_s4 = smov 58  }
 0x22c   : > { %18771 = vst [vmem:[#allocation204_spill] sm:$0xff] %v12271_v11  ;;  %2851 = vrot.lane.b32.xlu0 %v12137_v16, %s18737_s2  ;;  %s18778_s2 = smov 72  }
 0x22d   : > { %v12282_v18 = vpop.permute.xlu2 %2748  ;;  %v12284_v24 = vpop.permute.xlu1 %2640 }
 0x22e   : > { %v12286_v40 = vpop.permute.xlu0 %2724  ;;  %v3121_v36 = vrot.slane %v12284_v24, 4 }
 0x233   : > { %2857 = vrot.lane.b32.xlu2 %v12137_v16, %s18756_s29  ;;  %2709 = vrot.lane.b32.xlu1 %v12276_v43, %s18773_s11  ;;  %s18775_s29 = smov 52  }
 0x234   : > { %2860 = vrot.lane.b32.xlu0 %v12137_v16, %s18757_s5  ;;  %s18776_s5 = smov 78  }
 0x235   : > { %v12294_v0 = vpop.permute.xlu2 %2757  ;;  %v12296_v20 = vpop.permute.xlu1 %2643 }
 0x236   : > { %v12298_v29 = vpop.permute.xlu0 %2733  ;;  %v3107_v58 = vrot.slane %v12296_v20, 4 }
 0x238   : > { %v3108_v46 = vsel %vm523_vm0, %v3107_v58, %v12250_v19 }
 0x239   : > { %v3114_v39 = vperm.slane %v3108_v46, %v10647_v13 }
 0x23b   : > { %2866 = vrot.lane.b32.xlu2 %v12137_v16, %s18560_s17  ;;  %2718 = vrot.lane.b32.xlu1 %v12276_v43, %s18774_s4  ;;  %s18777_s17 = smov 46   ;;  %v3157_v46 = vrot.slane %v3114_v39, 4 }
 0x23c   : > { %2869 = vrot.lane.b32.xlu0 %v12137_v16, %s18576_s28 }
 0x23d   : > { %v12306_v27 = vpop.permute.xlu2 %2766  ;;  %v12308_v49 = vpop.permute.xlu1 %2646 }
 0x23e   : > { %v12310_v47 = vpop.permute.xlu0 %2742  ;;  %v3119_v41 = vrot.slane %v12308_v49, 4  ;;  %v3122_v9 = vsel %vm523_vm0, %v12308_v49, %v3121_v36 }
 0x240   : > { %v3120_v4 = vsel %vm523_vm0, %v3119_v41, %v12284_v24 }
 0x241   : > { %v3126_v58 = vperm.slane %v3120_v4, %v10647_v13 }
 0x243   : > { %2875 = vrot.lane.b32.xlu2 %v12137_v16, %s18572_s25  ;;  %2727 = vrot.lane.b32.xlu1 %v12276_v43, %s18775_s29  ;;  %s18779_s25 = smov 40  }
 0x244   : > { %2878 = vrot.lane.b32.xlu0 %v12137_v16, %s18776_s5 }
 0x245   : > { %v12318_v11 = vpop.permute.xlu2 %2775  ;;  %v2650_v44 = vpop.permute.xlu1 %2649 }
 0x246   : > { %v12320_v59 = vpop.permute.xlu0 %2751  ;;  %v3133_v7 = vrot.slane %v2650_v44, 4 }
 0x24b   : > { %2884 = vrot.lane.b32.xlu2 %v12137_v16, %s18577_s20  ;;  %2736 = vrot.lane.b32.xlu1 %v12276_v43, %s18777_s17  ;;  %s18784_s20 = smov 54  }
 0x24c   : > { %2887 = vrot.lane.b32.xlu0 %v12137_v16, %s18778_s2 }
 0x24d   : > { %v12328_v33 = vpop.permute.xlu2 %2784  ;;  %v2653_v45 = vpop.permute.xlu1 %2652 }
 0x24e   : > { %v12330_v15 = vpop.permute.xlu0 %2760  ;;  %v3145_v25 = vrot.slane %v2653_v45, 4 }
 0x253   : > { %2893 = vrot.lane.b32.xlu2 %v12137_v16, %s18580_s14  ;;  %2745 = vrot.lane.b32.xlu1 %v12276_v43, %s18779_s25  ;;  %s18781_s14 = smov 34  }
 0x254   : > { %2896 = vrot.lane.b32.xlu0 %v12137_v16, %s18780_s18 }
 0x255   : > { %v12338_v8 = vpop.permute.xlu2 %2793  ;;  %v2656_v48 = vpop.permute.xlu1 %2655 }
 0x256   : > { %v12340_v5 = vpop.permute.xlu0 %2769  ;;  %v3134_v62 = vsel %vm523_vm0, %v2656_v48, %v3133_v7  ;;  %v3131_v51 = vrot.slane %v2656_v48, 4 }
 0x257   : > { %v12344_v34 = vperm.slane %v3134_v62, %v10647_v13 }
 0x258   : > { %v3132_v48 = vsel %vm523_vm0, %v3131_v51, %v2650_v44  ;;  %v12416_v51 = vperm.slane %v3122_v9, %v10647_v13 }
 0x259   : > { %v3193_v3 = vrot.slane %v12344_v34, 4  ;;  %v3138_v54 = vperm.slane %v3132_v48, %v10647_v13  ;;  %v3155_v48 = vrot.slane %v3126_v58, 4 }
 0x25a   : > { %18789 = vst [vmem:[#allocation206_spill] sm:$0xff] %v12416_v51 }
 0x25b   : > { %2902 = vrot.lane.b32.xlu2 %v12137_v16, %s18587_s0  ;;  %2754 = vrot.lane.b32.xlu1 %v12276_v43, %s18781_s14  ;;  %s18783_s0 = smov 28   ;;  %s18786_s14 = smov 48   ;;  %v3181_v4 = vrot.slane %v3138_v54, 4 }
 0x25c   : > { %2905 = vrot.lane.b32.xlu0 %v12137_v16, %s18599_s9 }
 0x25d   : > { %v12352_v57 = vpop.permute.xlu2 %2802  ;;  %v2659_v12 = vpop.permute.xlu1 %2658 }
 0x25e   : > { %v12355_v30 = vpop.permute.xlu0 %2778  ;;  %v3146_v62 = vsel %vm523_vm0, %v2659_v12, %v3145_v25  ;;  %v3143_v60 = vrot.slane %v2659_v12, 4  ;;  %v3110_v12 = vsel %vm523_vm0, %v12296_v20, %v3109_v22 }
 0x25f   : > { %v12359_v7 = vperm.slane %v3146_v62, %v10647_v13  ;;  %v12428_v9 = vperm.slane %v3110_v12, %v10647_v13 }
 0x260   : > { %v3144_v41 = vsel %vm523_vm0, %v3143_v60, %v2653_v45  ;;  %v3167_v60 = vrot.slane %v12416_v51, 4  ;;  %v3158_v45 = vsel %vm523_vm0, %v3126_v58, %v3157_v46 }
 0x261   : > { %v12363_v53 = vsel %vm523_vm0, %v12359_v7, %v3193_v3  ;;  %v3150_v1 = vperm.slane %v3144_v41, %v10647_v13  ;;  %18791 = vst [vmem:[#allocation208_spill] sm:$0xff] %v12428_v9  ;;  %v3191_v58 = vrot.slane %v12359_v7, 4 }
 0x262   : > { %18782 = vst [vmem:[#allocation205_spill] sm:$0xff] %v12363_v53 }
 0x263   : > { %2911 = vrot.lane.b32.xlu2 %v12137_v16, %s18597_s7  ;;  %2763 = vrot.lane.b32.xlu1 %v12276_v43, %s18783_s0  ;;  %s18787_s7 = smov 16   ;;  %v3179_v41 = vrot.slane %v3150_v1, 4 }
 0x264   : > { %2914 = vrot.lane.b32.xlu0 %v12137_v16, %s18784_s20 }
 0x265   : > { %v12371_v31 = vpop.permute.xlu2 %2812  ;;  %v2662_v6 = vpop.permute.xlu1 %2661 }
 0x266   : > { %v12373_v25 = vpop.permute.xlu0 %2787  ;;  %v3221_v63 = vrot.slane %v2662_v6, 4 }
 0x26b   : > { %2920 = vrot.lane.b32.xlu2 %v12137_v16, %s18601_s19  ;;  %2772 = vrot.lane.b32.xlu1 %v12276_v43, %s18785_s3  ;;  %s18800_s19 = smov 24  }
 0x26c   : > { %2923 = vrot.lane.b32.xlu0 %v12137_v16, %s18786_s14 }
 0x26d   : > { %v12381_v3 = vpop.permute.xlu2 %2821  ;;  %v2665_v62 = vpop.permute.xlu1 %2664 }
 0x26e   : > { %v12383_v53 = vpop.permute.xlu0 %2796  ;;  %v3233_v23 = vrot.slane %v2665_v62, 4 }
 0x273   : > { %2929 = vrot.lane.b32.xlu2 %v12137_v16, %s18611_s1  ;;  %2781 = vrot.lane.b32.xlu1 %v12276_v43, %s18787_s7  ;;  %s18788_s1 = smov 10  }
 0x274   : > { %2932 = vrot.lane.b32.xlu0 %v12137_v16, %s18619_s12 }
 0x275   : > { %v12393_v21 = vpop.permute.xlu2 %2830  ;;  %v2668_v61 = vpop.permute.xlu1 %2667 }
 0x276   : > { %v12398_v17 = vpop.permute.xlu0 %2806  ;;  %v3219_v24 = vrot.slane %v2668_v61, 4  ;;  %v3222_v49 = vsel %vm523_vm0, %v2668_v61, %v3221_v63  ;;  %v12439_v63 = vperm.slane %v3158_v45, %v10671_v37  ;;  %v3182_v61 = vsel %vm523_vm0, %v3150_v1, %v3181_v4 }
 0x277   : > { %v12433_v22 = vperm.slane %v3222_v49, %v10647_v13  ;;  %v3168_v4 = vsel %vm523_vm0, %v3167_v60, %v12428_v9  ;;  %v12459_v49 = vperm.slane %v3182_v61, %v10671_v37  ;;  %v3180_v60 = vsel %vm523_vm0, %v3179_v41, %v3138_v54 }
 0x278   : > { %v3220_v20 = vsel %vm523_vm0, %v3219_v24, %v2662_v6  ;;  %18792 = vst [vmem:[#allocation209_spill] sm:$0xff] %v12439_v63  ;;  %v3156_v6 = vsel %vm523_vm0, %v3155_v48, %v3114_v39  ;;  %v3209_v24 = vrot.slane %v12439_v63, 4  ;;  %v12474_v51 = vperm.slane %v3168_v4, %v10671_v37 }
 0x279   : > { %v3226_v1 = vperm.slane %v3220_v20, %v10647_v13  ;;  %18794 = vst [vmem:[#allocation210_spill] sm:$0xff] %v12459_v49  ;;  %v12466_v45 = vperm.slane %v3156_v6, %v10671_v37  ;;  %v3243_v61 = vrot.slane %v12159_v10, 4  ;;  %v12486_v41 = vperm.slane %v3180_v60, %v10671_v37 }
 0x27a   : > { %v12471_v20 = vsel %vm523_vm0, %v12459_v49, %v3209_v24  ;;  %18797 = vst [vmem:[#allocation213_spill] sm:$0xff] %v12474_v51 }
 0x27b   : > { %2938 = vrot.lane.b32.xlu2 %v12137_v16, %s18617_s10  ;;  %2790 = vrot.lane.b32.xlu1 %v12276_v43, %s18788_s1  ;;  %s18793_s10 = smov 4   ;;  %18795 = vst [vmem:[#allocation211_spill] sm:$0xff] %v12466_v45  ;;  %v3205_v4 = vrot.slane %v12466_v45, 4  ;;  %s18818_s1 = smov 12  }
 0x27c   : > { %2941 = vrot.lane.b32.xlu0 %v12137_v16, %s18627_s22  ;;  %18796 = vst [vmem:[#allocation212_spill] sm:$0xff] %v12471_v20 }
 0x27d   : > { %v12419_v36 = vpop.permute.xlu2 %2839  ;;  %v2671_v19 = vpop.permute.xlu1 %2670  ;;  %18798 = vst [vmem:[#allocation214_spill] sm:$0xff] %v12486_v41 }
 0x27e   : > { %18790 = vst [vmem:[#allocation207_spill] sm:$0xff] %v12419_v36  ;;  %v12423_v44 = vpop.permute.xlu0 %2815  ;;  %v3231_v36 = vrot.slane %v2671_v19, 4  ;;  %v3234_v12 = vsel %vm523_vm0, %v2671_v19, %v3233_v23  ;;  %v3281_v23 = vrot.slane %v12433_v22, 4 }
 0x27f   : > { %v12463_v7 = vperm.slane %v3234_v12, %v10647_v13  ;;  %v3269_v12 = vrot.slane %v3226_v1, 4 }
 0x280   : > { %v3232_v39 = vsel %vm523_vm0, %v3231_v36, %v2665_v62  ;;  %v3192_v36 = vsel %vm523_vm0, %v3191_v58, %v12344_v34  ;;  %v3213_v58 = vrot.slane %v12474_v51, 4 }
 0x281   : > { %v3238_v6 = vperm.slane %v3232_v39, %v10647_v13  ;;  %v3282_v24 = vsel %vm523_vm0, %v12463_v7, %v3281_v23  ;;  %v12499_v34 = vperm.slane %v3192_v36, %v10671_v37 }
 0x282   : > { %v12506_v23 = vperm.slane %v3282_v24, %v10671_v37 }
 0x283   : > { %2947 = vrot.lane.b32.xlu2 %v12137_v16, %s18623_s6  ;;  %2799 = vrot.lane.b32.xlu1 %v12276_v43, %s18793_s10  ;;  %s18799_s6 = smov 124   ;;  %18801 = vst [vmem:[#allocation215_spill] sm:$0xff] %v12499_v34  ;;  %v3270_v36 = vsel %vm523_vm0, %v3238_v6, %v3269_v12  ;;  %v12518_v9 = vsel %vm523_vm0, %v12499_v34, %v3213_v58  ;;  %v3267_v51 = vrot.slane %v3238_v6, 4  ;;  %v3279_v58 = vrot.slane %v12463_v7, 4  ;;  %s18808_s10 = smov 18  }
 0x284   : > { %2950 = vrot.lane.b32.xlu0 %v12137_v16, %s18636_s27  ;;  %18804 = vst [vmem:[#allocation218_spill] sm:$0xff] %v12518_v9  ;;  %v12527_v45 = vperm.slane %v3270_v36, %v10671_v37  ;;  %v3329_v12 = vrot.slane %v12506_v23, 4  ;;  %v3345_v36 = vrot.slane %v12171_v35, 4 }
 0x285   : > { %v12449_v46 = vpop.permute.xlu2 %2848  ;;  %v2674_v19 = vpop.permute.xlu1 %2673 }
 0x286   : > { %v12456_v43 = vpop.permute.xlu0 %2824  ;;  %v3245_v48 = vrot.slane %v2674_v19, 4  ;;  %v3244_v54 = vsel %vm523_vm0, %v3243_v61, %v2674_v19  ;;  %v3257_v19 = vrot.slane %v12019_v28, 4  ;;  %18805 = vst [vmem:[#allocation219_spill] sm:$0xff] %v12527_v45 }
 0x287   : > { %v3250_v60 = vperm.slane %v3244_v54, %v10647_v13 }
 0x288   : > { %v3246_v62 = vsel %vm523_vm0, %v12159_v10, %v3245_v48  ;;  %v12510_v48 = vsel %vm523_vm0, %v12486_v41, %v3205_v4 }
 0x289   : > { %v12492_v10 = vperm.slane %v3246_v62, %v10647_v13  ;;  %18803 = vst [vmem:[#allocation217_spill] sm:$0xff] %v12510_v48  ;;  %v3343_v48 = vrot.slane %v12110_v2, 4  ;;  %v3293_v6 = vrot.slane %v3250_v60, 4 }
 0x28b   : > { %2956 = vrot.lane.b32.xlu2 %v12137_v16, %s18634_s15  ;;  %2809 = vrot.lane.b32.xlu1 %v12137_v16, %s18799_s6  ;;  %v3305_v63 = vrot.slane %v12492_v10, 4  ;;  %s18806_s15 = smov 20   ;;  %s18807_s6 = smov 118  }
 0x28c   : > { %2959 = vrot.lane.b32.xlu0 %v12137_v16, %s18800_s19 }
 0x28d   : > { %v12503_v39 = vpop.permute.xlu2 %2857  ;;  %v2683_v61 = vpop.permute.xlu1 %2682 }
 0x28e   : > { %18802 = vst [vmem:[#allocation216_spill] sm:$0xff] %v12503_v39  ;;  %v12513_v62 = vpop.permute.xlu0 %2833  ;;  %v3255_v20 = vrot.slane %v2683_v61, 4  ;;  %v3258_v24 = vsel %vm523_vm0, %v2683_v61, %v3257_v19  ;;  %v3344_v61 = vsel %vm523_vm0, %v3343_v48, %v12171_v35  ;;  %v3333_v48 = vrot.slane %v12069_v50, 4 }
 0x28f   : > { %v3266_v4 = vperm.slane %v3258_v24, %v10647_v13  ;;  %v3357_v24 = vrot.slane %v12189_v26, 4  ;;  %v3321_v35 = vrot.slane %v12527_v45, 4 }
 0x290   : > { %v3256_v54 = vsel %vm523_vm0, %v3255_v20, %v12019_v28  ;;  %v3268_v28 = vsel %vm523_vm0, %v3267_v51, %v3226_v1 }
 0x291   : > { %v3262_v9 = vperm.slane %v3256_v54, %v10647_v13  ;;  %v3306_v19 = vsel %vm523_vm0, %v3266_v4, %v3305_v63  ;;  %v3303_v34 = vrot.slane %v3266_v4, 4 }
 0x292   : > { %v3314_v20 = vperm.slane %v3306_v19, %v10671_v37  ;;  %v3355_v19 = vrot.slane %v12157_v52, 4 }
 0x293   : > { %2965 = vrot.lane.b32.xlu2 %v12137_v16, %s18806_s15  ;;  %v3291_v7 = vrot.slane %v3262_v9, 4  ;;  %2818 = vrot.lane.b32.xlu1 %v12137_v16, %s18807_s6  ;;  %v3294_v63 = vsel %vm523_vm0, %v3262_v9, %v3293_v6  ;;  %v12560_v9 = vperm.slane %v3268_v28, %v10671_v37  ;;  %v3280_v6 = vsel %vm523_vm0, %v3279_v58, %v12433_v22  ;;  %s18816_s15 = smov 14   ;;  %s18817_s6 = smov 112  }
 0x294   : > { %2968 = vrot.lane.b32.xlu0 %v12137_v16, %s18808_s10  ;;  %v12550_v51 = vperm.slane %v3294_v63, %v10671_v37  ;;  %v12554_v1 = vsel %vm523_vm0, %v3314_v20, %v3329_v12  ;;  %v3350_v63 = vperm.slane %v3344_v61, %v10647_v13  ;;  %v3356_v4 = vsel %vm523_vm0, %v3355_v19, %v12189_v26 }
 0x295   : > { %v12547_v54 = vpop.permute.xlu2 %2866  ;;  %18811 = vst [vmem:[#allocation222_spill] sm:$0xff] %v12554_v1  ;;  %v2692_v49 = vpop.permute.xlu1 %2691  ;;  %v3292_v12 = vsel %vm523_vm0, %v3291_v7, %v3250_v60  ;;  %v3346_v1 = vsel %vm523_vm0, %v12110_v2, %v3345_v36  ;;  %v3358_v28 = vsel %vm523_vm0, %v12157_v52, %v3357_v24  ;;  %v3327_v60 = vrot.slane %v3314_v20, 4 }
 0x296   : > { %18809 = vst [vmem:[#allocation220_spill] sm:$0xff] %v12547_v54  ;;  %v12557_v41 = vpop.permute.xlu0 %2842  ;;  %v3331_v54 = vrot.slane %v2692_v49, 4  ;;  %v3334_v45 = vsel %vm523_vm0, %v2692_v49, %v3333_v48  ;;  %v12578_v58 = vsel %vm523_vm0, %v12550_v51, %v3321_v35  ;;  %v12581_v49 = vperm.slane %v3280_v6, %v10671_v37 }
 0x297   : > { %18810 = vst [vmem:[#allocation221_spill] sm:$0xff] %v12550_v51  ;;  %v3342_v39 = vperm.slane %v3334_v45, %v10647_v13  ;;  %v12585_v26 = vperm.slane %v3292_v12, %v10671_v37  ;;  %v3304_v52 = vsel %vm523_vm0, %v3303_v34, %v12492_v10  ;;  %v3317_v45 = vrot.slane %v12560_v9, 4 }
 0x298   : > { %18812 = vst [vmem:[#allocation223_spill] sm:$0xff] %v12560_v9  ;;  %v3332_v22 = vsel %vm523_vm0, %v3331_v54, %v12069_v50  ;;  %v3354_v50 = vperm.slane %v3346_v1, %v10647_v13  ;;  %v3362_v61 = vperm.slane %v3356_v4, %v10647_v13  ;;  %v3366_v36 = vperm.slane %v3358_v28, %v10647_v13 }
 0x299   : > { %18813 = vst [vmem:[#allocation224_spill] sm:$0xff] %v12578_v58  ;;  %v3338_v2 = vperm.slane %v3332_v22, %v10647_v13  ;;  %v3393_v24 = vrot.slane %v3342_v39, 4  ;;  %v3367_v10 = vrot.slane %v12210_v14, 4  ;;  %v12603_v7 = vperm.slane %v3304_v52, %v10671_v37 }
 0x29a   : > { %18814 = vst [vmem:[#allocation225_spill] sm:$0xff] %v12581_v49  ;;  %v12607_v48 = vsel %vm523_vm0, %v3327_v60, %v12506_v23  ;;  %v3325_v54 = vrot.slane %v12581_v49, 4  ;;  %v3379_v35 = vrot.slane %v3350_v63, 4  ;;  %v12615_v12 = vsel %vm523_vm0, %v12585_v26, %v3317_v45 }
 0x29b   : > { %18815 = vst [vmem:[#allocation226_spill] sm:$0xff] %v12585_v26  ;;  %2974 = vrot.lane.b32.xlu2 %v12137_v16, %s18816_s15  ;;  %v3381_v20 = vrot.slane %v3338_v2, 4  ;;  %2827 = vrot.lane.b32.xlu1 %v12137_v16, %s18817_s6  ;;  %v3391_v4 = vrot.slane %v3354_v50, 4  ;;  %v3405_v28 = vrot.slane %v3362_v61, 4  ;;  %v3394_v49 = vsel %vm523_vm0, %v3354_v50, %v3393_v24  ;;  %s18826_s15 = smov 106   ;;  %s18827_s6 = smov 6  }
 0x29c   : > { %2977 = vrot.lane.b32.xlu0 %v12137_v16, %s18818_s1  ;;  %18819 = vst [vmem:[#allocation227_spill] sm:$0xff] %v12603_v7  ;;  %v3380_v60 = vsel %vm523_vm0, %v3379_v35, %v3338_v2  ;;  %v3417_v58 = vrot.slane %v3366_v36, 4  ;;  %v12628_v45 = vsel %vm523_vm0, %v12603_v7, %v3325_v54  ;;  %v3402_v54 = vperm.slane %v3394_v49, %v10671_v37 }
 0x29d   : > { %v12600_v34 = vpop.permute.xlu2 %2875  ;;  %18820 = vst [vmem:[#allocation228_spill] sm:$0xff] %v12607_v48  ;;  %v2701_v1 = vpop.permute.xlu1 %2700  ;;  %v3382_v6 = vsel %vm523_vm0, %v3350_v63, %v3381_v20  ;;  %v3392_v2 = vsel %vm523_vm0, %v3391_v4, %v3342_v39  ;;  %v12636_v50 = vperm.slane %v3380_v60, %v10671_v37  ;;  %v3693_v9 = vrot.slane %v12340_v5, 4 }
 0x29e   : > { %v12610_v19 = vpop.permute.xlu0 %2851  ;;  %18821 = vst [vmem:[#allocation229_spill] sm:$0xff] %v12615_v12  ;;  %v3368_v22 = vsel %vm523_vm0, %v3367_v10, %v2701_v1  ;;  %v3369_v52 = vrot.slane %v2701_v1, 4  ;;  %v12621_v48 = vperm.slane %v3382_v6, %v10671_v37 }
 0x29f   : > { %v3374_v23 = vperm.slane %v3368_v22, %v10647_v13  ;;  %18823 = vst [vmem:[#allocation231_spill] sm:$0xff] %v12628_v45  ;;  %v12659_v22 = vperm.slane %v3392_v2, %v10671_v37 }
 0x2a0   : > { %18822 = vst [vmem:[#allocation230_spill] sm:$0xff] %v12621_v48  ;;  %v3370_v63 = vsel %vm523_vm0, %v12210_v14, %v3369_v52  ;;  %v3433_v14 = vrot.slane %v12621_v48, 4 }
 0x2a1   : > { %v3378_v20 = vperm.slane %v3370_v63, %v10647_v13  ;;  %v3403_v10 = vrot.slane %v3374_v23, 4  ;;  %v3406_v1 = vsel %vm523_vm0, %v3374_v23, %v3405_v28  ;;  %18824 = vst [vmem:[#allocation232_spill] sm:$0xff] %v12636_v50  ;;  %v3441_v63 = vrot.slane %v3402_v54, 4 }
 0x2a2   : > { %v12639_v24 = vperm.slane %v3406_v1, %v10671_v37  ;;  %18830 = vst [vmem:[#allocation236_spill] sm:$0xff] %v12659_v22 }
 0x2a3   : > { %2983 = vrot.lane.b32.xlu2 %v12137_v16, %s18742_s16  ;;  %v3415_v35 = vrot.slane %v3378_v20, 4  ;;  %2836 = vrot.lane.b32.xlu1 %v12137_v16, %s18826_s15  ;;  %v3404_v39 = vsel %vm523_vm0, %v3403_v10, %v3362_v61  ;;  %v3418_v6 = vsel %vm523_vm0, %v3378_v20, %v3417_v58  ;;  %v3429_v20 = vrot.slane %v12636_v50, 4  ;;  %s18835_s16 = smov 2   ;;  %s18837_s15 = smov 100  }
 0x2a4   : > { %18825 = vst [vmem:[#allocation233_spill] sm:$0xff] %v12639_v24  ;;  %2986 = vrot.lane.b32.xlu0 %v12137_v16, %s18827_s6  ;;  %v12652_v28 = vperm.slane %v3404_v39, %v10671_v37  ;;  %v12656_v49 = vsel %vm523_vm0, %v12639_v24, %v3433_v14  ;;  %v3426_v52 = vperm.slane %v3418_v6, %v10671_v37  ;;  %v12670_v14 = vld [vmem:[%s10533_s24 + $0x20] sm:$0xff] }
 0x2a5   : > { %v12649_v4 = vpop.permute.xlu2 %2884  ;;  %18829 = vst [vmem:[#allocation235_spill] sm:$0xff] %v12656_v49  ;;  %v2710_v23 = vpop.permute.xlu1 %2709  ;;  %v3416_v61 = vsel %vm523_vm0, %v3415_v35, %v3366_v36  ;;  %v3437_v36 = vrot.slane %v12659_v22, 4 }
 0x2a6   : > { %18828 = vst [vmem:[#allocation234_spill] sm:$0xff] %v12652_v28  ;;  %v12662_v60 = vpop.permute.xlu0 %2860  ;;  %v3445_v58 = vrot.slane %v2710_v23, 4  ;;  %v12667_v10 = vperm.slane %v3416_v61, %v10671_v37  ;;  %v3439_v1 = vrot.slane %v3426_v52, 4  ;;  %v12675_v39 = vsel %vm523_vm0, %v3426_v52, %v3441_v63 }
 0x2a7   : > { %18832 = vst [vmem:[#allocation238_spill] sm:$0xff] %v12675_v39  ;;  %v12679_v6 = vsel %vm523_vm0, %v12652_v28, %v3429_v20  ;;  %v3457_v52 = vrot.slane %v12169_v42, 4 }
 0x2a8   : > { %18831 = vst [vmem:[#allocation237_spill] sm:$0xff] %v12667_v10  ;;  %v3446_v2 = vsel %vm523_vm0, %v12252_v56, %v3445_v58  ;;  %v12683_v35 = vsel %vm523_vm0, %v3439_v1, %v3402_v54  ;;  %v12689_v61 = vsel %vm523_vm0, %v12667_v10, %v3437_v36  ;;  %v3481_v54 = vrot.slane %v12286_v40, 4 }
 0x2a9   : > { %18833 = vst [vmem:[#allocation239_spill] sm:$0xff] %v12679_v6  ;;  %v3454_v58 = vperm.slane %v3446_v2, %v10647_v13  ;;  %v3443_v36 = vrot.slane %v12252_v56, 4 }
 0x2aa   : > { %18834 = vst [vmem:[#allocation240_spill] sm:$0xff] %v12683_v35  ;;  %v3482_v12 = vsel %vm523_vm0, %v12205_v32, %v3481_v54 }
 0x2ab   : > { %2992 = vrot.lane.b32.xlu2 %v12137_v16, %s18835_s16  ;;  %18836 = vst [vmem:[#allocation241_spill] sm:$0xff] %v12689_v61  ;;  %2845 = vrot.lane.b32.xlu1 %v12137_v16, %s18837_s15  ;;  %v3505_v45 = vrot.slane %v3454_v58, 4  ;;  %v3444_v39 = vsel %vm523_vm0, %v3443_v36, %v2710_v23  ;;  %v3490_v56 = vperm.slane %v3482_v12, %v10647_v13  ;;  %s18838_s16 = smov 94  }
 0x2ac   : > { %5097 = vrot.lane.b32.xlu0 %v12670_v14, %s18687_s13 }
 0x2ad   : > { %v12698_v63 = vpop.permute.xlu2 %2893  ;;  %v2719_v20 = vpop.permute.xlu1 %2718 }
 0x2ae   : > { %v12700_v1 = vpop.permute.xlu0 %2869  ;;  %v3455_v61 = vrot.slane %v2719_v20, 4  ;;  %v3458_v2 = vsel %vm523_vm0, %v2719_v20, %v3457_v52  ;;  %v3450_v52 = vperm.slane %v3444_v39, %v10647_v13 }
 0x2af   : > { %v3466_v6 = vperm.slane %v3458_v2, %v10647_v13 }
 0x2b0   : > { %v3456_v49 = vsel %vm523_vm0, %v3455_v61, %v12169_v42  ;;  %v3479_v42 = vrot.slane %v12205_v32, 4  ;;  %v3493_v2 = vrot.slane %v3450_v52, 4 }
 0x2b1   : > { %v3503_v35 = vrot.slane %v3466_v6, 4  ;;  %v3506_v22 = vsel %vm523_vm0, %v3466_v6, %v3505_v45  ;;  %v3469_v45 = vrot.slane %v12187_v55, 4  ;;  %v3462_v61 = vperm.slane %v3456_v49, %v10647_v13 }
 0x2b3   : > { %5103 = vrot.lane.b32.xlu2 %v12670_v14, %s18671_s30  ;;  %2854 = vrot.lane.b32.xlu1 %v12137_v16, %s18838_s16  ;;  %v3504_v23 = vsel %vm523_vm0, %v3503_v35, %v3454_v58  ;;  %v3480_v35 = vsel %vm523_vm0, %v3479_v42, %v12286_v40  ;;  %v3527_v58 = vrot.slane %v3490_v56, 4  ;;  %s18874_s30 = smov 34  }
 0x2b4   : > { %5145 = vrot.lane.b32.xlu0 %v12670_v14, %s18758_s26  ;;  %v12729_v36 = vperm.slane %v3504_v23, %v10671_v37  ;;  %v3486_v23 = vperm.slane %v3480_v35, %v10647_v13 }
 0x2b5   : > { %v12721_v6 = vpop.permute.xlu2 %2902  ;;  %v2728_v54 = vpop.permute.xlu1 %2727 }
 0x2b6   : > { %v12725_v12 = vpop.permute.xlu0 %2878  ;;  %v3467_v39 = vrot.slane %v2728_v54, 4  ;;  %v3470_v20 = vsel %vm523_vm0, %v2728_v54, %v3469_v45  ;;  %18839 = vst [vmem:[#allocation242_spill] sm:$0xff] %v12729_v36  ;;  %v3494_v45 = vsel %vm523_vm0, %v3462_v61, %v3493_v2  ;;  %v3491_v54 = vrot.slane %v3462_v61, 4 }
 0x2b7   : > { %v3478_v10 = vperm.slane %v3470_v20, %v10647_v13  ;;  %v3549_v42 = vrot.slane %v12729_v36, 4  ;;  %v12754_v61 = vperm.slane %v3494_v45, %v10671_v37  ;;  %v3557_v36 = vrot.slane %v12298_v29, 4 }
 0x2b8   : > { %v3468_v32 = vsel %vm523_vm0, %v3467_v39, %v12187_v55 }
 0x2b9   : > { %v3474_v49 = vperm.slane %v3468_v32, %v10647_v13  ;;  %v3528_v7 = vsel %vm523_vm0, %v3527_v58, %v3478_v10  ;;  %v3529_v48 = vrot.slane %v3478_v10, 4  ;;  %18841 = vst [vmem:[#allocation244_spill] sm:$0xff] %v12754_v61  ;;  %v3515_v32 = vrot.slane %v3486_v23, 4 }
 0x2ba   : > { %v12743_v40 = vperm.slane %v3528_v7, %v10671_v37 }
 0x2bb   : > { %5151 = vrot.lane.b32.xlu2 %v12670_v14, %s18576_s28  ;;  %v3517_v20 = vrot.slane %v3474_v49, 4  ;;  %2863 = vrot.lane.b32.xlu1 %v12137_v16, %s18758_s26  ;;  %v3530_v55 = vsel %vm523_vm0, %v3490_v56, %v3529_v48  ;;  %v3492_v48 = vsel %vm523_vm0, %v3491_v54, %v3450_v52  ;;  %v3514_v56 = vperm.slane %v3506_v22, %v10671_v37 }
 0x2bc   : > { %18840 = vst [vmem:[#allocation243_spill] sm:$0xff] %v12743_v40  ;;  %5154 = vrot.lane.b32.xlu0 %v12670_v14, %s18759_s23  ;;  %v3538_v39 = vperm.slane %v3530_v55, %v10671_v37  ;;  %v12759_v7 = vsel %vm523_vm0, %v12743_v40, %v3549_v42  ;;  %v3516_v50 = vsel %vm523_vm0, %v3515_v32, %v3474_v49  ;;  %v3545_v42 = vrot.slane %v12754_v61, 4 }
 0x2bd   : > { %v12751_v10 = vpop.permute.xlu2 %2911  ;;  %18842 = vst [vmem:[#allocation245_spill] sm:$0xff] %v12759_v7  ;;  %v2737_v35 = vpop.permute.xlu1 %2736  ;;  %v3518_v2 = vsel %vm523_vm0, %v3486_v23, %v3517_v20  ;;  %v12773_v40 = vperm.slane %v3492_v48, %v10671_v37  ;;  %v3558_v23 = vsel %vm523_vm0, %v12239_v38, %v3557_v36  ;;  %v3553_v52 = vrot.slane %v3514_v56, 4 }
 0x2be   : > { %v12761_v58 = vpop.permute.xlu0 %2887  ;;  %v12768_v45 = vperm.slane %v3518_v2, %v10671_v37  ;;  %v3569_v55 = vrot.slane %v2737_v35, 4  ;;  %v3551_v7 = vrot.slane %v3538_v39, 4  ;;  %v12788_v49 = vperm.slane %v3516_v50, %v10671_v37 }
 0x2bf   : > { %18844 = vst [vmem:[#allocation247_spill] sm:$0xff] %v12773_v40  ;;  %v3555_v54 = vrot.slane %v12239_v38, 4  ;;  %v12799_v32 = vsel %vm523_vm0, %v3538_v39, %v3553_v52  ;;  %v12802_v48 = vperm.slane %v3558_v23, %v10647_v13  ;;  %v3541_v50 = vrot.slane %v12773_v40, 4 }
 0x2c0   : > { %18843 = vst [vmem:[#allocation246_spill] sm:$0xff] %v12768_v45  ;;  %v12781_v22 = vsel %vm523_vm0, %v12768_v45, %v3545_v42  ;;  %v3570_v36 = vsel %vm523_vm0, %v12310_v47, %v3569_v55  ;;  %v12796_v2 = vsel %vm523_vm0, %v3551_v7, %v3514_v56  ;;  %v3567_v55 = vrot.slane %v12310_v47, 4 }
 0x2c1   : > { %18845 = vst [vmem:[#allocation248_spill] sm:$0xff] %v12781_v22  ;;  %v3556_v38 = vsel %vm523_vm0, %v3555_v54, %v12298_v29  ;;  %v12811_v7 = vperm.slane %v3570_v36, %v10647_v13  ;;  %v12815_v39 = vsel %vm523_vm0, %v12788_v49, %v3541_v50  ;;  %v3579_v56 = vrot.slane %v12320_v59, 4 }
 0x2c2   : > { %18846 = vst [vmem:[#allocation249_spill] sm:$0xff] %v12788_v49  ;;  %v3568_v23 = vsel %vm523_vm0, %v3567_v55, %v2737_v35  ;;  %v3617_v29 = vrot.slane %v12802_v48, 4  ;;  %v3679_v40 = vrot.slane %v12306_v27, 4  ;;  %v3681_v49 = vrot.slane %v12330_v15, 4 }
 0x2c3   : > { %5160 = vrot.lane.b32.xlu2 %v12670_v14, %s18776_s5  ;;  %2872 = vrot.lane.b32.xlu1 %v12137_v16, %s18759_s23  ;;  %18847 = vst [vmem:[#allocation250_spill] sm:$0xff] %v12796_v2  ;;  %v3574_v54 = vperm.slane %v3568_v23, %v10647_v13 }
 0x2c4   : > { %5163 = vrot.lane.b32.xlu0 %v12670_v14, %s18763_s8  ;;  %18848 = vst [vmem:[#allocation251_spill] sm:$0xff] %v12799_v32  ;;  %v3562_v32 = vperm.slane %v3556_v38, %v10647_v13 }
 0x2c5   : > { %v12793_v20 = vpop.permute.xlu2 %2920  ;;  %v2746_v42 = vpop.permute.xlu1 %2745  ;;  %18849 = vst [vmem:[#allocation252_spill] sm:$0xff] %v12815_v39  ;;  %v3603_v45 = vrot.slane %v3574_v54, 4 }
 0x2c6   : > { %v12804_v22 = vpop.permute.xlu0 %2896  ;;  %v3581_v61 = vrot.slane %v2746_v42, 4  ;;  %v3580_v47 = vsel %vm523_vm0, %v3579_v56, %v2746_v42  ;;  %v3605_v42 = vrot.slane %v3562_v32, 4 }
 0x2c7   : > { %v3586_v50 = vperm.slane %v3580_v47, %v10647_v13 }
 0x2c8   : > { %v3582_v52 = vsel %vm523_vm0, %v12320_v59, %v3581_v61  ;;  %v3618_v59 = vsel %vm523_vm0, %v12811_v7, %v3617_v29  ;;  %v3593_v61 = vrot.slane %v12282_v18, 4  ;;  %v3606_v29 = vsel %vm523_vm0, %v3574_v54, %v3605_v42 }
 0x2c9   : > { %v3590_v36 = vperm.slane %v3582_v52, %v10647_v13  ;;  %v12842_v52 = vperm.slane %v3618_v59, %v10671_v37  ;;  %v3629_v24 = vrot.slane %v3586_v50, 4  ;;  %v3680_v59 = vsel %vm523_vm0, %v3679_v40, %v12330_v15 }
 0x2ca   : > { %v12857_v42 = vperm.slane %v3606_v29, %v10671_v37  ;;  %v3691_v40 = vrot.slane %v12318_v11, 4  ;;  %v3604_v29 = vsel %vm523_vm0, %v3603_v45, %v3562_v32 }
 0x2cb   : > { %5169 = vrot.lane.b32.xlu2 %v12670_v14, %s18778_s2  ;;  %2881 = vrot.lane.b32.xlu1 %v12137_v16, %s18763_s8  ;;  %v3641_v39 = vrot.slane %v3590_v36, 4 }
 0x2cc   : > { %5172 = vrot.lane.b32.xlu0 %v12670_v14, %s18772_s21  ;;  %18850 = vst [vmem:[#allocation253_spill] sm:$0xff] %v12857_v42 }
 0x2cd   : > { %v12835_v35 = vpop.permute.xlu2 %2929  ;;  %v2755_v38 = vpop.permute.xlu1 %2754 }
 0x2ce   : > { %v12838_v55 = vpop.permute.xlu0 %2905  ;;  %v3591_v56 = vrot.slane %v2755_v38, 4  ;;  %v3594_v23 = vsel %vm523_vm0, %v2755_v38, %v3593_v61  ;;  %v3669_v38 = vrot.slane %v12294_v0, 4 }
 0x2cf   : > { %v3602_v2 = vperm.slane %v3594_v23, %v10647_v13 }
 0x2d0   : > { %v3592_v47 = vsel %vm523_vm0, %v3591_v56, %v12282_v18  ;;  %v3665_v18 = vrot.slane %v12842_v52, 4  ;;  %v3615_v56 = vrot.slane %v12811_v7, 4 }
 0x2d1   : > { %v3598_v28 = vperm.slane %v3592_v47, %v10647_v13  ;;  %v3642_v61 = vsel %vm523_vm0, %v3602_v2, %v3641_v39 }
 0x2d2   : > { %v3650_v54 = vperm.slane %v3642_v61, %v10671_v37  ;;  %v3686_v61 = vperm.slane %v3680_v59, %v10647_v13 }
 0x2d3   : > { %5178 = vrot.lane.b32.xlu2 %v12670_v14, %s18780_s18  ;;  %v3627_v23 = vrot.slane %v3598_v28, 4  ;;  %2890 = vrot.lane.b32.xlu1 %v12137_v16, %s18772_s21  ;;  %v3630_v15 = vsel %vm523_vm0, %v3598_v28, %v3629_v24  ;;  %v3682_v16 = vsel %vm523_vm0, %v12306_v27, %v3681_v49  ;;  %v3639_v24 = vrot.slane %v3602_v2, 4 }
 0x2d4   : > { %5181 = vrot.lane.b32.xlu0 %v12670_v14, %s18773_s11  ;;  %v12873_v47 = vperm.slane %v3630_v15, %v10671_v37  ;;  %v12876_v7 = vsel %vm523_vm0, %v3650_v54, %v3665_v18  ;;  %v3657_v15 = vrot.slane %v12857_v42, 4  ;;  %v3692_v18 = vsel %vm523_vm0, %v3691_v40, %v12340_v5 }
 0x2d5   : > { %v12869_v39 = vpop.permute.xlu2 %2938  ;;  %18852 = vst [vmem:[#allocation255_spill] sm:$0xff] %v12876_v7  ;;  %v2764_v28 = vpop.permute.xlu1 %2763  ;;  %v3628_v32 = vsel %vm523_vm0, %v3627_v23, %v3586_v50  ;;  %v12891_v49 = vperm.slane %v3604_v29, %v10671_v37  ;;  %v3616_v2 = vsel %vm523_vm0, %v3615_v56, %v12802_v48  ;;  %v3690_v59 = vperm.slane %v3682_v16, %v10647_v13  ;;  %v12916_v16 = vld [vmem:[%s10533_s24 + $0x18] sm:$0xff] }
 0x2d6   : > { %18851 = vst [vmem:[#allocation254_spill] sm:$0xff] %v12873_v47  ;;  %v12882_v51 = vpop.permute.xlu0 %2914  ;;  %v3667_v26 = vrot.slane %v2764_v28, 4  ;;  %v3670_v45 = vsel %vm523_vm0, %v2764_v28, %v3669_v38  ;;  %v12900_v50 = vsel %vm523_vm0, %v12873_v47, %v3657_v15  ;;  %v3663_v23 = vrot.slane %v3650_v54, 4 }
 0x2d7   : > { %v3678_v27 = vperm.slane %v3670_v45, %v10647_v13  ;;  %18853 = vst [vmem:[#allocation256_spill] sm:$0xff] %v12891_v49  ;;  %v3694_v5 = vsel %vm523_vm0, %v12318_v11, %v3693_v9  ;;  %v12906_v29 = vperm.slane %v3628_v32, %v10671_v37  ;;  %v3640_v48 = vsel %vm523_vm0, %v3639_v24, %v3590_v36 }
 0x2d8   : > { %v3668_v38 = vsel %vm523_vm0, %v3667_v26, %v12294_v0  ;;  %18854 = vst [vmem:[#allocation257_spill] sm:$0xff] %v12900_v50  ;;  %v3698_v56 = vperm.slane %v3692_v18, %v10647_v13  ;;  %v12913_v0 = vperm.slane %v3616_v2, %v10671_v37  ;;  %v3653_v11 = vrot.slane %v12891_v49, 4 }
 0x2d9   : > { %v3674_v40 = vperm.slane %v3668_v38, %v10647_v13  ;;  %18855 = vst [vmem:[#allocation258_spill] sm:$0xff] %v12906_v29  ;;  %v3729_v54 = vrot.slane %v3678_v27, 4  ;;  %v3702_v9 = vperm.slane %v3694_v5, %v10647_v13  ;;  %v3703_v36 = vrot.slane %v12355_v30, 4 }
 0x2da   : > { %18856 = vst [vmem:[#allocation259_spill] sm:$0xff] %v12913_v0  ;;  %v12928_v28 = vperm.slane %v3640_v48, %v10671_v37  ;;  %v12932_v45 = vsel %vm523_vm0, %v3663_v23, %v12842_v52  ;;  %v3715_v32 = vrot.slane %v3686_v61, 4  ;;  %v3727_v15 = vrot.slane %v3690_v59, 4 }
 0x2db   : > { %5187 = vrot.lane.b32.xlu2 %v12670_v14, %s18599_s9  ;;  %v3717_v26 = vrot.slane %v3674_v40, 4  ;;  %2899 = vrot.lane.b32.xlu1 %v12916_v16, %s18773_s11  ;;  %18858 = vst [vmem:[#allocation261_spill] sm:$0xff] %v12932_v45  ;;  %v12939_v5 = vsel %vm523_vm0, %v12906_v29, %v3653_v11  ;;  %v3741_v7 = vrot.slane %v3698_v56, 4  ;;  %v3661_v42 = vrot.slane %v12913_v0, 4 }
 0x2dc   : > { %5190 = vrot.lane.b32.xlu0 %v12670_v14, %s18774_s4  ;;  %18857 = vst [vmem:[#allocation260_spill] sm:$0xff] %v12928_v28  ;;  %v3716_v23 = vsel %vm523_vm0, %v3715_v32, %v3674_v40  ;;  %v3730_v49 = vsel %vm523_vm0, %v3690_v59, %v3729_v54  ;;  %v3728_v40 = vsel %vm523_vm0, %v3727_v15, %v3678_v27 }
 0x2dd   : > { %v12925_v24 = vpop.permute.xlu2 %2947  ;;  %v2773_v18 = vpop.permute.xlu1 %2772  ;;  %v3718_v38 = vsel %vm523_vm0, %v3686_v61, %v3717_v26  ;;  %18859 = vst [vmem:[#allocation262_spill] sm:$0xff] %v12939_v5  ;;  %v3753_v61 = vrot.slane %v3702_v9, 4  ;;  %v12953_v11 = vsel %vm523_vm0, %v12928_v28, %v3661_v42  ;;  %v12961_v59 = vperm.slane %v3716_v23, %v10671_v37 }
 0x2de   : > { %v12934_v2 = vpop.permute.xlu0 %2923  ;;  %v3704_v50 = vsel %vm523_vm0, %v3703_v36, %v2773_v18  ;;  %v3705_v48 = vrot.slane %v2773_v18, 4  ;;  %v12946_v45 = vperm.slane %v3718_v38, %v10671_v37  ;;  %18861 = vst [vmem:[#allocation264_spill] sm:$0xff] %v12953_v11  ;;  %v3738_v42 = vperm.slane %v3730_v49, %v10671_v37 }
 0x2df   : > { %v3710_v52 = vperm.slane %v3704_v50, %v10647_v13  ;;  %18862 = vst [vmem:[#allocation265_spill] sm:$0xff] %v12961_v59  ;;  %v12984_v49 = vperm.slane %v3728_v40, %v10671_v37 }
 0x2e0   : > { %18860 = vst [vmem:[#allocation263_spill] sm:$0xff] %v12946_v45  ;;  %v3706_v26 = vsel %vm523_vm0, %v12355_v30, %v3705_v48  ;;  %v3769_v30 = vrot.slane %v12946_v45, 4  ;;  %v3915_v45 = vrot.slane %v12381_v3, 4 }
 0x2e1   : > { %v3714_v36 = vperm.slane %v3706_v26, %v10647_v13  ;;  %v3739_v18 = vrot.slane %v3710_v52, 4  ;;  %v3742_v50 = vsel %vm523_vm0, %v3710_v52, %v3741_v7  ;;  %18866 = vst [vmem:[#allocation269_spill] sm:$0xff] %v12984_v49 }
 0x2e2   : > { %v12964_v54 = vperm.slane %v3742_v50, %v10671_v37 }
 0x2e3   : > { %5196 = vrot.lane.b32.xlu2 %v12670_v14, %s18784_s20  ;;  %v3751_v32 = vrot.slane %v3714_v36, 4  ;;  %2908 = vrot.lane.b32.xlu1 %v12916_v16, %s18774_s4  ;;  %v3740_v7 = vsel %vm523_vm0, %v3739_v18, %v3698_v56  ;;  %v3754_v27 = vsel %vm523_vm0, %v3714_v36, %v3753_v61  ;;  %v3777_v36 = vrot.slane %v3738_v42, 4 }
 0x2e4   : > { %18863 = vst [vmem:[#allocation266_spill] sm:$0xff] %v12964_v54  ;;  %5199 = vrot.lane.b32.xlu0 %v12670_v14, %s18775_s29  ;;  %v12977_v38 = vperm.slane %v3740_v7, %v10671_v37  ;;  %v12981_v48 = vsel %vm523_vm0, %v12964_v54, %v3769_v30  ;;  %v3762_v52 = vperm.slane %v3754_v27, %v10671_v37  ;;  %v3765_v18 = vrot.slane %v12961_v59, 4 }
 0x2e5   : > { %v12974_v15 = vpop.permute.xlu2 %2956  ;;  %18865 = vst [vmem:[#allocation268_spill] sm:$0xff] %v12981_v48  ;;  %v2782_v23 = vpop.permute.xlu1 %2781  ;;  %v3752_v56 = vsel %vm523_vm0, %v3751_v32, %v3702_v9  ;;  %v3773_v9 = vrot.slane %v12984_v49, 4 }
 0x2e6   : > { %18864 = vst [vmem:[#allocation267_spill] sm:$0xff] %v12977_v38  ;;  %v12987_v26 = vpop.permute.xlu0 %2932  ;;  %v3781_v61 = vrot.slane %v2782_v23, 4  ;;  %v12992_v50 = vperm.slane %v3752_v56, %v10671_v37  ;;  %v3775_v7 = vrot.slane %v3762_v52, 4  ;;  %v12997_v40 = vsel %vm523_vm0, %v3762_v52, %v3777_v36 }
 0x2e7   : > { %18868 = vst [vmem:[#allocation271_spill] sm:$0xff] %v12997_v40  ;;  %v13001_v27 = vsel %vm523_vm0, %v12977_v38, %v3765_v18  ;;  %v3793_v52 = vrot.slane %v12328_v33, 4  ;;  %v4241_v38 = vrot.slane %v12725_v12, 4 }
 0x2e8   : > { %18867 = vst [vmem:[#allocation270_spill] sm:$0xff] %v12992_v50  ;;  %v3782_v30 = vsel %vm523_vm0, %v12373_v25, %v3781_v61  ;;  %v13005_v32 = vsel %vm523_vm0, %v3775_v7, %v3738_v42  ;;  %v13011_v56 = vsel %vm523_vm0, %v12992_v50, %v3773_v9  ;;  %v3817_v42 = vrot.slane %v12383_v53, 4 }
 0x2e9   : > { %18869 = vst [vmem:[#allocation272_spill] sm:$0xff] %v13001_v27  ;;  %v3790_v61 = vperm.slane %v3782_v30, %v10647_v13  ;;  %v3779_v9 = vrot.slane %v12373_v25, 4  ;;  %v3815_v50 = vrot.slane %v12352_v57, 4 }
 0x2ea   : > { %18870 = vst [vmem:[#allocation273_spill] sm:$0xff] %v13005_v32  ;;  %v3818_v5 = vsel %vm523_vm0, %v12352_v57, %v3817_v42 }
 0x2eb   : > { %5205 = vrot.lane.b32.xlu2 %v12670_v14, %s18786_s14  ;;  %18871 = vst [vmem:[#allocation274_spill] sm:$0xff] %v13011_v56  ;;  %2917 = vrot.lane.b32.xlu1 %v12916_v16, %s18775_s29  ;;  %v3841_v11 = vrot.slane %v3790_v61, 4  ;;  %v3780_v40 = vsel %vm523_vm0, %v3779_v9, %v2782_v23  ;;  %v3826_v25 = vperm.slane %v3818_v5, %v10647_v13  ;;  %v3805_v23 = vrot.slane %v12338_v8, 4 }
 0x2ec   : > { %5208 = vrot.lane.b32.xlu0 %v12670_v14, %s18777_s17  ;;  %v3816_v57 = vsel %vm523_vm0, %v3815_v50, %v12383_v53 }
 0x2ed   : > { %v13020_v36 = vpop.permute.xlu2 %2965  ;;  %v2791_v18 = vpop.permute.xlu1 %2790 }
 0x2ee   : > { %v13022_v7 = vpop.permute.xlu0 %2941  ;;  %v3791_v56 = vrot.slane %v2791_v18, 4  ;;  %v3794_v30 = vsel %vm523_vm0, %v2791_v18, %v3793_v52  ;;  %v3786_v52 = vperm.slane %v3780_v40, %v10647_v13 }
 0x2ef   : > { %v3802_v27 = vperm.slane %v3794_v30, %v10647_v13 }
 0x2f0   : > { %v3792_v32 = vsel %vm523_vm0, %v3791_v56, %v12328_v33  ;;  %v3829_v9 = vrot.slane %v3786_v52, 4 }
 0x2f1   : > { %v3839_v49 = vrot.slane %v3802_v27, 4  ;;  %v3842_v48 = vsel %vm523_vm0, %v3802_v27, %v3841_v11  ;;  %v3798_v11 = vperm.slane %v3792_v32, %v10647_v13 }
 0x2f3   : > { %5214 = vrot.lane.b32.xlu2 %v12670_v14, %s18619_s12  ;;  %2926 = vrot.lane.b32.xlu1 %v12916_v16, %s18777_s17  ;;  %v3840_v33 = vsel %vm523_vm0, %v3839_v49, %v3790_v61  ;;  %v3822_v49 = vperm.slane %v3816_v57, %v10647_v13  ;;  %v3863_v61 = vrot.slane %v3826_v25, 4  ;;  %v3827_v53 = vrot.slane %v3798_v11, 4 }
 0x2f4   : > { %5217 = vrot.lane.b32.xlu0 %v12670_v14, %s18779_s25  ;;  %v13053_v18 = vperm.slane %v3840_v33, %v10671_v37  ;;  %v3903_v33 = vrot.slane %v12371_v31, 4  ;;  %v3893_v57 = vrot.slane %v12916_v16, 4 }
 0x2f5   : > { %v13047_v27 = vpop.permute.xlu2 %2974  ;;  %v2800_v5 = vpop.permute.xlu1 %2799 }
 0x2f6   : > { %v13049_v56 = vpop.permute.xlu0 %2950  ;;  %v3803_v40 = vrot.slane %v2800_v5, 4  ;;  %v3806_v42 = vsel %vm523_vm0, %v2800_v5, %v3805_v23  ;;  %18872 = vst [vmem:[#allocation275_spill] sm:$0xff] %v13053_v18  ;;  %v3830_v23 = vsel %vm523_vm0, %v3798_v11, %v3829_v9  ;;  %v3828_v9 = vsel %vm523_vm0, %v3827_v53, %v3786_v52 }
 0x2f7   : > { %v3814_v30 = vperm.slane %v3806_v42, %v10647_v13  ;;  %v3885_v42 = vrot.slane %v13053_v18, 4  ;;  %v3904_v59 = vsel %vm523_vm0, %v3903_v33, %v12398_v17 }
 0x2f8   : > { %v3804_v50 = vsel %vm523_vm0, %v3803_v40, %v12338_v8  ;;  %v3851_v8 = vrot.slane %v3822_v49, 4  ;;  %v3905_v40 = vrot.slane %v12398_v17, 4  ;;  %v13101_v17 = vperm.slane %v3828_v9, %v10671_v37 }
 0x2f9   : > { %v3810_v32 = vperm.slane %v3804_v50, %v10647_v13  ;;  %v3864_v0 = vsel %vm523_vm0, %v3863_v61, %v3814_v30  ;;  %v3865_v28 = vrot.slane %v3814_v30, 4 }
 0x2fa   : > { %v13067_v5 = vperm.slane %v3864_v0, %v10671_v37  ;;  %v13080_v0 = vperm.slane %v3830_v23, %v10671_v37  ;;  %18877 = vst [vmem:[#allocation279_spill] sm:$0xff] %v13101_v17 }
 0x2fb   : > { %5223 = vrot.lane.b32.xlu2 %v12670_v14, %s18627_s22  ;;  %v3853_v50 = vrot.slane %v3810_v32, 4  ;;  %2935 = vrot.lane.b32.xlu1 %v12916_v16, %s18779_s25  ;;  %v3866_v11 = vsel %vm523_vm0, %v3826_v25, %v3865_v28  ;;  %v3917_v28 = vrot.slane %v12423_v44, 4 }
 0x2fc   : > { %18873 = vst [vmem:[#allocation276_spill] sm:$0xff] %v13067_v5  ;;  %5226 = vrot.lane.b32.xlu0 %v12670_v14, %s18874_s30  ;;  %v3874_v30 = vperm.slane %v3866_v11, %v10671_v37  ;;  %v13085_v18 = vsel %vm523_vm0, %v13067_v5, %v3885_v42  ;;  %v3852_v11 = vsel %vm523_vm0, %v3851_v8, %v3810_v32  ;;  %v3881_v32 = vrot.slane %v13080_v0, 4 }
 0x2fd   : > { %v13076_v61 = vpop.permute.xlu2 %2983  ;;  %18875 = vst [vmem:[#allocation277_spill] sm:$0xff] %v13080_v0  ;;  %v2810_v25 = vpop.permute.xlu1 %2809  ;;  %v3854_v52 = vsel %vm523_vm0, %v3822_v49, %v3853_v50  ;;  %v3850_v42 = vperm.slane %v3842_v48, %v10671_v37  ;;  %v3916_v49 = vsel %vm523_vm0, %v3915_v45, %v12423_v44  ;;  %v3910_v8 = vperm.slane %v3904_v59, %v10647_v13 }
 0x2fe   : > { %18876 = vst [vmem:[#allocation278_spill] sm:$0xff] %v13085_v18  ;;  %v13091_v54 = vpop.permute.xlu0 %2959  ;;  %v3891_v53 = vrot.slane %v2810_v25, 4  ;;  %v3894_v23 = vsel %vm523_vm0, %v2810_v25, %v3893_v57  ;;  %v3906_v18 = vsel %vm523_vm0, %v12371_v31, %v3905_v40  ;;  %v13104_v33 = vperm.slane %v3854_v52, %v10671_v37 }
 0x2ff   : > { %v3902_v5 = vperm.slane %v3894_v23, %v10647_v13  ;;  %v3887_v48 = vrot.slane %v3874_v30, 4  ;;  %v3918_v31 = vsel %vm523_vm0, %v12381_v3, %v3917_v28  ;;  %v13116_v50 = vperm.slane %v3852_v11, %v10671_v37 }
 0x300   : > { %18878 = vst [vmem:[#allocation280_spill] sm:$0xff] %v13104_v33  ;;  %v3892_v57 = vsel %vm523_vm0, %v3891_v53, %v12916_v16  ;;  %v3914_v9 = vperm.slane %v3906_v18, %v10647_v13  ;;  %v13123_v44 = vsel %vm523_vm0, %v13104_v33, %v3881_v32  ;;  %v3889_v45 = vrot.slane %v3850_v42, 4 }
 0x301   : > { %v3898_v40 = vperm.slane %v3892_v57, %v10647_v13  ;;  %18879 = vst [vmem:[#allocation281_spill] sm:$0xff] %v13116_v50  ;;  %v3922_v59 = vperm.slane %v3916_v49, %v10647_v13  ;;  %v3953_v52 = vrot.slane %v3902_v5, 4  ;;  %v3877_v3 = vrot.slane %v13101_v17, 4 }
 0x302   : > { %18880 = vst [vmem:[#allocation282_spill] sm:$0xff] %v13123_v44  ;;  %v3926_v18 = vperm.slane %v3918_v31, %v10647_v13  ;;  %v3927_v28 = vrot.slane %v12456_v43, 4  ;;  %v13136_v23 = vsel %vm523_vm0, %v3887_v48, %v3850_v42  ;;  %v13139_v11 = vsel %vm523_vm0, %v3874_v30, %v3889_v45 }
 0x303   : > { %5232 = vrot.lane.b32.xlu2 %v12670_v14, %s18636_s27  ;;  %v3941_v25 = vrot.slane %v3898_v40, 4  ;;  %2944 = vrot.lane.b32.xlu1 %v12916_v16, %s18874_s30  ;;  %18881 = vst [vmem:[#allocation283_spill] sm:$0xff] %v13136_v23  ;;  %v3939_v49 = vrot.slane %v3910_v8, 4  ;;  %v13146_v0 = vsel %vm523_vm0, %v13116_v50, %v3877_v3  ;;  %v3951_v31 = vrot.slane %v3914_v9, 4 }
 0x304   : > { %5235 = vrot.lane.b32.xlu0 %v12670_v14, %s18783_s0  ;;  %18882 = vst [vmem:[#allocation284_spill] sm:$0xff] %v13139_v11  ;;  %v3965_v48 = vrot.slane %v3922_v59, 4  ;;  %v3954_v11 = vsel %vm523_vm0, %v3914_v9, %v3953_v52  ;;  %v3977_v23 = vrot.slane %v3926_v18, 4 }
 0x305   : > { %v13133_v53 = vpop.permute.xlu2 %2992  ;;  %v2819_v57 = vpop.permute.xlu1 %2818  ;;  %v3942_v44 = vsel %vm523_vm0, %v3910_v8, %v3941_v25  ;;  %18883 = vst [vmem:[#allocation285_spill] sm:$0xff] %v13146_v0  ;;  %v3940_v45 = vsel %vm523_vm0, %v3939_v49, %v3898_v40 }
 0x306   : > { %v13141_v32 = vpop.permute.xlu0 %2968  ;;  %v3928_v17 = vsel %vm523_vm0, %v3927_v28, %v2819_v57  ;;  %v3929_v33 = vrot.slane %v2819_v57, 4  ;;  %v13150_v42 = vperm.slane %v3942_v44, %v10671_v37  ;;  %v3952_v57 = vsel %vm523_vm0, %v3951_v31, %v3902_v5 }
 0x307   : > { %v3934_v30 = vperm.slane %v3928_v17, %v10647_v13  ;;  %v13163_v17 = vperm.slane %v3940_v45, %v10671_v37 }
 0x308   : > { %18884 = vst [vmem:[#allocation286_spill] sm:$0xff] %v13150_v42  ;;  %v3930_v8 = vsel %vm523_vm0, %v12456_v43, %v3929_v33  ;;  %v3993_v9 = vrot.slane %v13150_v42, 4  ;;  %v3962_v43 = vperm.slane %v3954_v11, %v10671_v37  ;;  %v13186_v11 = vperm.slane %v3952_v57, %v10671_v37 }
 0x309   : > { %v3938_v25 = vperm.slane %v3930_v8, %v10647_v13  ;;  %v3963_v3 = vrot.slane %v3934_v30, 4  ;;  %v3966_v28 = vsel %vm523_vm0, %v3934_v30, %v3965_v48  ;;  %18885 = vst [vmem:[#allocation287_spill] sm:$0xff] %v13163_v17 }
 0x30a   : > { %v13166_v40 = vperm.slane %v3966_v28, %v10671_v37  ;;  %18889 = vst [vmem:[#allocation291_spill] sm:$0xff] %v13186_v11  ;;  %v4001_v8 = vrot.slane %v3962_v43, 4 }
 0x30b   : > { %5241 = vrot.lane.b32.xlu2 %v12670_v14, %s18800_s19  ;;  %v3975_v33 = vrot.slane %v3938_v25, 4  ;;  %2953 = vrot.lane.b32.xlu1 %v12916_v16, %s18783_s0  ;;  %v3964_v5 = vsel %vm523_vm0, %v3963_v3, %v3922_v59  ;;  %v3978_v44 = vsel %vm523_vm0, %v3938_v25, %v3977_v23  ;;  %v3989_v25 = vrot.slane %v13163_v17, 4 }
 0x30c   : > { %18886 = vst [vmem:[#allocation288_spill] sm:$0xff] %v13166_v40  ;;  %5244 = vrot.lane.b32.xlu0 %v12670_v14, %s18785_s3  ;;  %v13179_v49 = vperm.slane %v3964_v5, %v10671_v37  ;;  %v13183_v31 = vsel %vm523_vm0, %v13166_v40, %v3993_v9  ;;  %v3986_v48 = vperm.slane %v3978_v44, %v10671_v37  ;;  %v3997_v5 = vrot.slane %v13186_v11, 4 }
 0x30d   : > { %v13176_v52 = vpop.permute.xlu2 %5103  ;;  %18888 = vst [vmem:[#allocation290_spill] sm:$0xff] %v13183_v31  ;;  %v2828_v30 = vpop.permute.xlu1 %2827  ;;  %v3976_v59 = vsel %vm523_vm0, %v3975_v33, %v3926_v18 }
 0x30e   : > { %18887 = vst [vmem:[#allocation289_spill] sm:$0xff] %v13179_v49  ;;  %v13189_v45 = vpop.permute.xlu0 %2977  ;;  %v4005_v23 = vrot.slane %v2828_v30, 4  ;;  %v13194_v3 = vperm.slane %v3976_v59, %v10671_v37  ;;  %v3999_v28 = vrot.slane %v3986_v48, 4  ;;  %v13197_v9 = vsel %vm523_vm0, %v3986_v48, %v4001_v8 }
 0x30f   : > { %18891 = vst [vmem:[#allocation293_spill] sm:$0xff] %v13197_v9  ;;  %v13201_v57 = vsel %vm523_vm0, %v13179_v49, %v3989_v25  ;;  %v4017_v48 = vrot.slane %v12393_v21, 4  ;;  %v4041_v59 = vrot.slane %v12557_v41, 4 }
 0x310   : > { %18890 = vst [vmem:[#allocation292_spill] sm:$0xff] %v13194_v3  ;;  %v4006_v18 = vsel %vm523_vm0, %v12513_v62, %v4005_v23  ;;  %v13207_v33 = vsel %vm523_vm0, %v3999_v28, %v3962_v43  ;;  %v13213_v44 = vsel %vm523_vm0, %v13194_v3, %v3997_v5  ;;  %v4003_v28 = vrot.slane %v12513_v62, 4 }
 0x311   : > { %18892 = vst [vmem:[#allocation294_spill] sm:$0xff] %v13201_v57  ;;  %v4014_v43 = vperm.slane %v4006_v18, %v10647_v13  ;;  %v4042_v0 = vsel %vm523_vm0, %v12449_v46, %v4041_v59 }
 0x312   : > { %18893 = vst [vmem:[#allocation295_spill] sm:$0xff] %v13207_v33  ;;  %v4004_v9 = vsel %vm523_vm0, %v4003_v28, %v2828_v30  ;;  %v4050_v31 = vperm.slane %v4042_v0, %v10647_v13 }
 0x313   : > { %5250 = vrot.lane.b32.xlu2 %v12670_v14, %s18808_s10  ;;  %18894 = vst [vmem:[#allocation296_spill] sm:$0xff] %v13213_v44  ;;  %2962 = vrot.lane.b32.xlu1 %v12916_v16, %s18785_s3  ;;  %v4065_v33 = vrot.slane %v4014_v43, 4  ;;  %s18895_s10 = smov 10   ;;  %s18928_s3 = smov 106  }
 0x314   : > { %5253 = vrot.lane.b32.xlu0 %v12670_v14, %s18787_s7 }
 0x315   : > { %v13222_v23 = vpop.permute.xlu2 %5151  ;;  %v2837_v8 = vpop.permute.xlu1 %2836 }
 0x316   : > { %v13224_v25 = vpop.permute.xlu0 %2986  ;;  %v4015_v5 = vrot.slane %v2837_v8, 4  ;;  %v4018_v44 = vsel %vm523_vm0, %v2837_v8, %v4017_v48  ;;  %v4010_v48 = vperm.slane %v4004_v9, %v10647_v13  ;;  %v4039_v8 = vrot.slane %v12449_v46, 4 }
 0x317   : > { %v4026_v57 = vperm.slane %v4018_v44, %v10647_v13  ;;  %v18896_v44 = vld [vmem:[#allocation207_spill] sm:$0xff] }
 0x318   : > { %v4016_v18 = vsel %vm523_vm0, %v4015_v5, %v12393_v21  ;;  %v4029_v59 = vrot.slane %v18896_v44, 4  ;;  %v4053_v3 = vrot.slane %v4010_v48, 4 }
 0x319   : > { %v4063_v11 = vrot.slane %v4026_v57, 4  ;;  %v4066_v62 = vsel %vm523_vm0, %v4026_v57, %v4065_v33  ;;  %v4022_v57 = vperm.slane %v4016_v18, %v10647_v13 }
 0x31b   : > { %5259 = vrot.lane.b32.xlu2 %v12670_v14, %s18818_s1  ;;  %2971 = vrot.lane.b32.xlu1 %v12916_v16, %s18787_s7  ;;  %v4064_v30 = vsel %vm523_vm0, %v4063_v11, %v4014_v43  ;;  %v4040_v11 = vsel %vm523_vm0, %v4039_v8, %v12557_v41  ;;  %v4087_v43 = vrot.slane %v4050_v31, 4  ;;  %s18899_s1 = smov 4   ;;  %s18927_s7 = smov 122  }
 0x31c   : > { %5262 = vrot.lane.b32.xlu0 %v12670_v14, %s18895_s10  ;;  %v13253_v5 = vperm.slane %v4064_v30, %v10671_v37  ;;  %v4046_v30 = vperm.slane %v4040_v11, %v10647_v13 }
 0x31d   : > { %v13245_v21 = vpop.permute.xlu2 %5160  ;;  %v2846_v33 = vpop.permute.xlu1 %2845 }
 0x31e   : > { %v13249_v0 = vpop.permute.xlu0 %5097  ;;  %v4027_v9 = vrot.slane %v2846_v33, 4  ;;  %v4030_v28 = vsel %vm523_vm0, %v2846_v33, %v4029_v59  ;;  %18897 = vst [vmem:[#allocation207_spill] sm:$0xff] %v13253_v5  ;;  %v4054_v59 = vsel %vm523_vm0, %v4022_v57, %v4053_v3  ;;  %v4051_v33 = vrot.slane %v4022_v57, 4 }
 0x31f   : > { %v4038_v42 = vperm.slane %v4030_v28, %v10647_v13  ;;  %v4109_v8 = vrot.slane %v13253_v5, 4  ;;  %v13278_v57 = vperm.slane %v4054_v59, %v10671_v37  ;;  %v4117_v5 = vrot.slane %v12610_v19, 4  ;;  %v13292_v59 = vld [vmem:[%s10533_s24 + $0x28] sm:$0xff] }
 0x320   : > { %v4028_v46 = vsel %vm523_vm0, %v4027_v9, %v18896_v44 }
 0x321   : > { %v4034_v18 = vperm.slane %v4028_v46, %v10647_v13  ;;  %v4088_v17 = vsel %vm523_vm0, %v4087_v43, %v4038_v42  ;;  %v4089_v40 = vrot.slane %v4038_v42, 4  ;;  %18901 = vst [vmem:[#allocation299_spill] sm:$0xff] %v13278_v57  ;;  %v4075_v46 = vrot.slane %v4046_v30, 4 }
 0x322   : > { %v13267_v41 = vperm.slane %v4088_v17, %v10671_v37 }
 0x323   : > { %5268 = vrot.lane.b32.xlu2 %v12670_v14, %s18827_s6  ;;  %v4077_v44 = vrot.slane %v4034_v18, 4  ;;  %2980 = vrot.lane.b32.xlu1 %v12916_v16, %s18895_s10  ;;  %v4090_v42 = vsel %vm523_vm0, %v4050_v31, %v4089_v40  ;;  %v4052_v40 = vsel %vm523_vm0, %v4051_v33, %v4010_v48  ;;  %v4074_v31 = vperm.slane %v4066_v62, %v10671_v37  ;;  %s18906_s6 = smov 126   ;;  %s18908_s10 = smov 124  }
 0x324   : > { %18898 = vst [vmem:[#allocation297_spill] sm:$0xff] %v13267_v41  ;;  %5271 = vrot.lane.b32.xlu0 %v12670_v14, %s18899_s1  ;;  %v4098_v17 = vperm.slane %v4090_v42, %v10671_v37  ;;  %v13283_v9 = vsel %vm523_vm0, %v13267_v41, %v4109_v8  ;;  %v4076_v8 = vsel %vm523_vm0, %v4075_v46, %v4034_v18 }
 0x325   : > { %v13275_v3 = vpop.permute.xlu2 %5169  ;;  %18902 = vst [vmem:[#allocation300_spill] sm:$0xff] %v13283_v9  ;;  %v2855_v28 = vpop.permute.xlu1 %2854  ;;  %v4078_v43 = vsel %vm523_vm0, %v4046_v30, %v4077_v44  ;;  %v4105_v9 = vrot.slane %v13278_v57, 4  ;;  %v13300_v44 = vperm.slane %v4052_v40, %v10671_v37  ;;  %v18905_v30 = vld [vmem:[#allocation216_spill] sm:$0xff]  ;;  %v4113_v48 = vrot.slane %v4074_v31, 4 }
 0x326   : > { %18900 = vst [vmem:[#allocation298_spill] sm:$0xff] %v13275_v3  ;;  %v13285_v11 = vpop.permute.xlu0 %5145  ;;  %v13295_v42 = vperm.slane %v4078_v43, %v10671_v37  ;;  %v4129_v49 = vrot.slane %v2855_v28, 4  ;;  %v4111_v41 = vrot.slane %v4098_v17, 4  ;;  %v4118_v50 = vsel %vm523_vm0, %v18905_v30, %v4117_v5 }
 0x327   : > { %18904 = vst [vmem:[#allocation302_spill] sm:$0xff] %v13300_v44  ;;  %v13315_v18 = vperm.slane %v4076_v8, %v10671_v37  ;;  %v4115_v33 = vrot.slane %v18905_v30, 4  ;;  %v13326_v46 = vsel %vm523_vm0, %v4098_v17, %v4113_v48  ;;  %v4101_v8 = vrot.slane %v13300_v44, 4 }
 0x328   : > { %18903 = vst [vmem:[#allocation301_spill] sm:$0xff] %v13295_v42  ;;  %v13308_v62 = vsel %vm523_vm0, %v13295_v42, %v4105_v9  ;;  %v4130_v5 = vsel %vm523_vm0, %v12662_v60, %v4129_v49  ;;  %v13323_v9 = vsel %vm523_vm0, %v4111_v41, %v4074_v31  ;;  %v4127_v49 = vrot.slane %v12662_v60, 4 }
 0x329   : > { %18907 = vst [vmem:[#allocation216_spill] sm:$0xff] %v13308_v62  ;;  %v4116_v30 = vsel %vm523_vm0, %v4115_v33, %v12610_v19  ;;  %v13338_v41 = vperm.slane %v4130_v5, %v10647_v13  ;;  %v13342_v17 = vsel %vm523_vm0, %v13315_v18, %v4101_v8  ;;  %v4239_v42 = vrot.slane %v12649_v4, 4 }
 0x32a   : > { %18909 = vst [vmem:[#allocation303_spill] sm:$0xff] %v13315_v18  ;;  %v4128_v31 = vsel %vm523_vm0, %v4127_v49, %v2855_v28 }
 0x32b   : > { %5278 = vrot.lane.b32.xlu2 %v13292_v59, %s18906_s6  ;;  %2989 = vrot.lane.b32.xlu1 %v12916_v16, %s18899_s1  ;;  %18910 = vst [vmem:[#allocation304_spill] sm:$0xff] %v13323_v9  ;;  %v13329_v16 = vperm.slane %v4118_v50, %v10647_v13  ;;  %v4139_v50 = vrot.slane %v12700_v1, 4  ;;  %v4134_v33 = vperm.slane %v4128_v31, %v10647_v13  ;;  %s18913_s1 = smov 118  }
 0x32c   : > { %5281 = vrot.lane.b32.xlu0 %v13292_v59, %s18908_s10  ;;  %18911 = vst [vmem:[#allocation305_spill] sm:$0xff] %v13326_v46  ;;  %v4122_v46 = vperm.slane %v4116_v30, %v10647_v13 }
 0x32d   : > { %v13320_v43 = vpop.permute.xlu2 %5178  ;;  %v2864_v40 = vpop.permute.xlu1 %2863  ;;  %18912 = vst [vmem:[#allocation306_spill] sm:$0xff] %v13342_v17  ;;  %v4177_v19 = vrot.slane %v13329_v16, 4  ;;  %v4163_v18 = vrot.slane %v4134_v33, 4 }
 0x32e   : > { %v13331_v62 = vpop.permute.xlu0 %5154  ;;  %v4141_v57 = vrot.slane %v2864_v40, 4  ;;  %v4140_v60 = vsel %vm523_vm0, %v4139_v50, %v2864_v40  ;;  %v4165_v40 = vrot.slane %v4122_v46, 4 }
 0x32f   : > { %v4146_v30 = vperm.slane %v4140_v60, %v10647_v13 }
 0x330   : > { %v4142_v48 = vsel %vm523_vm0, %v12700_v1, %v4141_v57  ;;  %v4178_v1 = vsel %vm523_vm0, %v13338_v41, %v4177_v19  ;;  %v18914_v57 = vld [vmem:[#allocation220_spill] sm:$0xff]  ;;  %v4166_v19 = vsel %vm523_vm0, %v4134_v33, %v4165_v40 }
 0x331   : > { %v4150_v5 = vperm.slane %v4142_v48, %v10647_v13  ;;  %v4153_v28 = vrot.slane %v18914_v57, 4  ;;  %v13369_v17 = vperm.slane %v4178_v1, %v10671_v37  ;;  %v4189_v47 = vrot.slane %v4146_v30, 4 }
 0x332   : > { %v4240_v1 = vsel %vm523_vm0, %v4239_v42, %v12725_v12  ;;  %v13384_v40 = vperm.slane %v4166_v19, %v10671_v37  ;;  %v4251_v42 = vrot.slane %v12698_v63, 4  ;;  %v4164_v19 = vsel %vm523_vm0, %v4163_v18, %v4122_v46 }
 0x333   : > { %5287 = vrot.lane.b32.xlu2 %v13292_v59, %s18687_s13  ;;  %5088 = vrot.lane.b32.xlu1 %v12670_v14, %s18906_s6  ;;  %v4201_v9 = vrot.slane %v4150_v5, 4  ;;  %s18916_s6 = smov 114   ;;  %s18918_s13 = smov 112  }
 0x334   : > { %5290 = vrot.lane.b32.xlu0 %v13292_v59, %s18913_s1  ;;  %18917 = vst [vmem:[#allocation307_spill] sm:$0xff] %v13384_v40 }
 0x335   : > { %v13362_v8 = vpop.permute.xlu2 %5187  ;;  %v2873_v49 = vpop.permute.xlu1 %2872 }
 0x336   : > { %18915 = vst [vmem:[#allocation220_spill] sm:$0xff] %v13362_v8  ;;  %v13365_v50 = vpop.permute.xlu0 %5163  ;;  %v4151_v31 = vrot.slane %v2873_v49, 4  ;;  %v4154_v48 = vsel %vm523_vm0, %v2873_v49, %v4153_v28  ;;  %v4229_v49 = vrot.slane %v12600_v34, 4  ;;  %v4253_v8 = vrot.slane %v12761_v58, 4 }
 0x337   : > { %v4162_v44 = vperm.slane %v4154_v48, %v10647_v13 }
 0x338   : > { %v4152_v60 = vsel %vm523_vm0, %v4151_v31, %v18914_v57  ;;  %v4225_v57 = vrot.slane %v13369_v17, 4  ;;  %v4175_v31 = vrot.slane %v13338_v41, 4 }
 0x339   : > { %v4158_v29 = vperm.slane %v4152_v60, %v10647_v13  ;;  %v4202_v28 = vsel %vm523_vm0, %v4162_v44, %v4201_v9 }
 0x33a   : > { %v4210_v33 = vperm.slane %v4202_v28, %v10671_v37  ;;  %v4246_v28 = vperm.slane %v4240_v1, %v10647_v13 }
 0x33b   : > { %5296 = vrot.lane.b32.xlu2 %v13292_v59, %s18916_s6  ;;  %v4187_v48 = vrot.slane %v4158_v29, 4  ;;  %5091 = vrot.lane.b32.xlu1 %v12670_v14, %s18908_s10  ;;  %v4190_v12 = vsel %vm523_vm0, %v4158_v29, %v4189_v47  ;;  %v4242_v14 = vsel %vm523_vm0, %v12649_v4, %v4241_v38  ;;  %v4199_v47 = vrot.slane %v4162_v44, 4  ;;  %s18925_s10 = smov 108  }
 0x33c   : > { %5299 = vrot.lane.b32.xlu0 %v13292_v59, %s18918_s13  ;;  %v13400_v60 = vperm.slane %v4190_v12, %v10671_v37  ;;  %v13403_v41 = vsel %vm523_vm0, %v4210_v33, %v4225_v57  ;;  %v4217_v12 = vrot.slane %v13384_v40, 4  ;;  %v4252_v57 = vsel %vm523_vm0, %v4251_v42, %v12761_v58 }
 0x33d   : > { %v13396_v9 = vpop.permute.xlu2 %5196  ;;  %18921 = vst [vmem:[#allocation310_spill] sm:$0xff] %v13403_v41  ;;  %v2882_v29 = vpop.permute.xlu1 %2881  ;;  %v4188_v46 = vsel %vm523_vm0, %v4187_v48, %v4146_v30  ;;  %v13418_v38 = vperm.slane %v4164_v19, %v10671_v37  ;;  %v4176_v44 = vsel %vm523_vm0, %v4175_v31, %v13329_v16  ;;  %v4250_v1 = vperm.slane %v4242_v14, %v10647_v13  ;;  %v13443_v14 = vld [vmem:[%s10533_s24 + $0x20] sm:$0xff] }
 0x33e   : > { %18919 = vst [vmem:[#allocation308_spill] sm:$0xff] %v13396_v9  ;;  %v13409_v3 = vpop.permute.xlu0 %5172  ;;  %v4227_v9 = vrot.slane %v2882_v29, 4  ;;  %v4230_v18 = vsel %vm523_vm0, %v2882_v29, %v4229_v49  ;;  %v13427_v30 = vsel %vm523_vm0, %v13400_v60, %v4217_v12  ;;  %v4223_v48 = vrot.slane %v4210_v33, 4 }
 0x33f   : > { %18920 = vst [vmem:[#allocation309_spill] sm:$0xff] %v13400_v60  ;;  %v4238_v4 = vperm.slane %v4230_v18, %v10647_v13  ;;  %v4254_v58 = vsel %vm523_vm0, %v12698_v63, %v4253_v8  ;;  %v13433_v19 = vperm.slane %v4188_v46, %v10671_v37  ;;  %v4200_v16 = vsel %vm523_vm0, %v4199_v47, %v4150_v5 }
 0x340   : > { %18922 = vst [vmem:[#allocation311_spill] sm:$0xff] %v13418_v38  ;;  %v4228_v49 = vsel %vm523_vm0, %v4227_v9, %v12600_v34  ;;  %v4258_v31 = vperm.slane %v4252_v57, %v10647_v13  ;;  %v13440_v34 = vperm.slane %v4176_v44, %v10671_v37  ;;  %v4213_v63 = vrot.slane %v13418_v38, 4 }
 0x341   : > { %18923 = vst [vmem:[#allocation312_spill] sm:$0xff] %v13427_v30  ;;  %v4234_v42 = vperm.slane %v4228_v49, %v10647_v13  ;;  %v4289_v33 = vrot.slane %v4238_v4, 4  ;;  %v4262_v5 = vperm.slane %v4254_v58, %v10647_v13  ;;  %v4263_v8 = vrot.slane %v12804_v22, 4 }
 0x342   : > { %18924 = vst [vmem:[#allocation313_spill] sm:$0xff] %v13433_v19  ;;  %v13455_v29 = vperm.slane %v4200_v16, %v10671_v37  ;;  %v13459_v18 = vsel %vm523_vm0, %v4223_v48, %v13369_v17  ;;  %v4275_v46 = vrot.slane %v4246_v28, 4  ;;  %v4287_v12 = vrot.slane %v4250_v1, 4 }
 0x343   : > { %5305 = vrot.lane.b32.xlu2 %v13292_v59, %s18925_s10  ;;  %18926 = vst [vmem:[#allocation314_spill] sm:$0xff] %v13440_v34  ;;  %v4277_v9 = vrot.slane %v4234_v42, 4  ;;  %5094 = vrot.lane.b32.xlu1 %v13443_v14, %s18927_s7  ;;  %v13466_v58 = vsel %vm523_vm0, %v13433_v19, %v4213_v63  ;;  %v4301_v41 = vrot.slane %v4258_v31, 4  ;;  %v4221_v40 = vrot.slane %v13440_v34, 4  ;;  %s18934_s7 = smov 102  }
 0x344   : > { %5308 = vrot.lane.b32.xlu0 %v13292_v59, %s18928_s3  ;;  %18929 = vst [vmem:[#allocation315_spill] sm:$0xff] %v13455_v29  ;;  %v4276_v48 = vsel %vm523_vm0, %v4275_v46, %v4234_v42  ;;  %v4290_v38 = vsel %vm523_vm0, %v4250_v1, %v4289_v33  ;;  %v4288_v42 = vsel %vm523_vm0, %v4287_v12, %v4238_v4  ;;  %v4589_v60 = vrot.slane %v13091_v54, 4 }
 0x345   : > { %v13452_v47 = vpop.permute.xlu2 %5205  ;;  %18930 = vst [vmem:[#allocation316_spill] sm:$0xff] %v13459_v18  ;;  %v2891_v57 = vpop.permute.xlu1 %2890  ;;  %v4278_v49 = vsel %vm523_vm0, %v4246_v28, %v4277_v9  ;;  %v4313_v28 = vrot.slane %v4262_v5, 4  ;;  %v13480_v63 = vsel %vm523_vm0, %v13455_v29, %v4221_v40  ;;  %v13488_v1 = vperm.slane %v4276_v48, %v10671_v37 }
 0x346   : > { %v13461_v44 = vpop.permute.xlu0 %5181  ;;  %18931 = vst [vmem:[#allocation317_spill] sm:$0xff] %v13466_v58  ;;  %v4264_v30 = vsel %vm523_vm0, %v4263_v8, %v2891_v57  ;;  %v4265_v16 = vrot.slane %v2891_v57, 4  ;;  %v13473_v18 = vperm.slane %v4278_v49, %v10671_v37  ;;  %v4298_v40 = vperm.slane %v4290_v38, %v10671_v37 }
 0x347   : > { %v4270_v17 = vperm.slane %v4264_v30, %v10647_v13  ;;  %18933 = vst [vmem:[#allocation319_spill] sm:$0xff] %v13480_v63  ;;  %v13511_v38 = vperm.slane %v4288_v42, %v10671_v37 }
 0x348   : > { %18932 = vst [vmem:[#allocation318_spill] sm:$0xff] %v13473_v18  ;;  %v4266_v9 = vsel %vm523_vm0, %v12804_v22, %v4265_v16  ;;  %v4329_v22 = vrot.slane %v13473_v18, 4 }
 0x349   : > { %v4274_v8 = vperm.slane %v4266_v9, %v10647_v13  ;;  %v4299_v57 = vrot.slane %v4270_v17, 4  ;;  %v4302_v30 = vsel %vm523_vm0, %v4270_v17, %v4301_v41  ;;  %18935 = vst [vmem:[#allocation320_spill] sm:$0xff] %v13488_v1 }
 0x34a   : > { %v13491_v33 = vperm.slane %v4302_v30, %v10671_v37  ;;  %18939 = vst [vmem:[#allocation324_spill] sm:$0xff] %v13511_v38 }
 0x34b   : > { %5314 = vrot.lane.b32.xlu2 %v13292_v59, %s18934_s7  ;;  %v4311_v46 = vrot.slane %v4274_v8, 4  ;;  %5100 = vrot.lane.b32.xlu1 %v13443_v14, %s18913_s1  ;;  %v4300_v41 = vsel %vm523_vm0, %v4299_v57, %v4258_v31  ;;  %v4314_v4 = vsel %vm523_vm0, %v4274_v8, %v4313_v28  ;;  %v4337_v8 = vrot.slane %v4298_v40, 4  ;;  %s18944_s1 = smov 96  }
 0x34c   : > { %18936 = vst [vmem:[#allocation321_spill] sm:$0xff] %v13491_v33  ;;  %5317 = vrot.lane.b32.xlu0 %v13292_v59, %s18837_s15  ;;  %v13504_v49 = vperm.slane %v4300_v41, %v10671_v37  ;;  %v13508_v16 = vsel %vm523_vm0, %v13491_v33, %v4329_v22  ;;  %v4322_v17 = vperm.slane %v4314_v4, %v10671_v37  ;;  %v4325_v57 = vrot.slane %v13488_v1, 4 }
 0x34d   : > { %v13501_v12 = vpop.permute.xlu2 %5214  ;;  %18938 = vst [vmem:[#allocation323_spill] sm:$0xff] %v13508_v16  ;;  %v2900_v48 = vpop.permute.xlu1 %2899  ;;  %v4312_v31 = vsel %vm523_vm0, %v4311_v46, %v4262_v5  ;;  %v4333_v5 = vrot.slane %v13511_v38, 4 }
 0x34e   : > { %18937 = vst [vmem:[#allocation322_spill] sm:$0xff] %v13504_v49  ;;  %v13514_v9 = vpop.permute.xlu0 %5190  ;;  %v4341_v28 = vrot.slane %v2900_v48, 4  ;;  %v13519_v30 = vperm.slane %v4312_v31, %v10671_v37  ;;  %v4335_v41 = vrot.slane %v4322_v17, 4  ;;  %v13524_v42 = vsel %vm523_vm0, %v4322_v17, %v4337_v8 }
 0x34f   : > { %18941 = vst [vmem:[#allocation326_spill] sm:$0xff] %v13524_v42  ;;  %v13528_v4 = vsel %vm523_vm0, %v13504_v49, %v4325_v57  ;;  %v4353_v17 = vrot.slane %v12721_v6, 4 }
 0x350   : > { %18940 = vst [vmem:[#allocation325_spill] sm:$0xff] %v13519_v30  ;;  %v4342_v22 = vsel %vm523_vm0, %v12838_v55, %v4341_v28  ;;  %v13532_v46 = vsel %vm523_vm0, %v4335_v41, %v4298_v40  ;;  %v13538_v31 = vsel %vm523_vm0, %v13519_v30, %v4333_v5  ;;  %v4377_v40 = vrot.slane %v12882_v51, 4 }
 0x351   : > { %18942 = vst [vmem:[#allocation327_spill] sm:$0xff] %v13528_v4  ;;  %v4350_v28 = vperm.slane %v4342_v22, %v10647_v13  ;;  %v4339_v5 = vrot.slane %v12838_v55, 4 }
 0x352   : > { %18943 = vst [vmem:[#allocation328_spill] sm:$0xff] %v13532_v46  ;;  %v4378_v58 = vsel %vm523_vm0, %v12793_v20, %v4377_v40 }
 0x353   : > { %5323 = vrot.lane.b32.xlu2 %v13292_v59, %s18944_s1  ;;  %18945 = vst [vmem:[#allocation329_spill] sm:$0xff] %v13538_v31  ;;  %5106 = vrot.lane.b32.xlu1 %v13443_v14, %s18916_s6  ;;  %v4401_v63 = vrot.slane %v4350_v28, 4  ;;  %v4340_v42 = vsel %vm523_vm0, %v4339_v5, %v2900_v48  ;;  %s18946_s6 = smov 90   ;;  %v4386_v55 = vperm.slane %v4378_v58, %v10647_v13 }
 0x354   : > { %5326 = vrot.lane.b32.xlu0 %v13292_v59, %s18838_s16 }
 0x355   : > { %v13547_v8 = vpop.permute.xlu2 %5223  ;;  %v2909_v57 = vpop.permute.xlu1 %2908 }
 0x356   : > { %v13549_v41 = vpop.permute.xlu0 %5199  ;;  %v4351_v31 = vrot.slane %v2909_v57, 4  ;;  %v4354_v22 = vsel %vm523_vm0, %v2909_v57, %v4353_v17  ;;  %v4346_v17 = vperm.slane %v4340_v42, %v10647_v13 }
 0x357   : > { %v4362_v4 = vperm.slane %v4354_v22, %v10647_v13 }
 0x358   : > { %v4352_v16 = vsel %vm523_vm0, %v4351_v31, %v12721_v6  ;;  %v4375_v6 = vrot.slane %v12793_v20, 4  ;;  %v4389_v22 = vrot.slane %v4346_v17, 4 }
 0x359   : > { %v4399_v46 = vrot.slane %v4362_v4, 4  ;;  %v4402_v38 = vsel %vm523_vm0, %v4362_v4, %v4401_v63  ;;  %v4365_v63 = vrot.slane %v12751_v10, 4  ;;  %v4358_v31 = vperm.slane %v4352_v16, %v10647_v13 }
 0x35b   : > { %5332 = vrot.lane.b32.xlu2 %v13292_v59, %s18946_s6  ;;  %5109 = vrot.lane.b32.xlu1 %v13443_v14, %s18918_s13  ;;  %v4400_v48 = vsel %vm523_vm0, %v4399_v46, %v4350_v28  ;;  %v4376_v46 = vsel %vm523_vm0, %v4375_v6, %v12882_v51  ;;  %v4423_v28 = vrot.slane %v4386_v55, 4  ;;  %s18949_s13 = smov 110  }
 0x35c   : > { %5335 = vrot.lane.b32.xlu0 %v13292_v59, %s18758_s26  ;;  %v13578_v5 = vperm.slane %v4400_v48, %v10671_v37  ;;  %v4382_v48 = vperm.slane %v4376_v46, %v10647_v13 }
 0x35d   : > { %v13570_v4 = vpop.permute.xlu2 %5232  ;;  %v2918_v40 = vpop.permute.xlu1 %2917 }
 0x35e   : > { %v13574_v58 = vpop.permute.xlu0 %5208  ;;  %v4363_v42 = vrot.slane %v2918_v40, 4  ;;  %v4366_v57 = vsel %vm523_vm0, %v2918_v40, %v4365_v63  ;;  %18947 = vst [vmem:[#allocation330_spill] sm:$0xff] %v13578_v5  ;;  %v4390_v63 = vsel %vm523_vm0, %v4358_v31, %v4389_v22  ;;  %v4387_v40 = vrot.slane %v4358_v31, 4 }
 0x35f   : > { %v4374_v30 = vperm.slane %v4366_v57, %v10647_v13  ;;  %v4445_v6 = vrot.slane %v13578_v5, 4  ;;  %v13603_v31 = vperm.slane %v4390_v63, %v10671_v37  ;;  %v4453_v5 = vrot.slane %v12934_v2, 4 }
 0x360   : > { %v4364_v20 = vsel %vm523_vm0, %v4363_v42, %v12751_v10 }
 0x361   : > { %v4370_v16 = vperm.slane %v4364_v20, %v10647_v13  ;;  %v4424_v34 = vsel %vm523_vm0, %v4423_v28, %v4374_v30  ;;  %v4425_v29 = vrot.slane %v4374_v30, 4  ;;  %18950 = vst [vmem:[#allocation332_spill] sm:$0xff] %v13603_v31  ;;  %v4411_v20 = vrot.slane %v4382_v48, 4 }
 0x362   : > { %v13592_v51 = vperm.slane %v4424_v34, %v10671_v37 }
 0x363   : > { %5341 = vrot.lane.b32.xlu2 %v13292_v59, %s18576_s28  ;;  %v4413_v57 = vrot.slane %v4370_v16, 4  ;;  %5112 = vrot.lane.b32.xlu1 %v13443_v14, %s18949_s13  ;;  %v4426_v10 = vsel %vm523_vm0, %v4386_v55, %v4425_v29  ;;  %v4388_v29 = vsel %vm523_vm0, %v4387_v40, %v4346_v17  ;;  %v4410_v55 = vperm.slane %v4402_v38, %v10671_v37  ;;  %s19017_s28 = smov 4  }
 0x364   : > { %18948 = vst [vmem:[#allocation331_spill] sm:$0xff] %v13592_v51  ;;  %5344 = vrot.lane.b32.xlu0 %v13292_v59, %s18759_s23  ;;  %v4434_v42 = vperm.slane %v4426_v10, %v10671_v37  ;;  %v13608_v34 = vsel %vm523_vm0, %v13592_v51, %v4445_v6  ;;  %v4412_v18 = vsel %vm523_vm0, %v4411_v20, %v4370_v16  ;;  %v4441_v6 = vrot.slane %v13603_v31, 4 }
 0x365   : > { %v13600_v30 = vpop.permute.xlu2 %5241  ;;  %18951 = vst [vmem:[#allocation333_spill] sm:$0xff] %v13608_v34  ;;  %v2927_v46 = vpop.permute.xlu1 %2926  ;;  %v4414_v22 = vsel %vm523_vm0, %v4382_v48, %v4413_v57  ;;  %v13622_v51 = vperm.slane %v4388_v29, %v10671_v37  ;;  %v4454_v48 = vsel %vm523_vm0, %v12835_v35, %v4453_v5  ;;  %v4449_v17 = vrot.slane %v4410_v55, 4 }
 0x366   : > { %v13610_v28 = vpop.permute.xlu0 %5217  ;;  %v13617_v63 = vperm.slane %v4414_v22, %v10671_v37  ;;  %v4465_v10 = vrot.slane %v2927_v46, 4  ;;  %v4447_v34 = vrot.slane %v4434_v42, 4  ;;  %v13637_v16 = vperm.slane %v4412_v18, %v10671_v37 }
 0x367   : > { %18953 = vst [vmem:[#allocation335_spill] sm:$0xff] %v13622_v51  ;;  %v4451_v40 = vrot.slane %v12835_v35, 4  ;;  %v13648_v20 = vsel %vm523_vm0, %v4434_v42, %v4449_v17  ;;  %v13651_v29 = vperm.slane %v4454_v48, %v10647_v13  ;;  %v4437_v18 = vrot.slane %v13622_v51, 4 }
 0x368   : > { %18952 = vst [vmem:[#allocation334_spill] sm:$0xff] %v13617_v63  ;;  %v13630_v38 = vsel %vm523_vm0, %v13617_v63, %v4441_v6  ;;  %v4466_v5 = vsel %vm523_vm0, %v12987_v26, %v4465_v10  ;;  %v13645_v22 = vsel %vm523_vm0, %v4447_v34, %v4410_v55  ;;  %v4463_v10 = vrot.slane %v12987_v26, 4 }
 0x369   : > { %18954 = vst [vmem:[#allocation336_spill] sm:$0xff] %v13630_v38  ;;  %v4452_v35 = vsel %vm523_vm0, %v4451_v40, %v12934_v2  ;;  %v13660_v34 = vperm.slane %v4466_v5, %v10647_v13  ;;  %v13664_v42 = vsel %vm523_vm0, %v13637_v16, %v4437_v18  ;;  %v4475_v55 = vrot.slane %v13022_v7, 4 }
 0x36a   : > { %18955 = vst [vmem:[#allocation337_spill] sm:$0xff] %v13637_v16  ;;  %v4464_v48 = vsel %vm523_vm0, %v4463_v10, %v2927_v46  ;;  %v4513_v2 = vrot.slane %v13651_v29, 4  ;;  %v4575_v51 = vrot.slane %v12974_v15, 4 }
 0x36b   : > { %5350 = vrot.lane.b32.xlu2 %v13292_v59, %s18776_s5  ;;  %5115 = vrot.lane.b32.xlu1 %v13443_v14, %s18925_s10  ;;  %18956 = vst [vmem:[#allocation338_spill] sm:$0xff] %v13645_v22  ;;  %v4470_v40 = vperm.slane %v4464_v48, %v10647_v13  ;;  %s19016_s5 = smov 74   ;;  %s19037_s10 = smov 50  }
 0x36c   : > { %5353 = vrot.lane.b32.xlu0 %v13292_v59, %s18763_s8  ;;  %18957 = vst [vmem:[#allocation339_spill] sm:$0xff] %v13648_v20  ;;  %v4458_v20 = vperm.slane %v4452_v35, %v10647_v13 }
 0x36d   : > { %v13642_v57 = vpop.permute.xlu2 %5250  ;;  %v2936_v6 = vpop.permute.xlu1 %2935  ;;  %18958 = vst [vmem:[#allocation340_spill] sm:$0xff] %v13664_v42  ;;  %v4499_v63 = vrot.slane %v4470_v40, 4 }
 0x36e   : > { %v13653_v38 = vpop.permute.xlu0 %5226  ;;  %v4477_v31 = vrot.slane %v2936_v6, 4  ;;  %v4476_v26 = vsel %vm523_vm0, %v4475_v55, %v2936_v6  ;;  %v4501_v6 = vrot.slane %v4458_v20, 4 }
 0x36f   : > { %v4482_v18 = vperm.slane %v4476_v26, %v10647_v13  ;;  %v4577_v26 = vrot.slane %v13049_v56, 4 }
 0x370   : > { %v4478_v17 = vsel %vm523_vm0, %v13022_v7, %v4477_v31  ;;  %v4514_v7 = vsel %vm523_vm0, %v13660_v34, %v4513_v2  ;;  %v4489_v31 = vrot.slane %v12869_v39, 4  ;;  %v4502_v2 = vsel %vm523_vm0, %v4470_v40, %v4501_v6 }
 0x371   : > { %v4486_v5 = vperm.slane %v4478_v17, %v10647_v13  ;;  %v4522_v17 = vperm.slane %v4514_v7, %v10671_v37  ;;  %v4525_v1 = vrot.slane %v4482_v18, 4  ;;  %v4576_v7 = vsel %vm523_vm0, %v4575_v51, %v13049_v56 }
 0x372   : > { %v13704_v6 = vperm.slane %v4502_v2, %v10671_v37  ;;  %v4587_v51 = vrot.slane %v13020_v36, 4  ;;  %v4582_v49 = vperm.slane %v4576_v7, %v10647_v13 }
 0x373   : > { %5359 = vrot.lane.b32.xlu2 %v13292_v59, %s18778_s2  ;;  %5118 = vrot.lane.b32.xlu1 %v13443_v14, %s18928_s3  ;;  %v4537_v42 = vrot.slane %v4486_v5, 4  ;;  %s18960_s2 = smov 104  }
 0x374   : > { %5362 = vrot.lane.b32.xlu0 %v13292_v59, %s18772_s21  ;;  %18959 = vst [vmem:[#allocation341_spill] sm:$0xff] %v13704_v6 }
 0x375   : > { %v13684_v46 = vpop.permute.xlu2 %5259  ;;  %v2945_v35 = vpop.permute.xlu1 %2944 }
 0x376   : > { %v13687_v10 = vpop.permute.xlu0 %5235  ;;  %v4487_v55 = vrot.slane %v2945_v35, 4  ;;  %v4490_v48 = vsel %vm523_vm0, %v2945_v35, %v4489_v31  ;;  %v4561_v35 = vrot.slane %v4522_v17, 4 }
 0x377   : > { %v4498_v22 = vperm.slane %v4490_v48, %v10647_v13 }
 0x378   : > { %v4488_v16 = vsel %vm523_vm0, %v4487_v55, %v12869_v39  ;;  %v4565_v39 = vrot.slane %v12925_v24, 4  ;;  %v4511_v55 = vrot.slane %v13660_v34, 4 }
 0x379   : > { %v4494_v33 = vperm.slane %v4488_v16, %v10647_v13  ;;  %v4538_v31 = vsel %vm523_vm0, %v4498_v22, %v4537_v42  ;;  %v4500_v42 = vsel %vm523_vm0, %v4499_v63, %v4458_v20 }
 0x37a   : > { %v4546_v40 = vperm.slane %v4538_v31, %v10671_v37  ;;  %v4578_v31 = vsel %vm523_vm0, %v12974_v15, %v4577_v26  ;;  %v13737_v26 = vperm.slane %v4500_v42, %v10671_v37 }
 0x37b   : > { %5368 = vrot.lane.b32.xlu2 %v13292_v59, %s18780_s18  ;;  %v4523_v48 = vrot.slane %v4494_v33, 4  ;;  %5121 = vrot.lane.b32.xlu1 %v13443_v14, %s18960_s2  ;;  %v4526_v56 = vsel %vm523_vm0, %v4494_v33, %v4525_v1  ;;  %v4535_v1 = vrot.slane %v4498_v22, 4  ;;  %v4512_v22 = vsel %vm523_vm0, %v4511_v55, %v13651_v29  ;;  %s19009_s18 = smov 10  }
 0x37c   : > { %5371 = vrot.lane.b32.xlu0 %v13292_v59, %s18773_s11  ;;  %v13719_v2 = vperm.slane %v4526_v56, %v10671_v37  ;;  %v13722_v34 = vsel %vm523_vm0, %v4546_v40, %v4561_v35  ;;  %v4553_v56 = vrot.slane %v13704_v6, 4  ;;  %v4588_v35 = vsel %vm523_vm0, %v4587_v51, %v13091_v54  ;;  %18964 = vst [vmem:[#allocation345_spill] sm:$0xff] %v13737_v26 }
 0x37d   : > { %v13715_v16 = vpop.permute.xlu2 %5268  ;;  %18963 = vst [vmem:[#allocation344_spill] sm:$0xff] %v13722_v34  ;;  %v2954_v33 = vpop.permute.xlu1 %2953  ;;  %v4524_v20 = vsel %vm523_vm0, %v4523_v48, %v4482_v18  ;;  %v4586_v7 = vperm.slane %v4578_v31, %v10647_v13  ;;  %v4559_v48 = vrot.slane %v4546_v40, 4  ;;  %v4590_v54 = vsel %vm523_vm0, %v13020_v36, %v4589_v60 }
 0x37e   : > { %18961 = vst [vmem:[#allocation342_spill] sm:$0xff] %v13715_v16  ;;  %v13728_v19 = vpop.permute.xlu0 %5244  ;;  %v4563_v16 = vrot.slane %v2954_v33, 4  ;;  %v4566_v63 = vsel %vm523_vm0, %v2954_v33, %v4565_v39  ;;  %v13746_v18 = vsel %vm523_vm0, %v13719_v2, %v4553_v56  ;;  %v13752_v42 = vperm.slane %v4524_v20, %v10671_v37 }
 0x37f   : > { %18962 = vst [vmem:[#allocation343_spill] sm:$0xff] %v13719_v2  ;;  %v4574_v15 = vperm.slane %v4566_v63, %v10647_v13  ;;  %v4536_v29 = vsel %vm523_vm0, %v4535_v1, %v4486_v5  ;;  %v4594_v55 = vperm.slane %v4588_v35, %v10647_v13  ;;  %v4549_v36 = vrot.slane %v13737_v26, 4 }
 0x380   : > { %v4564_v39 = vsel %vm523_vm0, %v4563_v16, %v12925_v24  ;;  %18965 = vst [vmem:[#allocation346_spill] sm:$0xff] %v13746_v18  ;;  %v13759_v24 = vperm.slane %v4512_v22, %v10671_v37  ;;  %v4598_v60 = vperm.slane %v4590_v54, %v10647_v13  ;;  %v4599_v5 = vrot.slane %v13141_v32, 4 }
 0x381   : > { %v4570_v51 = vperm.slane %v4564_v39, %v10647_v13  ;;  %18966 = vst [vmem:[#allocation347_spill] sm:$0xff] %v13752_v42  ;;  %v4625_v40 = vrot.slane %v4574_v15, 4  ;;  %v13771_v1 = vperm.slane %v4536_v29, %v10671_v37  ;;  %v13774_v33 = vsel %vm523_vm0, %v4559_v48, %v4522_v17 }
 0x382   : > { %18967 = vst [vmem:[#allocation348_spill] sm:$0xff] %v13759_v24  ;;  %v4611_v63 = vrot.slane %v4582_v49, 4  ;;  %v4623_v20 = vrot.slane %v4586_v7, 4  ;;  %v13781_v39 = vsel %vm523_vm0, %v13752_v42, %v4549_v36  ;;  %v4637_v54 = vrot.slane %v4594_v55, 4 }
 0x383   : > { %5377 = vrot.lane.b32.xlu2 %v13292_v59, %s18599_s9  ;;  %v4613_v16 = vrot.slane %v4570_v51, 4  ;;  %5124 = vrot.lane.b32.xlu1 %v13443_v14, %s18934_s7  ;;  %18968 = vst [vmem:[#allocation349_spill] sm:$0xff] %v13771_v1  ;;  %v4557_v29 = vrot.slane %v13759_v24, 4  ;;  %v4626_v6 = vsel %vm523_vm0, %v4586_v7, %v4625_v40  ;;  %s19008_s9 = smov 80   ;;  %s19031_s7 = smov 62  }
 0x384   : > { %5380 = vrot.lane.b32.xlu0 %v13292_v59, %s18774_s4  ;;  %18969 = vst [vmem:[#allocation350_spill] sm:$0xff] %v13774_v33  ;;  %v4612_v48 = vsel %vm523_vm0, %v4611_v63, %v4570_v51  ;;  %v4624_v51 = vsel %vm523_vm0, %v4623_v20, %v4574_v15 }
 0x385   : > { %v13768_v31 = vpop.permute.xlu2 %5278  ;;  %v2963_v56 = vpop.permute.xlu1 %2962  ;;  %v4614_v22 = vsel %vm523_vm0, %v4582_v49, %v4613_v16  ;;  %18970 = vst [vmem:[#allocation351_spill] sm:$0xff] %v13781_v39  ;;  %v4649_v49 = vrot.slane %v4598_v60, 4  ;;  %v13795_v36 = vsel %vm523_vm0, %v13771_v1, %v4557_v29  ;;  %v13803_v7 = vperm.slane %v4612_v48, %v10671_v37 }
 0x386   : > { %v13776_v35 = vpop.permute.xlu0 %5253  ;;  %v4600_v34 = vsel %vm523_vm0, %v4599_v5, %v2963_v56  ;;  %v4601_v18 = vrot.slane %v2963_v56, 4  ;;  %v13788_v33 = vperm.slane %v4614_v22, %v10671_v37  ;;  %18972 = vst [vmem:[#allocation353_spill] sm:$0xff] %v13795_v36 }
 0x387   : > { %v4606_v17 = vperm.slane %v4600_v34, %v10647_v13  ;;  %18973 = vst [vmem:[#allocation354_spill] sm:$0xff] %v13803_v7 }
 0x388   : > { %18971 = vst [vmem:[#allocation352_spill] sm:$0xff] %v13788_v33  ;;  %v4602_v16 = vsel %vm523_vm0, %v13141_v32, %v4601_v18  ;;  %v4665_v32 = vrot.slane %v13788_v33, 4  ;;  %v4634_v18 = vperm.slane %v4626_v6, %v10671_v37  ;;  %v13825_v6 = vperm.slane %v4624_v51, %v10671_v37 }
 0x389   : > { %v4610_v5 = vperm.slane %v4602_v16, %v10647_v13  ;;  %v4635_v56 = vrot.slane %v4606_v17, 4  ;;  %v4638_v34 = vsel %vm523_vm0, %v4606_v17, %v4637_v54 }
 0x38a   : > { %v13806_v40 = vperm.slane %v4638_v34, %v10671_v37  ;;  %18977 = vst [vmem:[#allocation358_spill] sm:$0xff] %v13825_v6  ;;  %v4673_v34 = vrot.slane %v4634_v18, 4 }
 0x38b   : > { %5386 = vrot.lane.b32.xlu2 %v13292_v59, %s18784_s20  ;;  %v4647_v63 = vrot.slane %v4610_v5, 4  ;;  %5127 = vrot.lane.b32.xlu1 %v13443_v14, %s18837_s15  ;;  %v4636_v15 = vsel %vm523_vm0, %v4635_v56, %v4594_v55  ;;  %v4650_v29 = vsel %vm523_vm0, %v4610_v5, %v4649_v49  ;;  %s18983_s20 = smov 98  }
 0x38c   : > { %18974 = vst [vmem:[#allocation355_spill] sm:$0xff] %v13806_v40  ;;  %5389 = vrot.lane.b32.xlu0 %v13292_v59, %s18775_s29  ;;  %v13818_v22 = vperm.slane %v4636_v15, %v10671_v37  ;;  %v13822_v54 = vsel %vm523_vm0, %v13806_v40, %v4665_v32  ;;  %v4658_v55 = vperm.slane %v4650_v29, %v10671_v37  ;;  %v4661_v15 = vrot.slane %v13803_v7, 4 }
 0x38d   : > { %v13815_v20 = vpop.permute.xlu2 %5287  ;;  %18976 = vst [vmem:[#allocation357_spill] sm:$0xff] %v13822_v54  ;;  %v2972_v17 = vpop.permute.xlu1 %2971  ;;  %v4648_v16 = vsel %vm523_vm0, %v4647_v63, %v4598_v60  ;;  %v4669_v60 = vrot.slane %v13825_v6, 4 }
 0x38e   : > { %18975 = vst [vmem:[#allocation356_spill] sm:$0xff] %v13818_v22  ;;  %v13828_v48 = vpop.permute.xlu0 %5262  ;;  %v4677_v56 = vrot.slane %v2972_v17, 4  ;;  %v13834_v36 = vperm.slane %v4648_v16, %v10671_v37  ;;  %v4671_v32 = vrot.slane %v4658_v55, 4  ;;  %v13839_v49 = vsel %vm523_vm0, %v4658_v55, %v4673_v34 }
 0x38f   : > { %18979 = vst [vmem:[#allocation360_spill] sm:$0xff] %v13839_v49  ;;  %v13843_v5 = vsel %vm523_vm0, %v13818_v22, %v4661_v15  ;;  %v4689_v55 = vrot.slane %v13047_v27, 4  ;;  %v4675_v34 = vrot.slane %v13189_v45, 4  ;;  %v4711_v49 = vrot.slane %v13133_v53, 4 }
 0x390   : > { %18978 = vst [vmem:[#allocation359_spill] sm:$0xff] %v13834_v36  ;;  %v4678_v51 = vsel %vm523_vm0, %v13189_v45, %v4677_v56  ;;  %v13847_v63 = vsel %vm523_vm0, %v4671_v32, %v4634_v18  ;;  %v13853_v29 = vsel %vm523_vm0, %v13834_v36, %v4669_v60  ;;  %v4713_v18 = vrot.slane %v13224_v25, 4 }
 0x391   : > { %18980 = vst [vmem:[#allocation361_spill] sm:$0xff] %v13843_v5  ;;  %v4686_v16 = vperm.slane %v4678_v51, %v10647_v13 }
 0x392   : > { %18981 = vst [vmem:[#allocation362_spill] sm:$0xff] %v13847_v63  ;;  %v4714_v63 = vsel %vm523_vm0, %v13133_v53, %v4713_v18  ;;  %v4701_v53 = vrot.slane %v13076_v61, 4 }
 0x393   : > { %5395 = vrot.lane.b32.xlu2 %v13292_v59, %s18786_s14  ;;  %18982 = vst [vmem:[#allocation363_spill] sm:$0xff] %v13853_v29  ;;  %5130 = vrot.lane.b32.xlu1 %v13443_v14, %s18983_s20  ;;  %v4676_v29 = vsel %vm523_vm0, %v4675_v34, %v2972_v17  ;;  %v4737_v5 = vrot.slane %v4686_v16, 4  ;;  %v4722_v34 = vperm.slane %v4714_v63, %v10647_v13  ;;  %s19004_s14 = smov 16  }
 0x394   : > { %5398 = vrot.lane.b32.xlu0 %v13292_v59, %s18777_s17  ;;  %v4682_v17 = vperm.slane %v4676_v29, %v10647_v13 }
 0x395   : > { %v13862_v56 = vpop.permute.xlu2 %5296  ;;  %v2981_v15 = vpop.permute.xlu1 %2980 }
 0x396   : > { %v13865_v32 = vpop.permute.xlu0 %5271  ;;  %v4687_v60 = vrot.slane %v2981_v15, 4  ;;  %v4690_v51 = vsel %vm523_vm0, %v2981_v15, %v4689_v55  ;;  %v4712_v55 = vsel %vm523_vm0, %v4711_v49, %v13224_v25 }
 0x397   : > { %v4698_v39 = vperm.slane %v4690_v51, %v10647_v13  ;;  %v4718_v25 = vperm.slane %v4712_v55, %v10647_v13 }
 0x398   : > { %v4688_v6 = vsel %vm523_vm0, %v4687_v60, %v13047_v27  ;;  %v4759_v60 = vrot.slane %v4722_v34, 4 }
 0x399   : > { %v4694_v45 = vperm.slane %v4688_v6, %v10647_v13  ;;  %v4735_v54 = vrot.slane %v4698_v39, 4  ;;  %v4738_v36 = vsel %vm523_vm0, %v4698_v39, %v4737_v5  ;;  %v4725_v5 = vrot.slane %v4682_v17, 4 }
 0x39a   : > { %v4747_v24 = vrot.slane %v4718_v25, 4 }
 0x39b   : > { %5404 = vrot.lane.b32.xlu2 %v13292_v59, %s18619_s12  ;;  %v4723_v15 = vrot.slane %v4694_v45, 4  ;;  %5133 = vrot.lane.b32.xlu1 %v13443_v14, %s18944_s1  ;;  %v4736_v27 = vsel %vm523_vm0, %v4735_v54, %v4686_v16  ;;  %v4726_v55 = vsel %vm523_vm0, %v4694_v45, %v4725_v5  ;;  %s19003_s12 = smov 86   ;;  %s19028_s1 = smov 120  }
 0x39c   : > { %5407 = vrot.lane.b32.xlu0 %v13292_v59, %s18779_s25  ;;  %v13896_v18 = vperm.slane %v4736_v27, %v10671_v37 }
 0x39d   : > { %v13889_v39 = vpop.permute.xlu2 %5305  ;;  %v2990_v6 = vpop.permute.xlu1 %2989  ;;  %v4724_v54 = vsel %vm523_vm0, %v4723_v15, %v4682_v17  ;;  %v4746_v17 = vperm.slane %v4738_v36, %v10671_v37 }
 0x39e   : > { %v13892_v49 = vpop.permute.xlu0 %5281  ;;  %v4699_v63 = vrot.slane %v2990_v6, 4  ;;  %v4702_v29 = vsel %vm523_vm0, %v2990_v6, %v4701_v53  ;;  %18984 = vst [vmem:[#allocation364_spill] sm:$0xff] %v13896_v18  ;;  %v13908_v27 = vperm.slane %v4724_v54, %v10671_v37  ;;  %v13921_v6 = vperm.slane %v4726_v55, %v10671_v37 }
 0x39f   : > { %v4710_v51 = vperm.slane %v4702_v29, %v10647_v13 }
 0x3a0   : > { %v4700_v16 = vsel %vm523_vm0, %v4699_v63, %v13076_v61  ;;  %18985 = vst [vmem:[#allocation365_spill] sm:$0xff] %v13908_v27  ;;  %v4781_v61 = vrot.slane %v13896_v18, 4  ;;  %v4773_v54 = vrot.slane %v13908_v27, 4 }
 0x3a1   : > { %v4706_v1 = vperm.slane %v4700_v16, %v10647_v13  ;;  %v4760_v33 = vsel %vm523_vm0, %v4759_v60, %v4710_v51  ;;  %v4761_v7 = vrot.slane %v4710_v51, 4  ;;  %18987 = vst [vmem:[#allocation367_spill] sm:$0xff] %v13921_v6 }
 0x3a2   : > { %v13911_v53 = vperm.slane %v4760_v33, %v10671_v37 }
 0x3a3   : > { %5413 = vrot.lane.b32.xlu2 %v13292_v59, %s18627_s22  ;;  %v4749_v45 = vrot.slane %v4706_v1, 4  ;;  %5136 = vrot.lane.b32.xlu1 %v13443_v14, %s18838_s16  ;;  %v4748_v15 = vsel %vm523_vm0, %v4747_v24, %v4706_v1  ;;  %v4762_v5 = vsel %vm523_vm0, %v4722_v34, %v4761_v7  ;;  %v4785_v1 = vrot.slane %v4746_v17, 4  ;;  %s18996_s22 = smov 92  }
 0x3a4   : > { %18986 = vst [vmem:[#allocation366_spill] sm:$0xff] %v13911_v53  ;;  %5416 = vrot.lane.b32.xlu0 %v13292_v59, %s18874_s30  ;;  %v13927_v36 = vperm.slane %v4748_v15, %v10671_v37  ;;  %v4770_v63 = vperm.slane %v4762_v5, %v10671_v37  ;;  %v13932_v29 = vsel %vm523_vm0, %v13911_v53, %v4781_v61  ;;  %v4777_v34 = vrot.slane %v13921_v6, 4 }
 0x3a5   : > { %v13924_v33 = vpop.permute.xlu2 %5314  ;;  %18990 = vst [vmem:[#allocation370_spill] sm:$0xff] %v13932_v29  ;;  %v5089_v60 = vpop.permute.xlu1 %5088  ;;  %v4750_v24 = vsel %vm523_vm0, %v4718_v25, %v4749_v45  ;;  %v5469_v25 = vrot.slane %v13443_v14, 4 }
 0x3a6   : > { %18988 = vst [vmem:[#allocation368_spill] sm:$0xff] %v13924_v33  ;;  %v13934_v51 = vpop.permute.xlu0 %5290  ;;  %v13939_v7 = vperm.slane %v4750_v24, %v10671_v37  ;;  %v4783_v16 = vrot.slane %v4770_v63, 4  ;;  %v13943_v55 = vsel %vm523_vm0, %v4770_v63, %v4785_v1  ;;  %v13947_v61 = vsel %vm523_vm0, %v13927_v36, %v4773_v54 }
 0x3a7   : > { %18989 = vst [vmem:[#allocation369_spill] sm:$0xff] %v13927_v36 }
 0x3a8   : > { %18991 = vst [vmem:[#allocation371_spill] sm:$0xff] %v13939_v7  ;;  %v13951_v15 = vsel %vm523_vm0, %v13939_v7, %v4777_v34  ;;  %v13957_v45 = vsel %vm523_vm0, %v4783_v16, %v4746_v17  ;;  %v5481_v16 = vrot.slane %v5089_v60, 4 }
 0x3a9   : > { %18992 = vst [vmem:[#allocation372_spill] sm:$0xff] %v13943_v55 }
 0x3aa   : > { %18993 = vst [vmem:[#allocation373_spill] sm:$0xff] %v13947_v61 }
 0x3ab   : > { %18994 = vst [vmem:[#allocation374_spill] sm:$0xff] %v13951_v15  ;;  %5422 = vrot.lane.b32.xlu2 %v13292_v59, %s18636_s27  ;;  %5139 = vrot.lane.b32.xlu1 %v13443_v14, %s18996_s22  ;;  %s18999_s27 = smov 22  }
 0x3ac   : > { %18995 = vst [vmem:[#allocation375_spill] sm:$0xff] %v13957_v45  ;;  %5425 = vrot.lane.b32.xlu0 %v13292_v59, %s18783_s0 }
 0x3ad   : > { %v13963_v5 = vpop.permute.xlu2 %5323  ;;  %v5092_v63 = vpop.permute.xlu1 %5091 }
 0x3ae   : > { %18997 = vst [vmem:[#allocation376_spill] sm:$0xff] %v13963_v5  ;;  %v13965_v24 = vpop.permute.xlu0 %5299  ;;  %v5467_v1 = vrot.slane %v5092_v63, 4  ;;  %v5470_v54 = vsel %vm523_vm0, %v5092_v63, %v5469_v25  ;;  %v10258_v5 = vld [vmem:[%s10533_s24 + $0x20] sm:$0xff] }
 0x3af   : > { %v5478_v17 = vperm.slane %v5470_v54, %v10647_v13 }
 0x3b0   : > { %v5468_v34 = vsel %vm523_vm0, %v5467_v1, %v13443_v14 }
 0x3b1   : > { %v13974_v29 = vperm.slane %v5468_v34, %v10647_v13  ;;  %v5529_v25 = vrot.slane %v5478_v17, 4 }
 0x3b3   : > { %5431 = vrot.lane.b32.xlu2 %v13292_v59, %s18800_s19  ;;  %18998 = vst [vmem:[#allocation377_spill] sm:$0xff] %v13974_v29  ;;  %5142 = vrot.lane.b32.xlu1 %v13443_v14, %s18946_s6  ;;  %v5517_v45 = vrot.slane %v13974_v29, 4  ;;  %s19002_s19 = smov 18   ;;  %s19027_s6 = smov 68  }
 0x3b4   : > { %5434 = vrot.lane.b32.xlu0 %v13292_v59, %s18999_s27 }
 0x3b5   : > { %v13980_v61 = vpop.permute.xlu2 %5332  ;;  %v5095_v63 = vpop.permute.xlu1 %5094 }
 0x3b6   : > { %19000 = vst [vmem:[#allocation378_spill] sm:$0xff] %v13980_v61  ;;  %v13982_v1 = vpop.permute.xlu0 %5308  ;;  %v5479_v54 = vrot.slane %v5095_v63, 4  ;;  %v5482_v55 = vsel %vm523_vm0, %v5095_v63, %v5481_v16 }
 0x3b7   : > { %v5490_v34 = vperm.slane %v5482_v55, %v10647_v13  ;;  %v5493_v55 = vrot.slane %v13249_v0, 4 }
 0x3b8   : > { %v5480_v18 = vsel %vm523_vm0, %v5479_v54, %v5089_v60 }
 0x3b9   : > { %v13989_v15 = vperm.slane %v5480_v18, %v10647_v13  ;;  %v5530_v53 = vsel %vm523_vm0, %v5490_v34, %v5529_v25  ;;  %v5491_v25 = vrot.slane %v13176_v52, 4  ;;  %v5494_v54 = vsel %vm523_vm0, %v13176_v52, %v5493_v55 }
 0x3ba   : > { %v5538_v52 = vperm.slane %v5530_v53, %v10671_v37 }
 0x3bb   : > { %19001 = vst [vmem:[#allocation379_spill] sm:$0xff] %v13989_v15  ;;  %5440 = vrot.lane.b32.xlu2 %v13292_v59, %s19002_s19  ;;  %5148 = vrot.lane.b32.xlu1 %v13443_v14, %s19003_s12  ;;  %v5518_v16 = vsel %vm523_vm0, %v13989_v15, %v5517_v45  ;;  %v5492_v29 = vsel %vm523_vm0, %v5491_v25, %v13249_v0  ;;  %s19007_s19 = smov 12   ;;  %v5527_v15 = vrot.slane %v5490_v34, 4 }
 0x3bc   : > { %5443 = vrot.lane.b32.xlu0 %v13292_v59, %s19004_s14  ;;  %v5502_v45 = vperm.slane %v5494_v54, %v10647_v13  ;;  %v14021_v0 = vperm.slane %v5492_v29, %v10647_v13  ;;  %v5526_v40 = vperm.slane %v5518_v16, %v10671_v37  ;;  %v5577_v53 = vrot.slane %v5538_v52, 4 }
 0x3bd   : > { %v14001_v60 = vpop.permute.xlu2 %5341  ;;  %v5101_v18 = vpop.permute.xlu1 %5100 }
 0x3be   : > { %19005 = vst [vmem:[#allocation380_spill] sm:$0xff] %v14001_v60  ;;  %v14003_v63 = vpop.permute.xlu0 %5317  ;;  %v5505_v6 = vrot.slane %v5101_v18, 4  ;;  %v5553_v54 = vrot.slane %v5502_v45, 4  ;;  %v5541_v26 = vrot.slane %v14021_v0, 4 }
 0x3bf   : > { %19006 = vst [vmem:[#allocation381_spill] sm:$0xff] %v14003_v63 }
 0x3c0   : > { %19011 = vst [vmem:[#allocation383_spill] sm:$0xff] %v14021_v0 }
 0x3c3   : > { %5449 = vrot.lane.b32.xlu2 %v13292_v59, %s19007_s19  ;;  %5157 = vrot.lane.b32.xlu1 %v13443_v14, %s19008_s9  ;;  %s19014_s19 = smov 6  }
 0x3c4   : > { %5452 = vrot.lane.b32.xlu0 %v13292_v59, %s19009_s18  ;;  %v5528_v59 = vsel %vm523_vm0, %v5527_v15, %v5478_v17 }
 0x3c5   : > { %v14017_v27 = vpop.permute.xlu2 %5350  ;;  %v5107_v55 = vpop.permute.xlu1 %5106 }
 0x3c6   : > { %19010 = vst [vmem:[#allocation382_spill] sm:$0xff] %v14017_v27  ;;  %v14023_v25 = vpop.permute.xlu0 %5326  ;;  %v5503_v7 = vrot.slane %v5107_v55, 4  ;;  %v5506_v34 = vsel %vm523_vm0, %v5107_v55, %v5505_v6  ;;  %v14036_v27 = vld [vmem:[%s10533_s24 + $0x28] sm:$0xff]  ;;  %v14041_v6 = vperm.slane %v5528_v59, %v10671_v37  ;;  %v14066_v59 = vld [vmem:[%s10533_s24 + $0x30] sm:$0xff] }
 0x3c7   : > { %19012 = vst [vmem:[#allocation384_spill] sm:$0xff] %v14023_v25  ;;  %v5514_v36 = vperm.slane %v5506_v34, %v10647_v13 }
 0x3c8   : > { %v5504_v22 = vsel %vm523_vm0, %v5503_v7, %v5101_v18  ;;  %19015 = vst [vmem:[#allocation386_spill] sm:$0xff] %v14041_v6 }
 0x3c9   : > { %v14032_v29 = vperm.slane %v5504_v22, %v10647_v13  ;;  %v5551_v2 = vrot.slane %v5514_v36, 4  ;;  %v5554_v42 = vsel %vm523_vm0, %v5514_v36, %v5553_v54  ;;  %v5569_v36 = vrot.slane %v5526_v40, 4 }
 0x3ca   : > { %v5562_v7 = vperm.slane %v5554_v42, %v10671_v37 }
 0x3cb   : > { %19013 = vst [vmem:[#allocation385_spill] sm:$0xff] %v14032_v29  ;;  %5458 = vrot.lane.b32.xlu2 %v14036_v27, %s19014_s19  ;;  %5166 = vrot.lane.b32.xlu1 %v13443_v14, %s19016_s5  ;;  %v5542_v22 = vsel %vm523_vm0, %v14032_v29, %v5541_v26  ;;  %v5552_v15 = vsel %vm523_vm0, %v5551_v2, %v5502_v45  ;;  %v5573_v26 = vrot.slane %v14041_v6, 4  ;;  %s19025_s19 = smov 118  }
 0x3cc   : > { %5461 = vrot.lane.b32.xlu0 %v14036_v27, %s19017_s28  ;;  %v5550_v16 = vperm.slane %v5542_v22, %v10671_v37  ;;  %v5575_v18 = vrot.slane %v5562_v7, 4  ;;  %v14055_v55 = vsel %vm523_vm0, %v5562_v7, %v5577_v53  ;;  %v14062_v54 = vperm.slane %v5552_v15, %v10671_v37 }
 0x3cd   : > { %v14051_v17 = vpop.permute.xlu2 %5359  ;;  %19019 = vst [vmem:[#allocation388_spill] sm:$0xff] %v14055_v55  ;;  %v14057_v42 = vpop.permute.xlu1 %5109 }
 0x3ce   : > { %19018 = vst [vmem:[#allocation387_spill] sm:$0xff] %v14051_v17  ;;  %v14059_v34 = vpop.permute.xlu0 %5335  ;;  %v14069_v2 = vsel %vm523_vm0, %v5550_v16, %v5569_v36  ;;  %v5567_v45 = vrot.slane %v5550_v16, 4  ;;  %v14072_v22 = vsel %vm523_vm0, %v5575_v18, %v5538_v52  ;;  %v14081_v7 = vsel %vm523_vm0, %v14062_v54, %v5573_v26 }
 0x3cf   : > { %19020 = vst [vmem:[#allocation389_spill] sm:$0xff] %v14059_v34 }
 0x3d0   : > { %19021 = vst [vmem:[#allocation390_spill] sm:$0xff] %v14062_v54  ;;  %v14075_v53 = vsel %vm523_vm0, %v5567_v45, %v5526_v40 }
 0x3d1   : > { %19022 = vst [vmem:[#allocation391_spill] sm:$0xff] %v14069_v2 }
 0x3d2   : > { %19023 = vst [vmem:[#allocation392_spill] sm:$0xff] %v14072_v22 }
 0x3d3   : > { %19024 = vst [vmem:[#allocation393_spill] sm:$0xff] %v14075_v53  ;;  %7572 = vrot.lane.b32.xlu2 %v14066_v59, %s19025_s19  ;;  %5175 = vrot.lane.b32.xlu1 %v13443_v14, %s19027_s6 }
 0x3d4   : > { %19026 = vst [vmem:[#allocation394_spill] sm:$0xff] %v14081_v7  ;;  %7569 = vrot.lane.b32.xlu0 %v14066_v59, %s19028_s1  ;;  %s19034_s1 = smov 56  }
 0x3d5   : > { %v14087_v36 = vpop.permute.xlu2 %5368  ;;  %v14089_v52 = vpop.permute.xlu1 %5112 }
 0x3d6   : > { %19029 = vst [vmem:[#allocation395_spill] sm:$0xff] %v14087_v36  ;;  %v14091_v15 = vpop.permute.xlu0 %5344 }
 0x3d7   : > { %19030 = vst [vmem:[#allocation396_spill] sm:$0xff] %v14091_v15 }
 0x3db   : > { %7617 = vrot.lane.b32.xlu2 %v14066_v59, %s18758_s26  ;;  %5184 = vrot.lane.b32.xlu1 %v13443_v14, %s19031_s7 }
 0x3dc   : > { %7620 = vrot.lane.b32.xlu0 %v14066_v59, %s19003_s12 }
 0x3dd   : > { %v14099_v40 = vpop.permute.xlu2 %5377  ;;  %v14101_v16 = vpop.permute.xlu1 %5115 }
 0x3de   : > { %19032 = vst [vmem:[#allocation397_spill] sm:$0xff] %v14099_v40  ;;  %v14103_v18 = vpop.permute.xlu0 %5353 }
 0x3df   : > { %19033 = vst [vmem:[#allocation398_spill] sm:$0xff] %v14103_v18 }
 0x3e3   : > { %7626 = vrot.lane.b32.xlu2 %v14066_v59, %s18759_s23  ;;  %5193 = vrot.lane.b32.xlu1 %v13443_v14, %s19034_s1  ;;  %s19040_s23 = smov 44  }
 0x3e4   : > { %7629 = vrot.lane.b32.xlu0 %v14066_v59, %s19008_s9 }
 0x3e5   : > { %v14111_v26 = vpop.permute.xlu2 %5386  ;;  %v14113_v45 = vpop.permute.xlu1 %5118 }
 0x3e6   : > { %19035 = vst [vmem:[#allocation399_spill] sm:$0xff] %v14111_v26  ;;  %v14115_v7 = vpop.permute.xlu0 %5362 }
 0x3e7   : > { %19036 = vst [vmem:[#allocation400_spill] sm:$0xff] %v14115_v7 }
 0x3eb   : > { %7635 = vrot.lane.b32.xlu2 %v14066_v59, %s18763_s8  ;;  %5202 = vrot.lane.b32.xlu1 %v13443_v14, %s19037_s10  ;;  %s19043_s8 = smov 38  }
 0x3ec   : > { %7638 = vrot.lane.b32.xlu0 %v14066_v59, %s19016_s5 }
 0x3ed   : > { %v14123_v55 = vpop.permute.xlu2 %5395  ;;  %v5122_v22 = vpop.permute.xlu1 %5121 }
 0x3ee   : > { %19038 = vst [vmem:[#allocation401_spill] sm:$0xff] %v14123_v55  ;;  %v14125_v53 = vpop.permute.xlu0 %5371  ;;  %v5605_v0 = vrot.slane %v5122_v22, 4 }
 0x3ef   : > { %19039 = vst [vmem:[#allocation402_spill] sm:$0xff] %v14125_v53 }
 0x3f3   : > { %7644 = vrot.lane.b32.xlu2 %v14066_v59, %s18772_s21  ;;  %5211 = vrot.lane.b32.xlu1 %v13443_v14, %s19040_s23  ;;  %s19053_s21 = smov 20  }
 0x3f4   : > { %7647 = vrot.lane.b32.xlu0 %v14066_v59, %s19027_s6 }
 0x3f5   : > { %v14133_v6 = vpop.permute.xlu2 %5404  ;;  %v5125_v2 = vpop.permute.xlu1 %5124 }
 0x3f6   : > { %19041 = vst [vmem:[#allocation403_spill] sm:$0xff] %v14133_v6  ;;  %v14135_v54 = vpop.permute.xlu0 %5380 }
 0x3f7   : > { %19042 = vst [vmem:[#allocation404_spill] sm:$0xff] %v14135_v54  ;;  %v5617_v54 = vrot.slane %v5125_v2, 4 }
 0x3fb   : > { %7653 = vrot.lane.b32.xlu2 %v14066_v59, %s18773_s11  ;;  %5220 = vrot.lane.b32.xlu1 %v13443_v14, %s19043_s8  ;;  %s19046_s11 = smov 32  }
 0x3fc   : > { %7656 = vrot.lane.b32.xlu0 %v14066_v59, %s19031_s7 }
 0x3fd   : > { %v14143_v29 = vpop.permute.xlu2 %5413  ;;  %v5128_v55 = vpop.permute.xlu1 %5127 }
 0x3fe   : > { %19044 = vst [vmem:[#allocation405_spill] sm:$0xff] %v14143_v29  ;;  %v14145_v26 = vpop.permute.xlu0 %5389  ;;  %v5606_v6 = vsel %vm523_vm0, %v5128_v55, %v5605_v0 }
 0x3ff   : > { %19045 = vst [vmem:[#allocation406_spill] sm:$0xff] %v14145_v26  ;;  %v14149_v40 = vperm.slane %v5606_v6, %v10647_v13 }
 0x401   : > { %v5665_v29 = vrot.slane %v14149_v40, 4 }
 0x403   : > { %7662 = vrot.lane.b32.xlu2 %v14066_v59, %s18774_s4  ;;  %5229 = vrot.lane.b32.xlu1 %v13443_v14, %s19046_s11  ;;  %s19050_s4 = smov 26  }
 0x404   : > { %7665 = vrot.lane.b32.xlu0 %v14066_v59, %s19034_s1 }
 0x405   : > { %v14157_v53 = vpop.permute.xlu2 %5422  ;;  %v5131_v26 = vpop.permute.xlu1 %5130 }
 0x406   : > { %19047 = vst [vmem:[#allocation407_spill] sm:$0xff] %v14157_v53  ;;  %v14160_v17 = vpop.permute.xlu0 %5398  ;;  %v5618_v0 = vsel %vm523_vm0, %v5131_v26, %v5617_v54  ;;  %v5615_v34 = vrot.slane %v5131_v26, 4 }
 0x407   : > { %19048 = vst [vmem:[#allocation408_spill] sm:$0xff] %v14160_v17  ;;  %v14164_v6 = vperm.slane %v5618_v0, %v10647_v13 }
 0x409   : > { %v14168_v36 = vsel %vm523_vm0, %v14164_v6, %v5665_v29 }
 0x40a   : > { %19049 = vst [vmem:[#allocation409_spill] sm:$0xff] %v14168_v36 }
 0x40b   : > { %7671 = vrot.lane.b32.xlu2 %v14066_v59, %s18775_s29  ;;  %5238 = vrot.lane.b32.xlu1 %v13443_v14, %s19050_s4  ;;  %s19056_s29 = smov 14  }
 0x40c   : > { %7674 = vrot.lane.b32.xlu0 %v14066_v59, %s19037_s10 }
 0x40d   : > { %v14176_v53 = vpop.permute.xlu2 %5431  ;;  %v14178_v17 = vpop.permute.xlu1 %5133 }
 0x40e   : > { %19051 = vst [vmem:[#allocation410_spill] sm:$0xff] %v14176_v53  ;;  %v14180_v54 = vpop.permute.xlu0 %5407  ;;  %v5603_v53 = vrot.slane %v5128_v55, 4  ;;  %v5591_v55 = vrot.slane %v14113_v45, 4 }
 0x40f   : > { %19052 = vst [vmem:[#allocation411_spill] sm:$0xff] %v14180_v54  ;;  %v5579_v54 = vrot.slane %v14101_v16, 4 }
 0x411   : > { %v5580_v15 = vsel %vm523_vm0, %v5579_v54, %v14057_v42  ;;  %v5593_v54 = vrot.slane %v14089_v52, 4 }
 0x413   : > { %7680 = vrot.lane.b32.xlu2 %v14066_v59, %s18777_s17  ;;  %5247 = vrot.lane.b32.xlu1 %v13443_v14, %s19053_s21 }
 0x414   : > { %7683 = vrot.lane.b32.xlu0 %v14066_v59, %s19040_s23 }
 0x415   : > { %v14188_v29 = vpop.permute.xlu2 %5440  ;;  %v5137_v0 = vpop.permute.xlu1 %5136 }
 0x416   : > { %19054 = vst [vmem:[#allocation412_spill] sm:$0xff] %v14188_v29  ;;  %v14190_v36 = vpop.permute.xlu0 %5416  ;;  %v5705_v33 = vrot.slane %v5137_v0, 4 }
 0x417   : > { %19055 = vst [vmem:[#allocation413_spill] sm:$0xff] %v14190_v36  ;;  %v5604_v36 = vsel %vm523_vm0, %v5603_v53, %v5122_v22  ;;  %v5616_v53 = vsel %vm523_vm0, %v5615_v34, %v5125_v2  ;;  %v5581_v2 = vrot.slane %v14057_v42, 4  ;;  %v5693_v42 = vrot.slane %v14178_v17, 4 }
 0x418   : > { %v14233_v34 = vperm.slane %v5616_v53, %v10647_v13 }
 0x41a   : > { %19064 = vst [vmem:[#allocation420_spill] sm:$0xff] %v14233_v34 }
 0x41b   : > { %7689 = vrot.lane.b32.xlu2 %v14066_v59, %s18779_s25  ;;  %5256 = vrot.lane.b32.xlu1 %v13443_v14, %s19056_s29  ;;  %v14208_v14 = vperm.slane %v5604_v36, %v10647_v13  ;;  %s19061_s25 = smov 8  }
 0x41c   : > { %7692 = vrot.lane.b32.xlu0 %v14066_v59, %s19043_s8 }
 0x41d   : > { %v14199_v7 = vpop.permute.xlu2 %5449  ;;  %v5140_v18 = vpop.permute.xlu1 %5139  ;;  %19059 = vst [vmem:[#allocation416_spill] sm:$0xff] %v14208_v14 }
 0x41e   : > { %19057 = vst [vmem:[#allocation414_spill] sm:$0xff] %v14199_v7  ;;  %v14201_v29 = vpop.permute.xlu0 %5425  ;;  %v5691_v60 = vrot.slane %v5140_v18, 4  ;;  %v14213_v7 = vperm.slane %v5580_v15, %v10647_v13  ;;  %v5653_v15 = vrot.slane %v14208_v14, 4 }
 0x41f   : > { %19058 = vst [vmem:[#allocation415_spill] sm:$0xff] %v14201_v29  ;;  %v5592_v29 = vsel %vm523_vm0, %v5591_v55, %v14089_v52  ;;  %v5594_v55 = vsel %vm523_vm0, %v14113_v45, %v5593_v54  ;;  %v5717_v45 = vrot.slane %v13285_v11, 4 }
 0x420   : > { %19060 = vst [vmem:[#allocation417_spill] sm:$0xff] %v14213_v7  ;;  %v5692_v61 = vsel %vm523_vm0, %v5691_v60, %v14178_v17  ;;  %v5629_v25 = vrot.slane %v14213_v7, 4  ;;  %v5654_v53 = vsel %vm523_vm0, %v14233_v34, %v5653_v15  ;;  %v5694_v7 = vsel %vm523_vm0, %v5140_v18, %v5693_v42 }
 0x421   : > { %v14240_v52 = vperm.slane %v5692_v61, %v10647_v13 }
 0x423   : > { %7698 = vrot.lane.b32.xlu2 %v14066_v59, %s18874_s30  ;;  %5265 = vrot.lane.b32.xlu1 %v10258_v5, %s19061_s25  ;;  %19066 = vst [vmem:[#allocation422_spill] sm:$0xff] %v14240_v52  ;;  %s19067_s30 = smov 2  }
 0x424   : > { %7701 = vrot.lane.b32.xlu0 %v14066_v59, %s19046_s11 }
 0x425   : > { %v14219_v22 = vpop.permute.xlu2 %5458  ;;  %v5143_v26 = vpop.permute.xlu1 %5142 }
 0x426   : > { %19062 = vst [vmem:[#allocation418_spill] sm:$0xff] %v14219_v22  ;;  %v14222_v36 = vpop.permute.xlu0 %5434  ;;  %v5703_v63 = vrot.slane %v5143_v26, 4  ;;  %v5715_v22 = vrot.slane %v13222_v23, 4  ;;  %v5706_v14 = vsel %vm523_vm0, %v5143_v26, %v5705_v33  ;;  %v5582_v33 = vsel %vm523_vm0, %v14101_v16, %v5581_v2 }
 0x427   : > { %19063 = vst [vmem:[#allocation419_spill] sm:$0xff] %v14222_v36  ;;  %v14237_v36 = vperm.slane %v5592_v29, %v10647_v13  ;;  %v5714_v15 = vperm.slane %v5706_v14, %v10647_v13  ;;  %v14290_v14 = vperm.slane %v5582_v33, %v10647_v13 }
 0x428   : > { %v5716_v60 = vsel %vm523_vm0, %v5715_v22, %v13285_v11  ;;  %v5704_v29 = vsel %vm523_vm0, %v5703_v63, %v5137_v0  ;;  %v5727_v22 = vrot.slane %v13331_v62, 4  ;;  %v5741_v0 = vrot.slane %v14240_v52, 4 }
 0x429   : > { %19065 = vst [vmem:[#allocation421_spill] sm:$0xff] %v14237_v36  ;;  %v5630_v61 = vsel %vm523_vm0, %v14237_v36, %v5629_v25  ;;  %v14264_v63 = vperm.slane %v5716_v60, %v10647_v13  ;;  %v14275_v11 = vperm.slane %v5704_v29, %v10647_v13  ;;  %v5718_v29 = vsel %vm523_vm0, %v13222_v23, %v5717_v45 }
 0x42a   : > { %v5638_v17 = vperm.slane %v5630_v61, %v10671_v37  ;;  %19073 = vst [vmem:[#allocation428_spill] sm:$0xff] %v14290_v14  ;;  %v5751_v42 = vrot.slane %v5714_v15, 4  ;;  %v5702_v23 = vperm.slane %v5694_v7, %v10647_v13  ;;  %v5726_v33 = vperm.slane %v5718_v29, %v10647_v13 }
 0x42b   : > { %7707 = vrot.lane.b32.xlu2 %v14066_v59, %s18783_s0  ;;  %5274 = vrot.lane.b32.xlu1 %v10258_v5, %s19067_s30  ;;  %19069 = vst [vmem:[#allocation424_spill] sm:$0xff] %v14264_v63  ;;  %v14269_v5 = vperm.slane %v5594_v55, %v10647_v13  ;;  %v5662_v55 = vperm.slane %v5654_v53, %v10671_v37  ;;  %v5765_v34 = vrot.slane %v14264_v63, 4  ;;  %s19075_s0 = smov 122  }
 0x42c   : > { %7710 = vrot.lane.b32.xlu0 %v14066_v59, %s19050_s4  ;;  %19071 = vst [vmem:[#allocation426_spill] sm:$0xff] %v14275_v11  ;;  %v5681_v52 = vrot.slane %v5638_v17, 4  ;;  %v5742_v53 = vsel %vm523_vm0, %v14275_v11, %v5741_v0  ;;  %v5753_v11 = vrot.slane %v5702_v23, 4 }
 0x42d   : > { %v14260_v54 = vpop.permute.xlu2 %7572  ;;  %19070 = vst [vmem:[#allocation425_spill] sm:$0xff] %v14269_v5  ;;  %v5149_v25 = vpop.permute.xlu1 %5148  ;;  %v5639_v18 = vrot.slane %v14269_v5, 4  ;;  %v5750_v45 = vperm.slane %v5742_v53, %v10671_v37  ;;  %v5752_v53 = vsel %vm523_vm0, %v5751_v42, %v5702_v23  ;;  %v5841_v42 = vrot.slane %v13409_v3, 4 }
 0x42e   : > { %19068 = vst [vmem:[#allocation423_spill] sm:$0xff] %v14260_v54  ;;  %v14272_v26 = vpop.permute.xlu0 %5443  ;;  %v5728_v61 = vsel %vm523_vm0, %v5727_v22, %v5149_v25  ;;  %v5729_v60 = vrot.slane %v5149_v25, 4 }
 0x42f   : > { %v14283_v2 = vperm.slane %v5728_v61, %v10647_v13  ;;  %v5803_v61 = vrot.slane %v13365_v50, 4  ;;  %v5793_v5 = vrot.slane %v5750_v45, 4  ;;  %v5640_v29 = vsel %vm523_vm0, %v5639_v18, %v14290_v14 }
 0x430   : > { %v5730_v16 = vsel %vm523_vm0, %v13331_v62, %v5729_v60  ;;  %v14297_v62 = vsel %vm523_vm0, %v5662_v55, %v5681_v52 }
 0x431   : > { %19072 = vst [vmem:[#allocation427_spill] sm:$0xff] %v14283_v2  ;;  %v5738_v22 = vperm.slane %v5730_v16, %v10647_v13  ;;  %v5766_v52 = vsel %vm523_vm0, %v14283_v2, %v5765_v34  ;;  %v5777_v2 = vrot.slane %v5726_v33, 4 }
 0x432   : > { %19074 = vst [vmem:[#allocation429_spill] sm:$0xff] %v14297_v62  ;;  %v5774_v16 = vperm.slane %v5766_v52, %v10671_v37  ;;  %v5663_v62 = vrot.slane %v14164_v6, 4  ;;  %v14327_v6 = vperm.slane %v5640_v29, %v10671_v37 }
 0x433   : > { %7716 = vrot.lane.b32.xlu2 %v14066_v59, %s18999_s27  ;;  %5284 = vrot.lane.b32.xlu1 %v14036_v27, %s19075_s0  ;;  %v5775_v0 = vrot.slane %v5738_v22, 4  ;;  %s19084_s27 = smov 116  }
 0x434   : > { %7719 = vrot.lane.b32.xlu0 %v14066_v59, %s19053_s21  ;;  %v14321_v34 = vsel %vm523_vm0, %v5774_v16, %v5793_v5  ;;  %v5791_v54 = vrot.slane %v5774_v16, 4  ;;  %19079 = vst [vmem:[#allocation433_spill] sm:$0xff] %v14327_v6  ;;  %v5664_v5 = vsel %vm523_vm0, %v5663_v62, %v14149_v40  ;;  %v5778_v40 = vsel %vm523_vm0, %v5738_v22, %v5777_v2 }
 0x435   : > { %v14308_v25 = vpop.permute.xlu2 %7617  ;;  %v5158_v60 = vpop.permute.xlu1 %5157  ;;  %19078 = vst [vmem:[#allocation432_spill] sm:$0xff] %v14321_v34  ;;  %v5776_v18 = vsel %vm523_vm0, %v5775_v0, %v5726_v33  ;;  %v5754_v33 = vsel %vm523_vm0, %v5714_v15, %v5753_v11  ;;  %v5685_v0 = vrot.slane %v14327_v6, 4  ;;  %v5842_v15 = vsel %vm523_vm0, %v13320_v43, %v5841_v42 }
 0x436   : > { %19076 = vst [vmem:[#allocation430_spill] sm:$0xff] %v14308_v25  ;;  %v14313_v7 = vpop.permute.xlu0 %5452  ;;  %v5805_v63 = vrot.slane %v5158_v60, 4  ;;  %v5804_v36 = vsel %vm523_vm0, %v5803_v61, %v5158_v60  ;;  %v5679_v25 = vrot.slane %v5662_v55, 4  ;;  %v14370_v60 = vperm.slane %v5664_v5, %v10671_v37 }
 0x437   : > { %19077 = vst [vmem:[#allocation431_spill] sm:$0xff] %v14313_v7  ;;  %v14330_v7 = vperm.slane %v5752_v53, %v10671_v37  ;;  %v14346_v23 = vperm.slane %v5804_v36, %v10647_v13  ;;  %v5762_v36 = vperm.slane %v5754_v33, %v10671_v37 }
 0x438   : > { %v5806_v52 = vsel %vm523_vm0, %v13365_v50, %v5805_v63  ;;  %v14339_v55 = vsel %vm523_vm0, %v5679_v25, %v5638_v17  ;;  %v14342_v50 = vsel %vm523_vm0, %v5791_v54, %v5750_v45  ;;  %v5817_v63 = vrot.slane %v13245_v21, 4  ;;  %19086 = vst [vmem:[#allocation439_spill] sm:$0xff] %v14370_v60 }
 0x439   : > { %19080 = vst [vmem:[#allocation434_spill] sm:$0xff] %v14330_v7  ;;  %v5814_v17 = vperm.slane %v5806_v52, %v10647_v13  ;;  %v14358_v54 = vperm.slane %v5776_v18, %v10671_v37  ;;  %v5786_v45 = vperm.slane %v5778_v40, %v10671_v37  ;;  %v5797_v11 = vrot.slane %v14330_v7, 4 }
 0x43a   : > { %19081 = vst [vmem:[#allocation435_spill] sm:$0xff] %v14339_v55  ;;  %v5853_v16 = vrot.slane %v14346_v23, 4  ;;  %v5801_v52 = vrot.slane %v5762_v36, 4  ;;  %v14378_v40 = vsel %vm523_vm0, %v14370_v60, %v5685_v0  ;;  %v5850_v0 = vperm.slane %v5842_v15, %v10647_v13 }
 0x43b   : > { %7725 = vrot.lane.b32.xlu2 %v14066_v59, %s19004_s14  ;;  %19082 = vst [vmem:[#allocation436_spill] sm:$0xff] %v14342_v50  ;;  %5293 = vrot.lane.b32.xlu1 %v14036_v27, %s19084_s27  ;;  %v5799_v53 = vrot.slane %v5786_v45, 4  ;;  %v5865_v18 = vrot.slane %v5814_v17, 4  ;;  %v14382_v42 = vsel %vm523_vm0, %v14358_v54, %v5797_v11  ;;  %v5839_v15 = vrot.slane %v13320_v43, 4  ;;  %v14454_v50 = vld [vmem:[%s10533_s24 + $0x38] sm:$0xff] }
 0x43c   : > { %19083 = vst [vmem:[#allocation437_spill] sm:$0xff] %v14346_v23  ;;  %7728 = vrot.lane.b32.xlu0 %v14066_v59, %s19056_s29 }
 0x43d   : > { %v14355_v62 = vpop.permute.xlu2 %7626  ;;  %19085 = vst [vmem:[#allocation438_spill] sm:$0xff] %v14358_v54  ;;  %v5167_v25 = vpop.permute.xlu1 %5166 }
 0x43e   : > { %v14362_v61 = vpop.permute.xlu0 %5461  ;;  %v5815_v2 = vrot.slane %v5167_v25, 4  ;;  %v5818_v22 = vsel %vm523_vm0, %v5167_v25, %v5817_v63  ;;  %19087 = vst [vmem:[#allocation440_spill] sm:$0xff] %v14378_v40  ;;  %v14388_v25 = vsel %vm523_vm0, %v5799_v53, %v5762_v36  ;;  %v5887_v40 = vrot.slane %v5850_v0, 4 }
 0x43f   : > { %v5826_v29 = vperm.slane %v5818_v22, %v10647_v13  ;;  %19088 = vst [vmem:[#allocation441_spill] sm:$0xff] %v14382_v42  ;;  %v14391_v22 = vsel %vm523_vm0, %v5786_v45, %v5801_v52  ;;  %v19092_v45 = vld [vmem:[#allocation298_spill] sm:$0xff] }
 0x440   : > { %v5816_v33 = vsel %vm523_vm0, %v5815_v2, %v13245_v21  ;;  %19090 = vst [vmem:[#allocation443_spill] sm:$0xff] %v14388_v25  ;;  %v5829_v2 = vrot.slane %v19092_v45, 4 }
 0x441   : > { %v14385_v5 = vperm.slane %v5816_v33, %v10647_v13  ;;  %v5863_v63 = vrot.slane %v5826_v29, 4  ;;  %19091 = vst [vmem:[#allocation444_spill] sm:$0xff] %v14391_v22  ;;  %v5866_v21 = vsel %vm523_vm0, %v5826_v29, %v5865_v18 }
 0x442   : > { %v5874_v14 = vperm.slane %v5866_v21, %v10671_v37 }
 0x443   : > { %19089 = vst [vmem:[#allocation442_spill] sm:$0xff] %v14385_v5  ;;  %7734 = vrot.lane.b32.xlu2 %v14066_v59, %s19009_s18  ;;  %5302 = vrot.lane.b32.xlu1 %v14036_v27, %s18949_s13  ;;  %v5854_v36 = vsel %vm523_vm0, %v14385_v5, %v5853_v16  ;;  %v5864_v11 = vsel %vm523_vm0, %v5863_v63, %v5814_v17 }
 0x444   : > { %7737 = vrot.lane.b32.xlu0 %v14066_v59, %s19061_s25  ;;  %v14412_v42 = vperm.slane %v5864_v11, %v10671_v37  ;;  %v5840_v17 = vsel %vm523_vm0, %v5839_v15, %v13409_v3 }
 0x445   : > { %v14405_v53 = vpop.permute.xlu2 %7635  ;;  %v5176_v52 = vpop.permute.xlu1 %5175 }
 0x446   : > { %v14407_v33 = vpop.permute.xlu0 %7569  ;;  %v5827_v29 = vrot.slane %v5176_v52, 4  ;;  %v5830_v18 = vsel %vm523_vm0, %v5176_v52, %v5829_v2  ;;  %19093 = vst [vmem:[#allocation298_spill] sm:$0xff] %v14412_v42  ;;  %v5909_v2 = vrot.slane %v14412_v42, 4  ;;  %v14430_v52 = vperm.slane %v5840_v17, %v10647_v13 }
 0x447   : > { %v5838_v16 = vperm.slane %v5830_v18, %v10647_v13 }
 0x448   : > { %v5828_v63 = vsel %vm523_vm0, %v5827_v29, %v19092_v45  ;;  %19096 = vst [vmem:[#allocation447_spill] sm:$0xff] %v14430_v52  ;;  %v8199_v45 = vrot.slane %v14355_v62, 4 }
 0x449   : > { %v14420_v22 = vperm.slane %v5828_v63, %v10647_v13  ;;  %v5888_v43 = vsel %vm523_vm0, %v5887_v40, %v5838_v16  ;;  %v5889_v25 = vrot.slane %v5838_v16, 4  ;;  %v5862_v40 = vperm.slane %v5854_v36, %v10671_v37 }
 0x44a   : > { %v14426_v11 = vperm.slane %v5888_v43, %v10671_v37  ;;  %v5917_v43 = vrot.slane %v13461_v44, 4 }
 0x44b   : > { %19094 = vst [vmem:[#allocation445_spill] sm:$0xff] %v14420_v22  ;;  %7743 = vrot.lane.b32.xlu2 %v14066_v59, %s19017_s28  ;;  %v5877_v3 = vrot.slane %v14420_v22, 4  ;;  %5311 = vrot.lane.b32.xlu1 %v14036_v27, %s18960_s2  ;;  %v5890_v63 = vsel %vm523_vm0, %v5850_v0, %v5889_v25  ;;  %v5905_v55 = vrot.slane %v5862_v40, 4  ;;  %v19098_v0 = vld [vmem:[#allocation220_spill] sm:$0xff]  ;;  %s19099_s28 = smov 124  }
 0x44c   : > { %19095 = vst [vmem:[#allocation446_spill] sm:$0xff] %v14426_v11  ;;  %7746 = vrot.lane.b32.xlu0 %v14066_v59, %s19067_s30  ;;  %v14443_v29 = vsel %vm523_vm0, %v14426_v11, %v5909_v2  ;;  %v5898_v25 = vperm.slane %v5890_v63, %v10671_v37  ;;  %v5915_v42 = vrot.slane %v19098_v0, 4  ;;  %v8275_v63 = vrot.slane %v14405_v53, 4 }
 0x44d   : > { %v14439_v15 = vpop.permute.xlu2 %7644  ;;  %19097 = vst [vmem:[#allocation448_spill] sm:$0xff] %v14443_v29  ;;  %v5185_v18 = vpop.permute.xlu1 %5184  ;;  %v5878_v17 = vsel %vm523_vm0, %v14430_v52, %v5877_v3 }
 0x44e   : > { %v7621_v16 = vpop.permute.xlu0 %7620  ;;  %v5929_v2 = vrot.slane %v5185_v18, 4  ;;  %v5886_v3 = vperm.slane %v5878_v17, %v10671_v37 }
 0x44f   : > { %v14450_v59 = vsel %vm523_vm0, %v8199_v45, %v7621_v16  ;;  %v8201_v36 = vrot.slane %v7621_v16, 4  ;;  %v5918_v45 = vsel %vm523_vm0, %v19098_v0, %v5917_v43  ;;  %v5913_v16 = vrot.slane %v5874_v14, 4 }
 0x450   : > { %v14468_v21 = vsel %vm523_vm0, %v5886_v3, %v5905_v55  ;;  %v5903_v17 = vrot.slane %v5886_v3, 4  ;;  %v5930_v43 = vsel %vm523_vm0, %v13514_v9, %v5929_v2  ;;  %v5911_v0 = vrot.slane %v5898_v25, 4 }
 0x451   : > { %v14458_v29 = vsel %vm523_vm0, %v14355_v62, %v8201_v36  ;;  %19100 = vst [vmem:[#allocation220_spill] sm:$0xff] %v14468_v21  ;;  %v5916_v62 = vsel %vm523_vm0, %v5915_v42, %v13461_v44  ;;  %v5927_v36 = vrot.slane %v13514_v9, 4  ;;  %v14483_v21 = vsel %vm523_vm0, %v5898_v25, %v5913_v16 }
 0x452   : > { %19101 = vst [vmem:[#allocation449_spill] sm:$0xff] %v14483_v21  ;;  %v5926_v44 = vperm.slane %v5918_v45, %v10647_v13  ;;  %v14487_v7 = vsel %vm523_vm0, %v5903_v17, %v5862_v40  ;;  %v14494_v2 = vperm.slane %v5916_v62, %v10647_v13  ;;  %v5938_v25 = vperm.slane %v5930_v43, %v10647_v13 }
 0x453   : > { %7753 = vrot.lane.b32.xlu2 %v14454_v50, %s19099_s28  ;;  %5320 = vrot.lane.b32.xlu1 %v14036_v27, %s18983_s20  ;;  %19102 = vst [vmem:[#allocation450_spill] sm:$0xff] %v14487_v7  ;;  %v5928_v3 = vsel %vm523_vm0, %v5927_v36, %v5185_v18  ;;  %v5939_v16 = vrot.slane %v13549_v41, 4  ;;  %v14505_v18 = vsel %vm523_vm0, %v5911_v0, %v5874_v14 }
 0x454   : > { %7756 = vrot.lane.b32.xlu0 %v14454_v50, %s19075_s0  ;;  %19103 = vst [vmem:[#allocation451_spill] sm:$0xff] %v14494_v2  ;;  %v5977_v36 = vrot.slane %v5926_v44, 4  ;;  %v5965_v17 = vrot.slane %v14494_v2, 4 }
 0x455   : > { %v14480_v55 = vpop.permute.xlu2 %7653  ;;  %v5194_v42 = vpop.permute.xlu1 %5193  ;;  %19104 = vst [vmem:[#allocation452_spill] sm:$0xff] %v14505_v18 }
 0x456   : > { %v7630_v11 = vpop.permute.xlu0 %7629  ;;  %v5941_v34 = vrot.slane %v5194_v42, 4  ;;  %v5940_v62 = vsel %vm523_vm0, %v5939_v16, %v5194_v42  ;;  %v5978_v14 = vsel %vm523_vm0, %v5938_v25, %v5977_v36 }
 0x457   : > { %v14491_v54 = vsel %vm523_vm0, %v8275_v63, %v7630_v11  ;;  %v8277_v9 = vrot.slane %v7630_v11, 4  ;;  %v14508_v11 = vperm.slane %v5928_v3, %v10647_v13  ;;  %v5975_v63 = vrot.slane %v5938_v25, 4 }
 0x458   : > { %v5942_v45 = vsel %vm523_vm0, %v13549_v41, %v5941_v34  ;;  %v19106_v34 = vld [vmem:[#allocation308_spill] sm:$0xff]  ;;  %v14526_v42 = vperm.slane %v5940_v62, %v10647_v13  ;;  %v5986_v21 = vperm.slane %v5978_v14, %v10671_v37  ;;  %v6041_v14 = vrot.slane %v13574_v58, 4 }
 0x459   : > { %v14502_v40 = vsel %vm523_vm0, %v14405_v53, %v8277_v9  ;;  %19105 = vst [vmem:[#allocation453_spill] sm:$0xff] %v14508_v11  ;;  %v5950_v41 = vperm.slane %v5942_v45, %v10647_v13  ;;  %v5953_v53 = vrot.slane %v19106_v34, 4  ;;  %v5966_v0 = vsel %vm523_vm0, %v14508_v11, %v5965_v17 }
 0x45a   : > { %19107 = vst [vmem:[#allocation308_spill] sm:$0xff] %v14526_v42  ;;  %v5974_v7 = vperm.slane %v5966_v0, %v10671_v37  ;;  %v5976_v17 = vsel %vm523_vm0, %v5975_v63, %v5926_v44  ;;  %v5989_v62 = vrot.slane %v14526_v42, 4 }
 0x45b   : > { %7762 = vrot.lane.b32.xlu2 %v14454_v50, %s19025_s19  ;;  %5329 = vrot.lane.b32.xlu1 %v14036_v27, %s18996_s22  ;;  %v6001_v36 = vrot.slane %v5950_v41, 4  ;;  %s19109_s19 = smov 112  }
 0x45c   : > { %7765 = vrot.lane.b32.xlu0 %v14454_v50, %s19084_s27  ;;  %v6017_v2 = vrot.slane %v5974_v7, 4 }
 0x45d   : > { %v14521_v43 = vpop.permute.xlu2 %7662  ;;  %v5203_v3 = vpop.permute.xlu1 %5202 }
 0x45e   : > { %v14528_v9 = vpop.permute.xlu0 %7638  ;;  %v5951_v16 = vrot.slane %v5203_v3, 4  ;;  %v5954_v45 = vsel %vm523_vm0, %v5203_v3, %v5953_v53 }
 0x45f   : > { %v5962_v18 = vperm.slane %v5954_v45, %v10647_v13 }
 0x460   : > { %v5952_v25 = vsel %vm523_vm0, %v5951_v16, %v19106_v34  ;;  %v6025_v34 = vrot.slane %v5986_v21, 4  ;;  %v14557_v16 = vperm.slane %v5976_v17, %v10671_v37  ;;  %v6051_v17 = vrot.slane %v13547_v8, 4 }
 0x461   : > { %v14539_v6 = vperm.slane %v5952_v25, %v10647_v13  ;;  %v5999_v60 = vrot.slane %v5962_v18, 4  ;;  %v6002_v53 = vsel %vm523_vm0, %v5962_v18, %v6001_v36  ;;  %v6039_v25 = vrot.slane %v13501_v12, 4 }
 0x462   : > { %v6010_v3 = vperm.slane %v6002_v53, %v10671_v37  ;;  %19110 = vst [vmem:[#allocation455_spill] sm:$0xff] %v14557_v16  ;;  %v6052_v22 = vsel %vm523_vm0, %v6051_v17, %v13610_v28 }
 0x463   : > { %19108 = vst [vmem:[#allocation454_spill] sm:$0xff] %v14539_v6  ;;  %7771 = vrot.lane.b32.xlu2 %v14454_v50, %s19109_s19  ;;  %5338 = vrot.lane.b32.xlu1 %v14036_v27, %s19003_s12  ;;  %v5990_v44 = vsel %vm523_vm0, %v14539_v6, %v5989_v62  ;;  %v6000_v63 = vsel %vm523_vm0, %v5999_v60, %v5950_v41  ;;  %v6029_v62 = vrot.slane %v13452_v47, 4 }
 0x464   : > { %7774 = vrot.lane.b32.xlu0 %v14454_v50, %s18949_s13  ;;  %v5998_v0 = vperm.slane %v5990_v44, %v10671_v37  ;;  %v6023_v45 = vrot.slane %v6010_v3, 4  ;;  %v14560_v36 = vsel %vm523_vm0, %v6010_v3, %v6025_v34  ;;  %v6042_v60 = vsel %vm523_vm0, %v13501_v12, %v6041_v14 }
 0x465   : > { %v14553_v18 = vpop.permute.xlu2 %7671  ;;  %19111 = vst [vmem:[#allocation456_spill] sm:$0xff] %v14560_v36  ;;  %v5212_v53 = vpop.permute.xlu1 %5211  ;;  %v14569_v44 = vperm.slane %v6000_v63, %v10671_v37  ;;  %v6040_v3 = vsel %vm523_vm0, %v6039_v25, %v13574_v58  ;;  %v6021_v14 = vrot.slane %v14557_v16, 4  ;;  %v6050_v63 = vperm.slane %v6042_v60, %v10647_v13 }
 0x466   : > { %v14563_v42 = vpop.permute.xlu0 %7647  ;;  %v6027_v41 = vrot.slane %v5212_v53, 4  ;;  %v14575_v34 = vsel %vm523_vm0, %v5998_v0, %v6017_v2  ;;  %v6015_v36 = vrot.slane %v5998_v0, 4  ;;  %v6030_v11 = vsel %vm523_vm0, %v5212_v53, %v6029_v62 }
 0x467   : > { %19112 = vst [vmem:[#allocation457_spill] sm:$0xff] %v14569_v44  ;;  %v14581_v12 = vsel %vm523_vm0, %v6023_v45, %v5986_v21  ;;  %v6053_v58 = vrot.slane %v13610_v28, 4  ;;  %v14598_v21 = vsel %vm523_vm0, %v14569_v44, %v6021_v14  ;;  %v14601_v0 = vperm.slane %v6040_v3, %v10647_v13 }
 0x468   : > { %19113 = vst [vmem:[#allocation458_spill] sm:$0xff] %v14575_v34  ;;  %v6028_v6 = vsel %vm523_vm0, %v6027_v41, %v13452_v47  ;;  %v14594_v47 = vsel %vm523_vm0, %v6015_v36, %v5974_v7  ;;  %v6038_v45 = vperm.slane %v6030_v11, %v10647_v13  ;;  %v14610_v7 = vperm.slane %v6052_v22, %v10647_v13 }
 0x469   : > { %19114 = vst [vmem:[#allocation459_spill] sm:$0xff] %v14581_v12  ;;  %v14589_v2 = vperm.slane %v6028_v6, %v10647_v13  ;;  %v6063_v6 = vrot.slane %v13653_v38, 4  ;;  %v8399_v36 = vrot.slane %v14521_v43, 4  ;;  %v6087_v53 = vrot.slane %v6050_v63, 4 }
 0x46a   : > { %19116 = vst [vmem:[#allocation461_spill] sm:$0xff] %v14594_v47  ;;  %v6054_v11 = vsel %vm523_vm0, %v13547_v8, %v6053_v58  ;;  %v6101_v58 = vrot.slane %v14610_v7, 4 }
 0x46b   : > { %19115 = vst [vmem:[#allocation460_spill] sm:$0xff] %v14589_v2  ;;  %7780 = vrot.lane.b32.xlu2 %v14454_v50, %s18928_s3  ;;  %v6077_v28 = vrot.slane %v14589_v2, 4  ;;  %5347 = vrot.lane.b32.xlu1 %v14036_v27, %s19008_s9  ;;  %v6088_v8 = vsel %vm523_vm0, %v6087_v53, %v6038_v45 }
 0x46c   : > { %19117 = vst [vmem:[#allocation462_spill] sm:$0xff] %v14598_v21  ;;  %7783 = vrot.lane.b32.xlu0 %v14454_v50, %s18960_s2  ;;  %v6089_v21 = vrot.slane %v6038_v45, 4  ;;  %v14643_v45 = vperm.slane %v6088_v8, %v10671_v37 }
 0x46d   : > { %19118 = vst [vmem:[#allocation463_spill] sm:$0xff] %v14601_v0  ;;  %v14614_v25 = vpop.permute.xlu2 %7680  ;;  %v5221_v62 = vpop.permute.xlu1 %5220  ;;  %v6078_v41 = vsel %vm523_vm0, %v14601_v0, %v6077_v28 }
 0x46e   : > { %19119 = vst [vmem:[#allocation464_spill] sm:$0xff] %v14610_v7  ;;  %v7657_v60 = vpop.permute.xlu0 %7656  ;;  %v6064_v17 = vsel %vm523_vm0, %v6063_v6, %v5221_v62  ;;  %v6065_v3 = vrot.slane %v5221_v62, 4  ;;  %v6086_v47 = vperm.slane %v6078_v41, %v10671_v37  ;;  %v8411_v41 = vrot.slane %v14553_v18, 4 }
 0x46f   : > { %v14622_v22 = vsel %vm523_vm0, %v8399_v36, %v7657_v60  ;;  %v8401_v14 = vrot.slane %v7657_v60, 4  ;;  %v14625_v12 = vperm.slane %v6064_v17, %v10647_v13  ;;  %v6062_v36 = vperm.slane %v6054_v11, %v10647_v13  ;;  %19121 = vst [vmem:[#allocation466_spill] sm:$0xff] %v14643_v45 }
 0x470   : > { %v6066_v28 = vsel %vm523_vm0, %v13653_v38, %v6065_v3  ;;  %v6090_v11 = vsel %vm523_vm0, %v6050_v63, %v6089_v21  ;;  %v6139_v21 = vrot.slane %v13687_v10, 4  ;;  %v6133_v2 = vrot.slane %v14643_v45, 4 }
 0x471   : > { %19120 = vst [vmem:[#allocation465_spill] sm:$0xff] %v14625_v12  ;;  %v14634_v6 = vsel %vm523_vm0, %v14521_v43, %v8401_v14  ;;  %v6074_v62 = vperm.slane %v6066_v28, %v10647_v13  ;;  %v6102_v60 = vsel %vm523_vm0, %v14625_v12, %v6101_v58  ;;  %v6129_v43 = vrot.slane %v6086_v47, 4 }
 0x472   : > { %v6110_v38 = vperm.slane %v6102_v60, %v10671_v37  ;;  %v6113_v3 = vrot.slane %v6062_v36, 4  ;;  %v6098_v63 = vperm.slane %v6090_v11, %v10671_v37 }
 0x473   : > { %7789 = vrot.lane.b32.xlu2 %v14454_v50, %s18837_s15  ;;  %v6111_v53 = vrot.slane %v6074_v62, 4  ;;  %5356 = vrot.lane.b32.xlu1 %v14036_v27, %s19016_s5 }
 0x474   : > { %7792 = vrot.lane.b32.xlu0 %v14454_v50, %s18983_s20  ;;  %v14655_v58 = vsel %vm523_vm0, %v6110_v38, %v6129_v43  ;;  %v6127_v16 = vrot.slane %v6110_v38, 4  ;;  %v6114_v7 = vsel %vm523_vm0, %v6074_v62, %v6113_v3 }
 0x475   : > { %v14652_v17 = vpop.permute.xlu2 %7689  ;;  %v5230_v14 = vpop.permute.xlu1 %5229  ;;  %19122 = vst [vmem:[#allocation467_spill] sm:$0xff] %v14655_v58  ;;  %v6112_v28 = vsel %vm523_vm0, %v6111_v53, %v6062_v36  ;;  %v6122_v62 = vperm.slane %v6114_v7, %v10671_v37 }
 0x476   : > { %v7666_v8 = vpop.permute.xlu0 %7665  ;;  %v6141_v34 = vrot.slane %v5230_v14, 4  ;;  %v14672_v53 = vperm.slane %v6112_v28, %v10671_v37  ;;  %v14675_v38 = vsel %vm523_vm0, %v6127_v16, %v6086_v47  ;;  %v6140_v11 = vsel %vm523_vm0, %v6139_v21, %v5230_v14 }
 0x477   : > { %v14659_v44 = vsel %vm523_vm0, %v8411_v41, %v7666_v8  ;;  %v8413_v60 = vrot.slane %v7666_v8, 4  ;;  %19124 = vst [vmem:[#allocation469_spill] sm:$0xff] %v14675_v38  ;;  %v6137_v41 = vrot.slane %v6098_v63, 4  ;;  %v6153_v16 = vrot.slane %v13570_v4, 4 }
 0x478   : > { %v6142_v43 = vsel %vm523_vm0, %v13687_v10, %v6141_v34  ;;  %19123 = vst [vmem:[#allocation468_spill] sm:$0xff] %v14672_v53  ;;  %v14683_v10 = vsel %vm523_vm0, %v14672_v53, %v6133_v2  ;;  %v6177_v34 = vrot.slane %v13728_v19, 4  ;;  %v6135_v3 = vrot.slane %v6122_v62, 4 }
 0x479   : > { %v14669_v36 = vsel %vm523_vm0, %v14553_v18, %v8413_v60  ;;  %19125 = vst [vmem:[#allocation470_spill] sm:$0xff] %v14683_v10  ;;  %v6150_v18 = vperm.slane %v6142_v43, %v10647_v13  ;;  %v14693_v7 = vsel %vm523_vm0, %v6122_v62, %v6137_v41  ;;  %v14696_v2 = vperm.slane %v6140_v11, %v10647_v13 }
 0x47a   : > { %19126 = vst [vmem:[#allocation471_spill] sm:$0xff] %v14693_v7  ;;  %v14702_v21 = vsel %vm523_vm0, %v6135_v3, %v6098_v63  ;;  %v6178_v38 = vsel %vm523_vm0, %v13642_v57, %v6177_v34  ;;  %v6165_v3 = vrot.slane %v13600_v30, 4 }
 0x47b   : > { %7798 = vrot.lane.b32.xlu2 %v14454_v50, %s18838_s16  ;;  %5365 = vrot.lane.b32.xlu1 %v14036_v27, %s19027_s6  ;;  %19127 = vst [vmem:[#allocation472_spill] sm:$0xff] %v14696_v2  ;;  %v6201_v43 = vrot.slane %v6150_v18, 4  ;;  %v6189_v11 = vrot.slane %v14696_v2, 4  ;;  %v6186_v63 = vperm.slane %v6178_v38, %v10647_v13  ;;  %v6175_v38 = vrot.slane %v13642_v57, 4 }
 0x47c   : > { %7801 = vrot.lane.b32.xlu0 %v14454_v50, %s18996_s22  ;;  %19128 = vst [vmem:[#allocation473_spill] sm:$0xff] %v14702_v21 }
 0x47d   : > { %v7699_v47 = vpop.permute.xlu2 %7698  ;;  %v5239_v14 = vpop.permute.xlu1 %5238  ;;  %v6223_v21 = vrot.slane %v6186_v63, 4 }
 0x47e   : > { %v14698_v8 = vpop.permute.xlu0 %7674  ;;  %v6151_v28 = vrot.slane %v5239_v14, 4  ;;  %v6154_v60 = vsel %vm523_vm0, %v5239_v14, %v6153_v16 }
 0x47f   : > { %v6162_v10 = vperm.slane %v6154_v60, %v10647_v13 }
 0x480   : > { %v6152_v62 = vsel %vm523_vm0, %v6151_v28, %v13570_v4 }
 0x481   : > { %v14711_v41 = vperm.slane %v6152_v62, %v10647_v13  ;;  %v6199_v7 = vrot.slane %v6162_v10, 4  ;;  %v6202_v16 = vsel %vm523_vm0, %v6162_v10, %v6201_v43 }
 0x482   : > { %v6210_v53 = vperm.slane %v6202_v16, %v10671_v37 }
 0x483   : > { %19129 = vst [vmem:[#allocation474_spill] sm:$0xff] %v14711_v41  ;;  %7807 = vrot.lane.b32.xlu2 %v14454_v50, %s18758_s26  ;;  %5374 = vrot.lane.b32.xlu1 %v14036_v27, %s19031_s7  ;;  %v6190_v4 = vsel %vm523_vm0, %v14711_v41, %v6189_v11  ;;  %v6200_v34 = vsel %vm523_vm0, %v6199_v7, %v6150_v18  ;;  %s19143_s26 = smov 70  }
 0x484   : > { %7810 = vrot.lane.b32.xlu0 %v14454_v50, %s19003_s12  ;;  %v14732_v62 = vperm.slane %v6200_v34, %v10671_v37  ;;  %v6176_v18 = vsel %vm523_vm0, %v6175_v38, %v13728_v19  ;;  %s19132_s12 = smov 82   ;;  %v6249_v16 = vrot.slane %v6210_v53, 4 }
 0x485   : > { %v14725_v14 = vpop.permute.xlu2 %7707  ;;  %v5248_v10 = vpop.permute.xlu1 %5247 }
 0x486   : > { %v14727_v28 = vpop.permute.xlu0 %7683  ;;  %v6163_v60 = vrot.slane %v5248_v10, 4  ;;  %v6166_v43 = vsel %vm523_vm0, %v5248_v10, %v6165_v3  ;;  %19130 = vst [vmem:[#allocation475_spill] sm:$0xff] %v14732_v62  ;;  %v6245_v3 = vrot.slane %v14732_v62, 4  ;;  %v14750_v10 = vperm.slane %v6176_v18, %v10647_v13 }
 0x487   : > { %v6174_v11 = vperm.slane %v6166_v43, %v10647_v13 }
 0x488   : > { %v6164_v7 = vsel %vm523_vm0, %v6163_v60, %v13600_v30  ;;  %19134 = vst [vmem:[#allocation478_spill] sm:$0xff] %v14750_v10  ;;  %v6198_v30 = vperm.slane %v6190_v4, %v10671_v37 }
 0x489   : > { %v14740_v45 = vperm.slane %v6164_v7, %v10647_v13  ;;  %v6224_v57 = vsel %vm523_vm0, %v6223_v21, %v6174_v11  ;;  %v6225_v58 = vrot.slane %v6174_v11, 4  ;;  %v8535_v21 = vrot.slane %v7699_v47, 4 }
 0x48a   : > { %v14746_v34 = vperm.slane %v6224_v57, %v10671_v37  ;;  %v6253_v57 = vrot.slane %v13776_v35, 4 }
 0x48b   : > { %19131 = vst [vmem:[#allocation476_spill] sm:$0xff] %v14740_v45  ;;  %7816 = vrot.lane.b32.xlu2 %v14454_v50, %s19132_s12  ;;  %v6213_v19 = vrot.slane %v14740_v45, 4  ;;  %5383 = vrot.lane.b32.xlu1 %v14036_v27, %s19034_s1  ;;  %v6226_v7 = vsel %vm523_vm0, %v6186_v63, %v6225_v58  ;;  %v6241_v45 = vrot.slane %v6198_v30, 4  ;;  %s19440_s12 = smov 12  }
 0x48c   : > { %19133 = vst [vmem:[#allocation477_spill] sm:$0xff] %v14746_v34  ;;  %7819 = vrot.lane.b32.xlu0 %v14454_v50, %s19008_s9  ;;  %v14762_v60 = vsel %vm523_vm0, %v14746_v34, %v6245_v3  ;;  %v6234_v34 = vperm.slane %v6226_v7, %v10671_v37  ;;  %v6254_v58 = vsel %vm523_vm0, %v13684_v46, %v6253_v57  ;;  %s19136_s9 = smov 76  }
 0x48d   : > { %v14758_v38 = vpop.permute.xlu2 %7716  ;;  %19135 = vst [vmem:[#allocation479_spill] sm:$0xff] %v14762_v60  ;;  %v5257_v43 = vpop.permute.xlu1 %5256  ;;  %v6214_v18 = vsel %vm523_vm0, %v14750_v10, %v6213_v19  ;;  %v6251_v19 = vrot.slane %v13684_v46, 4 }
 0x48e   : > { %v7693_v11 = vpop.permute.xlu0 %7692  ;;  %v6265_v2 = vrot.slane %v5257_v43, 4  ;;  %v6222_v60 = vperm.slane %v6214_v18, %v10671_v37  ;;  %v6247_v7 = vrot.slane %v6234_v34, 4  ;;  %v14798_v57 = vsel %vm523_vm0, %v6234_v34, %v6249_v16 }
 0x48f   : > { %v14769_v62 = vsel %vm523_vm0, %v8535_v21, %v7693_v11  ;;  %v8537_v4 = vrot.slane %v7693_v11, 4  ;;  %v6263_v21 = vrot.slane %v13828_v48, 4  ;;  %v8611_v11 = vrot.slane %v14725_v14, 4  ;;  %19138 = vst [vmem:[#allocation481_spill] sm:$0xff] %v14798_v57 }
 0x490   : > { %v14783_v63 = vsel %vm523_vm0, %v6222_v60, %v6241_v45  ;;  %v6266_v46 = vsel %vm523_vm0, %v13828_v48, %v6265_v2  ;;  %v6239_v45 = vrot.slane %v6222_v60, 4  ;;  %v6275_v2 = vrot.slane %v13865_v32, 4 }
 0x491   : > { %v14773_v3 = vsel %vm523_vm0, %v7699_v47, %v8537_v4  ;;  %19137 = vst [vmem:[#allocation480_spill] sm:$0xff] %v14783_v63  ;;  %v6252_v47 = vsel %vm523_vm0, %v6251_v19, %v13776_v35  ;;  %v6262_v35 = vperm.slane %v6254_v58, %v10647_v13  ;;  %v6264_v63 = vsel %vm523_vm0, %v6263_v21, %v5257_v43 }
 0x492   : > { %v14806_v48 = vperm.slane %v6252_v47, %v10647_v13  ;;  %v6274_v34 = vperm.slane %v6266_v46, %v10647_v13  ;;  %v14817_v43 = vsel %vm523_vm0, %v6239_v45, %v6198_v30  ;;  %v14820_v16 = vsel %vm523_vm0, %v6247_v7, %v6210_v53  ;;  %v19144_v30 = vld [vmem:[#allocation342_spill] sm:$0xff] }
 0x493   : > { %7825 = vrot.lane.b32.xlu2 %v14454_v50, %s19136_s9  ;;  %5392 = vrot.lane.b32.xlu1 %v14036_v27, %s19037_s10  ;;  %19140 = vst [vmem:[#allocation483_spill] sm:$0xff] %v14817_v43  ;;  %v6313_v21 = vrot.slane %v6262_v35, 4  ;;  %v14823_v47 = vperm.slane %v6264_v63, %v10647_v13  ;;  %v6289_v63 = vrot.slane %v19144_v30, 4  ;;  %s19444_s9 = smov 6  }
 0x494   : > { %7828 = vrot.lane.b32.xlu0 %v14454_v50, %s19016_s5  ;;  %19139 = vst [vmem:[#allocation482_spill] sm:$0xff] %v14806_v48  ;;  %v6311_v46 = vrot.slane %v6274_v34, 4  ;;  %s19203_s5 = smov 126  }
 0x495   : > { %v14795_v18 = vpop.permute.xlu2 %7725  ;;  %v5266_v4 = vpop.permute.xlu1 %5265  ;;  %19141 = vst [vmem:[#allocation484_spill] sm:$0xff] %v14820_v16  ;;  %v6314_v53 = vsel %vm523_vm0, %v6274_v34, %v6313_v21 }
 0x496   : > { %v7702_v19 = vpop.permute.xlu0 %7701  ;;  %v6277_v27 = vrot.slane %v5266_v4, 4  ;;  %19142 = vst [vmem:[#allocation485_spill] sm:$0xff] %v14823_v47  ;;  %v6322_v57 = vperm.slane %v6314_v53, %v10671_v37  ;;  %v6363_v53 = vrot.slane %v13892_v49, 4 }
 0x497   : > { %v14803_v10 = vsel %vm523_vm0, %v8611_v11, %v7702_v19  ;;  %v8613_v41 = vrot.slane %v7702_v19, 4  ;;  %v6276_v11 = vsel %vm523_vm0, %v6275_v2, %v5266_v4 }
 0x498   : > { %v6278_v60 = vsel %vm523_vm0, %v13865_v32, %v6277_v27  ;;  %v6301_v32 = vrot.slane %v14806_v48, 4  ;;  %v14844_v4 = vperm.slane %v6276_v11, %v10647_v13 }
 0x499   : > { %v14814_v58 = vsel %vm523_vm0, %v14725_v14, %v8613_v41  ;;  %v6286_v41 = vperm.slane %v6278_v60, %v10647_v13  ;;  %v14831_v14 = vld [vmem:[%s10533_s24 + $0x28] sm:$0xff] }
 0x49a   : > { %v6302_v7 = vsel %vm523_vm0, %v14823_v47, %v6301_v32  ;;  %19145 = vst [vmem:[#allocation342_spill] sm:$0xff] %v14844_v4  ;;  %v6312_v32 = vsel %vm523_vm0, %v6311_v46, %v6262_v35  ;;  %v6325_v11 = vrot.slane %v14844_v4, 4  ;;  %v6365_v0 = vrot.slane %v14831_v14, 4 }
 0x49b   : > { %7834 = vrot.lane.b32.xlu2 %v14454_v50, %s19143_s26  ;;  %5401 = vrot.lane.b32.xlu1 %v14831_v14, %s19040_s23  ;;  %v6337_v21 = vrot.slane %v6286_v41, 4  ;;  %v6310_v43 = vperm.slane %v6302_v7, %v10671_v37  ;;  %s19460_s26 = smov 120  }
 0x49c   : > { %7837 = vrot.lane.b32.xlu0 %v14454_v50, %s19027_s6  ;;  %s19147_s6 = smov 64  }
 0x49d   : > { %v14839_v45 = vpop.permute.xlu2 %7734  ;;  %v5275_v19 = vpop.permute.xlu1 %5274  ;;  %v6353_v4 = vrot.slane %v6310_v43, 4 }
 0x49e   : > { %v14846_v27 = vpop.permute.xlu0 %7710  ;;  %v6287_v2 = vrot.slane %v5275_v19, 4  ;;  %v6290_v60 = vsel %vm523_vm0, %v5275_v19, %v6289_v63 }
 0x49f   : > { %v6298_v16 = vperm.slane %v6290_v60, %v10647_v13 }
 0x4a0   : > { %v6288_v34 = vsel %vm523_vm0, %v6287_v2, %v19144_v30  ;;  %v6361_v30 = vrot.slane %v6322_v57, 4  ;;  %v14875_v2 = vperm.slane %v6312_v32, %v10671_v37 }
 0x4a1   : > { %v14857_v48 = vperm.slane %v6288_v34, %v10647_v13  ;;  %v6335_v47 = vrot.slane %v6298_v16, 4  ;;  %v6338_v63 = vsel %vm523_vm0, %v6298_v16, %v6337_v21 }
 0x4a2   : > { %v6346_v19 = vperm.slane %v6338_v63, %v10671_v37  ;;  %19148 = vst [vmem:[#allocation487_spill] sm:$0xff] %v14875_v2 }
 0x4a3   : > { %19146 = vst [vmem:[#allocation486_spill] sm:$0xff] %v14857_v48  ;;  %7843 = vrot.lane.b32.xlu2 %v14454_v50, %s19147_s6  ;;  %5410 = vrot.lane.b32.xlu1 %v14831_v14, %s19043_s8  ;;  %v6326_v35 = vsel %vm523_vm0, %v14857_v48, %v6325_v11  ;;  %v6336_v46 = vsel %vm523_vm0, %v6335_v47, %v6286_v41  ;;  %v6401_v48 = vrot.slane %v13934_v51, 4 }
 0x4a4   : > { %7846 = vrot.lane.b32.xlu0 %v14454_v50, %s19031_s7  ;;  %v6334_v7 = vperm.slane %v6326_v35, %v10671_v37  ;;  %v6359_v60 = vrot.slane %v6346_v19, 4  ;;  %v14878_v21 = vsel %vm523_vm0, %v6346_v19, %v6361_v30  ;;  %v6364_v47 = vsel %vm523_vm0, %v6363_v53, %v14831_v14  ;;  %s19155_s7 = smov 58  }
 0x4a5   : > { %v14871_v16 = vpop.permute.xlu2 %7743  ;;  %19149 = vst [vmem:[#allocation488_spill] sm:$0xff] %v14878_v21  ;;  %v5285_v34 = vpop.permute.xlu1 %5284  ;;  %v14886_v11 = vperm.slane %v6336_v46, %v10671_v37  ;;  %v6357_v30 = vrot.slane %v14875_v2, 4  ;;  %v14896_v21 = vperm.slane %v6364_v47, %v10647_v13  ;;  %v6399_v47 = vrot.slane %v13862_v56, 4 }
 0x4a6   : > { %v14880_v63 = vpop.permute.xlu0 %7719  ;;  %v6375_v41 = vrot.slane %v5285_v34, 4  ;;  %v14889_v32 = vsel %vm523_vm0, %v6334_v7, %v6353_v4  ;;  %v6351_v35 = vrot.slane %v6334_v7, 4  ;;  %v14892_v19 = vsel %vm523_vm0, %v6359_v60, %v6322_v57 }
 0x4a7   : > { %19150 = vst [vmem:[#allocation489_spill] sm:$0xff] %v14886_v11  ;;  %v6377_v4 = vrot.slane %v13768_v31, 4  ;;  %v6366_v7 = vsel %vm523_vm0, %v13892_v49, %v6365_v0  ;;  %v14911_v57 = vsel %vm523_vm0, %v14886_v11, %v6357_v30  ;;  %v6402_v30 = vsel %vm523_vm0, %v13862_v56, %v6401_v48 }
 0x4a8   : > { %19151 = vst [vmem:[#allocation490_spill] sm:$0xff] %v14889_v32  ;;  %v6376_v53 = vsel %vm523_vm0, %v6375_v41, %v13768_v31  ;;  %v14902_v46 = vsel %vm523_vm0, %v6351_v35, %v6310_v43  ;;  %v6389_v43 = vrot.slane %v13815_v20, 4  ;;  %v8735_v31 = vrot.slane %v14839_v45, 4 }
 0x4a9   : > { %19152 = vst [vmem:[#allocation491_spill] sm:$0xff] %v14892_v19  ;;  %v6378_v60 = vsel %vm523_vm0, %v5285_v34, %v6377_v4  ;;  %v14921_v49 = vperm.slane %v6376_v53, %v10647_v13  ;;  %v6374_v41 = vperm.slane %v6366_v7, %v10647_v13  ;;  %v6413_v35 = vrot.slane %v14896_v21, 4 }
 0x4aa   : > { %19153 = vst [vmem:[#allocation492_spill] sm:$0xff] %v14896_v21  ;;  %v6400_v4 = vsel %vm523_vm0, %v6399_v47, %v13934_v51  ;;  %v6386_v32 = vperm.slane %v6378_v60, %v10647_v13 }
 0x4ab   : > { %19154 = vst [vmem:[#allocation493_spill] sm:$0xff] %v14902_v46  ;;  %7852 = vrot.lane.b32.xlu2 %v14454_v50, %s19155_s7  ;;  %5419 = vrot.lane.b32.xlu1 %v14831_v14, %s19046_s11  ;;  %v6414_v48 = vsel %vm523_vm0, %v14921_v49, %v6413_v35 }
 0x4ac   : > { %19156 = vst [vmem:[#allocation494_spill] sm:$0xff] %v14911_v57  ;;  %7855 = vrot.lane.b32.xlu0 %v14454_v50, %s19034_s1  ;;  %s19160_s1 = smov 52  }
 0x4ad   : > { %19157 = vst [vmem:[#allocation495_spill] sm:$0xff] %v14921_v49  ;;  %v14923_v0 = vpop.permute.xlu2 %7753  ;;  %v5294_v57 = vpop.permute.xlu1 %5293 }
 0x4ae   : > { %v7729_v19 = vpop.permute.xlu0 %7728  ;;  %v6387_v46 = vrot.slane %v5294_v57, 4  ;;  %v6390_v2 = vsel %vm523_vm0, %v5294_v57, %v6389_v43  ;;  %v6425_v57 = vrot.slane %v6374_v41, 4 }
 0x4af   : > { %v14932_v34 = vsel %vm523_vm0, %v8735_v31, %v7729_v19  ;;  %v8737_v53 = vrot.slane %v7729_v19, 4  ;;  %v6398_v7 = vperm.slane %v6390_v2, %v10647_v13  ;;  %v6410_v19 = vperm.slane %v6402_v30, %v10647_v13 }
 0x4b0   : > { %v6388_v11 = vsel %vm523_vm0, %v6387_v46, %v13815_v20  ;;  %v14951_v31 = vperm.slane %v6400_v4, %v10647_v13  ;;  %v6423_v20 = vrot.slane %v6386_v32, 4  ;;  %v6422_v2 = vperm.slane %v6414_v48, %v10671_v37 }
 0x4b1   : > { %v14942_v56 = vsel %vm523_vm0, %v14839_v45, %v8737_v53  ;;  %v14948_v43 = vperm.slane %v6388_v11, %v10647_v13  ;;  %v6449_v51 = vrot.slane %v6398_v7, 4  ;;  %v6426_v11 = vsel %vm523_vm0, %v6386_v32, %v6425_v57 }
 0x4b2   : > { %19159 = vst [vmem:[#allocation497_spill] sm:$0xff] %v14951_v31  ;;  %v8747_v46 = vrot.slane %v14871_v16, 4  ;;  %v6447_v47 = vrot.slane %v6410_v19, 4  ;;  %v6434_v32 = vperm.slane %v6426_v11, %v10671_v37  ;;  %v6465_v49 = vrot.slane %v6422_v2, 4 }
 0x4b3   : > { %19158 = vst [vmem:[#allocation496_spill] sm:$0xff] %v14948_v43  ;;  %7861 = vrot.lane.b32.xlu2 %v14454_v50, %s19160_s1  ;;  %v6437_v45 = vrot.slane %v14948_v43, 4  ;;  %5428 = vrot.lane.b32.xlu1 %v14831_v14, %s19050_s4  ;;  %v6450_v4 = vsel %vm523_vm0, %v6410_v19, %v6449_v51  ;;  %v6477_v43 = vrot.slane %v13965_v24, 4  ;;  %v6424_v12 = vsel %vm523_vm0, %v6423_v20, %v6374_v41  ;;  %s20135_s1 = sld [smem:[#allocation12_spill]] }
 0x4b4   : > { %7864 = vrot.lane.b32.xlu0 %v14454_v50, %s19037_s10  ;;  %v6448_v57 = vsel %vm523_vm0, %v6447_v47, %v6398_v7  ;;  %v6458_v51 = vperm.slane %v6450_v4, %v10671_v37  ;;  %v14990_v41 = vperm.slane %v6424_v12, %v10671_v37  ;;  %v6487_v11 = vrot.slane %v13982_v1, 4  ;;  %s19174_s10 = smov 40  }
 0x4b5   : > { %v14963_v60 = vpop.permute.xlu2 %7762  ;;  %v5303_v35 = vpop.permute.xlu1 %5302  ;;  %v6438_v53 = vsel %vm523_vm0, %v14951_v31, %v6437_v45  ;;  %v6475_v45 = vrot.slane %v13889_v39, 4 }
 0x4b6   : > { %19161 = vst [vmem:[#allocation498_spill] sm:$0xff] %v14963_v60  ;;  %v7738_v30 = vpop.permute.xlu0 %7737  ;;  %v6489_v23 = vrot.slane %v5303_v35, 4  ;;  %v6446_v19 = vperm.slane %v6438_v53, %v10671_v37  ;;  %v6471_v47 = vrot.slane %v6458_v51, 4 }
 0x4b7   : > { %v14970_v21 = vsel %vm523_vm0, %v8747_v46, %v7738_v30  ;;  %v8749_v48 = vrot.slane %v7738_v30, 4  ;;  %v6478_v46 = vsel %vm523_vm0, %v13889_v39, %v6477_v43  ;;  %19163 = vst [vmem:[#allocation500_spill] sm:$0xff] %v14990_v41  ;;  %v6476_v20 = vsel %vm523_vm0, %v6475_v45, %v13965_v24 }
 0x4b8   : > { %v14987_v7 = vsel %vm523_vm0, %v6446_v19, %v6465_v49  ;;  %v15000_v39 = vperm.slane %v6448_v57, %v10671_v37  ;;  %v6490_v49 = vsel %vm523_vm0, %v13982_v1, %v6489_v23  ;;  %v6463_v43 = vrot.slane %v6446_v19, 4 }
 0x4b9   : > { %v14977_v52 = vsel %vm523_vm0, %v14871_v16, %v8749_v48  ;;  %19162 = vst [vmem:[#allocation499_spill] sm:$0xff] %v14987_v7  ;;  %v6473_v16 = vrot.slane %v6434_v32, 4  ;;  %v6486_v30 = vperm.slane %v6478_v46, %v10647_v13  ;;  %v6488_v48 = vsel %vm523_vm0, %v6487_v11, %v5303_v35 }
 0x4ba   : > { %19164 = vst [vmem:[#allocation501_spill] sm:$0xff] %v15000_v39  ;;  %v6469_v57 = vrot.slane %v14990_v41, 4  ;;  %v15015_v7 = vperm.slane %v6476_v20, %v10647_v13  ;;  %v6498_v1 = vperm.slane %v6490_v49, %v10647_v13  ;;  %v15019_v23 = vsel %vm523_vm0, %v6463_v43, %v6422_v2 }
 0x4bb   : > { %7870 = vrot.lane.b32.xlu2 %v14454_v50, %s18777_s17  ;;  %5437 = vrot.lane.b32.xlu1 %v14831_v14, %s19053_s21  ;;  %v15007_v24 = vsel %vm523_vm0, %v6458_v51, %v6473_v16  ;;  %19169 = vst [vmem:[#allocation506_spill] sm:$0xff] %v15019_v23  ;;  %v15022_v19 = vsel %vm523_vm0, %v6471_v47, %v6434_v32  ;;  %v19171_v51 = vld [vmem:[#allocation381_spill] sm:$0xff]  ;;  %v6537_v11 = vrot.slane %v6486_v30, 4  ;;  %v19175_v47 = vld [vmem:[#allocation368_spill] sm:$0xff]  ;;  %s19192_s17 = smov 28  }
 0x4bc   : > { %7873 = vrot.lane.b32.xlu0 %v14454_v50, %s19040_s23  ;;  %19166 = vst [vmem:[#allocation503_spill] sm:$0xff] %v15007_v24  ;;  %v6499_v46 = vrot.slane %v19171_v51, 4  ;;  %v15029_v35 = vsel %vm523_vm0, %v15000_v39, %v6469_v57  ;;  %v15032_v20 = vperm.slane %v6488_v48, %v10647_v13  ;;  %v6525_v2 = vrot.slane %v15015_v7, 4  ;;  %s19432_s23 = smov 24  }
 0x4bd   : > { %v15004_v12 = vpop.permute.xlu2 %7771  ;;  %v5312_v53 = vpop.permute.xlu1 %5311  ;;  %19168 = vst [vmem:[#allocation505_spill] sm:$0xff] %v15015_v7  ;;  %v6538_v43 = vsel %vm523_vm0, %v6498_v1, %v6537_v11  ;;  %v6513_v48 = vrot.slane %v19175_v47, 4 }
 0x4be   : > { %19165 = vst [vmem:[#allocation502_spill] sm:$0xff] %v15004_v12  ;;  %v15010_v4 = vpop.permute.xlu0 %7746  ;;  %v6501_v45 = vrot.slane %v5312_v53, 4  ;;  %v6500_v49 = vsel %vm523_vm0, %v6499_v46, %v5312_v53  ;;  %v6526_v53 = vsel %vm523_vm0, %v15032_v20, %v6525_v2 }
 0x4bf   : > { %19167 = vst [vmem:[#allocation504_spill] sm:$0xff] %v15010_v4  ;;  %v6534_v41 = vperm.slane %v6526_v53, %v10671_v37 }
 0x4c0   : > { %19170 = vst [vmem:[#allocation507_spill] sm:$0xff] %v15022_v19  ;;  %v6502_v16 = vsel %vm523_vm0, %v19171_v51, %v6501_v45  ;;  %v6535_v45 = vrot.slane %v6498_v1, 4  ;;  %v15050_v51 = vperm.slane %v6500_v49, %v10647_v13  ;;  %v6546_v19 = vperm.slane %v6538_v43, %v10671_v37 }
 0x4c1   : > { %19172 = vst [vmem:[#allocation381_spill] sm:$0xff] %v15029_v35  ;;  %v6510_v32 = vperm.slane %v6502_v16, %v10647_v13  ;;  %v6577_v5 = vrot.slane %v6534_v41, 4 }
 0x4c2   : > { %19173 = vst [vmem:[#allocation508_spill] sm:$0xff] %v15032_v20  ;;  %v6536_v2 = vsel %vm523_vm0, %v6535_v45, %v6486_v30  ;;  %v6549_v49 = vrot.slane %v15050_v51, 4 }
 0x4c3   : > { %7879 = vrot.lane.b32.xlu2 %v14454_v50, %s19174_s10  ;;  %5446 = vrot.lane.b32.xlu1 %v14831_v14, %s19056_s29  ;;  %19176 = vst [vmem:[#allocation368_spill] sm:$0xff] %v15050_v51  ;;  %v6561_v11 = vrot.slane %v6510_v32, 4  ;;  %v15081_v53 = vperm.slane %v6536_v2, %v10671_v37  ;;  %v19187_v2 = vld [vmem:[#allocation380_spill] sm:$0xff]  ;;  %s10138_s10 = sshll.u32 %s20135_s1, 6 }
 0x4c4   : > { %7882 = vrot.lane.b32.xlu0 %v14454_v50, %s19043_s8  ;;  %s19180_s8 = smov 34   ;;  %v6611_v12 = vrot.slane %v19187_v2, 4 }
 0x4c5   : > { %v15045_v57 = vpop.permute.xlu2 %7780  ;;  %v5321_v46 = vpop.permute.xlu1 %5320 }
 0x4c6   : > { %v15052_v16 = vpop.permute.xlu0 %7756  ;;  %v6511_v35 = vrot.slane %v5321_v46, 4  ;;  %v6514_v24 = vsel %vm523_vm0, %v5321_v46, %v6513_v48  ;;  %v19179_v46 = vld [vmem:[#allocation384_spill] sm:$0xff] }
 0x4c7   : > { %19177 = vst [vmem:[#allocation509_spill] sm:$0xff] %v15052_v16  ;;  %v6522_v23 = vperm.slane %v6514_v24, %v10647_v13  ;;  %v6601_v43 = vrot.slane %v19179_v46, 4  ;;  %v19190_v16 = vld [vmem:[#allocation389_spill] sm:$0xff] }
 0x4c8   : > { %v6512_v1 = vsel %vm523_vm0, %v6511_v35, %v19175_v47  ;;  %v6585_v35 = vrot.slane %v6546_v19, 4  ;;  %19181 = vst [vmem:[#allocation384_spill] sm:$0xff] %v15081_v53  ;;  %v6612_v4 = vsel %vm523_vm0, %v6611_v12, %v19190_v16 }
 0x4c9   : > { %v15063_v39 = vperm.slane %v6512_v1, %v10647_v13  ;;  %v6559_v7 = vrot.slane %v6522_v23, 4  ;;  %v6562_v48 = vsel %vm523_vm0, %v6522_v23, %v6561_v11 }
 0x4ca   : > { %v6570_v24 = vperm.slane %v6562_v48, %v10671_v37  ;;  %v19183_v48 = vld [vmem:[#allocation378_spill] sm:$0xff] }
 0x4cb   : > { %19178 = vst [vmem:[#allocation510_spill] sm:$0xff] %v15063_v39  ;;  %7888 = vrot.lane.b32.xlu2 %v14454_v50, %s19180_s8  ;;  %5455 = vrot.lane.b32.xlu1 %v14831_v14, %s19061_s25  ;;  %v6550_v30 = vsel %vm523_vm0, %v15063_v39, %v6549_v49  ;;  %v6560_v47 = vsel %vm523_vm0, %v6559_v7, %v6510_v32  ;;  %v6599_v51 = vrot.slane %v19183_v48, 4  ;;  %v19185_v49 = vld [vmem:[#allocation376_spill] sm:$0xff] }
 0x4cc   : > { %7891 = vrot.lane.b32.xlu0 %v14454_v50, %s19046_s11  ;;  %v6558_v45 = vperm.slane %v6550_v30, %v10671_v37  ;;  %v6583_v11 = vrot.slane %v6570_v24, 4  ;;  %v15084_v1 = vsel %vm523_vm0, %v6570_v24, %v6585_v35  ;;  %v6589_v39 = vrot.slane %v19185_v49, 4  ;;  %s19415_s11 = smov 48  }
 0x4cd   : > { %v15077_v23 = vpop.permute.xlu2 %7789  ;;  %19182 = vst [vmem:[#allocation511_spill] sm:$0xff] %v15084_v1  ;;  %v5330_v20 = vpop.permute.xlu1 %5329  ;;  %v6602_v7 = vsel %vm523_vm0, %v19183_v48, %v6601_v43  ;;  %v15093_v30 = vperm.slane %v6560_v47, %v10671_v37  ;;  %v6600_v24 = vsel %vm523_vm0, %v6599_v51, %v19179_v46  ;;  %v6581_v47 = vrot.slane %v15081_v53, 4 }
 0x4ce   : > { %v15087_v31 = vpop.permute.xlu0 %7765  ;;  %v6587_v32 = vrot.slane %v5330_v20, 4  ;;  %v15099_v35 = vsel %vm523_vm0, %v6558_v45, %v6577_v5  ;;  %v6575_v1 = vrot.slane %v6558_v45, 4  ;;  %v15105_v43 = vsel %vm523_vm0, %v6583_v11, %v6546_v19 }
 0x4cf   : > { %19184 = vst [vmem:[#allocation378_spill] sm:$0xff] %v15087_v31  ;;  %v6590_v31 = vsel %vm523_vm0, %v5330_v20, %v6589_v39  ;;  %v6610_v48 = vperm.slane %v6602_v7, %v10647_v13  ;;  %v6613_v51 = vrot.slane %v19190_v16, 4  ;;  %v15122_v19 = vsel %vm523_vm0, %v15093_v30, %v6581_v47 }
 0x4d0   : > { %19186 = vst [vmem:[#allocation376_spill] sm:$0xff] %v15093_v30  ;;  %v6588_v60 = vsel %vm523_vm0, %v6587_v32, %v19185_v49  ;;  %v15118_v39 = vsel %vm523_vm0, %v6575_v1, %v6534_v41  ;;  %v15125_v20 = vperm.slane %v6600_v24, %v10647_v13  ;;  %v6598_v12 = vperm.slane %v6590_v31, %v10647_v13  ;;  %v19197_v41 = vld [vmem:[#allocation396_spill] sm:$0xff] }
 0x4d1   : > { %19188 = vst [vmem:[#allocation380_spill] sm:$0xff] %v15099_v35  ;;  %v15113_v5 = vperm.slane %v6588_v60, %v10647_v13  ;;  %v15134_v60 = vperm.slane %v6612_v4, %v10647_v13  ;;  %v6623_v46 = vrot.slane %v19197_v41, 4  ;;  %v8959_v45 = vrot.slane %v15045_v57, 4 }
 0x4d2   : > { %19189 = vst [vmem:[#allocation512_spill] sm:$0xff] %v15105_v43  ;;  %v6647_v1 = vrot.slane %v6610_v48, 4  ;;  %v6614_v31 = vsel %vm523_vm0, %v19187_v2, %v6613_v51 }
 0x4d3   : > { %19191 = vst [vmem:[#allocation389_spill] sm:$0xff] %v15113_v5  ;;  %7897 = vrot.lane.b32.xlu2 %v14454_v50, %s19192_s17  ;;  %v6637_v16 = vrot.slane %v15113_v5, 4  ;;  %5464 = vrot.lane.b32.xlu1 %v14831_v14, %s19067_s30  ;;  %v6661_v51 = vrot.slane %v15134_v60, 4 }
 0x4d4   : > { %19193 = vst [vmem:[#allocation513_spill] sm:$0xff] %v15118_v39  ;;  %7900 = vrot.lane.b32.xlu0 %v14454_v50, %s19050_s4  ;;  %v6648_v2 = vsel %vm523_vm0, %v6647_v1, %v6598_v12  ;;  %s19201_s4 = smov 22  }
 0x4d5   : > { %19194 = vst [vmem:[#allocation514_spill] sm:$0xff] %v15122_v19  ;;  %v15138_v11 = vpop.permute.xlu2 %7798  ;;  %v5339_v49 = vpop.permute.xlu1 %5338  ;;  %v6638_v14 = vsel %vm523_vm0, %v15125_v20, %v6637_v16  ;;  %v6649_v19 = vrot.slane %v6598_v12, 4  ;;  %v15167_v12 = vperm.slane %v6648_v2, %v10671_v37 }
 0x4d6   : > { %19195 = vst [vmem:[#allocation515_spill] sm:$0xff] %v15125_v20  ;;  %v7775_v7 = vpop.permute.xlu0 %7774  ;;  %v6624_v32 = vsel %vm523_vm0, %v6623_v46, %v5339_v49  ;;  %v6625_v24 = vrot.slane %v5339_v49, 4  ;;  %v6646_v39 = vperm.slane %v6638_v14, %v10671_v37  ;;  %v15170_v14 = vld [vmem:[%s10533_s24 + $0x30] sm:$0xff] }
 0x4d7   : > { %19196 = vst [vmem:[#allocation516_spill] sm:$0xff] %v15134_v60  ;;  %v15146_v4 = vsel %vm523_vm0, %v8959_v45, %v7775_v7  ;;  %v8961_v47 = vrot.slane %v7775_v7, 4  ;;  %v15149_v43 = vperm.slane %v6624_v32, %v10647_v13  ;;  %v6622_v45 = vperm.slane %v6614_v31, %v10647_v13 }
 0x4d8   : > { %19198 = vst [vmem:[#allocation396_spill] sm:$0xff] %v15138_v11  ;;  %v6626_v16 = vsel %vm523_vm0, %v19197_v41, %v6625_v24  ;;  %v6689_v41 = vrot.slane %v6646_v39, 4  ;;  %v6650_v31 = vsel %vm523_vm0, %v6610_v48, %v6649_v19  ;;  %v8971_v32 = vrot.slane %v15077_v23, 4  ;;  %v19207_v19 = vld [vmem:[#allocation398_spill] sm:$0xff] }
 0x4d9   : > { %19199 = vst [vmem:[#allocation517_spill] sm:$0xff] %v15149_v43  ;;  %v15158_v46 = vsel %vm523_vm0, %v15045_v57, %v8961_v47  ;;  %v6634_v49 = vperm.slane %v6626_v16, %v10647_v13  ;;  %v6662_v7 = vsel %vm523_vm0, %v15149_v43, %v6661_v51  ;;  %v6673_v47 = vrot.slane %v6622_v45, 4 }
 0x4da   : > { %19200 = vst [vmem:[#allocation518_spill] sm:$0xff] %v15158_v46  ;;  %v6670_v57 = vperm.slane %v6662_v7, %v10671_v37  ;;  %v6658_v48 = vperm.slane %v6650_v31, %v10671_v37  ;;  %v6699_v60 = vrot.slane %v19207_v19, 4  ;;  %v6693_v20 = vrot.slane %v15167_v12, 4  ;;  %v19260_v46 = vld [vmem:[#allocation411_spill] sm:$0xff] }
 0x4db   : > { %7906 = vrot.lane.b32.xlu2 %v14454_v50, %s19201_s4  ;;  %19202 = vst [vmem:[#allocation519_spill] sm:$0xff] %v15167_v12  ;;  %v6671_v1 = vrot.slane %v6634_v49, 4  ;;  %7560 = vrot.lane.b32.xlu1 %v15170_v14, %s19203_s5  ;;  %v6674_v5 = vsel %vm523_vm0, %v6634_v49, %v6673_v47  ;;  %s20136_s4 = sld [smem:[#allocation554_spill]] }
 0x4dc   : > { %7909 = vrot.lane.b32.xlu0 %v14454_v50, %s19053_s21  ;;  %v15182_v16 = vsel %vm523_vm0, %v6670_v57, %v6689_v41  ;;  %v6687_v35 = vrot.slane %v6670_v57, 4  ;;  %v6682_v49 = vperm.slane %v6674_v5, %v10671_v37  ;;  %v6697_v47 = vrot.slane %v6658_v48, 4  ;;  %s19266_s21 = smov 108  }
 0x4dd   : > { %v15179_v24 = vpop.permute.xlu2 %7807  ;;  %v5348_v2 = vpop.permute.xlu1 %5347  ;;  %19205 = vst [vmem:[#allocation521_spill] sm:$0xff] %v15182_v16  ;;  %v6672_v53 = vsel %vm523_vm0, %v6671_v1, %v6622_v45 }
 0x4de   : > { %19204 = vst [vmem:[#allocation520_spill] sm:$0xff] %v15179_v24  ;;  %v7784_v51 = vpop.permute.xlu0 %7783  ;;  %v6701_v50 = vrot.slane %v5348_v2, 4  ;;  %v15199_v1 = vperm.slane %v6672_v53, %v10671_v37  ;;  %v15202_v57 = vsel %vm523_vm0, %v6687_v35, %v6646_v39  ;;  %v6700_v31 = vsel %vm523_vm0, %v6699_v60, %v5348_v2  ;;  %v19212_v53 = vld [vmem:[#allocation382_spill] sm:$0xff]  ;;  %v19213_v35 = vld [vmem:[#allocation400_spill] sm:$0xff] }
 0x4df   : > { %v15186_v7 = vsel %vm523_vm0, %v8971_v32, %v7784_v51  ;;  %v8973_v30 = vrot.slane %v7784_v51, 4  ;;  %19210 = vst [vmem:[#allocation524_spill] sm:$0xff] %v15202_v57  ;;  %v10261_v32 = vld [vmem:[%s10533_s24 + $0x38] sm:$0xff]  ;;  %v6737_v39 = vrot.slane %v19213_v35, 4  ;;  %v6695_v2 = vrot.slane %v6682_v49, 4 }
 0x4e0   : > { %19206 = vst [vmem:[#allocation522_spill] sm:$0xff] %v15186_v7  ;;  %v6702_v41 = vsel %vm523_vm0, %v19207_v19, %v6701_v50  ;;  %v15210_v51 = vsel %vm523_vm0, %v15199_v1, %v6693_v20  ;;  %v15219_v5 = vsel %vm523_vm0, %v6682_v49, %v6697_v47  ;;  %v15222_v50 = vperm.slane %v6700_v31, %v10647_v13 }
 0x4e1   : > { %v15196_v45 = vsel %vm523_vm0, %v15077_v23, %v8973_v30  ;;  %19209 = vst [vmem:[#allocation523_spill] sm:$0xff] %v15199_v1  ;;  %v6710_v23 = vperm.slane %v6702_v41, %v10647_v13  ;;  %v6713_v30 = vrot.slane %v19212_v53, 4  ;;  %v15228_v57 = vsel %vm523_vm0, %v6695_v2, %v6658_v48  ;;  %v19218_v1 = vld [vmem:[#allocation395_spill] sm:$0xff] }
 0x4e2   : > { %19208 = vst [vmem:[#allocation398_spill] sm:$0xff] %v15196_v45  ;;  %v6738_v43 = vsel %vm523_vm0, %v19218_v1, %v6737_v39  ;;  %v6749_v31 = vrot.slane %v15222_v50, 4  ;;  %v19220_v39 = vld [vmem:[#allocation387_spill] sm:$0xff] }
 0x4e3   : > { %7915 = vrot.lane.b32.xlu2 %v10261_v32, %s19004_s14  ;;  %19211 = vst [vmem:[#allocation525_spill] sm:$0xff] %v15210_v51  ;;  %7563 = vrot.lane.b32.xlu1 %v15170_v14, %s19099_s28  ;;  %v6761_v12 = vrot.slane %v6710_v23, 4  ;;  %v6746_v48 = vperm.slane %v6738_v43, %v10647_v13  ;;  %v6725_v2 = vrot.slane %v19220_v39, 4  ;;  %s19378_s28 = smov 78  }
 0x4e4   : > { %7918 = vrot.lane.b32.xlu0 %v10261_v32, %s19056_s29  ;;  %19214 = vst [vmem:[#allocation382_spill] sm:$0xff] %v15219_v5  ;;  %s19388_s29 = smov 72  }
 0x4e5   : > { %v7817_v60 = vpop.permute.xlu2 %7816  ;;  %19215 = vst [vmem:[#allocation400_spill] sm:$0xff] %v15222_v50  ;;  %v5357_v20 = vpop.permute.xlu1 %5356  ;;  %v6783_v50 = vrot.slane %v6746_v48, 4 }
 0x4e6   : > { %v15224_v19 = vpop.permute.xlu0 %7792  ;;  %v6711_v41 = vrot.slane %v5357_v20, 4  ;;  %v6714_v51 = vsel %vm523_vm0, %v5357_v20, %v6713_v30  ;;  %19217 = vst [vmem:[#allocation527_spill] sm:$0xff] %v15228_v57 }
 0x4e7   : > { %19216 = vst [vmem:[#allocation526_spill] sm:$0xff] %v15224_v19  ;;  %v6722_v16 = vperm.slane %v6714_v51, %v10647_v13 }
 0x4e8   : > { %v6712_v49 = vsel %vm523_vm0, %v6711_v41, %v19212_v53 }
 0x4e9   : > { %v15237_v47 = vperm.slane %v6712_v49, %v10647_v13  ;;  %v6759_v5 = vrot.slane %v6722_v16, 4  ;;  %v6762_v30 = vsel %vm523_vm0, %v6722_v16, %v6761_v12  ;;  %v6735_v16 = vrot.slane %v19218_v1, 4 }
 0x4eb   : > { %19219 = vst [vmem:[#allocation395_spill] sm:$0xff] %v15237_v47  ;;  %7924 = vrot.lane.b32.xlu2 %v10261_v32, %s19009_s18  ;;  %7566 = vrot.lane.b32.xlu1 %v15170_v14, %s19075_s0  ;;  %v6750_v51 = vsel %vm523_vm0, %v15237_v47, %v6749_v31  ;;  %v6760_v53 = vsel %vm523_vm0, %v6759_v5, %v6710_v23  ;;  %s19224_s0 = smov 4   ;;  %s19235_s18 = smov 114  }
 0x4ec   : > { %7927 = vrot.lane.b32.xlu0 %v10261_v32, %s19061_s25  ;;  %v15256_v57 = vperm.slane %v6760_v53, %v10671_v37  ;;  %v6736_v23 = vsel %vm523_vm0, %v6735_v16, %v19213_v35  ;;  %s19299_s25 = smov 102  }
 0x4ed   : > { %v15249_v20 = vpop.permute.xlu2 %7825  ;;  %v5366_v41 = vpop.permute.xlu1 %5365 }
 0x4ee   : > { %v15251_v12 = vpop.permute.xlu0 %7801  ;;  %v6723_v43 = vrot.slane %v5366_v41, 4  ;;  %v6726_v49 = vsel %vm523_vm0, %v5366_v41, %v6725_v2  ;;  %19222 = vst [vmem:[#allocation528_spill] sm:$0xff] %v15256_v57  ;;  %v6805_v2 = vrot.slane %v15256_v57, 4  ;;  %v15273_v41 = vperm.slane %v6736_v23, %v10647_v13 }
 0x4ef   : > { %19221 = vst [vmem:[#allocation387_spill] sm:$0xff] %v15251_v12  ;;  %v6734_v31 = vperm.slane %v6726_v49, %v10647_v13 }
 0x4f0   : > { %v6724_v5 = vsel %vm523_vm0, %v6723_v43, %v19220_v39  ;;  %19226 = vst [vmem:[#allocation531_spill] sm:$0xff] %v15273_v41  ;;  %v9095_v39 = vrot.slane %v7817_v60, 4 }
 0x4f1   : > { %v15264_v47 = vperm.slane %v6724_v5, %v10647_v13  ;;  %v6784_v1 = vsel %vm523_vm0, %v6783_v50, %v6734_v31  ;;  %v6785_v24 = vrot.slane %v6734_v31, 4  ;;  %v6758_v50 = vperm.slane %v6750_v51, %v10671_v37 }
 0x4f2   : > { %v15269_v53 = vperm.slane %v6784_v1, %v10671_v37  ;;  %v19229_v1 = vld [vmem:[#allocation402_spill] sm:$0xff] }
 0x4f3   : > { %19223 = vst [vmem:[#allocation529_spill] sm:$0xff] %v15264_v47  ;;  %7933 = vrot.lane.b32.xlu2 %v10261_v32, %s19224_s0  ;;  %v6773_v35 = vrot.slane %v15264_v47, 4  ;;  %7575 = vrot.lane.b32.xlu1 %v15170_v14, %s19084_s27  ;;  %v6786_v5 = vsel %vm523_vm0, %v6746_v48, %v6785_v24  ;;  %v6813_v57 = vrot.slane %v19229_v1, 4  ;;  %v6770_v47 = vperm.slane %v6762_v30, %v10671_v37  ;;  %s19371_s27 = smov 84  }
 0x4f4   : > { %19225 = vst [vmem:[#allocation530_spill] sm:$0xff] %v15269_v53  ;;  %7936 = vrot.lane.b32.xlu0 %v10261_v32, %s19067_s30  ;;  %v15284_v43 = vsel %vm523_vm0, %v15269_v53, %v6805_v2  ;;  %v6794_v53 = vperm.slane %v6786_v5, %v10671_v37  ;;  %s19398_s30 = smov 66  }
 0x4f5   : > { %v15280_v16 = vpop.permute.xlu2 %7834  ;;  %19228 = vst [vmem:[#allocation533_spill] sm:$0xff] %v15284_v43  ;;  %v5375_v49 = vpop.permute.xlu1 %5374  ;;  %v6774_v23 = vsel %vm523_vm0, %v15273_v41, %v6773_v35  ;;  %v19232_v35 = vld [vmem:[#allocation397_spill] sm:$0xff] }
 0x4f6   : > { %19227 = vst [vmem:[#allocation532_spill] sm:$0xff] %v15280_v16  ;;  %v7811_v31 = vpop.permute.xlu0 %7810  ;;  %v6801_v16 = vrot.slane %v6758_v50, 4  ;;  %v6825_v11 = vrot.slane %v5375_v49, 4  ;;  %v6782_v43 = vperm.slane %v6774_v23, %v10671_v37  ;;  %v6811_v41 = vrot.slane %v19232_v35, 4 }
 0x4f7   : > { %v15291_v32 = vsel %vm523_vm0, %v9095_v39, %v7811_v31  ;;  %v9097_v51 = vrot.slane %v7811_v31, 4  ;;  %v6814_v24 = vsel %vm523_vm0, %v19232_v35, %v6813_v57  ;;  %v6809_v39 = vrot.slane %v6770_v47, 4  ;;  %v19234_v31 = vld [vmem:[#allocation404_spill] sm:$0xff] }
 0x4f8   : > { %19230 = vst [vmem:[#allocation402_spill] sm:$0xff] %v15291_v32  ;;  %v15303_v48 = vsel %vm523_vm0, %v6782_v43, %v6801_v16  ;;  %v6812_v30 = vsel %vm523_vm0, %v6811_v41, %v19229_v1  ;;  %v6823_v32 = vrot.slane %v19234_v31, 4  ;;  %v9171_v23 = vrot.slane %v15249_v20, 4 }
 0x4f9   : > { %v15295_v2 = vsel %vm523_vm0, %v7817_v60, %v9097_v51  ;;  %19233 = vst [vmem:[#allocation397_spill] sm:$0xff] %v15303_v48  ;;  %v6799_v60 = vrot.slane %v6782_v43, 4  ;;  %v6826_v5 = vsel %vm523_vm0, %v19234_v31, %v6825_v11  ;;  %v6807_v57 = vrot.slane %v6794_v53, 4 }
 0x4fa   : > { %19231 = vst [vmem:[#allocation534_spill] sm:$0xff] %v15295_v2  ;;  %v15316_v16 = vsel %vm523_vm0, %v6794_v53, %v6809_v39  ;;  %v6822_v35 = vperm.slane %v6814_v24, %v10647_v13  ;;  %v6824_v43 = vsel %vm523_vm0, %v6823_v32, %v5375_v49  ;;  %v15327_v31 = vperm.slane %v6812_v30, %v10647_v13  ;;  %v19241_v39 = vld [vmem:[#allocation406_spill] sm:$0xff] }
 0x4fb   : > { %7578 = vrot.lane.b32.xlu1 %v15170_v14, %s19235_s18  ;;  %19237 = vst [vmem:[#allocation535_spill] sm:$0xff] %v15316_v16  ;;  %v15320_v48 = vsel %vm523_vm0, %v6799_v60, %v6758_v50  ;;  %v6834_v53 = vperm.slane %v6826_v5, %v10647_v13  ;;  %v6835_v16 = vrot.slane %v19241_v39, 4  ;;  %v15338_v49 = vsel %vm523_vm0, %v6807_v57, %v6770_v47 }
 0x4fc   : > { %19238 = vst [vmem:[#allocation536_spill] sm:$0xff] %v15320_v48  ;;  %v6873_v32 = vrot.slane %v6822_v35, 4  ;;  %v15341_v60 = vperm.slane %v6824_v43, %v10647_v13 }
 0x4fd   : > { %v15313_v51 = vpop.permute.xlu2 %7843  ;;  %v5384_v41 = vpop.permute.xlu1 %5383  ;;  %19240 = vst [vmem:[#allocation538_spill] sm:$0xff] %v15327_v31 }
 0x4fe   : > { %19236 = vst [vmem:[#allocation404_spill] sm:$0xff] %v15313_v51  ;;  %v7820_v1 = vpop.permute.xlu0 %7819  ;;  %v6837_v2 = vrot.slane %v5384_v41, 4  ;;  %v6836_v30 = vsel %vm523_vm0, %v6835_v16, %v5384_v41  ;;  %v19249_v51 = vld [vmem:[#allocation408_spill] sm:$0xff] }
 0x4ff   : > { %v15324_v12 = vsel %vm523_vm0, %v9171_v23, %v7820_v1  ;;  %v9173_v11 = vrot.slane %v7820_v1, 4  ;;  %19243 = vst [vmem:[#allocation539_spill] sm:$0xff] %v15338_v49  ;;  %v6861_v23 = vrot.slane %v15327_v31, 4  ;;  %v15353_v57 = vperm.slane %v6836_v30, %v10647_v13 }
 0x500   : > { %19239 = vst [vmem:[#allocation537_spill] sm:$0xff] %v15324_v12  ;;  %v6838_v24 = vsel %vm523_vm0, %v19241_v39, %v6837_v2  ;;  %v6874_v2 = vsel %vm523_vm0, %v6834_v53, %v6873_v32 }
 0x501   : > { %v15335_v50 = vsel %vm523_vm0, %v15249_v20, %v9173_v11  ;;  %19244 = vst [vmem:[#allocation540_spill] sm:$0xff] %v15341_v60  ;;  %v6846_v5 = vperm.slane %v6838_v24, %v10647_v13  ;;  %v19245_v20 = vld [vmem:[#allocation399_spill] sm:$0xff]  ;;  %v6871_v11 = vrot.slane %v6834_v53, 4  ;;  %v6862_v47 = vsel %vm523_vm0, %v15341_v60, %v6861_v23 }
 0x502   : > { %19242 = vst [vmem:[#allocation406_spill] sm:$0xff] %v15335_v50  ;;  %v6849_v1 = vrot.slane %v19245_v20, 4  ;;  %v6882_v49 = vperm.slane %v6874_v2, %v10671_v37  ;;  %v6870_v23 = vperm.slane %v6862_v47, %v10671_v37  ;;  %v6885_v31 = vrot.slane %v15353_v57, 4 }
 0x503   : > { %7581 = vrot.lane.b32.xlu1 %v15170_v14, %s19109_s19  ;;  %19246 = vst [vmem:[#allocation399_spill] sm:$0xff] %v15353_v57  ;;  %v6897_v32 = vrot.slane %v6846_v5, 4  ;;  %v6872_v30 = vsel %vm523_vm0, %v6871_v11, %v6822_v35  ;;  %v6937_v2 = vrot.slane %v19249_v51, 4  ;;  %s19436_s19 = smov 18  }
 0x504   : > { %v15380_v47 = vperm.slane %v6872_v30, %v10671_v37  ;;  %v6913_v45 = vrot.slane %v6870_v23, 4 }
 0x505   : > { %v5393_v43 = vpop.permute.xlu1 %5392  ;;  %v15358_v24 = vpop.permute.xlu2 %7852 }
 0x506   : > { %v15355_v16 = vpop.permute.xlu0 %7828  ;;  %v6847_v41 = vrot.slane %v5393_v43, 4  ;;  %v6850_v39 = vsel %vm523_vm0, %v5393_v43, %v6849_v1  ;;  %19250 = vst [vmem:[#allocation408_spill] sm:$0xff] %v15380_v47 }
 0x507   : > { %19247 = vst [vmem:[#allocation541_spill] sm:$0xff] %v15355_v16  ;;  %v6858_v48 = vperm.slane %v6850_v39, %v10647_v13  ;;  %v6921_v39 = vrot.slane %v6882_v49, 4  ;;  %v19254_v16 = vld [vmem:[#allocation23_spill] sm:$0xff] }
 0x508   : > { %v6848_v53 = vsel %vm523_vm0, %v6847_v41, %v19245_v20  ;;  %v619_v12 = vrot.slane %v19254_v16, 4 }
 0x509   : > { %v15368_v60 = vperm.slane %v6848_v53, %v10647_v13  ;;  %v6895_v1 = vrot.slane %v6858_v48, 4  ;;  %v6898_v43 = vsel %vm523_vm0, %v6858_v48, %v6897_v32  ;;  %v19252_v32 = vld [vmem:[#allocation403_spill] sm:$0xff] }
 0x50a   : > { %v6906_v50 = vperm.slane %v6898_v43, %v10671_v37  ;;  %v6935_v53 = vrot.slane %v19252_v32, 4 }
 0x50b   : > { %19248 = vst [vmem:[#allocation542_spill] sm:$0xff] %v15368_v60  ;;  %7584 = vrot.lane.b32.xlu1 %v15170_v14, %s18949_s13  ;;  %v6886_v20 = vsel %vm523_vm0, %v15368_v60, %v6885_v31  ;;  %v6896_v35 = vsel %vm523_vm0, %v6895_v1, %v6846_v5  ;;  %v19255_v31 = vld [vmem:[#allocation401_spill] sm:$0xff]  ;;  %v6938_v5 = vsel %vm523_vm0, %v19252_v32, %v6937_v2  ;;  %s19419_s13 = smov 42  }
 0x50c   : > { %v6894_v11 = vperm.slane %v6886_v20, %v10671_v37  ;;  %v6919_v41 = vrot.slane %v6906_v50, 4  ;;  %v15383_v48 = vsel %vm523_vm0, %v6906_v50, %v6921_v39  ;;  %v6925_v60 = vrot.slane %v19255_v31, 4  ;;  %v19257_v20 = vld [vmem:[#allocation405_spill] sm:$0xff] }
 0x50d   : > { %19251 = vst [vmem:[#allocation543_spill] sm:$0xff] %v15383_v48  ;;  %v5402_v43 = vpop.permute.xlu1 %5401  ;;  %v15393_v30 = vperm.slane %v6896_v35, %v10671_v37  ;;  %v6947_v50 = vrot.slane %v19257_v20, 4  ;;  %v6936_v39 = vsel %vm523_vm0, %v6935_v53, %v19249_v51  ;;  %v15404_v7 = vpop.permute.xlu2 %7861  ;;  %v6917_v35 = vrot.slane %v15380_v47, 4 }
 0x50e   : > { %v15386_v57 = vpop.permute.xlu0 %7837  ;;  %v6923_v1 = vrot.slane %v5402_v43, 4  ;;  %v15399_v48 = vsel %vm523_vm0, %v6894_v11, %v6913_v45  ;;  %v6926_v19 = vsel %vm523_vm0, %v5402_v43, %v6925_v60  ;;  %v15407_v2 = vsel %vm523_vm0, %v6919_v41, %v6882_v49 }
 0x50f   : > { %19253 = vst [vmem:[#allocation403_spill] sm:$0xff] %v15386_v57  ;;  %v6911_v57 = vrot.slane %v6894_v11, 4  ;;  %v6946_v32 = vperm.slane %v6938_v5, %v10647_v13  ;;  %v6948_v51 = vsel %vm523_vm0, %v6947_v50, %v19260_v46  ;;  %v19262_v11 = vld [vmem:[#allocation20_spill] sm:$0xff]  ;;  %v15423_v49 = vsel %vm523_vm0, %v15393_v30, %v6917_v35 }
 0x510   : > { %19256 = vst [vmem:[#allocation23_spill] sm:$0xff] %v15393_v30  ;;  %v6924_v16 = vsel %vm523_vm0, %v6923_v1, %v19255_v31  ;;  %v623_v53 = vrot.slane %v19262_v11, 4  ;;  %v6949_v31 = vrot.slane %v19260_v46, 4  ;;  %v15426_v41 = vperm.slane %v6936_v39, %v10647_v13  ;;  %v19268_v46 = vld [vmem:[#allocation413_spill] sm:$0xff]  ;;  %v19270_v11 = vld [vmem:[#allocation18_spill] sm:$0xff] }
 0x511   : > { %19258 = vst [vmem:[#allocation401_spill] sm:$0xff] %v15399_v48  ;;  %v15414_v45 = vperm.slane %v6924_v16, %v10647_v13  ;;  %v15419_v60 = vsel %vm523_vm0, %v6911_v57, %v6870_v23  ;;  %v6934_v43 = vperm.slane %v6926_v19, %v10647_v13  ;;  %v15433_v1 = vperm.slane %v6948_v51, %v10647_v13  ;;  %v19269_v23 = vld [vmem:[#allocation19_spill] sm:$0xff] }
 0x512   : > { %19259 = vst [vmem:[#allocation405_spill] sm:$0xff] %v15407_v2  ;;  %v6959_v57 = vrot.slane %v19268_v46, 4  ;;  %v620_v50 = vsel %vm523_vm0, %v619_v12, %v19269_v23  ;;  %v6983_v16 = vrot.slane %v6946_v32, 4  ;;  %v624_v19 = vsel %vm523_vm0, %v623_v53, %v19270_v11 }
 0x513   : > { %19261 = vst [vmem:[#allocation411_spill] sm:$0xff] %v15414_v45  ;;  %v6973_v5 = vrot.slane %v15414_v45, 4  ;;  %7587 = vrot.lane.b32.xlu1 %v15170_v14, %s19266_s21  ;;  %v6950_v51 = vsel %vm523_vm0, %v19257_v20, %v6949_v31  ;;  %v6985_v12 = vrot.slane %v6934_v43, 4  ;;  %v6997_v53 = vrot.slane %v15433_v1, 4  ;;  %v19273_v31 = vld [vmem:[#allocation31_spill] sm:$0xff] }
 0x514   : > { %19263 = vst [vmem:[#allocation20_spill] sm:$0xff] %v15419_v60  ;;  %v6984_v48 = vsel %vm523_vm0, %v6983_v16, %v6934_v43 }
 0x515   : > { %19264 = vst [vmem:[#allocation544_spill] sm:$0xff] %v15423_v49  ;;  %v5411_v35 = vpop.permute.xlu1 %5410  ;;  %v6974_v49 = vsel %vm523_vm0, %v15426_v41, %v6973_v5  ;;  %v15463_v11 = vpop.permute.xlu2 %7870 }
 0x516   : > { %19265 = vst [vmem:[#allocation545_spill] sm:$0xff] %v15426_v41  ;;  %2315 = vxpose.xlu0.b32.start [1/16] (narrow) %v620_v50, 8  ;;  %v15438_v39 = vpop.permute.xlu0 %7846  ;;  %v6960_v2 = vsel %vm523_vm0, %v6959_v57, %v5411_v35  ;;  %v6961_v60 = vrot.slane %v5411_v35, 4  ;;  %v6982_v50 = vperm.slane %v6974_v49, %v10671_v37  ;;  %v731_v57 = vrot.slane %v19273_v31, 4  ;;  %v19275_v49 = vld [vmem:[#allocation33_spill] sm:$0xff] }
 0x517   : > { %19267 = vst [vmem:[#allocation546_spill] sm:$0xff] %v15433_v1  ;;  %v9297_v47 = vrot.slane %v15438_v39, 4  ;;  %v15449_v23 = vperm.slane %v6960_v2, %v10647_v13  ;;  %v6958_v35 = vperm.slane %v6950_v51, %v10647_v13  ;;  %v735_v43 = vrot.slane %v19275_v49, 4 }
 0x518   : > { %v6962_v5 = vsel %vm523_vm0, %v19268_v46, %v6961_v60  ;;  %19274 = vst [vmem:[#allocation18_spill] sm:$0xff] %v15463_v11  ;;  %v15469_v60 = vperm.slane %v6984_v48, %v10671_v37  ;;  %v6986_v51 = vsel %vm523_vm0, %v6946_v32, %v6985_v12  ;;  %v19281_v11 = vld [vmem:[#allocation45_spill] sm:$0xff] }
 0x519   : > { %19271 = vst [vmem:[#allocation413_spill] sm:$0xff] %v15449_v23  ;;  %v15458_v20 = vsel %vm523_vm0, %v15358_v24, %v9297_v47  ;;  %2379 = vxpose.xlu2.b32.start [1/16] (narrow) %v624_v19, 8  ;;  %v6970_v2 = vperm.slane %v6962_v5, %v10647_v13  ;;  %v6998_v16 = vsel %vm523_vm0, %v15449_v23, %v6997_v53  ;;  %v7025_v19 = vrot.slane %v6982_v50, 4  ;;  %v19277_v5 = vld [vmem:[#allocation29_spill] sm:$0xff]  ;;  %v19279_v23 = vld [vmem:[#allocation30_spill] sm:$0xff] }
 0x51a   : > { %19272 = vst [vmem:[#allocation19_spill] sm:$0xff] %v15458_v20  ;;  %v7006_v47 = vperm.slane %v6998_v16, %v10671_v37  ;;  %v732_v31 = vsel %vm523_vm0, %v731_v57, %v19277_v5  ;;  %v7009_v30 = vrot.slane %v6958_v35, 4  ;;  %v736_v32 = vsel %vm523_vm0, %v735_v43, %v19279_v23  ;;  %v19280_v57 = vld [vmem:[#allocation415_spill] sm:$0xff] }
 0x51b   : > { %19276 = vst [vmem:[#allocation31_spill] sm:$0xff] %v15469_v60  ;;  %v7007_v46 = vrot.slane %v6970_v2, 4  ;;  %7590 = vrot.lane.b32.xlu1 %v15170_v14, %s18928_s3  ;;  %v6994_v12 = vperm.slane %v6986_v51, %v10671_v37  ;;  %v7035_v5 = vrot.slane %v19280_v57, 4  ;;  %v19286_v51 = vld [vmem:[#allocation42_spill] sm:$0xff]  ;;  %s19410_s3 = smov 54  }
 0x51c   : > { %v15480_v48 = vsel %vm523_vm0, %v7006_v47, %v7025_v19  ;;  %v7023_v45 = vrot.slane %v7006_v47, 4  ;;  %v7010_v20 = vsel %vm523_vm0, %v6970_v2, %v7009_v30  ;;  %v7029_v19 = vrot.slane %v15469_v60, 4 }
 0x51d   : > { %v5420_v49 = vpop.permute.xlu1 %5419  ;;  %19278 = vst [vmem:[#allocation33_spill] sm:$0xff] %v15480_v48  ;;  %v7008_v53 = vsel %vm523_vm0, %v7007_v46, %v6958_v35  ;;  %v7018_v30 = vperm.slane %v7010_v20, %v10671_v37  ;;  %v7033_v2 = vrot.slane %v6994_v12, 4  ;;  %v15517_v20 = vpop.permute.xlu2 %7879 }
 0x51e   : > { %2316 = vxpose.xlu0.b32.cont [2/16] (narrow) %v732_v31, 8  ;;  %v15477_v1 = vpop.permute.xlu0 %7855  ;;  %v7037_v41 = vrot.slane %v5420_v49, 4  ;;  %v843_v31 = vrot.slane %v19281_v11, 4  ;;  %v15498_v23 = vperm.slane %v7008_v53, %v10671_v37  ;;  %v15501_v43 = vsel %vm523_vm0, %v7023_v45, %v6982_v50  ;;  %v19288_v50 = vld [vmem:[#allocation407_spill] sm:$0xff]  ;;  %19290 = vst [vmem:[#allocation42_spill] sm:$0xff] %v15517_v20 }
 0x51f   : > { %v9309_v16 = vrot.slane %v15477_v1, 4  ;;  %19284 = vst [vmem:[#allocation415_spill] sm:$0xff] %v15501_v43  ;;  %v7036_v11 = vsel %vm523_vm0, %v7035_v5, %v5420_v49  ;;  %v19289_v49 = vld [vmem:[#allocation419_spill] sm:$0xff]  ;;  %v7031_v5 = vrot.slane %v7018_v30, 4 }
 0x520   : > { %v7038_v35 = vsel %vm523_vm0, %v19280_v57, %v7037_v41  ;;  %19283 = vst [vmem:[#allocation30_spill] sm:$0xff] %v15498_v23  ;;  %v15507_v47 = vsel %vm523_vm0, %v15498_v23, %v7029_v19  ;;  %v844_v53 = vsel %vm523_vm0, %v843_v31, %v19286_v51  ;;  %v7073_v57 = vrot.slane %v19289_v49, 4  ;;  %v19295_v23 = vld [vmem:[#allocation40_spill] sm:$0xff] }
 0x521   : > { %v15495_v46 = vsel %vm523_vm0, %v15404_v7, %v9309_v16  ;;  %2380 = vxpose.xlu2.b32.cont [2/16] (narrow) %v736_v32, 8  ;;  %19285 = vst [vmem:[#allocation45_spill] sm:$0xff] %v15507_v47  ;;  %v7046_v41 = vperm.slane %v7038_v35, %v10647_v13  ;;  %v19287_v16 = vld [vmem:[#allocation41_spill] sm:$0xff]  ;;  %v7049_v32 = vrot.slane %v19288_v50, 4  ;;  %v15520_v19 = vsel %vm523_vm0, %v7018_v30, %v7033_v2  ;;  %v19296_v2 = vld [vmem:[#allocation412_spill] sm:$0xff] }
 0x522   : > { %19282 = vst [vmem:[#allocation29_spill] sm:$0xff] %v15495_v46  ;;  %v847_v45 = vrot.slane %v19287_v16, 4  ;;  %v15523_v35 = vperm.slane %v7036_v11, %v10647_v13  ;;  %v15529_v16 = vsel %vm523_vm0, %v7031_v5, %v6994_v12  ;;  %v7074_v11 = vsel %vm523_vm0, %v19296_v2, %v7073_v57 }
 0x523   : > { %7593 = vrot.lane.b32.xlu1 %v15170_v14, %s18960_s2  ;;  %19291 = vst [vmem:[#allocation41_spill] sm:$0xff] %v15520_v19  ;;  %v7097_v60 = vrot.slane %v7046_v41, 4  ;;  %v19297_v19 = vld [vmem:[#allocation56_spill] sm:$0xff]  ;;  %s19404_s2 = smov 60  }
 0x524   : > { %19292 = vst [vmem:[#allocation407_spill] sm:$0xff] %v15523_v35  ;;  %v848_v30 = vsel %vm523_vm0, %v847_v45, %v19295_v23  ;;  %v955_v20 = vrot.slane %v19297_v19, 4  ;;  %v19300_v23 = vld [vmem:[#allocation53_spill] sm:$0xff]  ;;  %v19301_v19 = vld [vmem:[#allocation410_spill] sm:$0xff] }
 0x525   : > { %v5429_v47 = vpop.permute.xlu1 %5428  ;;  %19294 = vst [vmem:[#allocation547_spill] sm:$0xff] %v15529_v16  ;;  %v959_v45 = vrot.slane %v19300_v23, 4 }
 0x526   : > { %2317 = vxpose.xlu0.b32.cont [3/16] (narrow) %v844_v53, 8  ;;  %v15525_v43 = vpop.permute.xlu0 %7864  ;;  %v7047_v31 = vrot.slane %v5429_v47, 4  ;;  %v7050_v51 = vsel %vm523_vm0, %v5429_v47, %v7049_v32  ;;  %v7085_v47 = vrot.slane %v15523_v35, 4 }
 0x527   : > { %19293 = vst [vmem:[#allocation419_spill] sm:$0xff] %v15525_v43  ;;  %v7058_v48 = vperm.slane %v7050_v51, %v10647_v13  ;;  %v7082_v51 = vperm.slane %v7074_v11, %v10647_v13  ;;  %v15557_v11 = vpop.permute.xlu2 %7888 }
 0x528   : > { %v7048_v53 = vsel %vm523_vm0, %v7047_v31, %v19288_v50  ;;  %v7061_v31 = vrot.slane %v19301_v19, 4  ;;  %19304 = vst [vmem:[#allocation56_spill] sm:$0xff] %v15557_v11 }
 0x529   : > { %2381 = vxpose.xlu2.b32.cont [3/16] (narrow) %v848_v30, 8  ;;  %v15541_v12 = vperm.slane %v7048_v53, %v10647_v13  ;;  %v7095_v32 = vrot.slane %v7058_v48, 4  ;;  %v7098_v5 = vsel %vm523_vm0, %v7058_v48, %v7097_v60  ;;  %v19302_v30 = vld [vmem:[#allocation52_spill] sm:$0xff]  ;;  %v7071_v48 = vrot.slane %v19296_v2, 4 }
 0x52a   : > { %v956_v53 = vsel %vm523_vm0, %v955_v20, %v19302_v30 }
 0x52b   : > { %19298 = vst [vmem:[#allocation40_spill] sm:$0xff] %v15541_v12  ;;  %7596 = vrot.lane.b32.xlu1 %v15170_v14, %s19299_s25  ;;  %v7086_v50 = vsel %vm523_vm0, %v15541_v12, %v7085_v47  ;;  %v7096_v57 = vsel %vm523_vm0, %v7095_v32, %v7046_v41  ;;  %v7119_v41 = vrot.slane %v7082_v51, 4  ;;  %v19306_v12 = vld [vmem:[#allocation51_spill] sm:$0xff]  ;;  %v7072_v30 = vsel %vm523_vm0, %v7071_v48, %v19289_v49  ;;  %v19312_v48 = vld [vmem:[#allocation62_spill] sm:$0xff] }
 0x52c   : > { %v15561_v47 = vperm.slane %v7096_v57, %v10671_v37  ;;  %v960_v20 = vsel %vm523_vm0, %v959_v45, %v19306_v12  ;;  %v15580_v45 = vperm.slane %v7072_v30, %v10647_v13 }
 0x52d   : > { %v5438_v16 = vpop.permute.xlu1 %5437 }
 0x52e   : > { %2318 = vxpose.xlu0.b32.cont [4/16] (narrow) %v956_v53, 8  ;;  %v15554_v60 = vpop.permute.xlu0 %7873  ;;  %v7059_v35 = vrot.slane %v5438_v16, 4  ;;  %v7062_v23 = vsel %vm523_vm0, %v5438_v16, %v7061_v31  ;;  %19305 = vst [vmem:[#allocation53_spill] sm:$0xff] %v15561_v47  ;;  %v19307_v53 = vld [vmem:[#allocation64_spill] sm:$0xff]  ;;  %v7141_v12 = vrot.slane %v15561_v47, 4 }
 0x52f   : > { %19303 = vst [vmem:[#allocation412_spill] sm:$0xff] %v15554_v60  ;;  %v7070_v32 = vperm.slane %v7062_v23, %v10647_v13  ;;  %v1067_v60 = vrot.slane %v19307_v53, 4 }
 0x530   : > { %v7060_v2 = vsel %vm523_vm0, %v7059_v35, %v19301_v19  ;;  %19310 = vst [vmem:[#allocation51_spill] sm:$0xff] %v15580_v45  ;;  %v19311_v35 = vld [vmem:[#allocation66_spill] sm:$0xff] }
 0x531   : > { %2382 = vxpose.xlu2.b32.cont [4/16] (narrow) %v960_v20, 8  ;;  %v15572_v16 = vperm.slane %v7060_v2, %v10647_v13  ;;  %v7120_v57 = vsel %vm523_vm0, %v7119_v41, %v7070_v32  ;;  %v7121_v31 = vrot.slane %v7070_v32, 4  ;;  %v1071_v19 = vrot.slane %v19311_v35, 4 }
 0x532   : > { %v15576_v23 = vperm.slane %v7120_v57, %v10671_v37  ;;  %v1068_v20 = vsel %vm523_vm0, %v1067_v60, %v19312_v48  ;;  %v7094_v41 = vperm.slane %v7086_v50, %v10671_v37  ;;  %v7149_v35 = vrot.slane %v14272_v26, 4  ;;  %v19315_v48 = vld [vmem:[#allocation63_spill] sm:$0xff] }
 0x533   : > { %19308 = vst [vmem:[#allocation410_spill] sm:$0xff] %v15572_v16  ;;  %v7109_v49 = vrot.slane %v15572_v16, 4  ;;  %7599 = vrot.lane.b32.xlu1 %v15170_v14, %s18837_s15  ;;  %v7122_v57 = vsel %vm523_vm0, %v7082_v51, %v7121_v31  ;;  %v7106_v50 = vperm.slane %v7098_v5, %v10671_v37  ;;  %s19334_s15 = smov 96  }
 0x534   : > { %19309 = vst [vmem:[#allocation52_spill] sm:$0xff] %v15576_v23  ;;  %v15591_v32 = vsel %vm523_vm0, %v15576_v23, %v7141_v12  ;;  %v1072_v12 = vsel %vm523_vm0, %v1071_v19, %v19315_v48  ;;  %v7137_v31 = vrot.slane %v7094_v41, 4  ;;  %v19320_v19 = vld [vmem:[#allocation431_spill] sm:$0xff] }
 0x535   : > { %19313 = vst [vmem:[#allocation64_spill] sm:$0xff] %v15591_v32  ;;  %v5447_v2 = vpop.permute.xlu1 %5446  ;;  %v7110_v53 = vsel %vm523_vm0, %v15580_v45, %v7109_v49  ;;  %v19316_v32 = vld [vmem:[#allocation78_spill] sm:$0xff]  ;;  %v7130_v49 = vperm.slane %v7122_v57, %v10671_v37  ;;  %v7145_v46 = vrot.slane %v7106_v50, 4  ;;  %v19322_v57 = vld [vmem:[#allocation75_spill] sm:$0xff] }
 0x536   : > { %2319 = vxpose.xlu0.b32.cont [5/16] (narrow) %v1068_v20, 8  ;;  %v15593_v30 = vpop.permute.xlu0 %7882  ;;  %v7161_v47 = vrot.slane %v5447_v2, 4  ;;  %v1179_v23 = vrot.slane %v19316_v32, 4  ;;  %v15604_v20 = vpop.permute.xlu2 %7897  ;;  %v7118_v51 = vperm.slane %v7110_v53, %v10671_v37  ;;  %v19319_v45 = vld [vmem:[#allocation414_spill] sm:$0xff]  ;;  %v7159_v53 = vrot.slane %v19320_v19, 4 }
 0x537   : > { %19314 = vst [vmem:[#allocation66_spill] sm:$0xff] %v15593_v30  ;;  %v9433_v60 = vrot.slane %v15593_v30, 4  ;;  %v7147_v30 = vrot.slane %v19319_v45, 4  ;;  %v7150_v5 = vsel %vm523_vm0, %v19319_v45, %v7149_v35  ;;  %v7143_v35 = vrot.slane %v7130_v49, 4 }
 0x538   : > { %19317 = vst [vmem:[#allocation62_spill] sm:$0xff] %v15604_v20  ;;  %v7162_v32 = vsel %vm523_vm0, %v19320_v19, %v7161_v47  ;;  %v15618_v48 = vsel %vm523_vm0, %v7118_v51, %v7137_v31  ;;  %v15629_v47 = vsel %vm523_vm0, %v7130_v49, %v7145_v46  ;;  %v7158_v31 = vperm.slane %v7150_v5, %v10647_v13  ;;  %v19328_v49 = vld [vmem:[#allocation73_spill] sm:$0xff] }
 0x539   : > { %v15608_v16 = vsel %vm523_vm0, %v15557_v11, %v9433_v60  ;;  %2383 = vxpose.xlu2.b32.cont [5/16] (narrow) %v1072_v12, 8  ;;  %19321 = vst [vmem:[#allocation78_spill] sm:$0xff] %v15618_v48  ;;  %v7148_v60 = vsel %vm523_vm0, %v7147_v30, %v14272_v26  ;;  %v1183_v12 = vrot.slane %v19322_v57, 4  ;;  %v7135_v11 = vrot.slane %v7118_v51, 4  ;;  %v19329_v5 = vld [vmem:[#allocation89_spill] sm:$0xff] }
 0x53a   : > { %19318 = vst [vmem:[#allocation63_spill] sm:$0xff] %v15608_v16  ;;  %v19323_v16 = vld [vmem:[#allocation74_spill] sm:$0xff]  ;;  %v7160_v48 = vsel %vm523_vm0, %v7159_v53, %v5447_v2  ;;  %v7170_v26 = vperm.slane %v7162_v32, %v10647_v13  ;;  %v15640_v51 = vperm.slane %v7148_v60, %v10647_v13  ;;  %v1291_v32 = vrot.slane %v19329_v5, 4 }
 0x53b   : > { %7602 = vrot.lane.b32.xlu1 %v15170_v14, %s18983_s20  ;;  %v1180_v45 = vsel %vm523_vm0, %v1179_v23, %v19323_v16  ;;  %19324 = vst [vmem:[#allocation414_spill] sm:$0xff] %v15629_v47  ;;  %v15637_v57 = vsel %vm523_vm0, %v7135_v11, %v7094_v41  ;;  %v7171_v23 = vrot.slane %v14362_v61, 4  ;;  %v1184_v2 = vsel %vm523_vm0, %v1183_v12, %v19328_v49  ;;  %s19427_s20 = smov 30  }
 0x53c   : > { %19326 = vst [vmem:[#allocation75_spill] sm:$0xff] %v15637_v57  ;;  %v15648_v53 = vperm.slane %v7160_v48, %v10647_v13  ;;  %v15657_v60 = vsel %vm523_vm0, %v7143_v35, %v7106_v50  ;;  %v7207_v47 = vrot.slane %v7170_v26, 4  ;;  %v7197_v12 = vrot.slane %v15640_v51, 4 }
 0x53d   : > { %v5456_v30 = vpop.permute.xlu1 %5455  ;;  %19327 = vst [vmem:[#allocation74_spill] sm:$0xff] %v15640_v51 }
 0x53e   : > { %2320 = vxpose.xlu0.b32.cont [6/16] (narrow) %v1180_v45, 8  ;;  %v15634_v19 = vpop.permute.xlu0 %7891  ;;  %v7173_v16 = vrot.slane %v5456_v30, 4  ;;  %19330 = vst [vmem:[#allocation73_spill] sm:$0xff] %v15648_v53  ;;  %v7209_v45 = vrot.slane %v7158_v31, 4  ;;  %v15660_v49 = vpop.permute.xlu2 %7906  ;;  %v7172_v48 = vsel %vm523_vm0, %v7171_v23, %v5456_v30  ;;  %v7198_v35 = vsel %vm523_vm0, %v15648_v53, %v7197_v12 }
 0x53f   : > { %19325 = vst [vmem:[#allocation431_spill] sm:$0xff] %v15634_v19  ;;  %v9509_v46 = vrot.slane %v15634_v19, 4  ;;  %v15674_v51 = vperm.slane %v7172_v48, %v10647_v13  ;;  %v7206_v48 = vperm.slane %v7198_v35, %v10671_v37 }
 0x540   : > { %v7174_v11 = vsel %vm523_vm0, %v14362_v61, %v7173_v16  ;;  %19332 = vst [vmem:[#allocation548_spill] sm:$0xff] %v15657_v60  ;;  %v19335_v61 = vld [vmem:[#allocation86_spill] sm:$0xff]  ;;  %v19337_v60 = vld [vmem:[#allocation85_spill] sm:$0xff] }
 0x541   : > { %v15654_v41 = vsel %vm523_vm0, %v15604_v20, %v9509_v46  ;;  %2384 = vxpose.xlu2.b32.cont [6/16] (narrow) %v1184_v2, 8  ;;  %19333 = vst [vmem:[#allocation549_spill] sm:$0xff] %v15660_v49  ;;  %v7182_v5 = vperm.slane %v7174_v11, %v10647_v13  ;;  %v1295_v16 = vrot.slane %v19335_v61, 4  ;;  %v7210_v46 = vsel %vm523_vm0, %v7170_v26, %v7209_v45  ;;  %v19336_v2 = vld [vmem:[#allocation418_spill] sm:$0xff]  ;;  %v19340_v45 = vld [vmem:[#allocation100_spill] sm:$0xff] }
 0x542   : > { %19331 = vst [vmem:[#allocation89_spill] sm:$0xff] %v15654_v41  ;;  %v7185_v50 = vrot.slane %v19336_v2, 4  ;;  %v1292_v57 = vsel %vm523_vm0, %v1291_v32, %v19337_v60  ;;  %v7208_v11 = vsel %vm523_vm0, %v7207_v47, %v7158_v31  ;;  %v1403_v49 = vrot.slane %v19340_v45, 4  ;;  %v19341_v32 = vld [vmem:[#allocation84_spill] sm:$0xff] }
 0x543   : > { %7605 = vrot.lane.b32.xlu1 %v15170_v14, %s19334_s15  ;;  %19338 = vst [vmem:[#allocation86_spill] sm:$0xff] %v15674_v51  ;;  %v7218_v41 = vperm.slane %v7210_v46, %v10671_v37  ;;  %v7233_v12 = vrot.slane %v7182_v5, 4  ;;  %v1296_v60 = vsel %vm523_vm0, %v1295_v16, %v19341_v32  ;;  %v15689_v47 = vperm.slane %v7208_v11, %v10671_v37 }
 0x544   : > { %v7221_v31 = vrot.slane %v15674_v51, 4  ;;  %v7249_v32 = vrot.slane %v7206_v48, 4 }
 0x545   : > { %v5465_v30 = vpop.permute.xlu1 %5464  ;;  %19342 = vst [vmem:[#allocation85_spill] sm:$0xff] %v15689_v47  ;;  %v7257_v45 = vrot.slane %v7218_v41, 4 }
 0x546   : > { %2321 = vxpose.xlu0.b32.cont [7/16] (narrow) %v1292_v57, 8  ;;  %v15676_v23 = vpop.permute.xlu0 %7900  ;;  %v7183_v61 = vrot.slane %v5465_v30, 4  ;;  %v7186_v26 = vsel %vm523_vm0, %v5465_v30, %v7185_v50 }
 0x547   : > { %19339 = vst [vmem:[#allocation418_spill] sm:$0xff] %v15676_v23  ;;  %v7194_v53 = vperm.slane %v7186_v26, %v10647_v13  ;;  %v19344_v26 = vld [vmem:[#allocation97_spill] sm:$0xff]  ;;  %v19442_v23 = vld [vmem:[#allocation90_spill] sm:$0xff] }
 0x548   : > { %v7184_v57 = vsel %vm523_vm0, %v7183_v61, %v19336_v2  ;;  %v1404_v16 = vsel %vm523_vm0, %v1403_v49, %v19344_v26  ;;  %v19345_v2 = vld [vmem:[#allocation96_spill] sm:$0xff] }
 0x549   : > { %2385 = vxpose.xlu2.b32.cont [7/16] (narrow) %v1296_v60, 8  ;;  %v15693_v50 = vperm.slane %v7184_v57, %v10647_v13  ;;  %v7231_v46 = vrot.slane %v7194_v53, 4  ;;  %v7234_v30 = vsel %vm523_vm0, %v7194_v53, %v7233_v12  ;;  %v1407_v11 = vrot.slane %v19345_v2, 4  ;;  %v15705_v57 = vpop.permute.xlu2 %7915 }
 0x54a   : > { %v7242_v35 = vperm.slane %v7234_v30, %v10671_v37  ;;  %19346 = vst [vmem:[#allocation84_spill] sm:$0xff] %v15705_v57 }
 0x54b   : > { %19343 = vst [vmem:[#allocation100_spill] sm:$0xff] %v15693_v50  ;;  %7608 = vrot.lane.b32.xlu1 %v15170_v14, %s18838_s16  ;;  %v7222_v61 = vsel %vm523_vm0, %v15693_v50, %v7221_v31  ;;  %v7232_v60 = vsel %vm523_vm0, %v7231_v46, %v7182_v5  ;;  %v7253_v31 = vrot.slane %v15689_v47, 4  ;;  %v19351_v5 = vld [vmem:[#allocation95_spill] sm:$0xff]  ;;  %s19423_s16 = smov 36  }
 0x54c   : > { %v7230_v53 = vperm.slane %v7222_v61, %v10671_v37  ;;  %v15709_v49 = vperm.slane %v7232_v60, %v10671_v37  ;;  %v7255_v12 = vrot.slane %v7242_v35, 4  ;;  %v15712_v30 = vsel %vm523_vm0, %v7242_v35, %v7257_v45 }
 0x54d   : > { %19348 = vst [vmem:[#allocation96_spill] sm:$0xff] %v15712_v30  ;;  %v7561_v26 = vpop.permute.xlu1 %7560  ;;  %v1408_v46 = vsel %vm523_vm0, %v1407_v11, %v19351_v5  ;;  %v19356_v11 = vld [vmem:[#allocation108_spill] sm:$0xff]  ;;  %v19357_v5 = vld [vmem:[#allocation107_spill] sm:$0xff] }
 0x54e   : > { %19347 = vst [vmem:[#allocation97_spill] sm:$0xff] %v15709_v49  ;;  %2322 = vxpose.xlu0.b32.cont [8/16] (narrow) %v1404_v16, 8  ;;  %v15714_v2 = vpop.permute.xlu0 %7909  ;;  %v15718_v51 = vsel %vm523_vm0, %v7230_v53, %v7249_v32  ;;  %v7247_v61 = vrot.slane %v7230_v53, 4  ;;  %v15723_v60 = vsel %vm523_vm0, %v7255_v12, %v7218_v41  ;;  %v15727_v35 = vsel %vm523_vm0, %v15709_v49, %v7253_v31  ;;  %v19354_v16 = vld [vmem:[#allocation111_spill] sm:$0xff] }
 0x54f   : > { %19349 = vst [vmem:[#allocation550_spill] sm:$0xff] %v15714_v2  ;;  %v1515_v45 = vrot.slane %v19354_v16, 4  ;;  %v7941_v32 = vrot.slane %v15170_v14, 4  ;;  %v1519_v53 = vrot.slane %v19356_v11, 4  ;;  %v19362_v11 = vld [vmem:[#allocation119_spill] sm:$0xff] }
 0x550   : > { %19350 = vst [vmem:[#allocation551_spill] sm:$0xff] %v15718_v51  ;;  %v15731_v30 = vsel %vm523_vm0, %v7247_v61, %v7206_v48  ;;  %v19360_v61 = vld [vmem:[#allocation106_spill] sm:$0xff]  ;;  %v19366_v51 = vld [vmem:[#allocation117_spill] sm:$0xff] }
 0x551   : > { %19352 = vst [vmem:[#allocation95_spill] sm:$0xff] %v15723_v60  ;;  %2386 = vxpose.xlu2.b32.cont [8/16] (narrow) %v1408_v46, 8  ;;  %v1516_v41 = vsel %vm523_vm0, %v1515_v45, %v19357_v5  ;;  %v15742_v16 = vpop.permute.xlu2 %7924  ;;  %v1627_v45 = vrot.slane %v19362_v11, 4  ;;  %v7953_v5 = vrot.slane %v7561_v26, 4 }
 0x552   : > { %19353 = vst [vmem:[#allocation552_spill] sm:$0xff] %v15727_v35  ;;  %v1520_v35 = vsel %vm523_vm0, %v1519_v53, %v19360_v61 }
 0x553   : > { %19355 = vst [vmem:[#allocation111_spill] sm:$0xff] %v15731_v30  ;;  %7611 = vrot.lane.b32.xlu1 %v15170_v14, %s18996_s22  ;;  %s19364_s22 = smov 90   ;;  %v19365_v30 = vld [vmem:[#allocation121_spill] sm:$0xff]  ;;  %v1628_v53 = vsel %vm523_vm0, %v1627_v45, %v19366_v51 }
 0x554   : > { %19359 = vst [vmem:[#allocation107_spill] sm:$0xff] %v15742_v16  ;;  %v1631_v47 = vrot.slane %v19365_v30, 4 }
 0x555   : > { %v7564_v12 = vpop.permute.xlu1 %7563 }
 0x556   : > { %2323 = vxpose.xlu0.b32.cont [9/16] (narrow) %v1516_v41, 8  ;;  %v15739_v31 = vpop.permute.xlu0 %7918  ;;  %v7942_v48 = vsel %vm523_vm0, %v7564_v12, %v7941_v32  ;;  %v7939_v32 = vrot.slane %v7564_v12, 4  ;;  %v19369_v12 = vld [vmem:[#allocation133_spill] sm:$0xff] }
 0x557   : > { %19358 = vst [vmem:[#allocation108_spill] sm:$0xff] %v15739_v31  ;;  %v9633_v46 = vrot.slane %v15739_v31, 4  ;;  %v15753_v41 = vperm.slane %v7942_v48, %v10647_v13  ;;  %v19368_v48 = vld [vmem:[#allocation118_spill] sm:$0xff]  ;;  %v19429_v31 = vld [vmem:[#allocation57_spill] sm:$0xff] }
 0x558   : > { %v1632_v49 = vsel %vm523_vm0, %v1631_v47, %v19368_v48  ;;  %v7940_v50 = vsel %vm523_vm0, %v7939_v32, %v15170_v14 }
 0x559   : > { %v15749_v60 = vsel %vm523_vm0, %v15742_v16, %v9633_v46  ;;  %2387 = vxpose.xlu2.b32.cont [9/16] (narrow) %v1520_v35, 8  ;;  %19363 = vst [vmem:[#allocation119_spill] sm:$0xff] %v15753_v41  ;;  %v8001_v46 = vrot.slane %v15753_v41, 4  ;;  %v15773_v45 = vperm.slane %v7940_v50, %v10647_v13 }
 0x55a   : > { %19361 = vst [vmem:[#allocation106_spill] sm:$0xff] %v15749_v60  ;;  %v1739_v60 = vrot.slane %v19369_v12, 4  ;;  %v19375_v12 = vld [vmem:[#allocation128_spill] sm:$0xff] }
 0x55b   : > { %7614 = vrot.lane.b32.xlu1 %v15170_v14, %s19364_s22  ;;  %19370 = vst [vmem:[#allocation117_spill] sm:$0xff] %v15773_v45 }
 0x55d   : > { %v7567_v61 = vpop.permute.xlu1 %7566 }
 0x55e   : > { %2324 = vxpose.xlu0.b32.cont [10/16] (narrow) %v1628_v53, 8  ;;  %v7954_v35 = vsel %vm523_vm0, %v7567_v61, %v7953_v5  ;;  %v7951_v30 = vrot.slane %v7567_v61, 4  ;;  %v19372_v5 = vld [vmem:[#allocation129_spill] sm:$0xff] }
 0x55f   : > { %v15763_v11 = vperm.slane %v7954_v35, %v10647_v13  ;;  %v1743_v53 = vrot.slane %v19372_v5, 4  ;;  %v19373_v35 = vld [vmem:[#allocation130_spill] sm:$0xff] }
 0x560   : > { %v7952_v47 = vsel %vm523_vm0, %v7951_v30, %v7561_v26  ;;  %v1740_v32 = vsel %vm523_vm0, %v1739_v60, %v19373_v35  ;;  %v19376_v26 = vld [vmem:[#allocation144_spill] sm:$0xff] }
 0x561   : > { %19367 = vst [vmem:[#allocation121_spill] sm:$0xff] %v15763_v11  ;;  %2388 = vxpose.xlu2.b32.cont [10/16] (narrow) %v1632_v49, 8  ;;  %v8002_v51 = vsel %vm523_vm0, %v15763_v11, %v8001_v46  ;;  %v7965_v49 = vrot.slane %v14407_v33, 4  ;;  %v7989_v46 = vrot.slane %v15773_v45, 4  ;;  %v15784_v50 = vperm.slane %v7952_v47, %v10647_v13 }
 0x562   : > { %v1744_v41 = vsel %vm523_vm0, %v1743_v53, %v19375_v12  ;;  %v1851_v30 = vrot.slane %v19376_v26, 4  ;;  %v19380_v53 = vld [vmem:[#allocation423_spill] sm:$0xff] }
 0x563   : > { %7623 = vrot.lane.b32.xlu1 %v15170_v14, %s19371_s27  ;;  %19374 = vst [vmem:[#allocation118_spill] sm:$0xff] %v15784_v50  ;;  %v7990_v11 = vsel %vm523_vm0, %v15784_v50, %v7989_v46  ;;  %v7977_v12 = vrot.slane %v19380_v53, 4  ;;  %v19385_v50 = vld [vmem:[#allocation139_spill] sm:$0xff] }
 0x565   : > { %v7576_v61 = vpop.permute.xlu1 %7575 }
 0x566   : > { %2325 = vxpose.xlu0.b32.cont [11/16] (narrow) %v1740_v32, 8  ;;  %v7963_v48 = vrot.slane %v7576_v61, 4  ;;  %v7966_v5 = vsel %vm523_vm0, %v7576_v61, %v7965_v49  ;;  %v19379_v32 = vld [vmem:[#allocation141_spill] sm:$0xff]  ;;  %v19381_v61 = vld [vmem:[#allocation140_spill] sm:$0xff]  ;;  %v8010_v49 = vperm.slane %v8002_v51, %v10671_v37 }
 0x567   : > { %v15793_v35 = vperm.slane %v7966_v5, %v10647_v13  ;;  %v1855_v47 = vrot.slane %v19379_v32, 4  ;;  %v15809_v32 = vperm.slane %v7990_v11, %v10671_v37 }
 0x568   : > { %v7964_v60 = vsel %vm523_vm0, %v7963_v48, %v14407_v33 }
 0x569   : > { %2389 = vxpose.xlu2.b32.cont [11/16] (narrow) %v1744_v41, 8  ;;  %19377 = vst [vmem:[#allocation133_spill] sm:$0xff] %v15793_v35  ;;  %v1852_v41 = vsel %vm523_vm0, %v1851_v30, %v19381_v61  ;;  %v15805_v33 = vperm.slane %v7964_v60, %v10647_v13  ;;  %v8025_v46 = vrot.slane %v15793_v35, 4  ;;  %v1856_v30 = vsel %vm523_vm0, %v1855_v47, %v19385_v50  ;;  %v19386_v60 = vld [vmem:[#allocation152_spill] sm:$0xff]  ;;  %v19389_v50 = vld [vmem:[#allocation154_spill] sm:$0xff] }
 0x56a   : > { %19383 = vst [vmem:[#allocation130_spill] sm:$0xff] %v15809_v32  ;;  %v1963_v61 = vrot.slane %v19386_v60, 4  ;;  %v1967_v47 = vrot.slane %v19389_v50, 4  ;;  %v19395_v50 = vld [vmem:[#allocation151_spill] sm:$0xff] }
 0x56b   : > { %7632 = vrot.lane.b32.xlu1 %v15170_v14, %s19378_s28  ;;  %19382 = vst [vmem:[#allocation129_spill] sm:$0xff] %v15805_v33 }
 0x56d   : > { %v7579_v48 = vpop.permute.xlu1 %7578 }
 0x56e   : > { %2326 = vxpose.xlu0.b32.cont [12/16] (narrow) %v1852_v41, 8  ;;  %v7975_v5 = vrot.slane %v7579_v48, 4  ;;  %v7978_v26 = vsel %vm523_vm0, %v7579_v48, %v7977_v12  ;;  %v8049_v41 = vrot.slane %v8010_v49, 4  ;;  %v8013_v12 = vrot.slane %v15805_v33, 4 }
 0x56f   : > { %v15813_v45 = vperm.slane %v7978_v26, %v10647_v13  ;;  %v8041_v26 = vrot.slane %v15809_v32, 4 }
 0x570   : > { %v7976_v51 = vsel %vm523_vm0, %v7975_v5, %v19380_v53  ;;  %v19390_v5 = vld [vmem:[#allocation150_spill] sm:$0xff] }
 0x571   : > { %19384 = vst [vmem:[#allocation128_spill] sm:$0xff] %v15813_v45  ;;  %2390 = vxpose.xlu2.b32.cont [12/16] (narrow) %v1856_v30, 8  ;;  %v15822_v11 = vperm.slane %v7976_v51, %v10647_v13  ;;  %v8026_v48 = vsel %vm523_vm0, %v15813_v45, %v8025_v46  ;;  %v1964_v30 = vsel %vm523_vm0, %v1963_v61, %v19390_v5  ;;  %v19397_v61 = vld [vmem:[#allocation166_spill] sm:$0xff]  ;;  %v19400_v5 = vld [vmem:[#allocation163_spill] sm:$0xff] }
 0x572   : > { %v8034_v35 = vperm.slane %v8026_v48, %v10671_v37 }
 0x573   : > { %19387 = vst [vmem:[#allocation144_spill] sm:$0xff] %v15822_v11  ;;  %7641 = vrot.lane.b32.xlu1 %v15170_v14, %s19388_s29  ;;  %v8014_v53 = vsel %vm523_vm0, %v15822_v11, %v8013_v12  ;;  %v1968_v12 = vsel %vm523_vm0, %v1967_v47, %v19395_v50  ;;  %v19405_v50 = vld [vmem:[#allocation174_spill] sm:$0xff] }
 0x574   : > { %v15836_v51 = vperm.slane %v8014_v53, %v10671_v37  ;;  %v8047_v60 = vrot.slane %v8034_v35, 4  ;;  %v15839_v46 = vsel %vm523_vm0, %v8034_v35, %v8049_v41  ;;  %v2075_v53 = vrot.slane %v19397_v61, 4  ;;  %v19399_v35 = vld [vmem:[#allocation162_spill] sm:$0xff]  ;;  %v19406_v61 = vld [vmem:[#allocation173_spill] sm:$0xff] }
 0x575   : > { %19392 = vst [vmem:[#allocation423_spill] sm:$0xff] %v15839_v46  ;;  %v15841_v45 = vpop.permute.xlu1 %7581  ;;  %v2079_v41 = vrot.slane %v19399_v35, 4  ;;  %v19402_v46 = vld [vmem:[#allocation161_spill] sm:$0xff] }
 0x576   : > { %19391 = vst [vmem:[#allocation141_spill] sm:$0xff] %v15836_v51  ;;  %2327 = vxpose.xlu0.b32.cont [13/16] (narrow) %v1964_v30, 8  ;;  %v15845_v48 = vsel %vm523_vm0, %v15836_v51, %v8041_v26  ;;  %v15850_v32 = vsel %vm523_vm0, %v8047_v60, %v8010_v49  ;;  %v2076_v30 = vsel %vm523_vm0, %v2075_v53, %v19400_v5  ;;  %v19403_v49 = vld [vmem:[#allocation177_spill] sm:$0xff]  ;;  %v19408_v53 = vld [vmem:[#allocation172_spill] sm:$0xff] }
 0x577   : > { %19393 = vst [vmem:[#allocation140_spill] sm:$0xff] %v15841_v45  ;;  %v2080_v47 = vsel %vm523_vm0, %v2079_v41, %v19402_v46  ;;  %v2187_v60 = vrot.slane %v19403_v49, 4  ;;  %v15874_v41 = vld [vmem:[%s10533_s24 + $0x30] sm:$0xff]  ;;  %v19412_v49 = vld [vmem:[#allocation183_spill] sm:$0xff] }
 0x578   : > { %19394 = vst [vmem:[#allocation139_spill] sm:$0xff] %v15845_v48  ;;  %v19418_v48 = vld [vmem:[#allocation22_spill] sm:$0xff]  ;;  %v19426_v51 = vld [vmem:[#allocation44_spill] sm:$0xff] }
 0x579   : > { %19396 = vst [vmem:[#allocation152_spill] sm:$0xff] %v15850_v32  ;;  %2391 = vxpose.xlu2.b32.cont [13/16] (narrow) %v1968_v12, 8  ;;  %v2191_v12 = vrot.slane %v19405_v50, 4  ;;  %v2188_v35 = vsel %vm523_vm0, %v2187_v60, %v19406_v61  ;;  %v19414_v61 = vld [vmem:[#allocation184_spill] sm:$0xff] }
 0x57b   : > { %7650 = vrot.lane.b32.xlu1 %v15170_v14, %s19398_s30  ;;  %v2192_v5 = vsel %vm523_vm0, %v2191_v12, %v19408_v53  ;;  %v19416_v12 = vld [vmem:[#allocation25_spill] sm:$0xff] }
 0x57c   : > { %v627_v53 = vrot.slane %v19416_v12, 4 }
 0x57d   : > { %v15858_v26 = vpop.permute.xlu1 %7584 }
 0x57e   : > { %19401 = vst [vmem:[#allocation154_spill] sm:$0xff] %v15858_v26  ;;  %2328 = vxpose.xlu0.b32.cont [14/16] (narrow) %v2076_v30, 8  ;;  %v19409_v30 = vld [vmem:[#allocation186_spill] sm:$0xff] }
 0x57f   : > { %v2299_v46 = vrot.slane %v19409_v30, 4  ;;  %v19417_v30 = vld [vmem:[#allocation24_spill] sm:$0xff] }
 0x581   : > { %2392 = vxpose.xlu2.b32.cont [14/16] (narrow) %v2080_v47, 8  ;;  %v2300_v50 = vsel %vm523_vm0, %v2299_v46, %v19412_v49  ;;  %v19420_v46 = vld [vmem:[#allocation34_spill] sm:$0xff] }
 0x582   : > { %v739_v49 = vrot.slane %v19420_v46, 4 }
 0x583   : > { %7659 = vrot.lane.b32.xlu1 %v15170_v14, %s19404_s2  ;;  %v19411_v14 = vld [vmem:[#allocation187_spill] sm:$0xff] }
 0x584   : > { %v2303_v47 = vrot.slane %v19411_v14, 4  ;;  %v628_v14 = vsel %vm523_vm0, %v627_v53, %v19418_v48  ;;  %v19425_v53 = vld [vmem:[#allocation43_spill] sm:$0xff] }
 0x585   : > { %v15868_v32 = vpop.permute.xlu1 %7587 }
 0x586   : > { %19407 = vst [vmem:[#allocation150_spill] sm:$0xff] %v15868_v32  ;;  %2329 = vxpose.xlu0.b32.cont [15/16] (narrow) %v2188_v35, 8  ;;  %v2304_v35 = vsel %vm523_vm0, %v2303_v47, %v19414_v61  ;;  %v19421_v47 = vld [vmem:[#allocation37_spill] sm:$0xff]  ;;  %v19422_v61 = vld [vmem:[#allocation32_spill] sm:$0xff] }
 0x589   : > { %2393 = vxpose.xlu2.b32.cont [15/16] (narrow) %v2192_v5, 8 }
 0x58b   : > { %7668 = vrot.lane.b32.xlu1 %v15874_v41, %s19410_s3 }
 0x58d   : > { %v15881_v60 = vpop.permute.xlu1 %7590 }
 0x58e   : > { %19413 = vst [vmem:[#allocation151_spill] sm:$0xff] %v15881_v60  ;;  %2330 = vxpose.xlu0.b32.end [16/16] (narrow) %v2300_v50, 8 }
 0x591   : > { %2394 = vxpose.xlu2.b32.end [16/16] (narrow) %v2304_v35, 8  ;;  %v740_v35 = vsel %vm523_vm0, %v739_v49, %v19422_v61  ;;  %v19428_v61 = vld [vmem:[#allocation58_spill] sm:$0xff] }
 0x593   : > { %7677 = vrot.lane.b32.xlu1 %v15874_v41, %s19415_s11 }
 0x595   : > { %v7594_v5 = vpop.permute.xlu1 %7593 }
 0x596   : > { %2411 = vxpose.xlu0.b32.start [1/16] (narrow) %v19417_v30, 8  ;;  %v8077_v12 = vrot.slane %v7594_v5, 4  ;;  %v19424_v30 = vld [vmem:[#allocation47_spill] sm:$0xff] }
 0x597   : > { %v851_v33 = vrot.slane %v19424_v30, 4 }
 0x599   : > { %2443 = vxpose.xlu2.b32.start [1/16] (narrow) %v628_v14, 8  ;;  %v852_v46 = vsel %vm523_vm0, %v851_v33, %v19426_v51  ;;  %v19430_v33 = vld [vmem:[#allocation55_spill] sm:$0xff] }
 0x59b   : > { %7686 = vrot.lane.b32.xlu1 %v15874_v41, %s19419_s13 }
 0x59d   : > { %v7597_v50 = vpop.permute.xlu1 %7596 }
 0x59e   : > { %2412 = vxpose.xlu0.b32.cont [2/16] (narrow) %v19421_v47, 8  ;;  %v8089_v49 = vrot.slane %v7597_v50, 4 }
 0x5a1   : > { %2444 = vxpose.xlu2.b32.cont [2/16] (narrow) %v740_v35, 8  ;;  %v963_v35 = vrot.slane %v19428_v61, 4 }
 0x5a3   : > { %7695 = vrot.lane.b32.xlu1 %v15874_v41, %s19423_s16  ;;  %v964_v51 = vsel %vm523_vm0, %v963_v35, %v19430_v33  ;;  %v19437_v35 = vld [vmem:[#allocation80_spill] sm:$0xff] }
 0x5a4   : > { %v1187_v33 = vrot.slane %v19437_v35, 4 }
 0x5a5   : > { %v7600_v48 = vpop.permute.xlu1 %7599 }
 0x5a6   : > { %2413 = vxpose.xlu0.b32.cont [3/16] (narrow) %v19425_v53, 8  ;;  %v8078_v14 = vsel %vm523_vm0, %v7600_v48, %v8077_v12  ;;  %v8075_v19 = vrot.slane %v7600_v48, 4 }
 0x5a7   : > { %v15905_v47 = vperm.slane %v8078_v14, %v10647_v13 }
 0x5a9   : > { %2445 = vxpose.xlu2.b32.cont [3/16] (narrow) %v852_v46, 8  ;;  %v8137_v30 = vrot.slane %v15905_v47, 4  ;;  %v19433_v46 = vld [vmem:[#allocation67_spill] sm:$0xff] }
 0x5aa   : > { %v1075_v61 = vrot.slane %v19433_v46, 4 }
 0x5ab   : > { %7704 = vrot.lane.b32.xlu1 %v15874_v41, %s19427_s20 }
 0x5ad   : > { %v7603_v11 = vpop.permute.xlu1 %7602 }
 0x5ae   : > { %2414 = vxpose.xlu0.b32.cont [4/16] (narrow) %v19429_v31, 8  ;;  %v8090_v12 = vsel %vm523_vm0, %v7603_v11, %v8089_v49  ;;  %v19434_v31 = vld [vmem:[#allocation70_spill] sm:$0xff]  ;;  %v19435_v49 = vld [vmem:[#allocation65_spill] sm:$0xff]  ;;  %v8087_v46 = vrot.slane %v7603_v11, 4  ;;  %v19443_v11 = vld [vmem:[#allocation88_spill] sm:$0xff] }
 0x5af   : > { %v15914_v53 = vperm.slane %v8090_v12, %v10647_v13  ;;  %v1076_v12 = vsel %vm523_vm0, %v1075_v61, %v19435_v49  ;;  %v19441_v61 = vld [vmem:[#allocation91_spill] sm:$0xff]  ;;  %v8051_v49 = vrot.slane %v15868_v32, 4 }
 0x5b1   : > { %2446 = vxpose.xlu2.b32.cont [4/16] (narrow) %v964_v51, 8  ;;  %v15920_v14 = vsel %vm523_vm0, %v15914_v53, %v8137_v30  ;;  %v19438_v30 = vld [vmem:[#allocation77_spill] sm:$0xff] }
 0x5b2   : > { %19431 = vst [vmem:[#allocation166_spill] sm:$0xff] %v15920_v14  ;;  %v19439_v14 = vld [vmem:[#allocation76_spill] sm:$0xff] }
 0x5b3   : > { %7713 = vrot.lane.b32.xlu1 %v15874_v41, %s19432_s23  ;;  %v1188_v57 = vsel %vm523_vm0, %v1187_v33, %v19439_v14 }
 0x5b5   : > { %v7606_v16 = vpop.permute.xlu1 %7605 }
 0x5b6   : > { %2415 = vxpose.xlu0.b32.cont [5/16] (narrow) %v19434_v31, 8  ;;  %v8165_v2 = vrot.slane %v7606_v16, 4  ;;  %v1299_v31 = vrot.slane %v19441_v61, 4  ;;  %v8052_v61 = vsel %vm523_vm0, %v8051_v49, %v15841_v45  ;;  %v19449_v45 = vld [vmem:[#allocation113_spill] sm:$0xff] }
 0x5b8   : > { %v1300_v48 = vsel %vm523_vm0, %v1299_v31, %v19443_v11 }
 0x5b9   : > { %2447 = vxpose.xlu2.b32.cont [5/16] (narrow) %v1076_v12, 8  ;;  %v8088_v12 = vsel %vm523_vm0, %v8087_v46, %v7597_v50 }
 0x5ba   : > { %v8094_v14 = vperm.slane %v8088_v12, %v10647_v13 }
 0x5bb   : > { %7722 = vrot.lane.b32.xlu1 %v15874_v41, %s19436_s19 }
 0x5bc   : > { %v8123_v12 = vrot.slane %v8094_v14, 4 }
 0x5bd   : > { %v7609_v51 = vpop.permute.xlu1 %7608 }
 0x5be   : > { %2416 = vxpose.xlu0.b32.cont [6/16] (narrow) %v19438_v30, 8  ;;  %v8177_v46 = vrot.slane %v7609_v51, 4 }
 0x5c1   : > { %2448 = vxpose.xlu2.b32.cont [6/16] (narrow) %v1188_v57, 8  ;;  %v8076_v57 = vsel %vm523_vm0, %v8075_v19, %v7594_v5  ;;  %v19445_v5 = vld [vmem:[#allocation102_spill] sm:$0xff] }
 0x5c2   : > { %v1411_v31 = vrot.slane %v19445_v5, 4  ;;  %v19448_v5 = vld [vmem:[#allocation99_spill] sm:$0xff] }
 0x5c3   : > { %7731 = vrot.lane.b32.xlu1 %v15874_v41, %s19440_s12 }
 0x5c4   : > { %v1412_v32 = vsel %vm523_vm0, %v1411_v31, %v19448_v5 }
 0x5c5   : > { %v7612_v35 = vpop.permute.xlu1 %7611 }
 0x5c6   : > { %2417 = vxpose.xlu0.b32.cont [7/16] (narrow) %v19442_v23, 8  ;;  %v8163_v30 = vrot.slane %v7612_v35, 4  ;;  %v8166_v20 = vsel %vm523_vm0, %v7612_v35, %v8165_v2  ;;  %v8082_v23 = vperm.slane %v8076_v57, %v10647_v13  ;;  %v8063_v2 = vrot.slane %v15881_v60, 4  ;;  %v19447_v35 = vld [vmem:[#allocation98_spill] sm:$0xff] }
 0x5c7   : > { %v15949_v50 = vperm.slane %v8166_v20, %v10647_v13  ;;  %v8135_v57 = vrot.slane %v15914_v53, 4  ;;  %v1523_v53 = vrot.slane %v19449_v45, 4 }
 0x5c8   : > { %v8164_v33 = vsel %vm523_vm0, %v8163_v30, %v7606_v16  ;;  %v15958_v16 = vperm.slane %v8052_v61, %v10647_v13  ;;  %v8125_v30 = vrot.slane %v8082_v23, 4  ;;  %v15973_v43 = vsel %vm523_vm0, %v8123_v12, %v8082_v23  ;;  %v19452_v23 = vld [vmem:[#allocation430_spill] sm:$0xff] }
 0x5c9   : > { %2449 = vxpose.xlu2.b32.cont [7/16] (narrow) %v1300_v48, 8  ;;  %v8170_v19 = vperm.slane %v8164_v33, %v10647_v13  ;;  %v8225_v49 = vrot.slane %v15949_v50, 4  ;;  %19450 = vst [vmem:[#allocation163_spill] sm:$0xff] %v15973_v43  ;;  %v8189_v12 = vrot.slane %v19452_v23, 4 }
 0x5ca   : > { %19446 = vst [vmem:[#allocation162_spill] sm:$0xff] %v15958_v16  ;;  %v8101_v60 = vrot.slane %v15958_v16, 4 }
 0x5cb   : > { %7740 = vrot.lane.b32.xlu1 %v15874_v41, %s19444_s9  ;;  %v8064_v41 = vsel %vm523_vm0, %v8063_v2, %v15858_v26  ;;  %v8213_v33 = vrot.slane %v8170_v19, 4 }
 0x5cc   : > { %v15982_v31 = vperm.slane %v8064_v41, %v10647_v13  ;;  %v19454_v41 = vld [vmem:[#allocation122_spill] sm:$0xff] }
 0x5cd   : > { %v7615_v20 = vpop.permute.xlu1 %7614  ;;  %v1635_v5 = vrot.slane %v19454_v41, 4 }
 0x5ce   : > { %2418 = vxpose.xlu0.b32.cont [8/16] (narrow) %v19447_v35, 8  ;;  %v8175_v11 = vrot.slane %v7615_v20, 4  ;;  %v8178_v48 = vsel %vm523_vm0, %v7615_v20, %v8177_v46  ;;  %v15977_v46 = vperm.slane %v14458_v29, %v10647_v13 }
 0x5cf   : > { %v8186_v61 = vperm.slane %v8178_v48, %v10647_v13  ;;  %v8126_v48 = vsel %vm523_vm0, %v8094_v14, %v8125_v30  ;;  %v8102_v14 = vsel %vm523_vm0, %v15982_v31, %v8101_v60  ;;  %v8282_v60 = vperm.slane %v14491_v54, %v10647_v13 }
 0x5d0   : > { %v8176_v35 = vsel %vm523_vm0, %v8175_v11, %v7609_v51  ;;  %v15990_v51 = vld [vmem:[%s10533_s24 + $0x38] sm:$0xff]  ;;  %v8247_v30 = vrot.slane %v15977_v46, 4  ;;  %v16015_v26 = vperm.slane %v8126_v48, %v10671_v37 }
 0x5d1   : > { %2450 = vxpose.xlu2.b32.cont [8/16] (narrow) %v1412_v32, 8  ;;  %v8182_v2 = vperm.slane %v8176_v35, %v10647_v13  ;;  %v8226_v20 = vsel %vm523_vm0, %v8186_v61, %v8225_v49  ;;  %v15987_v32 = vsel %vm523_vm0, %v8135_v57, %v15905_v47  ;;  %v19453_v49 = vld [vmem:[#allocation110_spill] sm:$0xff]  ;;  %v8206_v47 = vperm.slane %v14450_v59, %v10647_v13  ;;  %v19455_v35 = vld [vmem:[#allocation112_spill] sm:$0xff] }
 0x5d2   : > { %19451 = vst [vmem:[#allocation161_spill] sm:$0xff] %v15987_v32  ;;  %v1524_v11 = vsel %vm523_vm0, %v1523_v53, %v19453_v49  ;;  %v8223_v32 = vrot.slane %v8186_v61, 4 }
 0x5d3   : > { %v8211_v45 = vrot.slane %v8182_v2, 4  ;;  %7750 = vrot.lane.b32.xlu1 %v15990_v51, %s19203_s5  ;;  %v8214_v29 = vsel %vm523_vm0, %v8182_v2, %v8213_v33  ;;  %v16006_v33 = vperm.slane %v8102_v14, %v10671_v37  ;;  %19457 = vst [vmem:[#allocation174_spill] sm:$0xff] %v16015_v26  ;;  %v8235_v61 = vrot.slane %v8206_v47, 4  ;;  %s10042_s5 = scalar_lea.hbm %s20136_s4, %s10138_s10 }
 0x5d5   : > { %v7624_v57 = vpop.permute.xlu1 %7623  ;;  %19456 = vst [vmem:[#allocation177_spill] sm:$0xff] %v16006_v33  ;;  %v8212_v2 = vsel %vm523_vm0, %v8211_v45, %v8170_v19  ;;  %v8222_v19 = vperm.slane %v8214_v29, %v10671_v37 }
 0x5d6   : > { %2419 = vxpose.xlu0.b32.cont [9/16] (narrow) %v19455_v35, 8  ;;  %v8187_v53 = vrot.slane %v7624_v57, 4  ;;  %v8190_v49 = vsel %vm523_vm0, %v7624_v57, %v8189_v12  ;;  %v8218_v41 = vperm.slane %v8212_v2, %v10671_v37  ;;  %v8153_v35 = vrot.slane %v16006_v33, 4  ;;  %v19459_v57 = vld [vmem:[#allocation120_spill] sm:$0xff] }
 0x5d7   : > { %v8198_v59 = vperm.slane %v8190_v49, %v10647_v13  ;;  %v1636_v48 = vsel %vm523_vm0, %v1635_v5, %v19459_v57  ;;  %v8224_v49 = vsel %vm523_vm0, %v8223_v32, %v15949_v50  ;;  %v8265_v5 = vrot.slane %v8222_v19, 4  ;;  %v19461_v50 = vld [vmem:[#allocation125_spill] sm:$0xff] }
 0x5d8   : > { %v8188_v14 = vsel %vm523_vm0, %v8187_v53, %v19452_v23  ;;  %v16025_v54 = vsel %vm523_vm0, %v16015_v26, %v8153_v35  ;;  %v8261_v2 = vrot.slane %v8218_v41, 4  ;;  %v8230_v53 = vperm.slane %v8224_v49, %v10671_v37 }
 0x5d9   : > { %2451 = vxpose.xlu2.b32.cont [9/16] (narrow) %v1524_v11, 8  ;;  %v8194_v45 = vperm.slane %v8188_v14, %v10647_v13  ;;  %v8248_v12 = vsel %vm523_vm0, %v8247_v30, %v8198_v59  ;;  %19458 = vst [vmem:[#allocation173_spill] sm:$0xff] %v16025_v54  ;;  %v8325_v11 = vrot.slane %v8282_v60, 4  ;;  %v8287_v35 = vrot.slane %v14528_v9, 4 }
 0x5da   : > { %v8254_v23 = vperm.slane %v8248_v12, %v10671_v37  ;;  %v8249_v54 = vrot.slane %v8198_v59, 4  ;;  %v8269_v12 = vrot.slane %v8230_v53, 4  ;;  %v8234_v33 = vperm.slane %v8226_v20, %v10671_v37 }
 0x5db   : > { %v8237_v29 = vrot.slane %v8194_v45, 4  ;;  %7759 = vrot.lane.b32.xlu1 %v15990_v51, %s19460_s26  ;;  %v8236_v30 = vsel %vm523_vm0, %v8235_v61, %v8194_v45 }
 0x5dc   : > { %v8242_v14 = vperm.slane %v8236_v30, %v10671_v37  ;;  %v8267_v57 = vrot.slane %v8254_v23, 4 }
 0x5dd   : > { %v7633_v43 = vpop.permute.xlu1 %7632  ;;  %v8238_v32 = vsel %vm523_vm0, %v8206_v47, %v8237_v29 }
 0x5de   : > { %2420 = vxpose.xlu0.b32.cont [10/16] (narrow) %v19461_v50, 8  ;;  %v8288_v26 = vsel %vm523_vm0, %v8287_v35, %v7633_v43  ;;  %v8289_v61 = vrot.slane %v7633_v43, 4  ;;  %v8246_v45 = vperm.slane %v8238_v32, %v10671_v37  ;;  %v16044_v49 = vsel %vm523_vm0, %v8242_v14, %v8261_v2  ;;  %v19467_v32 = vld [vmem:[#allocation132_spill] sm:$0xff] }
 0x5df   : > { %v8294_v30 = vperm.slane %v8288_v26, %v10647_v13  ;;  %v8259_v16 = vrot.slane %v8242_v14, 4  ;;  %v16048_v59 = vsel %vm523_vm0, %v8267_v57, %v8230_v53  ;;  %v16051_v50 = vsel %vm523_vm0, %v8254_v23, %v8269_v12 }
 0x5e0   : > { %19462 = vst [vmem:[#allocation172_spill] sm:$0xff] %v16048_v59  ;;  %v8263_v47 = vrot.slane %v8246_v45, 4  ;;  %v16054_v20 = vsel %vm523_vm0, %v8246_v45, %v8265_v5  ;;  %v8290_v26 = vsel %vm523_vm0, %v14528_v9, %v8289_v61  ;;  %v8250_v14 = vsel %vm523_vm0, %v15977_v46, %v8249_v54  ;;  %v19466_v5 = vld [vmem:[#allocation131_spill] sm:$0xff] }
 0x5e1   : > { %19463 = vst [vmem:[#allocation186_spill] sm:$0xff] %v16051_v50  ;;  %2452 = vxpose.xlu2.b32.cont [10/16] (narrow) %v1636_v48, 8  ;;  %v8323_v43 = vrot.slane %v8294_v30, 4  ;;  %v8326_v29 = vsel %vm523_vm0, %v8294_v30, %v8325_v11  ;;  %v16058_v2 = vsel %vm523_vm0, %v8259_v16, %v8218_v41  ;;  %v19465_v48 = vld [vmem:[#allocation135_spill] sm:$0xff]  ;;  %v8273_v11 = vrot.slane %v8234_v33, 4 }
 0x5e2   : > { %19464 = vst [vmem:[#allocation187_spill] sm:$0xff] %v16054_v20  ;;  %v16063_v53 = vsel %vm523_vm0, %v8263_v47, %v8222_v19  ;;  %v1747_v23 = vrot.slane %v19465_v48, 4  ;;  %v8286_v16 = vperm.slane %v14502_v40, %v10647_v13  ;;  %v8298_v41 = vperm.slane %v8290_v26, %v10647_v13  ;;  %v19470_v26 = vld [vmem:[#allocation146_spill] sm:$0xff] }
 0x5e3   : > { %7768 = vrot.lane.b32.xlu1 %v15990_v51, %s19235_s18  ;;  %v8324_v35 = vsel %vm523_vm0, %v8323_v43, %v8282_v60  ;;  %v8258_v19 = vperm.slane %v8250_v14, %v10671_v37  ;;  %v8299_v46 = vrot.slane %v14563_v42, 4  ;;  %v1859_v48 = vrot.slane %v19470_v26, 4 }
 0x5e4   : > { %v1748_v12 = vsel %vm523_vm0, %v1747_v23, %v19467_v32  ;;  %v8337_v54 = vrot.slane %v8286_v16, 4  ;;  %v8335_v45 = vrot.slane %v8298_v41, 4  ;;  %v19471_v23 = vld [vmem:[#allocation155_spill] sm:$0xff] }
 0x5e5   : > { %v7642_v9 = vpop.permute.xlu1 %7641  ;;  %v8271_v61 = vrot.slane %v8258_v19, 4  ;;  %v16079_v60 = vsel %vm523_vm0, %v8258_v19, %v8273_v11  ;;  %v1971_v14 = vrot.slane %v19471_v23, 4 }
 0x5e6   : > { %2421 = vxpose.xlu0.b32.cont [11/16] (narrow) %v19466_v5, 8  ;;  %v8301_v57 = vrot.slane %v7642_v9, 4  ;;  %19468 = vst [vmem:[#allocation183_spill] sm:$0xff] %v16079_v60  ;;  %v8300_v47 = vsel %vm523_vm0, %v8299_v46, %v7642_v9  ;;  %v8338_v11 = vsel %vm523_vm0, %v8298_v41, %v8337_v54  ;;  %v8336_v9 = vsel %vm523_vm0, %v8335_v45, %v8286_v16  ;;  %v19474_v54 = vld [vmem:[#allocation153_spill] sm:$0xff] }
 0x5e7   : > { %v16085_v30 = vsel %vm523_vm0, %v8271_v61, %v8234_v33  ;;  %v8306_v5 = vperm.slane %v8300_v47, %v10647_v13  ;;  %v19472_v33 = vld [vmem:[#allocation145_spill] sm:$0xff]  ;;  %v1972_v26 = vsel %vm523_vm0, %v1971_v14, %v19474_v54  ;;  %v8334_v16 = vperm.slane %v8326_v29, %v10671_v37 }
 0x5e8   : > { %v8302_v40 = vsel %vm523_vm0, %v14563_v42, %v8301_v57  ;;  %19469 = vst [vmem:[#allocation184_spill] sm:$0xff] %v16085_v30  ;;  %v8313_v42 = vrot.slane %v14439_v15, 4  ;;  %v8330_v45 = vperm.slane %v8324_v35, %v10671_v37  ;;  %v8342_v23 = vperm.slane %v8336_v9, %v10671_v37 }
 0x5e9   : > { %2453 = vxpose.xlu2.b32.cont [11/16] (narrow) %v1748_v12, 8  ;;  %v8310_v43 = vperm.slane %v8302_v40, %v10647_v13  ;;  %v8346_v12 = vperm.slane %v8338_v11, %v10671_v37  ;;  %v19473_v40 = vld [vmem:[#allocation143_spill] sm:$0xff]  ;;  %v8349_v11 = vrot.slane %v8306_v5, 4  ;;  %v8406_v29 = vperm.slane %v14622_v22, %v10647_v13 }
 0x5ea   : > { %v1860_v41 = vsel %vm523_vm0, %v1859_v48, %v19473_v40  ;;  %v8389_v48 = vrot.slane %v14480_v55, 4  ;;  %v8381_v60 = vrot.slane %v8342_v23, 4 }
 0x5eb   : > { %7777 = vrot.lane.b32.xlu1 %v15990_v51, %s19266_s21  ;;  %v8361_v61 = vrot.slane %v8310_v43, 4  ;;  %s10045_s21 = sshll.u32 %s10042_s5, 4  ;;  %s10046_s21 = int_to_ptr.hbm [resolvable:$true] %s10045_s21 }
 0x5ed   : > { %v7651_v19 = vpop.permute.xlu1 %7650 }
 0x5ee   : > { %2422 = vxpose.xlu0.b32.cont [12/16] (narrow) %v19472_v33, 8  ;;  %v8311_v57 = vrot.slane %v7651_v19, 4  ;;  %v8314_v32 = vsel %vm523_vm0, %v7651_v19, %v8313_v42 }
 0x5ef   : > { %v8322_v46 = vperm.slane %v8314_v32, %v10647_v13  ;;  %v19475_v32 = vld [vmem:[#allocation168_spill] sm:$0xff] }
 0x5f0   : > { %v8312_v47 = vsel %vm523_vm0, %v8311_v57, %v14439_v15  ;;  %v2083_v14 = vrot.slane %v19475_v32, 4  ;;  %v8385_v15 = vrot.slane %v8346_v12, 4  ;;  %v8373_v32 = vrot.slane %v8330_v45, 4 }
 0x5f1   : > { %2454 = vxpose.xlu2.b32.cont [12/16] (narrow) %v1860_v41, 8  ;;  %v8318_v42 = vperm.slane %v8312_v47, %v10647_v13  ;;  %v8359_v19 = vrot.slane %v8322_v46, 4  ;;  %v8362_v33 = vsel %vm523_vm0, %v8322_v46, %v8361_v61  ;;  %v8377_v46 = vrot.slane %v8334_v16, 4 }
 0x5f2   : > { %v8370_v40 = vperm.slane %v8362_v33, %v10671_v37  ;;  %v19477_v33 = vld [vmem:[#allocation158_spill] sm:$0xff] }
 0x5f3   : > { %v8347_v57 = vrot.slane %v8318_v42, 4  ;;  %7786 = vrot.lane.b32.xlu1 %v15990_v51, %s19299_s25  ;;  %v8350_v35 = vsel %vm523_vm0, %v8318_v42, %v8349_v11  ;;  %v8360_v9 = vsel %vm523_vm0, %v8359_v19, %v8310_v43 }
 0x5f4   : > { %v8358_v61 = vperm.slane %v8350_v35, %v10671_v37  ;;  %v8366_v41 = vperm.slane %v8360_v9, %v10671_v37  ;;  %v16124_v54 = vsel %vm523_vm0, %v8370_v40, %v8385_v15  ;;  %v8383_v30 = vrot.slane %v8370_v40, 4 }
 0x5f5   : > { %19476 = vst [vmem:[#allocation25_spill] sm:$0xff] %v16124_v54  ;;  %v7660_v47 = vpop.permute.xlu1 %7659  ;;  %v8348_v22 = vsel %vm523_vm0, %v8347_v57, %v8306_v5 }
 0x5f6   : > { %2423 = vxpose.xlu0.b32.cont [13/16] (narrow) %v19477_v33, 8  ;;  %v8387_v50 = vrot.slane %v7660_v47, 4  ;;  %v8390_v11 = vsel %vm523_vm0, %v7660_v47, %v8389_v48  ;;  %v8375_v43 = vrot.slane %v8358_v61, 4  ;;  %v8354_v42 = vperm.slane %v8348_v22, %v10671_v37 }
 0x5f7   : > { %v8398_v19 = vperm.slane %v8390_v11, %v10647_v13  ;;  %v16132_v35 = vsel %vm523_vm0, %v8358_v61, %v8377_v46  ;;  %v8379_v15 = vrot.slane %v8366_v41, 4  ;;  %v16135_v9 = vsel %vm523_vm0, %v8366_v41, %v8381_v60 }
 0x5f8   : > { %19478 = vst [vmem:[#allocation24_spill] sm:$0xff] %v16132_v35  ;;  %v8388_v5 = vsel %vm523_vm0, %v8387_v50, %v14480_v55  ;;  %v16140_v40 = vsel %vm523_vm0, %v8375_v43, %v8334_v16  ;;  %v16143_v48 = vsel %vm523_vm0, %v8354_v42, %v8373_v32  ;;  %v8371_v57 = vrot.slane %v8354_v42, 4  ;;  %v19482_v32 = vld [vmem:[#allocation164_spill] sm:$0xff] }
 0x5f9   : > { %19479 = vst [vmem:[#allocation22_spill] sm:$0xff] %v16135_v9  ;;  %2455 = vxpose.xlu2.b32.cont [13/16] (narrow) %v1972_v26, 8  ;;  %v8410_v47 = vperm.slane %v14634_v6, %v10647_v13  ;;  %v8435_v61 = vrot.slane %v8406_v29, 4  ;;  %v8394_v46 = vperm.slane %v8388_v5, %v10647_v13  ;;  %v16149_v60 = vsel %vm523_vm0, %v8379_v15, %v8342_v23  ;;  %v19565_v9 = vld [vmem:[#allocation180_spill] sm:$0xff] }
 0x5fa   : > { %19480 = vst [vmem:[#allocation34_spill] sm:$0xff] %v16149_v60  ;;  %v8418_v55 = vperm.slane %v14659_v44, %v10647_v13  ;;  %v16154_v50 = vsel %vm523_vm0, %v8371_v57, %v8330_v45  ;;  %v16157_v26 = vsel %vm523_vm0, %v8383_v30, %v8346_v12  ;;  %v8449_v41 = vrot.slane %v8398_v19, 4  ;;  %v19483_v45 = vld [vmem:[#allocation165_spill] sm:$0xff] }
 0x5fb   : > { %19481 = vst [vmem:[#allocation37_spill] sm:$0xff] %v16157_v26  ;;  %v8437_v16 = vrot.slane %v8394_v46, 4  ;;  %7795 = vrot.lane.b32.xlu1 %v15990_v51, %s19334_s15  ;;  %v8436_v6 = vsel %vm523_vm0, %v8435_v61, %v8394_v46  ;;  %v8423_v33 = vrot.slane %v14698_v8, 4  ;;  %v8447_v23 = vrot.slane %v8410_v47, 4  ;;  %s10309_s15 = sshra.s32 %s10046_s21, 4  ;;  %s10310_s15 = int_to_ptr.hbm [resolvable:$true] %s10309_s15 }
 0x5fc   : > { %v8422_v22 = vperm.slane %v14669_v36, %v10647_v13  ;;  %v2084_v30 = vsel %vm523_vm0, %v2083_v14, %v19483_v45  ;;  %v8461_v11 = vrot.slane %v8418_v55, 4  ;;  %v8442_v57 = vperm.slane %v8436_v6, %v10671_v37  ;;  %v19484_v14 = vld [vmem:[#allocation179_spill] sm:$0xff]  ;;  %p10316_p0 = scmp.lt.s32.totalorder %s10310_s15, %s20136_s4 }
 0x5fd   : > { %v7669_v44 = vpop.permute.xlu1 %7668  ;;  %v8438_v12 = vsel %vm523_vm0, %v8406_v29, %v8437_v16  ;;  %v8448_v36 = vsel %vm523_vm0, %v8447_v23, %v8398_v19  ;;  %v8450_v61 = vsel %vm523_vm0, %v8410_v47, %v8449_v41  ;;  %v2195_v29 = vrot.slane %v19484_v14, 4 }
 0x5fe   : > { %2424 = vxpose.xlu0.b32.cont [14/16] (narrow) %v19482_v32, 8  ;;  %v8424_v43 = vsel %vm523_vm0, %v8423_v33, %v7669_v44  ;;  %v8425_v42 = vrot.slane %v7669_v44, 4  ;;  %v8446_v15 = vperm.slane %v8438_v12, %v10671_v37  ;;  %v8473_v16 = vrot.slane %v8422_v22, 4 }
 0x5ff   : > { %v8430_v5 = vperm.slane %v8424_v43, %v10647_v13  ;;  %v8454_v6 = vperm.slane %v8448_v36, %v10671_v37  ;;  %v8458_v19 = vperm.slane %v8450_v61, %v10671_v37  ;;  %v8485_v41 = vrot.slane %v8442_v57, 4  ;;  %v19486_v36 = vld [vmem:[#allocation178_spill] sm:$0xff] }
 0x600   : > { %v8426_v46 = vsel %vm523_vm0, %v14698_v8, %v8425_v42  ;;  %v8489_v12 = vrot.slane %v8446_v15, 4 }
 0x601   : > { %2456 = vxpose.xlu2.b32.cont [14/16] (narrow) %v2084_v30, 8  ;;  %v8434_v33 = vperm.slane %v8426_v46, %v10647_v13  ;;  %v8459_v44 = vrot.slane %v8430_v5, 4  ;;  %v8462_v32 = vsel %vm523_vm0, %v8430_v5, %v8461_v11 }
 0x602   : > { %v8470_v45 = vperm.slane %v8462_v32, %v10671_v37 }
 0x603   : > { %v8471_v47 = vrot.slane %v8434_v33, 4  ;;  %7804 = vrot.lane.b32.xlu1 %v15990_v51, %s19364_s22  ;;  %v8460_v8 = vsel %vm523_vm0, %v8459_v44, %v8418_v55  ;;  %v8474_v23 = vsel %vm523_vm0, %v8434_v33, %v8473_v16  ;;  %v8497_v16 = vrot.slane %v8458_v19, 4  ;;  %v19487_v33 = vld [vmem:[#allocation175_spill] sm:$0xff]  ;;  %s10311_s22 = scalar_lea.hbm %s10310_s15, 64 }
 0x604   : > { %v8487_v30 = vrot.slane %v8470_v45, 4  ;;  %v8466_v43 = vperm.slane %v8460_v8, %v10671_v37  ;;  %v16189_v11 = vsel %vm523_vm0, %v8470_v45, %v8489_v12  ;;  %v8482_v42 = vperm.slane %v8474_v23, %v10671_v37  ;;  %p10312_p6 = scmp.ne.s32.totalorder %s10310_s15, %s10311_s22 }
 0x605   : > { %19485 = vst [vmem:[#allocation32_spill] sm:$0xff] %v16189_v11  ;;  %v7678_v5 = vpop.permute.xlu1 %7677  ;;  %v8472_v61 = vsel %vm523_vm0, %v8471_v47, %v8422_v22  ;;  %v2196_v44 = vsel %vm523_vm0, %v2195_v29, %v19487_v33  ;;  %v8499_v8 = vrot.slane %v14727_v28, 4  ;;  %v8493_v47 = vrot.slane %v8454_v6, 4 }
 0x606   : > { %2425 = vxpose.xlu0.b32.cont [15/16] (narrow) %v19486_v36, 8  ;;  %v8501_v46 = vrot.slane %v7678_v5, 4  ;;  %v16195_v14 = vsel %vm523_vm0, %v8487_v30, %v8446_v15  ;;  %v16198_v55 = vsel %vm523_vm0, %v8466_v43, %v8485_v41  ;;  %v8483_v32 = vrot.slane %v8466_v43, 4  ;;  %p10313_p9 = pnand %p10312_p6, %p10491_p11 }
 0x607   : > { %v8478_v45 = vperm.slane %v8472_v61, %v10671_v37  ;;  %v8495_v12 = vrot.slane %v8482_v42, 4  ;;  %v16207_v15 = vsel %vm523_vm0, %v8482_v42, %v8497_v16  ;;  %v8500_v29 = vsel %vm523_vm0, %v8499_v8, %v7678_v5  ;;  %v19493_v16 = vld [vmem:[#allocation191_spill] sm:$0xff] }
 0x608   : > { %v8502_v22 = vsel %vm523_vm0, %v14727_v28, %v8501_v46  ;;  %19488 = vst [vmem:[#allocation47_spill] sm:$0xff] %v16207_v15  ;;  %v16210_v41 = vsel %vm523_vm0, %v8483_v32, %v8442_v57  ;;  %v19491_v28 = vld [vmem:[#allocation188_spill] sm:$0xff]  ;;  %v8513_v57 = vrot.slane %v14614_v25, 4  ;;  %v8506_v5 = vperm.slane %v8500_v29, %v10647_v13  ;;  %p10314_p13 = pneg %p10313_p9 }
 0x609   : > { %2457 = vxpose.xlu2.b32.cont [15/16] (narrow) %v2196_v44, 8  ;;  %v8491_v23 = vrot.slane %v8478_v45, 4  ;;  %v16214_v30 = vsel %vm523_vm0, %v8478_v45, %v8493_v47  ;;  %v16217_v43 = vsel %vm523_vm0, %v8495_v12, %v8458_v19  ;;  %v8510_v36 = vperm.slane %v8502_v22, %v10647_v13  ;;  %v19494_v45 = vld [vmem:[#allocation185_spill] sm:$0xff] }
 0x60a   : > { %19489 = vst [vmem:[#allocation43_spill] sm:$0xff] %v16214_v30  ;;  %v2307_v42 = vrot.slane %v19491_v28, 4  ;;  %v8549_v8 = vrot.slane %v8506_v5, 4  ;;  %v8546_v29 = vperm.slane %v14773_v3, %v10647_v13 }
 0x60b   : > { %19490 = vst [vmem:[#allocation44_spill] sm:$0xff] %v16217_v43  ;;  %7813 = vrot.lane.b32.xlu1 %v15990_v51, %s19371_s27  ;;  %v16224_v61 = vsel %vm523_vm0, %v8491_v23, %v8454_v6  ;;  %v8561_v44 = vrot.slane %v8510_v36, 4 }
 0x60c   : > { %19492 = vst [vmem:[#allocation58_spill] sm:$0xff] %v16224_v61  ;;  %v2308_v12 = vsel %vm523_vm0, %v2307_v42, %v19494_v45  ;;  %v8583_v45 = vrot.slane %v8546_v29, 4 }
 0x60d   : > { %v7687_v46 = vpop.permute.xlu1 %7686 }
 0x60e   : > { %2426 = vxpose.xlu0.b32.end [16/16] (narrow) %v19493_v16, 8  ;;  %v8511_v33 = vrot.slane %v7687_v46, 4  ;;  %v8514_v19 = vsel %vm523_vm0, %v7687_v46, %v8513_v57  ;;  %v8542_v46 = vperm.slane %v14769_v62, %v10647_v13 }
 0x60f   : > { %v8522_v32 = vperm.slane %v8514_v19, %v10647_v13 }
 0x610   : > { %v8512_v6 = vsel %vm523_vm0, %v8511_v33, %v14614_v25  ;;  %v8525_v25 = vrot.slane %v14652_v17, 4  ;;  %v19495_v33 = vld [vmem:[#allocation26_spill] sm:$0xff] }
 0x611   : > { %2458 = vxpose.xlu2.b32.end [16/16] (narrow) %v2308_v12, 8  ;;  %v8518_v22 = vperm.slane %v8512_v6, %v10647_v13  ;;  %v8559_v47 = vrot.slane %v8522_v32, 4  ;;  %v8562_v23 = vsel %vm523_vm0, %v8522_v32, %v8561_v44  ;;  %v8571_v6 = vrot.slane %v8542_v46, 4 }
 0x613   : > { %v8547_v28 = vrot.slane %v8518_v22, 4  ;;  %7822 = vrot.lane.b32.xlu1 %v15990_v51, %s19378_s28  ;;  %v8550_v57 = vsel %vm523_vm0, %v8518_v22, %v8549_v8  ;;  %v8560_v42 = vsel %vm523_vm0, %v8559_v47, %v8510_v36  ;;  %v8618_v8 = vperm.slane %v14803_v10, %v10647_v13  ;;  %v19496_v22 = vld [vmem:[#allocation21_spill] sm:$0xff] }
 0x614   : > { %v8566_v32 = vperm.slane %v8560_v42, %v10671_v37 }
 0x615   : > { %v7696_v16 = vpop.permute.xlu1 %7695  ;;  %v8548_v19 = vsel %vm523_vm0, %v8547_v28, %v8506_v5  ;;  %v8570_v5 = vperm.slane %v8562_v23, %v10671_v37 }
 0x616   : > { %2507 = vxpose.xlu0.b32.start [1/16] (narrow) %v19495_v33, 8  ;;  %v8523_v44 = vrot.slane %v7696_v16, 4  ;;  %v8526_v3 = vsel %vm523_vm0, %v7696_v16, %v8525_v25  ;;  %v8554_v36 = vperm.slane %v8548_v19, %v10671_v37  ;;  %v8558_v25 = vperm.slane %v8550_v57, %v10671_v37 }
 0x617   : > { %v8534_v12 = vperm.slane %v8526_v3, %v10647_v13  ;;  %v8623_v16 = vrot.slane %v14846_v27, 4  ;;  %v8605_v19 = vrot.slane %v8566_v32, 4  ;;  %v8609_v54 = vrot.slane %v8570_v5, 4 }
 0x618   : > { %v8524_v62 = vsel %vm523_vm0, %v8523_v44, %v14652_v17  ;;  %v8597_v44 = vrot.slane %v8554_v36, 4  ;;  %v8601_v43 = vrot.slane %v8558_v25, 4 }
 0x619   : > { %2539 = vxpose.xlu2.b32.start [1/16] (narrow) %v19496_v22, 8  ;;  %v8530_v47 = vperm.slane %v8524_v62, %v10647_v13  ;;  %v8584_v28 = vsel %vm523_vm0, %v8583_v45, %v8534_v12  ;;  %v8585_v42 = vrot.slane %v8534_v12, 4  ;;  %v8661_v62 = vrot.slane %v8618_v8, 4 }
 0x61a   : > { %v8590_v33 = vperm.slane %v8584_v28, %v10671_v37  ;;  %v19498_v28 = vld [vmem:[#allocation38_spill] sm:$0xff] }
 0x61b   : > { %v8573_v10 = vrot.slane %v8530_v47, 4  ;;  %7831 = vrot.lane.b32.xlu1 %v15990_v51, %s19388_s29  ;;  %v8572_v17 = vsel %vm523_vm0, %v8571_v6, %v8530_v47  ;;  %v8586_v23 = vsel %vm523_vm0, %v8546_v29, %v8585_v42  ;;  %s10315_s29 = scalar_lea.hbm %s20136_s4, 128 }
 0x61c   : > { %v8578_v3 = vperm.slane %v8572_v17, %v10671_v37  ;;  %v8603_v45 = vrot.slane %v8590_v33, 4  ;;  %v16269_v12 = vsel %vm523_vm0, %v8590_v33, %v8605_v19  ;;  %v8594_v57 = vperm.slane %v8586_v23, %v10671_v37  ;;  %p10317_p1 = scmp.lt.s32.totalorder %s10315_s29, %s10311_s22 }
 0x61d   : > { %19497 = vst [vmem:[#allocation57_spill] sm:$0xff] %v16269_v12  ;;  %v7705_v22 = vpop.permute.xlu1 %7704  ;;  %v8574_v15 = vsel %vm523_vm0, %v8542_v46, %v8573_v10 }
 0x61e   : > { %2508 = vxpose.xlu0.b32.cont [2/16] (narrow) %v19498_v28, 8  ;;  %v8624_v6 = vsel %vm523_vm0, %v8623_v16, %v7705_v22  ;;  %v8625_v47 = vrot.slane %v7705_v22, 4  ;;  %v8582_v29 = vperm.slane %v8574_v15, %v10671_v37  ;;  %v16277_v42 = vsel %vm523_vm0, %v8578_v3, %v8597_v44  ;;  %v19500_v28 = vld [vmem:[#allocation35_spill] sm:$0xff]  ;;  %p10318_p3 = por %p10317_p1, %p10316_p0 }
 0x61f   : > { %v8630_v33 = vperm.slane %v8624_v6, %v10647_v13  ;;  %v8595_v19 = vrot.slane %v8578_v3, 4  ;;  %v16281_v17 = vsel %vm523_vm0, %v8603_v45, %v8566_v32  ;;  %v8607_v23 = vrot.slane %v8594_v57, 4  ;;  %v19505_v6 = vld [vmem:[#allocation48_spill] sm:$0xff] }
 0x620   : > { %19499 = vst [vmem:[#allocation55_spill] sm:$0xff] %v16281_v17  ;;  %v8599_v46 = vrot.slane %v8582_v29, 4  ;;  %v16285_v10 = vsel %vm523_vm0, %v8582_v29, %v8601_v43  ;;  %v16288_v16 = vsel %vm523_vm0, %v8594_v57, %v8609_v54  ;;  %v8626_v32 = vsel %vm523_vm0, %v14846_v27, %v8625_v47  ;;  %p10319_p4 = pnand %p10318_p3, %p10314_p13 }
 0x621   : > { %2540 = vxpose.xlu2.b32.cont [2/16] (narrow) %v19500_v28, 8  ;;  %19501 = vst [vmem:[#allocation67_spill] sm:$0xff] %v16285_v10  ;;  %v8659_v15 = vrot.slane %v8630_v33, 4  ;;  %v8662_v44 = vsel %vm523_vm0, %v8630_v33, %v8661_v62  ;;  %v16292_v22 = vsel %vm523_vm0, %v8595_v19, %v8554_v36  ;;  %v16300_v45 = vsel %vm523_vm0, %v8607_v23, %v8570_v5  ;;  %v19504_v62 = vld [vmem:[#allocation46_spill] sm:$0xff] }
 0x622   : > { %19502 = vst [vmem:[#allocation70_spill] sm:$0xff] %v16288_v16  ;;  %v16297_v3 = vsel %vm523_vm0, %v8599_v46, %v8558_v25  ;;  %v8622_v43 = vperm.slane %v14814_v58, %v10647_v13  ;;  %v8634_v36 = vperm.slane %v8626_v32, %v10647_v13  ;;  %v8635_v25 = vrot.slane %v14880_v63, 4  ;;  %v19506_v46 = vld [vmem:[#allocation59_spill] sm:$0xff] }
 0x623   : > { %19503 = vst [vmem:[#allocation65_spill] sm:$0xff] %v16300_v45  ;;  %7840 = vrot.lane.b32.xlu1 %v15990_v51, %s19398_s30  ;;  %v8660_v54 = vsel %vm523_vm0, %v8659_v15, %v8618_v8  ;;  %v8649_v19 = vrot.slane %v14758_v38, 4 }
 0x624   : > { %v8673_v47 = vrot.slane %v8622_v43, 4  ;;  %v8671_v29 = vrot.slane %v8634_v36, 4 }
 0x625   : > { %v7714_v57 = vpop.permute.xlu1 %7713 }
 0x626   : > { %2509 = vxpose.xlu0.b32.cont [3/16] (narrow) %v19504_v62, 8  ;;  %v8637_v27 = vrot.slane %v7714_v57, 4  ;;  %v8636_v8 = vsel %vm523_vm0, %v8635_v25, %v7714_v57  ;;  %v8674_v58 = vsel %vm523_vm0, %v8634_v36, %v8673_v47  ;;  %v19507_v25 = vld [vmem:[#allocation54_spill] sm:$0xff] }
 0x627   : > { %v8642_v23 = vperm.slane %v8636_v8, %v10647_v13  ;;  %v8682_v57 = vperm.slane %v8674_v58, %v10671_v37 }
 0x628   : > { %v8638_v5 = vsel %vm523_vm0, %v14880_v63, %v8637_v27  ;;  %v8672_v63 = vsel %vm523_vm0, %v8671_v29, %v8622_v43 }
 0x629   : > { %2541 = vxpose.xlu2.b32.cont [3/16] (narrow) %v19505_v6, 8  ;;  %v8646_v33 = vperm.slane %v8638_v5, %v10647_v13  ;;  %v8670_v5 = vperm.slane %v8662_v44, %v10671_v37  ;;  %v8666_v6 = vperm.slane %v8660_v54, %v10671_v37  ;;  %v8678_v47 = vperm.slane %v8672_v63, %v10671_v37 }
 0x62a   : > { %v8685_v43 = vrot.slane %v8642_v23, 4  ;;  %v8742_v44 = vperm.slane %v14932_v34, %v10647_v13 }
 0x62b   : > { %7849 = vrot.lane.b32.xlu1 %v15990_v51, %s19404_s2  ;;  %v8697_v62 = vrot.slane %v8646_v33, 4  ;;  %v8709_v16 = vrot.slane %v8666_v6, 4  ;;  %v8717_v45 = vrot.slane %v8678_v47, 4 }
 0x62d   : > { %v7723_v28 = vpop.permute.xlu1 %7722 }
 0x62e   : > { %2510 = vxpose.xlu0.b32.cont [4/16] (narrow) %v19506_v46, 8  ;;  %v8647_v15 = vrot.slane %v7723_v28, 4  ;;  %v8650_v32 = vsel %vm523_vm0, %v7723_v28, %v8649_v19  ;;  %v8725_v19 = vrot.slane %v14795_v18, 4  ;;  %v8835_v28 = vrot.slane %v14923_v0, 4 }
 0x62f   : > { %v8658_v27 = vperm.slane %v8650_v32, %v10647_v13  ;;  %v8721_v46 = vrot.slane %v8682_v57, 4 }
 0x630   : > { %v8648_v36 = vsel %vm523_vm0, %v8647_v15, %v14758_v38 }
 0x631   : > { %2542 = vxpose.xlu2.b32.cont [4/16] (narrow) %v19507_v25, 8  ;;  %v8654_v29 = vperm.slane %v8648_v36, %v10647_v13  ;;  %v8695_v8 = vrot.slane %v8658_v27, 4  ;;  %v8698_v58 = vsel %vm523_vm0, %v8658_v27, %v8697_v62  ;;  %v8713_v62 = vrot.slane %v8670_v5, 4 }
 0x632   : > { %v8706_v38 = vperm.slane %v8698_v58, %v10671_v37  ;;  %v19509_v58 = vld [vmem:[#allocation71_spill] sm:$0xff] }
 0x633   : > { %v8683_v15 = vrot.slane %v8654_v29, 4  ;;  %7858 = vrot.lane.b32.xlu1 %v15990_v51, %s19410_s3  ;;  %v8686_v54 = vsel %vm523_vm0, %v8654_v29, %v8685_v43  ;;  %v8696_v63 = vsel %vm523_vm0, %v8695_v8, %v8646_v33 }
 0x634   : > { %v8694_v32 = vperm.slane %v8686_v54, %v10671_v37  ;;  %v8702_v27 = vperm.slane %v8696_v63, %v10671_v37  ;;  %v16345_v36 = vsel %vm523_vm0, %v8706_v38, %v8721_v46  ;;  %v8719_v26 = vrot.slane %v8706_v38, 4 }
 0x635   : > { %19508 = vst [vmem:[#allocation80_spill] sm:$0xff] %v16345_v36  ;;  %v7732_v25 = vpop.permute.xlu1 %7731  ;;  %v8684_v34 = vsel %vm523_vm0, %v8683_v15, %v8642_v23  ;;  %v19512_v15 = vld [vmem:[#allocation68_spill] sm:$0xff] }
 0x636   : > { %2511 = vxpose.xlu0.b32.cont [5/16] (narrow) %v19509_v58, 8  ;;  %v8723_v12 = vrot.slane %v7732_v25, 4  ;;  %v8726_v43 = vsel %vm523_vm0, %v7732_v25, %v8725_v19  ;;  %v8711_v33 = vrot.slane %v8694_v32, 4  ;;  %v8690_v29 = vperm.slane %v8684_v34, %v10671_v37  ;;  %v19515_v34 = vld [vmem:[#allocation504_spill] sm:$0xff] }
 0x637   : > { %v8734_v8 = vperm.slane %v8726_v43, %v10647_v13  ;;  %v16353_v54 = vsel %vm523_vm0, %v8694_v32, %v8713_v62  ;;  %v8715_v46 = vrot.slane %v8702_v27, 4  ;;  %v16356_v63 = vsel %vm523_vm0, %v8702_v27, %v8717_v45 }
 0x638   : > { %19510 = vst [vmem:[#allocation77_spill] sm:$0xff] %v16353_v54  ;;  %v8724_v23 = vsel %vm523_vm0, %v8723_v12, %v14795_v18  ;;  %v16362_v38 = vsel %vm523_vm0, %v8711_v33, %v8670_v5  ;;  %v16365_v19 = vsel %vm523_vm0, %v8690_v29, %v8709_v16  ;;  %v8707_v25 = vrot.slane %v8690_v29, 4 }
 0x639   : > { %19511 = vst [vmem:[#allocation76_spill] sm:$0xff] %v16356_v63  ;;  %2543 = vxpose.xlu2.b32.cont [5/16] (narrow) %v19512_v15, 8  ;;  %v8746_v32 = vperm.slane %v14942_v56, %v10647_v13  ;;  %v8771_v62 = vrot.slane %v8742_v44, 4  ;;  %v8730_v58 = vperm.slane %v8724_v23, %v10647_v13  ;;  %v16371_v45 = vsel %vm523_vm0, %v8715_v46, %v8678_v47 }
 0x63a   : > { %19513 = vst [vmem:[#allocation91_spill] sm:$0xff] %v16371_v45  ;;  %v8785_v27 = vrot.slane %v8734_v8, 4  ;;  %v16374_v18 = vsel %vm523_vm0, %v8707_v25, %v8666_v6  ;;  %v16377_v12 = vsel %vm523_vm0, %v8719_v26, %v8682_v57  ;;  %v8754_v16 = vperm.slane %v14970_v21, %v10647_v13  ;;  %v19516_v57 = vld [vmem:[#allocation79_spill] sm:$0xff] }
 0x63b   : > { %19514 = vst [vmem:[#allocation90_spill] sm:$0xff] %v16377_v12  ;;  %v8773_v5 = vrot.slane %v8730_v58, 4  ;;  %7867 = vrot.lane.b32.xlu1 %v15990_v51, %s19415_s11  ;;  %v8772_v56 = vsel %vm523_vm0, %v8771_v62, %v8730_v58  ;;  %v8758_v47 = vperm.slane %v14977_v52, %v10647_v13  ;;  %v8759_v43 = vrot.slane %v19515_v34, 4  ;;  %v19520_v12 = vld [vmem:[#allocation92_spill] sm:$0xff]  ;;  %v19521_v45 = vld [vmem:[#allocation87_spill] sm:$0xff] }
 0x63c   : > { %v8783_v33 = vrot.slane %v8746_v32, 4  ;;  %v8836_v6 = vsel %vm523_vm0, %v8835_v28, %v15990_v51  ;;  %v8786_v15 = vsel %vm523_vm0, %v8746_v32, %v8785_v27  ;;  %v8797_v25 = vrot.slane %v8754_v16, 4 }
 0x63d   : > { %v7741_v26 = vpop.permute.xlu1 %7740  ;;  %v8774_v21 = vsel %vm523_vm0, %v8742_v44, %v8773_v5  ;;  %v8778_v62 = vperm.slane %v8772_v56, %v10671_v37  ;;  %v8842_v28 = vperm.slane %v8836_v6, %v10647_v13  ;;  %v8809_v36 = vrot.slane %v8758_v47, 4  ;;  %v19517_v5 = vld [vmem:[#allocation81_spill] sm:$0xff] }
 0x63e   : > { %2512 = vxpose.xlu0.b32.cont [6/16] (narrow) %v19516_v57, 8  ;;  %v8760_v29 = vsel %vm523_vm0, %v8759_v43, %v7741_v26  ;;  %v8761_v46 = vrot.slane %v7741_v26, 4  ;;  %v8782_v23 = vperm.slane %v8774_v21, %v10671_v37  ;;  %v8784_v58 = vsel %vm523_vm0, %v8783_v33, %v8734_v8  ;;  %v19518_v57 = vld [vmem:[#allocation509_spill] sm:$0xff] }
 0x63f   : > { %v8766_v52 = vperm.slane %v8760_v29, %v10647_v13  ;;  %v8794_v27 = vperm.slane %v8786_v15, %v10671_v37  ;;  %v8847_v21 = vrot.slane %v19518_v57, 4  ;;  %v8790_v33 = vperm.slane %v8784_v58, %v10671_v37 }
 0x640   : > { %v8762_v44 = vsel %vm523_vm0, %v19515_v34, %v8761_v46  ;;  %v8825_v8 = vrot.slane %v8782_v23, 4  ;;  %v8821_v29 = vrot.slane %v8778_v62, 4  ;;  %v8885_v58 = vrot.slane %v8842_v28, 4 }
 0x641   : > { %2544 = vxpose.xlu2.b32.cont [6/16] (narrow) %v19517_v5, 8  ;;  %v8770_v43 = vperm.slane %v8762_v44, %v10647_v13  ;;  %v8795_v26 = vrot.slane %v8766_v52, 4  ;;  %v8798_v32 = vsel %vm523_vm0, %v8766_v52, %v8797_v25  ;;  %v8837_v5 = vrot.slane %v15990_v51, 4 }
 0x642   : > { %v8806_v56 = vperm.slane %v8798_v32, %v10671_v37 }
 0x643   : > { %v8807_v6 = vrot.slane %v8770_v43, 4  ;;  %7876 = vrot.lane.b32.xlu1 %v15990_v51, %s19419_s13  ;;  %v8796_v34 = vsel %vm523_vm0, %v8795_v26, %v8754_v16  ;;  %v8810_v46 = vsel %vm523_vm0, %v8770_v43, %v8809_v36  ;;  %v8833_v16 = vrot.slane %v8794_v27, 4 }
 0x644   : > { %v8823_v44 = vrot.slane %v8806_v56, 4  ;;  %v8802_v25 = vperm.slane %v8796_v34, %v10671_v37  ;;  %v16413_v15 = vsel %vm523_vm0, %v8806_v56, %v8825_v8  ;;  %v8818_v52 = vperm.slane %v8810_v46, %v10671_v37 }
 0x645   : > { %19519 = vst [vmem:[#allocation88_spill] sm:$0xff] %v16413_v15  ;;  %v7751_v32 = vpop.permute.xlu1 %7750  ;;  %v8808_v63 = vsel %vm523_vm0, %v8807_v6, %v8758_v47 }
 0x646   : > { %2513 = vxpose.xlu0.b32.cont [7/16] (narrow) %v19520_v12, 8  ;;  %v8848_v26 = vsel %vm523_vm0, %v8847_v21, %v7751_v32  ;;  %v8849_v36 = vrot.slane %v7751_v32, 4  ;;  %v16421_v43 = vsel %vm523_vm0, %v8823_v44, %v8782_v23  ;;  %v16424_v56 = vsel %vm523_vm0, %v8802_v25, %v8821_v29 }
 0x647   : > { %v8854_v8 = vperm.slane %v8848_v26, %v10647_v13  ;;  %v8819_v34 = vrot.slane %v8802_v25, 4  ;;  %v8814_v46 = vperm.slane %v8808_v63, %v10671_v37  ;;  %v8831_v15 = vrot.slane %v8818_v52, 4 }
 0x648   : > { %v8829_v12 = vrot.slane %v8790_v33, 4  ;;  %v16430_v47 = vsel %vm523_vm0, %v8818_v52, %v8833_v16  ;;  %v8838_v21 = vsel %vm523_vm0, %v14923_v0, %v8837_v5  ;;  %v8850_v44 = vsel %vm523_vm0, %v19518_v57, %v8849_v36  ;;  %v19527_v16 = vld [vmem:[#allocation378_spill] sm:$0xff] }
 0x649   : > { %2545 = vxpose.xlu2.b32.cont [7/16] (narrow) %v19521_v45, 8  ;;  %19522 = vst [vmem:[#allocation102_spill] sm:$0xff] %v16430_v47  ;;  %v8883_v23 = vrot.slane %v8854_v8, 4  ;;  %v8886_v6 = vsel %vm523_vm0, %v8854_v8, %v8885_v58  ;;  %v16436_v29 = vsel %vm523_vm0, %v8819_v34, %v8778_v62  ;;  %v8827_v63 = vrot.slane %v8814_v46, 4  ;;  %v19526_v58 = vld [vmem:[#allocation101_spill] sm:$0xff] }
 0x64a   : > { %v16441_v25 = vsel %vm523_vm0, %v8814_v46, %v8829_v12  ;;  %v16444_v45 = vsel %vm523_vm0, %v8831_v15, %v8794_v27  ;;  %v8846_v62 = vperm.slane %v8838_v21, %v10647_v13  ;;  %v8858_v5 = vperm.slane %v8850_v44, %v10647_v13  ;;  %v19528_v15 = vld [vmem:[#allocation103_spill] sm:$0xff]  ;;  %v19529_v46 = vld [vmem:[#allocation498_spill] sm:$0xff] }
 0x64b   : > { %19523 = vst [vmem:[#allocation98_spill] sm:$0xff] %v16441_v25  ;;  %7885 = vrot.lane.b32.xlu1 %v15990_v51, %s19423_s16  ;;  %v8884_v0 = vsel %vm523_vm0, %v8883_v23, %v8842_v28  ;;  %v16450_v52 = vsel %vm523_vm0, %v8827_v63, %v8790_v33  ;;  %v8859_v26 = vrot.slane %v19527_v16, 4  ;;  %v8873_v12 = vrot.slane %v19529_v46, 4  ;;  %v19530_v44 = vld [vmem:[#allocation114_spill] sm:$0xff] }
 0x64c   : > { %19524 = vst [vmem:[#allocation99_spill] sm:$0xff] %v16444_v45  ;;  %v8897_v36 = vrot.slane %v8846_v62, 4  ;;  %v8895_v28 = vrot.slane %v8858_v5, 4 }
 0x64d   : > { %19525 = vst [vmem:[#allocation113_spill] sm:$0xff] %v16450_v52  ;;  %v7760_v57 = vpop.permute.xlu1 %7759 }
 0x64e   : > { %2514 = vxpose.xlu0.b32.cont [8/16] (narrow) %v19526_v58, 8  ;;  %v8861_v32 = vrot.slane %v7760_v57, 4  ;;  %v8860_v33 = vsel %vm523_vm0, %v8859_v26, %v7760_v57  ;;  %v8898_v34 = vsel %vm523_vm0, %v8858_v5, %v8897_v36  ;;  %v8896_v63 = vsel %vm523_vm0, %v8895_v28, %v8846_v62 }
 0x64f   : > { %v8866_v21 = vperm.slane %v8860_v33, %v10647_v13  ;;  %v8906_v57 = vperm.slane %v8898_v34, %v10671_v37  ;;  %v8890_v36 = vperm.slane %v8884_v0, %v10671_v37  ;;  %v8902_v33 = vperm.slane %v8896_v63, %v10671_v37 }
 0x650   : > { %v8862_v27 = vsel %vm523_vm0, %v19527_v16, %v8861_v32 }
 0x651   : > { %2546 = vxpose.xlu2.b32.cont [8/16] (narrow) %v19528_v15, 8  ;;  %v8870_v8 = vperm.slane %v8862_v27, %v10647_v13  ;;  %v19531_v27 = vld [vmem:[#allocation109_spill] sm:$0xff]  ;;  %v8894_v15 = vperm.slane %v8886_v6, %v10671_v37  ;;  %v8909_v62 = vrot.slane %v8866_v21, 4  ;;  %v8945_v47 = vrot.slane %v8906_v57, 4 }
 0x652   : > { %v8933_v45 = vrot.slane %v8890_v36, 4  ;;  %v8941_v25 = vrot.slane %v8902_v33, 4 }
 0x653   : > { %7894 = vrot.lane.b32.xlu1 %v15990_v51, %s19427_s20  ;;  %v8921_v16 = vrot.slane %v8870_v8, 4 }
 0x655   : > { %v7769_v23 = vpop.permute.xlu1 %7768 }
 0x656   : > { %2515 = vxpose.xlu0.b32.cont [9/16] (narrow) %v19530_v44, 8  ;;  %v8871_v58 = vrot.slane %v7769_v23, 4  ;;  %v8874_v32 = vsel %vm523_vm0, %v7769_v23, %v8873_v12  ;;  %v19532_v23 = vld [vmem:[#allocation502_spill] sm:$0xff] }
 0x657   : > { %v8882_v26 = vperm.slane %v8874_v32, %v10647_v13  ;;  %v8949_v44 = vrot.slane %v19532_v23, 4 }
 0x658   : > { %v8872_v5 = vsel %vm523_vm0, %v8871_v58, %v19529_v46  ;;  %v8966_v46 = vperm.slane %v15146_v4, %v10647_v13 }
 0x659   : > { %2547 = vxpose.xlu2.b32.cont [9/16] (narrow) %v19531_v27, 8  ;;  %v8878_v28 = vperm.slane %v8872_v5, %v10647_v13  ;;  %v8919_v12 = vrot.slane %v8882_v26, 4  ;;  %v8922_v34 = vsel %vm523_vm0, %v8882_v26, %v8921_v16  ;;  %v8937_v5 = vrot.slane %v8894_v15, 4 }
 0x65a   : > { %v8930_v32 = vperm.slane %v8922_v34, %v10671_v37  ;;  %v19534_v34 = vld [vmem:[#allocation126_spill] sm:$0xff] }
 0x65b   : > { %v8907_v58 = vrot.slane %v8878_v28, 4  ;;  %7903 = vrot.lane.b32.xlu1 %v15990_v51, %s19432_s23  ;;  %v8910_v6 = vsel %vm523_vm0, %v8878_v28, %v8909_v62  ;;  %v8920_v0 = vsel %vm523_vm0, %v8919_v12, %v8870_v8 }
 0x65c   : > { %v8918_v63 = vperm.slane %v8910_v6, %v10671_v37  ;;  %v8926_v16 = vperm.slane %v8920_v0, %v10671_v37  ;;  %v16490_v26 = vsel %vm523_vm0, %v8930_v32, %v8945_v47  ;;  %v8943_v52 = vrot.slane %v8930_v32, 4 }
 0x65d   : > { %19533 = vst [vmem:[#allocation430_spill] sm:$0xff] %v16490_v26  ;;  %v7778_v27 = vpop.permute.xlu1 %7777  ;;  %v8908_v4 = vsel %vm523_vm0, %v8907_v58, %v8866_v21  ;;  %v19537_v58 = vld [vmem:[#allocation123_spill] sm:$0xff] }
 0x65e   : > { %2516 = vxpose.xlu0.b32.cont [10/16] (narrow) %v19534_v34, 8  ;;  %v8947_v30 = vrot.slane %v7778_v27, 4  ;;  %v8950_v62 = vsel %vm523_vm0, %v7778_v27, %v8949_v44  ;;  %v8935_v8 = vrot.slane %v8918_v63, 4  ;;  %v8914_v28 = vperm.slane %v8908_v4, %v10671_v37  ;;  %v19538_v34 = vld [vmem:[#allocation518_spill] sm:$0xff] }
 0x65f   : > { %v8958_v12 = vperm.slane %v8950_v62, %v10647_v13  ;;  %v16498_v6 = vsel %vm523_vm0, %v8918_v63, %v8937_v5  ;;  %v8939_v47 = vrot.slane %v8926_v16, 4  ;;  %v16501_v0 = vsel %vm523_vm0, %v8926_v16, %v8941_v25 }
 0x660   : > { %19535 = vst [vmem:[#allocation110_spill] sm:$0xff] %v16498_v6  ;;  %v8948_v21 = vsel %vm523_vm0, %v8947_v30, %v19532_v23  ;;  %v16507_v32 = vsel %vm523_vm0, %v8935_v8, %v8894_v15  ;;  %v16510_v44 = vsel %vm523_vm0, %v8914_v28, %v8933_v45  ;;  %v8931_v27 = vrot.slane %v8914_v28, 4  ;;  %v19540_v30 = vld [vmem:[#allocation522_spill] sm:$0xff] }
 0x661   : > { %19536 = vst [vmem:[#allocation122_spill] sm:$0xff] %v16501_v0  ;;  %2548 = vxpose.xlu2.b32.cont [10/16] (narrow) %v19537_v58, 8  ;;  %v8970_v63 = vperm.slane %v19538_v34, %v10647_v13  ;;  %v8995_v5 = vrot.slane %v8966_v46, 4  ;;  %v8954_v4 = vperm.slane %v8948_v21, %v10647_v13  ;;  %v16516_v25 = vsel %vm523_vm0, %v8939_v47, %v8902_v33  ;;  %v19542_v28 = vld [vmem:[#allocation526_spill] sm:$0xff] }
 0x662   : > { %19539 = vst [vmem:[#allocation112_spill] sm:$0xff] %v16516_v25  ;;  %v8978_v23 = vperm.slane %v19540_v30, %v10647_v13  ;;  %v16521_v16 = vsel %vm523_vm0, %v8931_v27, %v8890_v36  ;;  %v16524_v15 = vsel %vm523_vm0, %v8943_v52, %v8906_v57  ;;  %v9009_v62 = vrot.slane %v8958_v12, 4  ;;  %v19543_v47 = vld [vmem:[#allocation398_spill] sm:$0xff] }
 0x663   : > { %19541 = vst [vmem:[#allocation120_spill] sm:$0xff] %v16524_v15  ;;  %v8997_v45 = vrot.slane %v8954_v4, 4  ;;  %7912 = vrot.lane.b32.xlu1 %v15990_v51, %s19436_s19  ;;  %v8996_v8 = vsel %vm523_vm0, %v8995_v5, %v8954_v4  ;;  %v8983_v21 = vrot.slane %v19542_v28, 4  ;;  %v9007_v33 = vrot.slane %v8970_v63, 4  ;;  %v19544_v30 = vld [vmem:[#allocation134_spill] sm:$0xff]  ;;  %v19545_v15 = vld [vmem:[#allocation136_spill] sm:$0xff] }
 0x664   : > { %v8982_v58 = vperm.slane %v19543_v47, %v10647_v13  ;;  %v9021_v52 = vrot.slane %v8978_v23, 4  ;;  %v9002_v5 = vperm.slane %v8996_v8, %v10671_v37  ;;  %v9010_v47 = vsel %vm523_vm0, %v8970_v63, %v9009_v62  ;;  %v10264_v63 = vld [vmem:[%s10533_s24 + $0x38] sm:$0xff]  ;;  %s20112_s24 = sld [smem:[#allocation17_spill]] }
 0x665   : > { %v7787_v34 = vpop.permute.xlu1 %7786  ;;  %v8998_v36 = vsel %vm523_vm0, %v8966_v46, %v8997_v45  ;;  %v9008_v4 = vsel %vm523_vm0, %v9007_v33, %v8958_v12  ;;  %v9018_v12 = vperm.slane %v9010_v47, %v10671_v37 }
 0x666   : > { %2517 = vxpose.xlu0.b32.cont [11/16] (narrow) %v19544_v30, 8  ;;  %v8984_v57 = vsel %vm523_vm0, %v8983_v21, %v7787_v34  ;;  %v8985_v27 = vrot.slane %v7787_v34, 4  ;;  %v9006_v26 = vperm.slane %v8998_v36, %v10671_v37  ;;  %v9033_v46 = vrot.slane %v8982_v58, 4 }
 0x667   : > { %v8990_v51 = vperm.slane %v8984_v57, %v10647_v13  ;;  %v9014_v8 = vperm.slane %v9008_v4, %v10671_v37 }
 0x668   : > { %v8986_v30 = vsel %vm523_vm0, %v19542_v28, %v8985_v27  ;;  %v9049_v57 = vrot.slane %v9006_v26, 4 }
 0x669   : > { %2549 = vxpose.xlu2.b32.cont [11/16] (narrow) %v19545_v15, 8  ;;  %v8994_v45 = vperm.slane %v8986_v30, %v10647_v13  ;;  %v9019_v21 = vrot.slane %v8990_v51, 4  ;;  %v9022_v34 = vsel %vm523_vm0, %v8990_v51, %v9021_v52  ;;  %v9045_v15 = vrot.slane %v9002_v5, 4 }
 0x66a   : > { %v9030_v36 = vperm.slane %v9022_v34, %v10671_v37  ;;  %v19547_v34 = vld [vmem:[#allocation147_spill] sm:$0xff]  ;;  %s20115_s6 = sshll.u32 %s20112_s24, 6  ;;  %s10030_s25 = scalar_lea.sflag [#allocation4], %s20112_s24 }
 0x66b   : > { %v9031_v33 = vrot.slane %v8994_v45, 4  ;;  %7921 = vrot.lane.b32.xlu1 %v10264_v63, %s19440_s12  ;;  %v9020_v62 = vsel %vm523_vm0, %v9019_v21, %v8978_v23  ;;  %v9034_v28 = vsel %vm523_vm0, %v8994_v45, %v9033_v46  ;;  %v9057_v46 = vrot.slane %v9018_v12, 4  ;;  %s17777_s7 = scalar_lea.vmem [#allocation5], %s20115_s6 }
 0x66c   : > { %v9047_v27 = vrot.slane %v9030_v36, 4  ;;  %v9026_v30 = vperm.slane %v9020_v62, %v10671_v37  ;;  %v16554_v52 = vsel %vm523_vm0, %v9030_v36, %v9049_v57  ;;  %v9042_v51 = vperm.slane %v9034_v28, %v10671_v37  ;;  %v19548_v57 = vld [vmem:[#allocation387_spill] sm:$0xff]  ;;  %s10043_s0 = sshll.u32 %s17777_s7, 4  ;;  %s10044_s0 = int_to_ptr.vmem [resolvable:$true] %s10043_s0 }
 0x66d   : > { %19546 = vst [vmem:[#allocation125_spill] sm:$0xff] %v16554_v52  ;;  %v7796_v4 = vpop.permute.xlu1 %7795  ;;  %v9032_v47 = vsel %vm523_vm0, %v9031_v33, %v8982_v58  ;;  %v9059_v62 = vrot.slane %v19548_v57, 4  ;;  %v9053_v58 = vrot.slane %v9014_v8, 4 }
 0x66e   : > { %2518 = vxpose.xlu0.b32.cont [12/16] (narrow) %v19547_v34, 8  ;;  %v9061_v0 = vrot.slane %v7796_v4, 4  ;;  %v16560_v25 = vsel %vm523_vm0, %v9047_v27, %v9006_v26  ;;  %v16563_v23 = vsel %vm523_vm0, %v9026_v30, %v9045_v15  ;;  %v9043_v45 = vrot.slane %v9026_v30, 4  ;;  %v19549_v34 = vld [vmem:[#allocation142_spill] sm:$0xff] }
 0x66f   : > { %v9038_v21 = vperm.slane %v9032_v47, %v10671_v37  ;;  %v9055_v36 = vrot.slane %v9042_v51, 4  ;;  %v16571_v33 = vsel %vm523_vm0, %v9042_v51, %v9057_v46  ;;  %v9060_v27 = vsel %vm523_vm0, %v9059_v62, %v7796_v4  ;;  %v19554_v51 = vld [vmem:[#allocation396_spill] sm:$0xff] }
 0x670   : > { %v9062_v28 = vsel %vm523_vm0, %v19548_v57, %v9061_v0  ;;  %19550 = vst [vmem:[#allocation135_spill] sm:$0xff] %v16571_v33  ;;  %v16574_v26 = vsel %vm523_vm0, %v9043_v45, %v9002_v5  ;;  %v9073_v46 = vrot.slane %v19554_v51, 4  ;;  %v9066_v5 = vperm.slane %v9060_v27, %v10647_v13  ;;  %v19557_v27 = vld [vmem:[#allocation534_spill] sm:$0xff] }
 0x671   : > { %2550 = vxpose.xlu2.b32.cont [12/16] (narrow) %v19549_v34, 8  ;;  %v9051_v15 = vrot.slane %v9038_v21, 4  ;;  %v16578_v30 = vsel %vm523_vm0, %v9038_v21, %v9053_v58  ;;  %v16581_v47 = vsel %vm523_vm0, %v9055_v36, %v9018_v12  ;;  %v9070_v0 = vperm.slane %v9062_v28, %v10647_v13  ;;  %v19555_v34 = vld [vmem:[#allocation159_spill] sm:$0xff] }
 0x672   : > { %19551 = vst [vmem:[#allocation131_spill] sm:$0xff] %v16578_v30  ;;  %v19560_v30 = vld [vmem:[#allocation167_spill] sm:$0xff] }
 0x673   : > { %19552 = vst [vmem:[#allocation132_spill] sm:$0xff] %v16581_v47  ;;  %7930 = vrot.lane.b32.xlu1 %v10264_v63, %s19444_s9  ;;  %v16586_v57 = vsel %vm523_vm0, %v9051_v15, %v9014_v8  ;;  %v9121_v62 = vrot.slane %v9070_v0, 4  ;;  %v19556_v63 = vld [vmem:[#allocation156_spill] sm:$0xff]  ;;  %v9109_v8 = vrot.slane %v9066_v5, 4 }
 0x674   : > { %19553 = vst [vmem:[#allocation146_spill] sm:$0xff] %v16586_v57 }
 0x675   : > { %v7805_v45 = vpop.permute.xlu1 %7804 }
 0x676   : > { %2519 = vxpose.xlu0.b32.cont [13/16] (narrow) %v19555_v34, 8  ;;  %v9071_v4 = vrot.slane %v7805_v45, 4  ;;  %v9074_v21 = vsel %vm523_vm0, %v7805_v45, %v9073_v46  ;;  %v9106_v34 = vperm.slane %v19557_v27, %v10647_v13 }
 0x677   : > { %v9082_v12 = vperm.slane %v9074_v21, %v10647_v13  ;;  %v19558_v21 = vld [vmem:[#allocation520_spill] sm:$0xff] }
 0x678   : > { %v9072_v36 = vsel %vm523_vm0, %v9071_v4, %v19554_v51  ;;  %v9085_v47 = vrot.slane %v19558_v21, 4  ;;  %v19559_v51 = vld [vmem:[#allocation402_spill] sm:$0xff]  ;;  %v9143_v27 = vrot.slane %v9106_v34, 4 }
 0x679   : > { %2551 = vxpose.xlu2.b32.cont [13/16] (narrow) %v19556_v63, 8  ;;  %v9078_v28 = vperm.slane %v9072_v36, %v10647_v13  ;;  %v9119_v58 = vrot.slane %v9082_v12, 4  ;;  %v9122_v15 = vsel %vm523_vm0, %v9082_v12, %v9121_v62  ;;  %v9102_v4 = vperm.slane %v19559_v51, %v10647_v13 }
 0x67b   : > { %v9107_v33 = vrot.slane %v9078_v28, 4  ;;  %v9110_v46 = vsel %vm523_vm0, %v9078_v28, %v9109_v8  ;;  %v9120_v45 = vsel %vm523_vm0, %v9119_v58, %v9070_v0  ;;  %v9131_v28 = vrot.slane %v9102_v4, 4  ;;  %v19561_v58 = vld [vmem:[#allocation537_spill] sm:$0xff] }
 0x67c   : > { %v9126_v12 = vperm.slane %v9120_v45, %v10671_v37  ;;  %v9178_v52 = vperm.slane %v19561_v58, %v10647_v13 }
 0x67d   : > { %v7814_v63 = vpop.permute.xlu1 %7813  ;;  %v9108_v36 = vsel %vm523_vm0, %v9107_v33, %v9066_v5  ;;  %v9130_v33 = vperm.slane %v9122_v15, %v10671_v37 }
 0x67e   : > { %2520 = vxpose.xlu0.b32.cont [14/16] (narrow) %v19560_v30, 8  ;;  %v9083_v57 = vrot.slane %v7814_v63, 4  ;;  %v9086_v62 = vsel %vm523_vm0, %v7814_v63, %v9085_v47  ;;  %v9114_v0 = vperm.slane %v9108_v36, %v10671_v37  ;;  %v19562_v30 = vld [vmem:[#allocation169_spill] sm:$0xff]  ;;  %v9118_v63 = vperm.slane %v9110_v46, %v10671_v37 }
 0x67f   : > { %v9094_v8 = vperm.slane %v9086_v62, %v10647_v13  ;;  %v19563_v62 = vld [vmem:[#allocation541_spill] sm:$0xff]  ;;  %v9165_v54 = vrot.slane %v9126_v12, 4  ;;  %v9221_v46 = vrot.slane %v9178_v52, 4  ;;  %v9169_v61 = vrot.slane %v9130_v33, 4 }
 0x680   : > { %v9084_v51 = vsel %vm523_vm0, %v9083_v57, %v19558_v21  ;;  %v9183_v36 = vrot.slane %v19563_v62, 4  ;;  %v9157_v57 = vrot.slane %v9114_v0, 4  ;;  %v9161_v10 = vrot.slane %v9118_v63, 4 }
 0x681   : > { %2552 = vxpose.xlu2.b32.cont [14/16] (narrow) %v19562_v30, 8  ;;  %v9090_v47 = vperm.slane %v9084_v51, %v10647_v13  ;;  %v9144_v5 = vsel %vm523_vm0, %v9143_v27, %v9094_v8  ;;  %v9145_v45 = vrot.slane %v9094_v8, 4 }
 0x682   : > { %v9150_v6 = vperm.slane %v9144_v5, %v10671_v37 }
 0x683   : > { %v9133_v58 = vrot.slane %v9090_v47, 4  ;;  %v9132_v17 = vsel %vm523_vm0, %v9131_v28, %v9090_v47  ;;  %v9146_v21 = vsel %vm523_vm0, %v9106_v34, %v9145_v45 }
 0x684   : > { %v9138_v15 = vperm.slane %v9132_v17, %v10671_v37  ;;  %v9163_v30 = vrot.slane %v9150_v6, 4  ;;  %v16626_v51 = vsel %vm523_vm0, %v9150_v6, %v9165_v54  ;;  %v9154_v27 = vperm.slane %v9146_v21, %v10671_v37 }
 0x685   : > { %19564 = vst [vmem:[#allocation155_spill] sm:$0xff] %v16626_v51  ;;  %v7823_v8 = vpop.permute.xlu1 %7822  ;;  %v9134_v5 = vsel %vm523_vm0, %v9102_v4, %v9133_v58 }
 0x686   : > { %2521 = vxpose.xlu0.b32.cont [15/16] (narrow) %v19565_v9, 8  ;;  %v9184_v28 = vsel %vm523_vm0, %v9183_v36, %v7823_v8  ;;  %v9185_v47 = vrot.slane %v7823_v8, 4  ;;  %v9142_v34 = vperm.slane %v9134_v5, %v10671_v37  ;;  %v16634_v17 = vsel %vm523_vm0, %v9138_v15, %v9157_v57  ;;  %v19567_v9 = vld [vmem:[#allocation176_spill] sm:$0xff] }
 0x687   : > { %v9190_v54 = vperm.slane %v9184_v28, %v10647_v13  ;;  %v9155_v6 = vrot.slane %v9138_v15, 4  ;;  %v16638_v45 = vsel %vm523_vm0, %v9163_v30, %v9126_v12  ;;  %v9167_v21 = vrot.slane %v9154_v27, 4 }
 0x688   : > { %19566 = vst [vmem:[#allocation145_spill] sm:$0xff] %v16638_v45  ;;  %v9159_v4 = vrot.slane %v9142_v34, 4  ;;  %v16642_v58 = vsel %vm523_vm0, %v9142_v34, %v9161_v10  ;;  %v16645_v36 = vsel %vm523_vm0, %v9154_v27, %v9169_v61  ;;  %v9186_v12 = vsel %vm523_vm0, %v19563_v62, %v9185_v47  ;;  %v19572_v61 = vld [vmem:[#allocation406_spill] sm:$0xff]  ;;  %v19575_v47 = vld [vmem:[#allocation189_spill] sm:$0xff] }
 0x689   : > { %2553 = vxpose.xlu2.b32.cont [15/16] (narrow) %v19567_v9, 8  ;;  %19568 = vst [vmem:[#allocation143_spill] sm:$0xff] %v16642_v58  ;;  %v9219_v8 = vrot.slane %v9190_v54, 4  ;;  %v9222_v57 = vsel %vm523_vm0, %v9190_v54, %v9221_v46  ;;  %v16649_v5 = vsel %vm523_vm0, %v9155_v6, %v9114_v0  ;;  %v16657_v30 = vsel %vm523_vm0, %v9167_v21, %v9130_v33  ;;  %v19573_v0 = vld [vmem:[#allocation192_spill] sm:$0xff]  ;;  %v19574_v54 = vld [vmem:[#allocation403_spill] sm:$0xff]  ;;  %v19581_v45 = vld [vmem:[#allocation214_spill] sm:$0xff] }
 0x68a   : > { %19569 = vst [vmem:[#allocation153_spill] sm:$0xff] %v16645_v36  ;;  %v16654_v15 = vsel %vm523_vm0, %v9159_v4, %v9118_v63  ;;  %v9182_v27 = vperm.slane %v19572_v61, %v10647_v13  ;;  %v9194_v46 = vperm.slane %v9186_v12, %v10647_v13  ;;  %v9195_v62 = vrot.slane %v19574_v54, 4  ;;  %v19576_v33 = vld [vmem:[#allocation200_spill] sm:$0xff] }
 0x68b   : > { %19570 = vst [vmem:[#allocation168_spill] sm:$0xff] %v16649_v5  ;;  %v16660_v10 = vsel %vm523_vm0, %v9219_v8, %v9178_v52  ;;  %v3091_v6 = vrot.slane %v19576_v33, 4  ;;  %v19577_v8 = vld [vmem:[#allocation197_spill] sm:$0xff] }
 0x68c   : > { %19571 = vst [vmem:[#allocation158_spill] sm:$0xff] %v16657_v30  ;;  %v9233_v52 = vrot.slane %v9182_v27, 4  ;;  %v9231_v21 = vrot.slane %v9194_v46, 4  ;;  %v3095_v12 = vrot.slane %v19577_v8, 4  ;;  %v19579_v30 = vld [vmem:[#allocation196_spill] sm:$0xff] }
 0x68d   : > { %v7832_v28 = vpop.permute.xlu1 %7831  ;;  %v3092_v51 = vsel %vm523_vm0, %v3091_v6, %v19579_v30  ;;  %v3203_v30 = vrot.slane %v19581_v45, 4 }
 0x68e   : > { %2522 = vxpose.xlu0.b32.end [16/16] (narrow) %v19573_v0, 8  ;;  %v9197_v34 = vrot.slane %v7832_v28, 4  ;;  %v9196_v9 = vsel %vm523_vm0, %v9195_v62, %v7832_v28  ;;  %v9234_v61 = vsel %vm523_vm0, %v9194_v46, %v9233_v52  ;;  %v19578_v0 = vld [vmem:[#allocation532_spill] sm:$0xff]  ;;  %v19580_v52 = vld [vmem:[#allocation194_spill] sm:$0xff] }
 0x68f   : > { %v9209_v36 = vrot.slane %v19578_v0, 4  ;;  %v9242_v62 = vperm.slane %v9234_v61, %v10671_v37  ;;  %v3096_v8 = vsel %vm523_vm0, %v3095_v12, %v19580_v52  ;;  %v19584_v52 = vld [vmem:[#allocation211_spill] sm:$0xff] }
 0x690   : > { %v9198_v63 = vsel %vm523_vm0, %v19574_v54, %v9197_v34  ;;  %v16679_v34 = vperm.slane %v9196_v9, %v10647_v13 }
 0x691   : > { %2554 = vxpose.xlu2.b32.end [16/16] (narrow) %v19575_v47, 8  ;;  %v9206_v4 = vperm.slane %v9198_v63, %v10647_v13  ;;  %v9232_v47 = vsel %vm523_vm0, %v9231_v21, %v9182_v27  ;;  %v16692_v27 = vperm.slane %v9222_v57, %v10671_v37 }
 0x692   : > { %v9245_v21 = vrot.slane %v16679_v34, 4 }
 0x693   : > { %v9257_v63 = vrot.slane %v9206_v4, 4 }
 0x695   : > { %v7841_v54 = vpop.permute.xlu1 %7840 }
 0x696   : > { %4787 = vxpose.xlu0.b32.start [1/16] (narrow) %v3092_v51, 8  ;;  %v9207_v33 = vrot.slane %v7841_v54, 4  ;;  %v9210_v28 = vsel %vm523_vm0, %v7841_v54, %v9209_v36  ;;  %v19582_v51 = vld [vmem:[#allocation210_spill] sm:$0xff]  ;;  %v9238_v36 = vperm.slane %v9232_v47, %v10671_v37 }
 0x697   : > { %v9218_v46 = vperm.slane %v9210_v28, %v10647_v13  ;;  %v3207_v9 = vrot.slane %v19582_v51, 4  ;;  %v9281_v28 = vrot.slane %v9242_v62, 4  ;;  %v9295_v51 = vrot.slane %v15358_v24, 4 }
 0x698   : > { %v9208_v6 = vsel %vm523_vm0, %v9207_v33, %v19578_v0  ;;  %v19583_v0 = vld [vmem:[#allocation404_spill] sm:$0xff] }
 0x699   : > { %4851 = vxpose.xlu2.b32.start [1/16] (narrow) %v3096_v8, 8  ;;  %v16697_v61 = vperm.slane %v9208_v6, %v10647_v13  ;;  %v9255_v54 = vrot.slane %v9218_v46, 4  ;;  %v9258_v12 = vsel %vm523_vm0, %v9218_v46, %v9257_v63  ;;  %v9285_v33 = vrot.slane %v19583_v0, 4 }
 0x69a   : > { %v9266_v45 = vperm.slane %v9258_v12, %v10671_v37  ;;  %v3204_v8 = vsel %vm523_vm0, %v3203_v30, %v19584_v52  ;;  %v9307_v12 = vrot.slane %v15404_v7, 4  ;;  %v19586_v30 = vld [vmem:[#allocation209_spill] sm:$0xff]  ;;  %v9296_v24 = vsel %vm523_vm0, %v9295_v51, %v15438_v39  ;;  %v19589_v51 = vld [vmem:[#allocation226_spill] sm:$0xff] }
 0x69b   : > { %v9246_v57 = vsel %vm523_vm0, %v16697_v61, %v9245_v21  ;;  %v9256_v47 = vsel %vm523_vm0, %v9255_v54, %v9206_v4  ;;  %v3208_v52 = vsel %vm523_vm0, %v3207_v9, %v19586_v30  ;;  %v9273_v21 = vrot.slane %v16692_v27, 4 }
 0x69c   : > { %v16709_v6 = vperm.slane %v9246_v57, %v10671_v37  ;;  %v9262_v63 = vperm.slane %v9256_v47, %v10671_v37  ;;  %v16713_v46 = vsel %vm523_vm0, %v9266_v45, %v9281_v28  ;;  %v9277_v4 = vrot.slane %v9238_v36, 4 }
 0x69d   : > { %19585 = vst [vmem:[#allocation164_spill] sm:$0xff] %v16713_v46  ;;  %v7850_v58 = vpop.permute.xlu1 %7849  ;;  %v9279_v47 = vrot.slane %v9266_v45, 4  ;;  %v9308_v9 = vsel %vm523_vm0, %v9307_v12, %v15477_v1  ;;  %v16742_v30 = vperm.slane %v9296_v24, %v10647_v13  ;;  %v19593_v1 = vld [vmem:[#allocation19_spill] sm:$0xff] }
 0x69e   : > { %4788 = vxpose.xlu0.b32.cont [2/16] (narrow) %v3204_v8, 8  ;;  %v9283_v54 = vrot.slane %v7850_v58, 4  ;;  %v9286_v57 = vsel %vm523_vm0, %v7850_v58, %v9285_v33  ;;  %v16725_v7 = vsel %vm523_vm0, %v16709_v6, %v9273_v21  ;;  %v9275_v8 = vrot.slane %v9262_v63, 4 }
 0x69f   : > { %v9294_v28 = vperm.slane %v9286_v57, %v10647_v13  ;;  %19587 = vst [vmem:[#allocation165_spill] sm:$0xff] %v16725_v7  ;;  %v16728_v46 = vsel %vm523_vm0, %v9262_v63, %v9277_v4  ;;  %v3315_v58 = vrot.slane %v19589_v51, 4  ;;  %v19591_v63 = vld [vmem:[#allocation221_spill] sm:$0xff]  ;;  %v16746_v4 = vsel %vm523_vm0, %v9279_v47, %v9242_v62  ;;  %v19595_v57 = vld [vmem:[#allocation419_spill] sm:$0xff] }
 0x6a0   : > { %19588 = vst [vmem:[#allocation179_spill] sm:$0xff] %v16728_v46  ;;  %v9284_v39 = vsel %vm523_vm0, %v9283_v54, %v19583_v0  ;;  %v16739_v33 = vsel %vm523_vm0, %v9275_v8, %v9238_v36  ;;  %v3319_v21 = vrot.slane %v19591_v63, 4  ;;  %v9306_v0 = vperm.slane %v19593_v1, %v10647_v13  ;;  %v19596_v8 = vld [vmem:[#allocation223_spill] sm:$0xff] }
 0x6a1   : > { %4852 = vxpose.xlu2.b32.cont [2/16] (narrow) %v3208_v52, 8  ;;  %v16736_v45 = vperm.slane %v9284_v39, %v10647_v13  ;;  %19590 = vst [vmem:[#allocation178_spill] sm:$0xff] %v16739_v33  ;;  %v16751_v12 = vperm.slane %v9308_v9, %v10647_v13  ;;  %v9345_v54 = vrot.slane %v9294_v28, 4  ;;  %v9319_v36 = vrot.slane %v19595_v57, 4  ;;  %v19597_v39 = vld [vmem:[#allocation29_spill] sm:$0xff]  ;;  %v19598_v1 = vld [vmem:[#allocation219_spill] sm:$0xff] }
 0x6a2   : > { %19592 = vst [vmem:[#allocation175_spill] sm:$0xff] %v16746_v4  ;;  %v3316_v24 = vsel %vm523_vm0, %v3315_v58, %v19596_v8  ;;  %v9318_v51 = vperm.slane %v19597_v39, %v10647_v13  ;;  %v3320_v4 = vsel %vm523_vm0, %v3319_v21, %v19598_v1  ;;  %v9343_v33 = vrot.slane %v9306_v0, 4  ;;  %v19600_v39 = vld [vmem:[#allocation27_spill] sm:$0xff] }
 0x6a3   : > { %19594 = vst [vmem:[#allocation188_spill] sm:$0xff] %v16751_v12  ;;  %v9333_v52 = vrot.slane %v16736_v45, 4  ;;  %v9357_v58 = vrot.slane %v16751_v12, 4 }
 0x6a4   : > { %v9369_v21 = vrot.slane %v9318_v51, 4  ;;  %v9344_v7 = vsel %vm523_vm0, %v9343_v33, %v9294_v28 }
 0x6a5   : > { %v7859_v63 = vpop.permute.xlu1 %7858  ;;  %v9334_v62 = vsel %vm523_vm0, %v16742_v30, %v9333_v52  ;;  %v9350_v28 = vperm.slane %v9344_v7, %v10671_v37  ;;  %v19609_v7 = vld [vmem:[#allocation249_spill] sm:$0xff] }
 0x6a6   : > { %4789 = vxpose.xlu0.b32.cont [3/16] (narrow) %v3316_v24, 8  ;;  %v9320_v47 = vsel %vm523_vm0, %v9319_v36, %v7859_v63  ;;  %v9321_v9 = vrot.slane %v7859_v63, 4  ;;  %v16765_v46 = vperm.slane %v9334_v62, %v10671_v37  ;;  %v9346_v24 = vsel %vm523_vm0, %v9306_v0, %v9345_v54  ;;  %v19601_v36 = vld [vmem:[#allocation234_spill] sm:$0xff] }
 0x6a7   : > { %v16769_v8 = vperm.slane %v9320_v47, %v10647_v13  ;;  %v3427_v63 = vrot.slane %v19601_v36, 4  ;;  %v9354_v54 = vperm.slane %v9346_v24, %v10671_v37  ;;  %v19604_v36 = vld [vmem:[#allocation232_spill] sm:$0xff]  ;;  %v9389_v35 = vrot.slane %v9350_v28, 4 }
 0x6a8   : > { %19599 = vst [vmem:[#allocation191_spill] sm:$0xff] %v16765_v46  ;;  %v9322_v52 = vsel %vm523_vm0, %v19595_v57, %v9321_v9  ;;  %2347 = vxpose.xlu1.b32.start [1/16] (narrow) %v19600_v39, 8  ;;  %v9385_v0 = vrot.slane %v16765_v46, 4  ;;  %v19603_v9 = vld [vmem:[#allocation233_spill] sm:$0xff] }
 0x6a9   : > { %4853 = vxpose.xlu2.b32.cont [3/16] (narrow) %v3320_v4, 8  ;;  %v9330_v62 = vperm.slane %v9322_v52, %v10647_v13  ;;  %v9358_v1 = vsel %vm523_vm0, %v16769_v8, %v9357_v58  ;;  %v3431_v4 = vrot.slane %v19603_v9, 4  ;;  %v3428_v52 = vsel %vm523_vm0, %v3427_v63, %v19604_v36  ;;  %v19606_v9 = vld [vmem:[#allocation230_spill] sm:$0xff]  ;;  %v19607_v36 = vld [vmem:[#allocation412_spill] sm:$0xff] }
 0x6aa   : > { %v16781_v47 = vperm.slane %v9358_v1, %v10671_v37  ;;  %v9393_v60 = vrot.slane %v9354_v54, 4  ;;  %v9395_v59 = vrot.slane %v19607_v36, 4 }
 0x6ab   : > { %v9367_v57 = vrot.slane %v9330_v62, 4  ;;  %v9370_v39 = vsel %vm523_vm0, %v9330_v62, %v9369_v21  ;;  %v3432_v21 = vsel %vm523_vm0, %v3431_v4, %v19606_v9  ;;  %v19613_v9 = vld [vmem:[#allocation246_spill] sm:$0xff] }
 0x6ac   : > { %19602 = vst [vmem:[#allocation185_spill] sm:$0xff] %v16781_v47  ;;  %v16791_v58 = vsel %vm523_vm0, %v16781_v47, %v9385_v0  ;;  %v9378_v33 = vperm.slane %v9370_v39, %v10671_v37  ;;  %v3539_v39 = vrot.slane %v19609_v7, 4 }
 0x6ad   : > { %19605 = vst [vmem:[#allocation26_spill] sm:$0xff] %v16791_v58  ;;  %v7868_v1 = vpop.permute.xlu1 %7867  ;;  %v9368_v24 = vsel %vm523_vm0, %v9367_v57, %v9318_v51  ;;  %v19608_v58 = vld [vmem:[#allocation36_spill] sm:$0xff] }
 0x6ae   : > { %4790 = vxpose.xlu0.b32.cont [4/16] (narrow) %v3428_v52, 8  ;;  %v9397_v11 = vrot.slane %v7868_v1, 4  ;;  %v9374_v62 = vperm.slane %v9368_v24, %v10671_v37  ;;  %v9391_v63 = vrot.slane %v9378_v33, 4  ;;  %v16804_v52 = vsel %vm523_vm0, %v9378_v33, %v9393_v60  ;;  %v19616_v60 = vld [vmem:[#allocation247_spill] sm:$0xff] }
 0x6af   : > { %19610 = vst [vmem:[#allocation21_spill] sm:$0xff] %v16804_v52  ;;  %v3540_v33 = vsel %vm523_vm0, %v3539_v39, %v19616_v60  ;;  %v19619_v39 = vld [vmem:[#allocation258_spill] sm:$0xff] }
 0x6b0   : > { %v9398_v0 = vsel %vm523_vm0, %v19607_v36, %v9397_v11  ;;  %2348 = vxpose.xlu1.b32.cont [2/16] (narrow) %v19608_v58, 8  ;;  %v9387_v51 = vrot.slane %v9374_v62, 4  ;;  %v16807_v57 = vsel %vm523_vm0, %v9374_v62, %v9389_v35  ;;  %v16810_v4 = vsel %vm523_vm0, %v9391_v63, %v9354_v54  ;;  %v19618_v36 = vld [vmem:[#allocation49_spill] sm:$0xff] }
 0x6b1   : > { %4854 = vxpose.xlu2.b32.cont [4/16] (narrow) %v3432_v21, 8  ;;  %19611 = vst [vmem:[#allocation38_spill] sm:$0xff] %v16807_v57  ;;  %v9406_v24 = vperm.slane %v9398_v0, %v10647_v13  ;;  %v3543_v11 = vrot.slane %v19613_v9, 4  ;;  %v19615_v21 = vld [vmem:[#allocation18_spill] sm:$0xff]  ;;  %v9396_v35 = vsel %vm523_vm0, %v9395_v59, %v7868_v1  ;;  %v19617_v9 = vld [vmem:[#allocation244_spill] sm:$0xff]  ;;  %v3651_v60 = vrot.slane %v19619_v39, 4 }
 0x6b2   : > { %19612 = vst [vmem:[#allocation35_spill] sm:$0xff] %v16810_v4  ;;  %v16815_v58 = vsel %vm523_vm0, %v9387_v51, %v9350_v28  ;;  %v9409_v7 = vrot.slane %v19615_v21, 4 }
 0x6b3   : > { %19614 = vst [vmem:[#allocation46_spill] sm:$0xff] %v16815_v58  ;;  %v9457_v63 = vrot.slane %v9406_v24, 4  ;;  %v3544_v28 = vsel %vm523_vm0, %v3543_v11, %v19617_v9  ;;  %v19623_v11 = vld [vmem:[#allocation254_spill] sm:$0xff] }
 0x6b4   : > { %v3655_v9 = vrot.slane %v19623_v11, 4 }
 0x6b5   : > { %v7877_v52 = vpop.permute.xlu1 %7876 }
 0x6b6   : > { %4791 = vxpose.xlu0.b32.cont [5/16] (narrow) %v3540_v33, 8  ;;  %v9407_v54 = vrot.slane %v7877_v52, 4  ;;  %v9410_v62 = vsel %vm523_vm0, %v7877_v52, %v9409_v7  ;;  %v16831_v33 = vperm.slane %v9396_v35, %v10647_v13  ;;  %v19621_v52 = vld [vmem:[#allocation63_spill] sm:$0xff] }
 0x6b7   : > { %v9418_v0 = vperm.slane %v9410_v62, %v10647_v13  ;;  %v9442_v7 = vperm.slane %v19621_v52, %v10647_v13 }
 0x6b8   : > { %v9408_v51 = vsel %vm523_vm0, %v9407_v54, %v19615_v21  ;;  %2349 = vxpose.xlu1.b32.cont [3/16] (narrow) %v19618_v36, 8  ;;  %19620 = vst [vmem:[#allocation48_spill] sm:$0xff] %v16831_v33  ;;  %v19624_v54 = vld [vmem:[#allocation42_spill] sm:$0xff]  ;;  %v19625_v36 = vld [vmem:[#allocation256_spill] sm:$0xff]  ;;  %v9445_v35 = vrot.slane %v16831_v33, 4 }
 0x6b9   : > { %4855 = vxpose.xlu2.b32.cont [5/16] (narrow) %v3544_v28, 8  ;;  %v9455_v59 = vrot.slane %v9418_v0, 4  ;;  %v9458_v1 = vsel %vm523_vm0, %v9418_v0, %v9457_v63  ;;  %v16837_v62 = vperm.slane %v9408_v51, %v10647_v13  ;;  %v9421_v28 = vrot.slane %v19624_v54, 4  ;;  %v19626_v63 = vld [vmem:[#allocation56_spill] sm:$0xff]  ;;  %v19645_v33 = vld [vmem:[#allocation418_spill] sm:$0xff] }
 0x6ba   : > { %v3652_v39 = vsel %vm523_vm0, %v3651_v60, %v19625_v36  ;;  %v9431_v0 = vrot.slane %v19626_v63, 4  ;;  %v9479_v58 = vrot.slane %v9442_v7, 4  ;;  %v19628_v36 = vld [vmem:[#allocation66_spill] sm:$0xff]  ;;  %v19629_v63 = vld [vmem:[#allocation60_spill] sm:$0xff] }
 0x6bb   : > { %19622 = vst [vmem:[#allocation59_spill] sm:$0xff] %v16837_v62  ;;  %v9456_v21 = vsel %vm523_vm0, %v9455_v59, %v9406_v24  ;;  %v19627_v24 = vld [vmem:[#allocation253_spill] sm:$0xff]  ;;  %v9446_v60 = vsel %vm523_vm0, %v16837_v62, %v9445_v35 }
 0x6bc   : > { %v9462_v51 = vperm.slane %v9456_v21, %v10671_v37  ;;  %v3656_v59 = vsel %vm523_vm0, %v3655_v9, %v19627_v24  ;;  %v9432_v20 = vsel %vm523_vm0, %v9431_v0, %v19628_v36  ;;  %v16864_v24 = vperm.slane %v9446_v60, %v10671_v37 }
 0x6bd   : > { %v7886_v4 = vpop.permute.xlu1 %7885  ;;  %v9466_v36 = vperm.slane %v9458_v1, %v10671_v37 }
 0x6be   : > { %4792 = vxpose.xlu0.b32.cont [6/16] (narrow) %v3652_v39, 8  ;;  %v9419_v57 = vrot.slane %v7886_v4, 4  ;;  %v9422_v52 = vsel %vm523_vm0, %v7886_v4, %v9421_v28  ;;  %v19630_v4 = vld [vmem:[#allocation267_spill] sm:$0xff]  ;;  %19632 = vst [vmem:[#allocation71_spill] sm:$0xff] %v16864_v24  ;;  %v9501_v0 = vrot.slane %v9462_v51, 4 }
 0x6bf   : > { %v9430_v11 = vperm.slane %v9422_v52, %v10647_v13  ;;  %v3763_v21 = vrot.slane %v19630_v4, 4  ;;  %v19635_v4 = vld [vmem:[#allocation265_spill] sm:$0xff] }
 0x6c0   : > { %v9420_v39 = vsel %vm523_vm0, %v9419_v57, %v19624_v54  ;;  %2350 = vxpose.xlu1.b32.cont [4/16] (narrow) %v19629_v63, 8  ;;  %v16869_v57 = vperm.slane %v9432_v20, %v10647_v13 }
 0x6c1   : > { %4856 = vxpose.xlu2.b32.cont [6/16] (narrow) %v3656_v59, 8  ;;  %v16860_v28 = vperm.slane %v9420_v39, %v10647_v13  ;;  %v9480_v52 = vsel %vm523_vm0, %v9479_v58, %v9430_v11  ;;  %v9481_v9 = vrot.slane %v9430_v11, 4  ;;  %v19634_v59 = vld [vmem:[#allocation266_spill] sm:$0xff]  ;;  %v3764_v58 = vsel %vm523_vm0, %v3763_v21, %v19635_v4  ;;  %v19641_v4 = vld [vmem:[#allocation281_spill] sm:$0xff] }
 0x6c2   : > { %v9486_v35 = vperm.slane %v9480_v52, %v10671_v37  ;;  %19633 = vst [vmem:[#allocation68_spill] sm:$0xff] %v16869_v57  ;;  %v3767_v63 = vrot.slane %v19634_v59, 4  ;;  %v19638_v59 = vld [vmem:[#allocation263_spill] sm:$0xff] }
 0x6c3   : > { %19631 = vst [vmem:[#allocation54_spill] sm:$0xff] %v16860_v28  ;;  %v9469_v54 = vrot.slane %v16860_v28, 4  ;;  %v9482_v39 = vsel %vm523_vm0, %v9442_v7, %v9481_v9  ;;  %v9497_v7 = vrot.slane %v16864_v24, 4  ;;  %v9505_v9 = vrot.slane %v9466_v36, 4 }
 0x6c4   : > { %v9499_v11 = vrot.slane %v9486_v35, 4  ;;  %v16877_v60 = vsel %vm523_vm0, %v9486_v35, %v9501_v0  ;;  %v9490_v52 = vperm.slane %v9482_v39, %v10671_v37  ;;  %v3768_v21 = vsel %vm523_vm0, %v3767_v63, %v19638_v59  ;;  %v19640_v39 = vld [vmem:[#allocation69_spill] sm:$0xff] }
 0x6c5   : > { %19636 = vst [vmem:[#allocation504_spill] sm:$0xff] %v16877_v60  ;;  %v7895_v5 = vpop.permute.xlu1 %7894  ;;  %v9470_v20 = vsel %vm523_vm0, %v16869_v57, %v9469_v54  ;;  %v19644_v60 = vld [vmem:[#allocation62_spill] sm:$0xff]  ;;  %v7928_v57 = vpop.permute.xlu0 %7927 }
 0x6c6   : > { %4793 = vxpose.xlu0.b32.cont [7/16] (narrow) %v3764_v58, 8  ;;  %v9521_v1 = vrot.slane %v7895_v5, 4  ;;  %v16883_v28 = vperm.slane %v9470_v20, %v10671_v37  ;;  %v16889_v35 = vsel %vm523_vm0, %v9499_v11, %v9462_v51  ;;  %v9503_v0 = vrot.slane %v9490_v52, 4  ;;  %v19647_v11 = vld [vmem:[#allocation280_spill] sm:$0xff] }
 0x6c7   : > { %19639 = vst [vmem:[#allocation81_spill] sm:$0xff] %v16889_v35  ;;  %v3875_v58 = vrot.slane %v19641_v4, 4  ;;  %v16898_v20 = vsel %vm523_vm0, %v9490_v52, %v9505_v9  ;;  %v9507_v24 = vrot.slane %v19644_v60, 4  ;;  %v3879_v59 = vrot.slane %v19647_v11, 4  ;;  %v19650_v52 = vld [vmem:[#allocation89_spill] sm:$0xff] }
 0x6c8   : > { %19637 = vst [vmem:[#allocation79_spill] sm:$0xff] %v16883_v28  ;;  %2351 = vxpose.xlu1.b32.cont [5/16] (narrow) %v19640_v39, 8  ;;  %v16895_v54 = vsel %vm523_vm0, %v16883_v28, %v9497_v7  ;;  %v9522_v63 = vsel %vm523_vm0, %v19645_v33, %v9521_v1  ;;  %v16904_v51 = vsel %vm523_vm0, %v9503_v0, %v9466_v36  ;;  %v9519_v4 = vrot.slane %v19645_v33, 4  ;;  %v19649_v7 = vld [vmem:[#allocation279_spill] sm:$0xff]  ;;  %v19652_v11 = vld [vmem:[#allocation277_spill] sm:$0xff]  ;;  %v19653_v33 = vld [vmem:[#allocation550_spill] sm:$0xff] }
 0x6c9   : > { %4857 = vxpose.xlu2.b32.cont [7/16] (narrow) %v3768_v21, 8  ;;  %19642 = vst [vmem:[#allocation509_spill] sm:$0xff] %v16895_v54  ;;  %v19648_v21 = vld [vmem:[#allocation431_spill] sm:$0xff]  ;;  %v3876_v35 = vsel %vm523_vm0, %v3875_v58, %v19649_v7  ;;  %v9518_v9 = vperm.slane %v19650_v52, %v10647_v13  ;;  %v9530_v60 = vperm.slane %v9522_v63, %v10647_v13  ;;  %v19654_v7 = vld [vmem:[#allocation82_spill] sm:$0xff]  ;;  %v19655_v63 = vld [vmem:[#allocation289_spill] sm:$0xff] }
 0x6ca   : > { %19643 = vst [vmem:[#allocation92_spill] sm:$0xff] %v16898_v20  ;;  %v9508_v39 = vsel %vm523_vm0, %v9507_v24, %v19648_v21  ;;  %v9520_v36 = vsel %vm523_vm0, %v9519_v4, %v7895_v5  ;;  %v3880_v24 = vsel %vm523_vm0, %v3879_v59, %v19652_v11  ;;  %v9531_v21 = vrot.slane %v19653_v33, 4 }
 0x6cb   : > { %19646 = vst [vmem:[#allocation87_spill] sm:$0xff] %v16904_v51  ;;  %v16917_v0 = vperm.slane %v9508_v39, %v10647_v13  ;;  %v3987_v52 = vrot.slane %v19655_v63, 4  ;;  %v16927_v5 = vperm.slane %v9520_v36, %v10647_v13  ;;  %v9567_v4 = vrot.slane %v9530_v60, 4  ;;  %v19657_v51 = vld [vmem:[#allocation288_spill] sm:$0xff] }
 0x6cc   : > { %v3991_v54 = vrot.slane %v19657_v51, 4 }
 0x6cd   : > { %v7904_v20 = vpop.permute.xlu1 %7903  ;;  %19651 = vst [vmem:[#allocation101_spill] sm:$0xff] %v16917_v0  ;;  %v9557_v59 = vrot.slane %v16917_v0, 4  ;;  %v9568_v51 = vsel %vm523_vm0, %v9567_v4, %v9518_v9  ;;  %v19661_v0 = vld [vmem:[#allocation286_spill] sm:$0xff]  ;;  %v7937_v47 = vpop.permute.xlu0 %7936 }
 0x6ce   : > { %4794 = vxpose.xlu0.b32.cont [8/16] (narrow) %v3876_v35, 8  ;;  %v9533_v1 = vrot.slane %v7904_v20, 4  ;;  %v9569_v35 = vrot.slane %v9518_v9, 4  ;;  %19656 = vst [vmem:[#allocation378_spill] sm:$0xff] %v16927_v5  ;;  %v9532_v39 = vsel %vm523_vm0, %v9531_v21, %v7904_v20  ;;  %v19664_v9 = vld [vmem:[#allocation93_spill] sm:$0xff] }
 0x6cf   : > { %v16938_v28 = vperm.slane %v9532_v39, %v10647_v13  ;;  %v9558_v20 = vsel %vm523_vm0, %v16927_v5, %v9557_v59 }
 0x6d0   : > { %v9534_v58 = vsel %vm523_vm0, %v19653_v33, %v9533_v1  ;;  %2352 = vxpose.xlu1.b32.cont [6/16] (narrow) %v19654_v7, 8  ;;  %v9570_v1 = vsel %vm523_vm0, %v9530_v60, %v9569_v35  ;;  %v19658_v33 = vld [vmem:[#allocation549_spill] sm:$0xff]  ;;  %v3992_v60 = vsel %vm523_vm0, %v3991_v54, %v19661_v0  ;;  %v16954_v4 = vperm.slane %v9558_v20, %v10671_v37 }
 0x6d1   : > { %4858 = vxpose.xlu2.b32.cont [8/16] (narrow) %v3880_v24, 8  ;;  %v9542_v11 = vperm.slane %v9534_v58, %v10647_v13  ;;  %v9545_v7 = vrot.slane %v19658_v33, 4  ;;  %v19659_v24 = vld [vmem:[#allocation287_spill] sm:$0xff]  ;;  %19660 = vst [vmem:[#allocation103_spill] sm:$0xff] %v16938_v28  ;;  %v9578_v35 = vperm.slane %v9570_v1, %v10671_v37  ;;  %v9574_v54 = vperm.slane %v9568_v51, %v10671_v37 }
 0x6d2   : > { %v3988_v63 = vsel %vm523_vm0, %v3987_v52, %v19659_v24  ;;  %v19662_v24 = vld [vmem:[#allocation303_spill] sm:$0xff]  ;;  %19665 = vst [vmem:[#allocation498_spill] sm:$0xff] %v16954_v4  ;;  %v9581_v0 = vrot.slane %v16938_v28, 4 }
 0x6d3   : > { %v9593_v52 = vrot.slane %v9542_v11, 4  ;;  %v4099_v46 = vrot.slane %v19662_v24, 4 }
 0x6d5   : > { %v7913_v36 = vpop.permute.xlu1 %7912 }
 0x6d6   : > { %4795 = vxpose.xlu0.b32.cont [9/16] (narrow) %v3988_v63, 8  ;;  %v9543_v21 = vrot.slane %v7913_v36, 4  ;;  %v9546_v58 = vsel %vm523_vm0, %v7913_v36, %v9545_v7  ;;  %v19663_v63 = vld [vmem:[#allocation301_spill] sm:$0xff] }
 0x6d7   : > { %v9554_v39 = vperm.slane %v9546_v58, %v10647_v13  ;;  %v4103_v62 = vrot.slane %v19663_v63, 4  ;;  %v7934_v58 = vpop.permute.xlu2 %7933  ;;  %v19668_v63 = vld [vmem:[#allocation299_spill] sm:$0xff] }
 0x6d8   : > { %v9544_v59 = vsel %vm523_vm0, %v9543_v21, %v19658_v33  ;;  %2353 = vxpose.xlu1.b32.cont [7/16] (narrow) %v19664_v9, 8  ;;  %v9617_v33 = vrot.slane %v9578_v35, 4  ;;  %v19667_v21 = vld [vmem:[#allocation302_spill] sm:$0xff] }
 0x6d9   : > { %4859 = vxpose.xlu2.b32.cont [9/16] (narrow) %v3992_v60, 8  ;;  %v16959_v1 = vperm.slane %v9544_v59, %v10647_v13  ;;  %v9591_v7 = vrot.slane %v9554_v39, 4  ;;  %v9594_v36 = vsel %vm523_vm0, %v9554_v39, %v9593_v52  ;;  %v4100_v60 = vsel %vm523_vm0, %v4099_v46, %v19667_v21  ;;  %v19669_v59 = vld [vmem:[#allocation84_spill] sm:$0xff] }
 0x6da   : > { %v9602_v24 = vperm.slane %v9594_v36, %v10671_v37  ;;  %v4104_v20 = vsel %vm523_vm0, %v4103_v62, %v19668_v63  ;;  %v9621_v28 = vrot.slane %v19669_v59, 4  ;;  %v19671_v36 = vld [vmem:[#allocation107_spill] sm:$0xff]  ;;  %v9643_v21 = vrot.slane %v7934_v58, 4 }
 0x6db   : > { %19666 = vst [vmem:[#allocation114_spill] sm:$0xff] %v16959_v1  ;;  %v9582_v51 = vsel %vm523_vm0, %v16959_v1, %v9581_v0  ;;  %v9592_v9 = vsel %vm523_vm0, %v9591_v7, %v9542_v11  ;;  %v9631_v46 = vrot.slane %v19671_v36, 4  ;;  %v9609_v62 = vrot.slane %v16954_v4, 4 }
 0x6dc   : > { %v16972_v5 = vperm.slane %v9582_v51, %v10671_v37  ;;  %v9598_v52 = vperm.slane %v9592_v9, %v10671_v37  ;;  %v16976_v39 = vsel %vm523_vm0, %v9602_v24, %v9617_v33  ;;  %v9613_v0 = vrot.slane %v9574_v54, 4 }
 0x6dd   : > { %19670 = vst [vmem:[#allocation109_spill] sm:$0xff] %v16976_v39  ;;  %v7922_v12 = vpop.permute.xlu1 %7921  ;;  %v9645_v63 = vrot.slane %v7928_v57, 4  ;;  %v9615_v1 = vrot.slane %v9602_v24, 4  ;;  %v9644_v4 = vsel %vm523_vm0, %v9643_v21, %v7928_v57  ;;  %v19677_v24 = vld [vmem:[#allocation313_spill] sm:$0xff] }
 0x6de   : > { %4796 = vxpose.xlu0.b32.cont [10/16] (narrow) %v4100_v60, 8  ;;  %v9619_v11 = vrot.slane %v7922_v12, 4  ;;  %v9622_v7 = vsel %vm523_vm0, %v7922_v12, %v9621_v28  ;;  %v16986_v33 = vsel %vm523_vm0, %v16972_v5, %v9609_v62  ;;  %v9611_v9 = vrot.slane %v9598_v52, 4  ;;  %v19675_v60 = vld [vmem:[#allocation108_spill] sm:$0xff] }
 0x6df   : > { %v16982_v51 = vperm.slane %v9622_v7, %v10647_v13  ;;  %19673 = vst [vmem:[#allocation126_spill] sm:$0xff] %v16986_v33  ;;  %v16989_v36 = vsel %vm523_vm0, %v9598_v52, %v9613_v0  ;;  %v9632_v39 = vsel %vm523_vm0, %v9631_v46, %v19675_v60  ;;  %v19676_v28 = vld [vmem:[#allocation104_spill] sm:$0xff]  ;;  %v4211_v7 = vrot.slane %v19677_v24, 4 }
 0x6e0   : > { %19674 = vst [vmem:[#allocation123_spill] sm:$0xff] %v16989_v36  ;;  %v9620_v12 = vsel %vm523_vm0, %v9619_v11, %v19669_v59  ;;  %2354 = vxpose.xlu1.b32.cont [8/16] (narrow) %v19676_v28, 8  ;;  %v17002_v52 = vsel %vm523_vm0, %v9611_v9, %v9574_v54  ;;  %v9646_v0 = vsel %vm523_vm0, %v7934_v58, %v9645_v63  ;;  %v19680_v11 = vld [vmem:[#allocation309_spill] sm:$0xff]  ;;  %v19681_v54 = vld [vmem:[#allocation106_spill] sm:$0xff]  ;;  %v9655_v58 = vrot.slane %v7937_v47, 4  ;;  %v19683_v63 = vld [vmem:[#allocation311_spill] sm:$0xff] }
 0x6e1   : > { %19672 = vst [vmem:[#allocation502_spill] sm:$0xff] %v16982_v51  ;;  %4860 = vxpose.xlu2.b32.cont [10/16] (narrow) %v4104_v20, 8  ;;  %v16999_v62 = vperm.slane %v9620_v12, %v10647_v13  ;;  %v9681_v46 = vrot.slane %v16982_v51, 4  ;;  %v17007_v57 = vsel %vm523_vm0, %v9615_v1, %v9578_v35  ;;  %v17010_v59 = vperm.slane %v9632_v39, %v10647_v13 }
 0x6e2   : > { %19678 = vst [vmem:[#allocation518_spill] sm:$0xff] %v17002_v52  ;;  %v17013_v20 = vperm.slane %v9644_v4, %v10647_v13  ;;  %v4215_v60 = vrot.slane %v19680_v11, 4  ;;  %v17019_v9 = vperm.slane %v19681_v54, %v10647_v13  ;;  %v4212_v12 = vsel %vm523_vm0, %v4211_v7, %v19683_v63  ;;  %v19693_v52 = vld [vmem:[#allocation124_spill] sm:$0xff] }
 0x6e3   : > { %19679 = vst [vmem:[#allocation522_spill] sm:$0xff] %v17007_v57  ;;  %v9669_v21 = vrot.slane %v16999_v62, 4  ;;  %v17024_v35 = vperm.slane %v9646_v0, %v10647_v13  ;;  %v19685_v0 = vld [vmem:[#allocation307_spill] sm:$0xff] }
 0x6e4   : > { %19682 = vst [vmem:[#allocation526_spill] sm:$0xff] %v17019_v9  ;;  %v9682_v11 = vsel %vm523_vm0, %v17019_v9, %v9681_v46  ;;  %v9693_v54 = vrot.slane %v17013_v20, 4  ;;  %v4216_v63 = vsel %vm523_vm0, %v4215_v60, %v19685_v0  ;;  %v19688_v60 = vld [vmem:[#allocation321_spill] sm:$0xff]  ;;  %v19698_v9 = vld [vmem:[#allocation332_spill] sm:$0xff] }
 0x6e5   : > { %19684 = vst [vmem:[#allocation398_spill] sm:$0xff] %v17024_v35  ;;  %v7931_v1 = vpop.permute.xlu1 %7930  ;;  %v9670_v4 = vsel %vm523_vm0, %v17010_v59, %v9669_v21  ;;  %v19686_v21 = vld [vmem:[#allocation115_spill] sm:$0xff] }
 0x6e6   : > { %4797 = vxpose.xlu0.b32.cont [11/16] (narrow) %v4212_v12, 8  ;;  %v9656_v39 = vsel %vm523_vm0, %v9655_v58, %v7931_v1  ;;  %v9657_v28 = vrot.slane %v7931_v1, 4  ;;  %v17030_v24 = vperm.slane %v9670_v4, %v10671_v37  ;;  %v19687_v58 = vld [vmem:[#allocation322_spill] sm:$0xff]  ;;  %v9705_v4 = vrot.slane %v17024_v35, 4  ;;  %v19838_v35 = vld [vmem:[#allocation361_spill] sm:$0xff] }
 0x6e7   : > { %v17036_v7 = vperm.slane %v9656_v39, %v10647_v13  ;;  %v4323_v1 = vrot.slane %v19687_v58, 4  ;;  %v9690_v39 = vperm.slane %v9682_v11, %v10671_v37  ;;  %v19691_v58 = vld [vmem:[#allocation318_spill] sm:$0xff] }
 0x6e8   : > { %v9658_v12 = vsel %vm523_vm0, %v7937_v47, %v9657_v28  ;;  %2355 = vxpose.xlu1.b32.cont [9/16] (narrow) %v19686_v21, 8  ;;  %v9721_v47 = vrot.slane %v17030_v24, 4  ;;  %v4327_v28 = vrot.slane %v19688_v60, 4 }
 0x6e9   : > { %4861 = vxpose.xlu2.b32.cont [11/16] (narrow) %v4216_v63, 8  ;;  %v17045_v57 = vperm.slane %v9658_v12, %v10647_v13  ;;  %v9694_v46 = vsel %vm523_vm0, %v17036_v7, %v9693_v54  ;;  %v19689_v63 = vld [vmem:[#allocation320_spill] sm:$0xff]  ;;  %v9729_v11 = vrot.slane %v9690_v39, 4 }
 0x6ea   : > { %v17051_v36 = vperm.slane %v9694_v46, %v10671_v37  ;;  %v4324_v21 = vsel %vm523_vm0, %v4323_v1, %v19689_v63  ;;  %v4328_v46 = vsel %vm523_vm0, %v4327_v28, %v19691_v58  ;;  %v19699_v58 = vld [vmem:[#allocation137_spill] sm:$0xff] }
 0x6eb   : > { %v9706_v0 = vsel %vm523_vm0, %v17045_v57, %v9705_v4  ;;  %v19694_v4 = vld [vmem:[#allocation337_spill] sm:$0xff] }
 0x6ec   : > { %v17061_v12 = vsel %vm523_vm0, %v17051_v36, %v9721_v47  ;;  %v9714_v54 = vperm.slane %v9706_v0, %v10671_v37  ;;  %v4435_v1 = vrot.slane %v19694_v4, 4  ;;  %v19696_v47 = vld [vmem:[#allocation334_spill] sm:$0xff]  ;;  %v19697_v0 = vld [vmem:[#allocation335_spill] sm:$0xff]  ;;  %v19702_v4 = vld [vmem:[#allocation345_spill] sm:$0xff] }
 0x6ed   : > { %19690 = vst [vmem:[#allocation134_spill] sm:$0xff] %v17061_v12  ;;  %v4439_v12 = vrot.slane %v19696_v47, 4 }
 0x6ee   : > { %4798 = vxpose.xlu0.b32.cont [12/16] (narrow) %v4324_v21, 8  ;;  %v9727_v51 = vrot.slane %v9714_v54, 4  ;;  %v17067_v60 = vsel %vm523_vm0, %v9714_v54, %v9729_v11  ;;  %v4436_v21 = vsel %vm523_vm0, %v4435_v1, %v19697_v0  ;;  %v19700_v54 = vld [vmem:[#allocation347_spill] sm:$0xff]  ;;  %v19705_v1 = vld [vmem:[#allocation356_spill] sm:$0xff] }
 0x6ef   : > { %19692 = vst [vmem:[#allocation136_spill] sm:$0xff] %v17067_v60  ;;  %v4440_v28 = vsel %vm523_vm0, %v4439_v12, %v19698_v9  ;;  %v19701_v11 = vld [vmem:[#allocation343_spill] sm:$0xff]  ;;  %v19704_v60 = vld [vmem:[#allocation148_spill] sm:$0xff]  ;;  %v4659_v0 = vrot.slane %v19705_v1, 4 }
 0x6f0   : > { %2356 = vxpose.xlu1.b32.cont [10/16] (narrow) %v19693_v52, 8  ;;  %v17072_v63 = vsel %vm523_vm0, %v9727_v51, %v9690_v39  ;;  %v4547_v52 = vrot.slane %v19700_v54, 4  ;;  %v19703_v39 = vld [vmem:[#allocation341_spill] sm:$0xff]  ;;  %v19706_v9 = vld [vmem:[#allocation355_spill] sm:$0xff] }
 0x6f1   : > { %4862 = vxpose.xlu2.b32.cont [12/16] (narrow) %v4328_v46, 8  ;;  %19695 = vst [vmem:[#allocation147_spill] sm:$0xff] %v17072_v63  ;;  %v4551_v46 = vrot.slane %v19701_v11, 4  ;;  %v4663_v12 = vrot.slane %v19706_v9, 4  ;;  %v19709_v11 = vld [vmem:[#allocation157_spill] sm:$0xff]  ;;  %v19714_v9 = vld [vmem:[#allocation170_spill] sm:$0xff] }
 0x6f2   : > { %v4548_v51 = vsel %vm523_vm0, %v4547_v52, %v19702_v4  ;;  %v19710_v52 = vld [vmem:[#allocation369_spill] sm:$0xff] }
 0x6f3   : > { %v4552_v47 = vsel %vm523_vm0, %v4551_v46, %v19703_v39  ;;  %v4771_v4 = vrot.slane %v19710_v52, 4  ;;  %v19711_v46 = vld [vmem:[#allocation371_spill] sm:$0xff]  ;;  %v19834_v63 = vld [vmem:[#allocation417_spill] sm:$0xff] }
 0x6f6   : > { %4799 = vxpose.xlu0.b32.cont [13/16] (narrow) %v4436_v21, 8  ;;  %v19707_v21 = vld [vmem:[#allocation354_spill] sm:$0xff] }
 0x6f8   : > { %2357 = vxpose.xlu1.b32.cont [11/16] (narrow) %v19699_v58, 8  ;;  %v19708_v58 = vld [vmem:[#allocation352_spill] sm:$0xff] }
 0x6f9   : > { %4863 = vxpose.xlu2.b32.cont [13/16] (narrow) %v4440_v28, 8  ;;  %v4660_v28 = vsel %vm523_vm0, %v4659_v0, %v19707_v21  ;;  %v4664_v54 = vsel %vm523_vm0, %v4663_v12, %v19708_v58  ;;  %v19715_v0 = vld [vmem:[#allocation198_spill] sm:$0xff]  ;;  %v19716_v12 = vld [vmem:[#allocation201_spill] sm:$0xff] }
 0x6fa   : > { %v3099_v21 = vrot.slane %v19715_v0, 4 }
 0x6fe   : > { %4800 = vxpose.xlu0.b32.cont [14/16] (narrow) %v4548_v51, 8  ;;  %v4775_v51 = vrot.slane %v19711_v46, 4  ;;  %v19721_v46 = vld [vmem:[#allocation213_spill] sm:$0xff] }
 0x700   : > { %2358 = vxpose.xlu1.b32.cont [12/16] (narrow) %v19704_v60, 8  ;;  %v19712_v60 = vld [vmem:[#allocation365_spill] sm:$0xff] }
 0x701   : > { %4864 = vxpose.xlu2.b32.cont [14/16] (narrow) %v4552_v47, 8  ;;  %v4772_v39 = vsel %vm523_vm0, %v4771_v4, %v19712_v60  ;;  %v19713_v47 = vld [vmem:[#allocation367_spill] sm:$0xff]  ;;  %v19720_v4 = vld [vmem:[#allocation212_spill] sm:$0xff]  ;;  %v19722_v60 = vld [vmem:[#allocation190_spill] sm:$0xff] }
 0x702   : > { %v4776_v1 = vsel %vm523_vm0, %v4775_v51, %v19713_v47 }
 0x706   : > { %4801 = vxpose.xlu0.b32.cont [15/16] (narrow) %v4660_v28, 8  ;;  %v19717_v28 = vld [vmem:[#allocation195_spill] sm:$0xff] }
 0x707   : > { %v3100_v58 = vsel %vm523_vm0, %v3099_v21, %v19717_v28  ;;  %v19726_v21 = vld [vmem:[#allocation28_spill] sm:$0xff] }
 0x708   : > { %2359 = vxpose.xlu1.b32.cont [13/16] (narrow) %v19709_v11, 8  ;;  %v19719_v11 = vld [vmem:[#allocation215_spill] sm:$0xff] }
 0x709   : > { %4865 = vxpose.xlu2.b32.cont [15/16] (narrow) %v4664_v54, 8  ;;  %v19718_v54 = vld [vmem:[#allocation181_spill] sm:$0xff]  ;;  %v3211_v52 = vrot.slane %v19719_v11, 4 }
 0x70b   : > { %v3212_v51 = vsel %vm523_vm0, %v3211_v52, %v19721_v46  ;;  %v19730_v52 = vld [vmem:[#allocation39_spill] sm:$0xff] }
 0x70e   : > { %4802 = vxpose.xlu0.b32.end [16/16] (narrow) %v4772_v39, 8  ;;  %v19723_v39 = vld [vmem:[#allocation227_spill] sm:$0xff] }
 0x70f   : > { %v3323_v47 = vrot.slane %v19723_v39, 4 }
 0x710   : > { %2360 = vxpose.xlu1.b32.cont [14/16] (narrow) %v19714_v9, 8  ;;  %v19725_v9 = vld [vmem:[#allocation225_spill] sm:$0xff] }
 0x711   : > { %4866 = vxpose.xlu2.b32.end [16/16] (narrow) %v4776_v1, 8  ;;  %v19724_v1 = vld [vmem:[#allocation224_spill] sm:$0xff]  ;;  %v3324_v0 = vsel %vm523_vm0, %v3323_v47, %v19725_v9  ;;  %v19734_v47 = vld [vmem:[#allocation50_spill] sm:$0xff] }
 0x716   : > { %4883 = vxpose.xlu0.b32.start [1/16] (narrow) %v19716_v12, 8  ;;  %v19727_v12 = vld [vmem:[#allocation237_spill] sm:$0xff] }
 0x717   : > { %v3435_v28 = vrot.slane %v19727_v12, 4 }
 0x718   : > { %2361 = vxpose.xlu1.b32.cont [15/16] (narrow) %v19718_v54, 8  ;;  %v19729_v54 = vld [vmem:[#allocation236_spill] sm:$0xff] }
 0x719   : > { %4915 = vxpose.xlu2.b32.start [1/16] (narrow) %v3100_v58, 8  ;;  %v19728_v58 = vld [vmem:[#allocation235_spill] sm:$0xff]  ;;  %v3436_v11 = vsel %vm523_vm0, %v3435_v28, %v19729_v54  ;;  %v19738_v28 = vld [vmem:[#allocation61_spill] sm:$0xff] }
 0x71e   : > { %4884 = vxpose.xlu0.b32.cont [2/16] (narrow) %v19720_v4, 8  ;;  %v19731_v4 = vld [vmem:[#allocation243_spill] sm:$0xff] }
 0x71f   : > { %v3547_v46 = vrot.slane %v19731_v4, 4 }
 0x720   : > { %2362 = vxpose.xlu1.b32.end [16/16] (narrow) %v19722_v60, 8  ;;  %v19733_v60 = vld [vmem:[#allocation242_spill] sm:$0xff] }
 0x721   : > { %4916 = vxpose.xlu2.b32.cont [2/16] (narrow) %v3212_v51, 8  ;;  %v19732_v51 = vld [vmem:[#allocation248_spill] sm:$0xff]  ;;  %v3548_v39 = vsel %vm523_vm0, %v3547_v46, %v19733_v60 }
 0x722   : > { %v19742_v46 = vld [vmem:[#allocation72_spill] sm:$0xff] }
 0x726   : > { %4885 = vxpose.xlu0.b32.cont [3/16] (narrow) %v19724_v1, 8  ;;  %v19735_v1 = vld [vmem:[#allocation260_spill] sm:$0xff] }
 0x727   : > { %v3659_v9 = vrot.slane %v19735_v1, 4 }
 0x728   : > { %2475 = vxpose.xlu1.b32.start [1/16] (narrow) %v19726_v21, 8  ;;  %v19737_v21 = vld [vmem:[#allocation259_spill] sm:$0xff] }
 0x729   : > { %4917 = vxpose.xlu2.b32.cont [3/16] (narrow) %v3324_v0, 8  ;;  %v19736_v0 = vld [vmem:[#allocation257_spill] sm:$0xff]  ;;  %v3660_v12 = vsel %vm523_vm0, %v3659_v9, %v19737_v21  ;;  %v19746_v9 = vld [vmem:[#allocation83_spill] sm:$0xff] }
 0x72e   : > { %4886 = vxpose.xlu0.b32.cont [4/16] (narrow) %v19728_v58, 8  ;;  %v19739_v58 = vld [vmem:[#allocation270_spill] sm:$0xff] }
 0x72f   : > { %v3771_v54 = vrot.slane %v19739_v58, 4 }
 0x730   : > { %2476 = vxpose.xlu1.b32.cont [2/16] (narrow) %v19730_v52, 8  ;;  %v19741_v52 = vld [vmem:[#allocation269_spill] sm:$0xff] }
 0x731   : > { %4918 = vxpose.xlu2.b32.cont [4/16] (narrow) %v3436_v11, 8  ;;  %v19740_v11 = vld [vmem:[#allocation268_spill] sm:$0xff]  ;;  %v3772_v4 = vsel %vm523_vm0, %v3771_v54, %v19741_v52  ;;  %v19750_v54 = vld [vmem:[#allocation94_spill] sm:$0xff] }
 0x736   : > { %4887 = vxpose.xlu0.b32.cont [5/16] (narrow) %v19732_v51, 8  ;;  %v19743_v51 = vld [vmem:[#allocation276_spill] sm:$0xff] }
 0x737   : > { %v3883_v60 = vrot.slane %v19743_v51, 4 }
 0x738   : > { %2477 = vxpose.xlu1.b32.cont [3/16] (narrow) %v19734_v47, 8  ;;  %v19745_v47 = vld [vmem:[#allocation275_spill] sm:$0xff] }
 0x739   : > { %4919 = vxpose.xlu2.b32.cont [5/16] (narrow) %v3548_v39, 8  ;;  %v19744_v39 = vld [vmem:[#allocation282_spill] sm:$0xff]  ;;  %v3884_v1 = vsel %vm523_vm0, %v3883_v60, %v19745_v47  ;;  %v19754_v60 = vld [vmem:[#allocation105_spill] sm:$0xff] }
 0x73e   : > { %4888 = vxpose.xlu0.b32.cont [6/16] (narrow) %v19736_v0, 8  ;;  %v19747_v0 = vld [vmem:[#allocation292_spill] sm:$0xff] }
 0x73f   : > { %v3995_v21 = vrot.slane %v19747_v0, 4 }
 0x740   : > { %2478 = vxpose.xlu1.b32.cont [4/16] (narrow) %v19738_v28, 8  ;;  %v19749_v28 = vld [vmem:[#allocation291_spill] sm:$0xff] }
 0x741   : > { %4920 = vxpose.xlu2.b32.cont [6/16] (narrow) %v3660_v12, 8  ;;  %v19748_v12 = vld [vmem:[#allocation290_spill] sm:$0xff]  ;;  %v3996_v58 = vsel %vm523_vm0, %v3995_v21, %v19749_v28  ;;  %v19758_v21 = vld [vmem:[#allocation116_spill] sm:$0xff] }
 0x746   : > { %4889 = vxpose.xlu0.b32.cont [7/16] (narrow) %v19740_v11, 8  ;;  %v19751_v11 = vld [vmem:[#allocation297_spill] sm:$0xff] }
 0x747   : > { %v4107_v52 = vrot.slane %v19751_v11, 4 }
 0x748   : > { %2479 = vxpose.xlu1.b32.cont [5/16] (narrow) %v19742_v46, 8  ;;  %v19753_v46 = vld [vmem:[#allocation207_spill] sm:$0xff] }
 0x749   : > { %4921 = vxpose.xlu2.b32.cont [7/16] (narrow) %v3772_v4, 8  ;;  %v19752_v4 = vld [vmem:[#allocation216_spill] sm:$0xff]  ;;  %v4108_v51 = vsel %vm523_vm0, %v4107_v52, %v19753_v46  ;;  %v19762_v52 = vld [vmem:[#allocation127_spill] sm:$0xff] }
 0x74e   : > { %4890 = vxpose.xlu0.b32.cont [8/16] (narrow) %v19744_v39, 8  ;;  %v19755_v39 = vld [vmem:[#allocation315_spill] sm:$0xff] }
 0x74f   : > { %v4219_v47 = vrot.slane %v19755_v39, 4 }
 0x750   : > { %2480 = vxpose.xlu1.b32.cont [6/16] (narrow) %v19746_v9, 8  ;;  %v19757_v9 = vld [vmem:[#allocation314_spill] sm:$0xff] }
 0x751   : > { %4922 = vxpose.xlu2.b32.cont [8/16] (narrow) %v3884_v1, 8  ;;  %v19756_v1 = vld [vmem:[#allocation312_spill] sm:$0xff]  ;;  %v4220_v0 = vsel %vm523_vm0, %v4219_v47, %v19757_v9  ;;  %v19766_v47 = vld [vmem:[#allocation138_spill] sm:$0xff] }
 0x756   : > { %4891 = vxpose.xlu0.b32.cont [9/16] (narrow) %v19748_v12, 8  ;;  %v19759_v12 = vld [vmem:[#allocation325_spill] sm:$0xff] }
 0x757   : > { %v4331_v28 = vrot.slane %v19759_v12, 4 }
 0x758   : > { %2481 = vxpose.xlu1.b32.cont [7/16] (narrow) %v19750_v54, 8  ;;  %v19761_v54 = vld [vmem:[#allocation324_spill] sm:$0xff] }
 0x759   : > { %4923 = vxpose.xlu2.b32.cont [9/16] (narrow) %v3996_v58, 8  ;;  %v19760_v58 = vld [vmem:[#allocation323_spill] sm:$0xff]  ;;  %v4332_v11 = vsel %vm523_vm0, %v4331_v28, %v19761_v54  ;;  %v19770_v28 = vld [vmem:[#allocation149_spill] sm:$0xff] }
 0x75e   : > { %4892 = vxpose.xlu0.b32.cont [10/16] (narrow) %v19752_v4, 8  ;;  %v19763_v4 = vld [vmem:[#allocation331_spill] sm:$0xff] }
 0x75f   : > { %v4443_v46 = vrot.slane %v19763_v4, 4 }
 0x760   : > { %2482 = vxpose.xlu1.b32.cont [8/16] (narrow) %v19754_v60, 8  ;;  %v19765_v60 = vld [vmem:[#allocation330_spill] sm:$0xff] }
 0x761   : > { %4924 = vxpose.xlu2.b32.cont [10/16] (narrow) %v4108_v51, 8  ;;  %v19764_v51 = vld [vmem:[#allocation336_spill] sm:$0xff]  ;;  %v4444_v39 = vsel %vm523_vm0, %v4443_v46, %v19765_v60 }
 0x762   : > { %v19774_v46 = vld [vmem:[#allocation160_spill] sm:$0xff] }
 0x766   : > { %4893 = vxpose.xlu0.b32.cont [11/16] (narrow) %v19756_v1, 8  ;;  %v19767_v1 = vld [vmem:[#allocation349_spill] sm:$0xff] }
 0x767   : > { %v4555_v9 = vrot.slane %v19767_v1, 4 }
 0x768   : > { %2483 = vxpose.xlu1.b32.cont [9/16] (narrow) %v19758_v21, 8  ;;  %v19769_v21 = vld [vmem:[#allocation348_spill] sm:$0xff] }
 0x769   : > { %4925 = vxpose.xlu2.b32.cont [11/16] (narrow) %v4220_v0, 8  ;;  %v19768_v0 = vld [vmem:[#allocation346_spill] sm:$0xff]  ;;  %v4556_v12 = vsel %vm523_vm0, %v4555_v9, %v19769_v21  ;;  %v19778_v9 = vld [vmem:[#allocation208_spill] sm:$0xff]  ;;  %v19779_v21 = vld [vmem:[#allocation171_spill] sm:$0xff] }
 0x76e   : > { %4894 = vxpose.xlu0.b32.cont [12/16] (narrow) %v19760_v58, 8  ;;  %v19771_v58 = vld [vmem:[#allocation359_spill] sm:$0xff] }
 0x76f   : > { %v4667_v54 = vrot.slane %v19771_v58, 4  ;;  %v19781_v58 = vld [vmem:[#allocation205_spill] sm:$0xff] }
 0x770   : > { %2484 = vxpose.xlu1.b32.cont [10/16] (narrow) %v19762_v52, 8  ;;  %v19773_v52 = vld [vmem:[#allocation358_spill] sm:$0xff] }
 0x771   : > { %4926 = vxpose.xlu2.b32.cont [12/16] (narrow) %v4332_v11, 8  ;;  %v19772_v11 = vld [vmem:[#allocation357_spill] sm:$0xff]  ;;  %v4668_v4 = vsel %vm523_vm0, %v4667_v54, %v19773_v52  ;;  %v3202_v54 = vperm.slane %v19781_v58, %v10671_v37  ;;  %v19791_v58 = vld [vmem:[#allocation238_spill] sm:$0xff] }
 0x776   : > { %4895 = vxpose.xlu0.b32.cont [13/16] (narrow) %v19764_v51, 8  ;;  %v19775_v51 = vld [vmem:[#allocation366_spill] sm:$0xff] }
 0x777   : > { %v4779_v60 = vrot.slane %v19775_v51, 4  ;;  %v3215_v51 = vrot.slane %v3202_v54, 4 }
 0x778   : > { %2485 = vxpose.xlu1.b32.cont [11/16] (narrow) %v19766_v47, 8  ;;  %v19777_v47 = vld [vmem:[#allocation364_spill] sm:$0xff] }
 0x779   : > { %4927 = vxpose.xlu2.b32.cont [13/16] (narrow) %v4444_v39, 8  ;;  %v19776_v39 = vld [vmem:[#allocation374_spill] sm:$0xff]  ;;  %v4780_v1 = vsel %vm523_vm0, %v4779_v60, %v19777_v47 }
 0x77e   : > { %4896 = vxpose.xlu0.b32.cont [14/16] (narrow) %v19768_v0, 8  ;;  %v3169_v0 = vrot.slane %v19778_v9, 4  ;;  %v19786_v9 = vld [vmem:[#allocation228_spill] sm:$0xff] }
 0x780   : > { %2486 = vxpose.xlu1.b32.cont [12/16] (narrow) %v19770_v28, 8 }
 0x781   : > { %4928 = vxpose.xlu2.b32.cont [14/16] (narrow) %v4556_v12, 8  ;;  %v19780_v12 = vld [vmem:[#allocation206_spill] sm:$0xff] }
 0x782   : > { %v3170_v28 = vsel %vm523_vm0, %v19780_v12, %v3169_v0  ;;  %v19787_v0 = vld [vmem:[#allocation204_spill] sm:$0xff] }
 0x783   : > { %v3178_v52 = vperm.slane %v3170_v28, %v10671_v37  ;;  %v19789_v12 = vld [vmem:[#allocation240_spill] sm:$0xff]  ;;  %v19790_v28 = vld [vmem:[#allocation217_spill] sm:$0xff] }
 0x785   : > { %v3217_v60 = vrot.slane %v3178_v52, 4 }
 0x786   : > { %4897 = vxpose.xlu0.b32.cont [15/16] (narrow) %v19772_v11, 8  ;;  %v19782_v11 = vld [vmem:[#allocation202_spill] sm:$0xff] }
 0x787   : > { %v3218_v47 = vsel %vm523_vm0, %v3202_v54, %v3217_v60  ;;  %v19794_v54 = vld [vmem:[#allocation251_spill] sm:$0xff]  ;;  %v19798_v60 = vld [vmem:[#allocation273_spill] sm:$0xff] }
 0x788   : > { %2487 = vxpose.xlu1.b32.cont [13/16] (narrow) %v19774_v46, 8  ;;  %v19784_v46 = vld [vmem:[#allocation199_spill] sm:$0xff] }
 0x789   : > { %4929 = vxpose.xlu2.b32.cont [15/16] (narrow) %v4668_v4, 8  ;;  %v19783_v4 = vld [vmem:[#allocation182_spill] sm:$0xff] }
 0x78e   : > { %4898 = vxpose.xlu0.b32.end [16/16] (narrow) %v19776_v39, 8  ;;  %v3216_v39 = vsel %vm523_vm0, %v3215_v51, %v3178_v52  ;;  %v19793_v52 = vld [vmem:[#allocation229_spill] sm:$0xff]  ;;  %v19797_v51 = vld [vmem:[#allocation255_spill] sm:$0xff] }
 0x790   : > { %2488 = vxpose.xlu1.b32.cont [14/16] (narrow) %v19779_v21, 8  ;;  %v19788_v21 = vld [vmem:[#allocation222_spill] sm:$0xff] }
 0x791   : > { %4930 = vxpose.xlu2.b32.end [16/16] (narrow) %v4780_v1, 8  ;;  %v19785_v1 = vld [vmem:[#allocation193_spill] sm:$0xff] }
 0x796   : > { %4979 = vxpose.xlu0.b32.start [1/16] (narrow) %v19782_v11, 8  ;;  %v19792_v11 = vld [vmem:[#allocation250_spill] sm:$0xff] }
 0x798   : > { %2489 = vxpose.xlu1.b32.cont [15/16] (narrow) %v19783_v4, 8  ;;  %v19795_v4 = vld [vmem:[#allocation261_spill] sm:$0xff] }
 0x799   : > { %5011 = vxpose.xlu2.b32.start [1/16] (narrow) %v19784_v46, 8  ;;  %v19796_v46 = vld [vmem:[#allocation239_spill] sm:$0xff] }
 0x79e   : > { %4980 = vxpose.xlu0.b32.cont [2/16] (narrow) %v3216_v39, 8  ;;  %v19799_v39 = vld [vmem:[#allocation252_spill] sm:$0xff] }
 0x7a0   : > { %2490 = vxpose.xlu1.b32.end [16/16] (narrow) %v19785_v1, 8  ;;  %v19801_v1 = vld [vmem:[#allocation283_spill] sm:$0xff] }
 0x7a1   : > { %5012 = vxpose.xlu2.b32.cont [2/16] (narrow) %v3218_v47, 8  ;;  %v19800_v47 = vld [vmem:[#allocation271_spill] sm:$0xff] }
 0x7a6   : > { %4981 = vxpose.xlu0.b32.cont [3/16] (narrow) %v19786_v9, 8  ;;  %v19802_v9 = vld [vmem:[#allocation262_spill] sm:$0xff] }
 0x7a8   : > { %4819 = vxpose.xlu1.b32.start [1/16] (narrow) %v19787_v0, 8  ;;  %v19803_v0 = vld [vmem:[#allocation284_spill] sm:$0xff] }
 0x7a9   : > { %5013 = vxpose.xlu2.b32.cont [3/16] (narrow) %v19788_v21, 8  ;;  %v19804_v21 = vld [vmem:[#allocation295_spill] sm:$0xff] }
 0x7ae   : > { %4982 = vxpose.xlu0.b32.cont [4/16] (narrow) %v19789_v12, 8  ;;  %v19805_v12 = vld [vmem:[#allocation272_spill] sm:$0xff] }
 0x7b0   : > { %4820 = vxpose.xlu1.b32.cont [2/16] (narrow) %v19790_v28, 8  ;;  %v19806_v28 = vld [vmem:[#allocation293_spill] sm:$0xff] }
 0x7b1   : > { %5014 = vxpose.xlu2.b32.cont [4/16] (narrow) %v19791_v58, 8  ;;  %v19807_v58 = vld [vmem:[#allocation304_spill] sm:$0xff] }
 0x7b6   : > { %4983 = vxpose.xlu0.b32.cont [5/16] (narrow) %v19792_v11, 8  ;;  %v19808_v11 = vld [vmem:[#allocation285_spill] sm:$0xff] }
 0x7b8   : > { %4821 = vxpose.xlu1.b32.cont [3/16] (narrow) %v19793_v52, 8  ;;  %v19809_v52 = vld [vmem:[#allocation305_spill] sm:$0xff] }
 0x7b9   : > { %5015 = vxpose.xlu2.b32.cont [5/16] (narrow) %v19794_v54, 8  ;;  %v19810_v54 = vld [vmem:[#allocation316_spill] sm:$0xff] }
 0x7be   : > { %4984 = vxpose.xlu0.b32.cont [6/16] (narrow) %v19795_v4, 8  ;;  %v19811_v4 = vld [vmem:[#allocation294_spill] sm:$0xff] }
 0x7c0   : > { %4822 = vxpose.xlu1.b32.cont [4/16] (narrow) %v19796_v46, 8  ;;  %v19812_v46 = vld [vmem:[#allocation310_spill] sm:$0xff] }
 0x7c1   : > { %5016 = vxpose.xlu2.b32.cont [6/16] (narrow) %v19797_v51, 8  ;;  %v19813_v51 = vld [vmem:[#allocation328_spill] sm:$0xff] }
 0x7c6   : > { %4985 = vxpose.xlu0.b32.cont [7/16] (narrow) %v19798_v60, 8  ;;  %v19814_v60 = vld [vmem:[#allocation306_spill] sm:$0xff] }
 0x7c8   : > { %4823 = vxpose.xlu1.b32.cont [5/16] (narrow) %v19799_v39, 8  ;;  %v19815_v39 = vld [vmem:[#allocation326_spill] sm:$0xff] }
 0x7c9   : > { %5017 = vxpose.xlu2.b32.cont [7/16] (narrow) %v19800_v47, 8  ;;  %v19816_v47 = vld [vmem:[#allocation338_spill] sm:$0xff] }
 0x7ce   : > { %4986 = vxpose.xlu0.b32.cont [8/16] (narrow) %v19801_v1, 8  ;;  %v19817_v1 = vld [vmem:[#allocation317_spill] sm:$0xff] }
 0x7d0   : > { %4824 = vxpose.xlu1.b32.cont [6/16] (narrow) %v19802_v9, 8  ;;  %v19818_v9 = vld [vmem:[#allocation339_spill] sm:$0xff] }
 0x7d1   : > { %5018 = vxpose.xlu2.b32.cont [8/16] (narrow) %v19803_v0, 8  ;;  %v19819_v0 = vld [vmem:[#allocation350_spill] sm:$0xff] }
 0x7d6   : > { %4987 = vxpose.xlu0.b32.cont [9/16] (narrow) %v19804_v21, 8  ;;  %v19820_v21 = vld [vmem:[#allocation327_spill] sm:$0xff] }
 0x7d8   : > { %4825 = vxpose.xlu1.b32.cont [7/16] (narrow) %v19805_v12, 8  ;;  %v19821_v12 = vld [vmem:[#allocation344_spill] sm:$0xff] }
 0x7d9   : > { %5019 = vxpose.xlu2.b32.cont [9/16] (narrow) %v19806_v28, 8  ;;  %v19822_v28 = vld [vmem:[#allocation379_spill] sm:$0xff] }
 0x7de   : > { %4988 = vxpose.xlu0.b32.cont [10/16] (narrow) %v19807_v58, 8  ;;  %v5515_v58 = vrot.slane %v19822_v28, 4  ;;  %v19831_v28 = vld [vmem:[#allocation420_spill] sm:$0xff] }
 0x7e0   : > { %4826 = vxpose.xlu1.b32.cont [8/16] (narrow) %v19808_v11, 8  ;;  %v19823_v11 = vld [vmem:[#allocation362_spill] sm:$0xff] }
 0x7e1   : > { %5020 = vxpose.xlu2.b32.cont [10/16] (narrow) %v19809_v52, 8  ;;  %v19824_v52 = vld [vmem:[#allocation385_spill] sm:$0xff] }
 0x7e6   : > { %4989 = vxpose.xlu0.b32.cont [11/16] (narrow) %v19810_v54, 8  ;;  %v5539_v54 = vrot.slane %v19824_v52, 4  ;;  %v19832_v52 = vld [vmem:[#allocation351_spill] sm:$0xff] }
 0x7e8   : > { %4827 = vxpose.xlu1.b32.cont [9/16] (narrow) %v19811_v4, 8  ;;  %v19825_v4 = vld [vmem:[#allocation340_spill] sm:$0xff] }
 0x7e9   : > { %5021 = vxpose.xlu2.b32.cont [11/16] (narrow) %v19812_v46, 8  ;;  %v19826_v46 = vld [vmem:[#allocation360_spill] sm:$0xff] }
 0x7ee   : > { %4990 = vxpose.xlu0.b32.cont [12/16] (narrow) %v19813_v51, 8  ;;  %v19827_v51 = vld [vmem:[#allocation377_spill] sm:$0xff] }
 0x7f0   : > { %4828 = vxpose.xlu1.b32.cont [10/16] (narrow) %v19814_v60, 8  ;;  %v5516_v60 = vsel %vm523_vm0, %v5515_v58, %v19827_v51 }
 0x7f1   : > { %5022 = vxpose.xlu2.b32.cont [12/16] (narrow) %v19815_v39, 8  ;;  %v5522_v39 = vperm.slane %v5516_v60, %v10671_v37 }
 0x7f6   : > { %4991 = vxpose.xlu0.b32.cont [13/16] (narrow) %v19816_v47, 8  ;;  %v19828_v47 = vld [vmem:[#allocation383_spill] sm:$0xff] }
 0x7f8   : > { %4829 = vxpose.xlu1.b32.cont [11/16] (narrow) %v19817_v1, 8  ;;  %v5540_v1 = vsel %vm523_vm0, %v5539_v54, %v19828_v47  ;;  %v19835_v47 = vld [vmem:[#allocation416_spill] sm:$0xff] }
 0x7f9   : > { %5023 = vxpose.xlu2.b32.cont [13/16] (narrow) %v19818_v9, 8  ;;  %v19829_v9 = vld [vmem:[#allocation421_spill] sm:$0xff] }
 0x7fe   : > { %4992 = vxpose.xlu0.b32.cont [14/16] (narrow) %v19819_v0, 8  ;;  %v5627_v0 = vrot.slane %v19829_v9, 4 }
 0x800   : > { %4830 = vxpose.xlu1.b32.cont [12/16] (narrow) %v19820_v21, 8  ;;  %v19830_v21 = vld [vmem:[#allocation375_spill] sm:$0xff]  ;;  %v5628_v58 = vsel %vm523_vm0, %v5627_v0, %v19834_v63  ;;  %v19839_v0 = vld [vmem:[#allocation422_spill] sm:$0xff] }
 0x801   : > { %5024 = vxpose.xlu2.b32.cont [14/16] (narrow) %v19821_v12, 8  ;;  %v5546_v12 = vperm.slane %v5540_v1, %v10671_v37  ;;  %v5634_v54 = vperm.slane %v5628_v58, %v10671_v37 }
 0x803   : > { %v5563_v51 = vrot.slane %v5546_v12, 4  ;;  %v5677_v63 = vrot.slane %v5634_v54, 4 }
 0x806   : > { %4993 = vxpose.xlu0.b32.cont [15/16] (narrow) %v19823_v11, 8  ;;  %v5651_v11 = vrot.slane %v19831_v28, 4  ;;  %v5564_v28 = vsel %vm523_vm0, %v5563_v51, %v5522_v39 }
 0x808   : > { %4831 = vxpose.xlu1.b32.cont [13/16] (narrow) %v19825_v4, 8  ;;  %v19833_v4 = vld [vmem:[#allocation372_spill] sm:$0xff]  ;;  %v5652_v9 = vsel %vm523_vm0, %v5651_v11, %v19835_v47 }
 0x809   : > { %5025 = vxpose.xlu2.b32.cont [15/16] (narrow) %v19826_v46, 8  ;;  %v5565_v46 = vrot.slane %v5522_v39, 4  ;;  %v19840_v47 = vld [vmem:[#allocation424_spill] sm:$0xff]  ;;  %v19841_v39 = vld [vmem:[#allocation442_spill] sm:$0xff] }
 0x80a   : > { %v5851_v51 = vrot.slane %v19841_v39, 4 }
 0x80b   : > { %v5566_v60 = vsel %vm523_vm0, %v5546_v12, %v5565_v46 }
 0x80e   : > { %4994 = vxpose.xlu0.b32.end [16/16] (narrow) %v19830_v21, 8  ;;  %v19836_v21 = vld [vmem:[#allocation426_spill] sm:$0xff] }
 0x80f   : > { %v5739_v1 = vrot.slane %v19836_v21, 4  ;;  %v19842_v21 = vld [vmem:[#allocation373_spill] sm:$0xff] }
 0x810   : > { %4832 = vxpose.xlu1.b32.cont [14/16] (narrow) %v19832_v52, 8  ;;  %v5658_v52 = vperm.slane %v5652_v9, %v10671_v37 }
 0x811   : > { %5026 = vxpose.xlu2.b32.end [16/16] (narrow) %v19833_v4, 8  ;;  %v19837_v4 = vld [vmem:[#allocation427_spill] sm:$0xff]  ;;  %v5740_v12 = vsel %vm523_vm0, %v5739_v1, %v19839_v0 }
 0x812   : > { %v5763_v33 = vrot.slane %v19837_v4, 4  ;;  %v5675_v46 = vrot.slane %v5658_v52, 4  ;;  %v5678_v58 = vsel %vm523_vm0, %v5658_v52, %v5677_v63  ;;  %v5746_v11 = vperm.slane %v5740_v12, %v10671_v37  ;;  %v19843_v1 = vld [vmem:[#allocation447_spill] sm:$0xff]  ;;  %v19844_v52 = vld [vmem:[#allocation437_spill] sm:$0xff] }
 0x813   : > { %v5875_v4 = vrot.slane %v19843_v1, 4  ;;  %v5852_v63 = vsel %vm523_vm0, %v5851_v51, %v19844_v52  ;;  %v19848_v1 = vld [vmem:[#allocation203_spill] sm:$0xff] }
 0x814   : > { %v5676_v9 = vsel %vm523_vm0, %v5675_v46, %v5634_v54  ;;  %v5858_v54 = vperm.slane %v5852_v63, %v10671_v37  ;;  %v19846_v46 = vld [vmem:[#allocation453_spill] sm:$0xff] }
 0x816   : > { %7291 = vxpose.xlu0.b32.start [1/16] (narrow) %v5566_v60, 8  ;;  %v5764_v60 = vsel %vm523_vm0, %v5763_v33, %v19840_v47  ;;  %v19845_v33 = vld [vmem:[#allocation445_spill] sm:$0xff]  ;;  %v5963_v47 = vrot.slane %v19846_v46, 4  ;;  %v5901_v51 = vrot.slane %v5858_v54, 4 }
 0x818   : > { %4833 = vxpose.xlu1.b32.cont [15/16] (narrow) %v19838_v35, 8  ;;  %v5770_v35 = vperm.slane %v5764_v60, %v10671_v37 }
 0x819   : > { %7259 = vxpose.xlu2.b32.start [1/16] (narrow) %v5564_v28, 8  ;;  %v5789_v28 = vrot.slane %v5746_v11, 4 }
 0x81a   : > { %v5787_v0 = vrot.slane %v5770_v35, 4 }
 0x81b   : > { %v5790_v12 = vsel %vm523_vm0, %v5770_v35, %v5789_v28  ;;  %v19849_v35 = vld [vmem:[#allocation451_spill] sm:$0xff] }
 0x81c   : > { %v5788_v60 = vsel %vm523_vm0, %v5787_v0, %v5746_v11  ;;  %v5964_v28 = vsel %vm523_vm0, %v5963_v47, %v19849_v35 }
 0x81d   : > { %v5970_v11 = vperm.slane %v5964_v28, %v10671_v37 }
 0x81e   : > { %7292 = vxpose.xlu0.b32.cont [2/16] (narrow) %v5678_v58, 8  ;;  %v5876_v58 = vsel %vm523_vm0, %v5875_v4, %v19845_v33 }
 0x81f   : > { %v5882_v39 = vperm.slane %v5876_v58, %v10671_v37  ;;  %v19851_v58 = vld [vmem:[#allocation465_spill] sm:$0xff]  ;;  %v6013_v47 = vrot.slane %v5970_v11, 4 }
 0x820   : > { %4834 = vxpose.xlu1.b32.end [16/16] (narrow) %v19842_v21, 8  ;;  %v6099_v46 = vrot.slane %v19851_v58, 4  ;;  %v19857_v58 = vld [vmem:[#allocation231_spill] sm:$0xff] }
 0x821   : > { %7260 = vxpose.xlu2.b32.cont [2/16] (narrow) %v5676_v9, 8  ;;  %v19847_v9 = vld [vmem:[#allocation454_spill] sm:$0xff]  ;;  %v5899_v52 = vrot.slane %v5882_v39, 4  ;;  %v5902_v4 = vsel %vm523_vm0, %v5882_v39, %v5901_v51  ;;  %v19854_v39 = vld [vmem:[#allocation460_spill] sm:$0xff] }
 0x822   : > { %v5987_v21 = vrot.slane %v19847_v9, 4  ;;  %v19853_v9 = vld [vmem:[#allocation463_spill] sm:$0xff] }
 0x823   : > { %v5900_v0 = vsel %vm523_vm0, %v5899_v52, %v5858_v54  ;;  %v19856_v52 = vld [vmem:[#allocation474_spill] sm:$0xff] }
 0x826   : > { %7293 = vxpose.xlu0.b32.cont [3/16] (narrow) %v5790_v12, 8  ;;  %v19850_v12 = vld [vmem:[#allocation308_spill] sm:$0xff] }
 0x827   : > { %v5988_v63 = vsel %vm523_vm0, %v5987_v21, %v19850_v12  ;;  %v6187_v12 = vrot.slane %v19856_v52, 4 }
 0x828   : > { %4947 = vxpose.xlu1.b32.start [1/16] (narrow) %v19848_v1, 8  ;;  %v5994_v33 = vperm.slane %v5988_v63, %v10671_v37  ;;  %v6075_v1 = vrot.slane %v19853_v9, 4 }
 0x829   : > { %7261 = vxpose.xlu2.b32.cont [3/16] (narrow) %v5788_v60, 8  ;;  %v19852_v60 = vld [vmem:[#allocation218_spill] sm:$0xff] }
 0x82a   : > { %v6011_v35 = vrot.slane %v5994_v33, 4  ;;  %v6076_v51 = vsel %vm523_vm0, %v6075_v1, %v19854_v39  ;;  %v6014_v21 = vsel %vm523_vm0, %v5994_v33, %v6013_v47  ;;  %v19859_v33 = vld [vmem:[#allocation472_spill] sm:$0xff] }
 0x82b   : > { %v6082_v54 = vperm.slane %v6076_v51, %v10671_v37  ;;  %v6188_v47 = vsel %vm523_vm0, %v6187_v12, %v19859_v33 }
 0x82c   : > { %v6012_v63 = vsel %vm523_vm0, %v6011_v35, %v5970_v11  ;;  %v6194_v11 = vperm.slane %v6188_v47, %v10671_v37  ;;  %v19861_v35 = vld [vmem:[#allocation485_spill] sm:$0xff] }
 0x82d   : > { %v6125_v1 = vrot.slane %v6082_v54, 4 }
 0x82e   : > { %7294 = vxpose.xlu0.b32.cont [4/16] (narrow) %v5902_v4, 8  ;;  %v19855_v4 = vld [vmem:[#allocation464_spill] sm:$0xff]  ;;  %v6237_v12 = vrot.slane %v6194_v11, 4 }
 0x82f   : > { %v6100_v28 = vsel %vm523_vm0, %v6099_v46, %v19855_v4  ;;  %v6299_v4 = vrot.slane %v19861_v35, 4 }
 0x830   : > { %4948 = vxpose.xlu1.b32.cont [2/16] (narrow) %v19852_v60, 8  ;;  %v19858_v60 = vld [vmem:[#allocation478_spill] sm:$0xff] }
 0x831   : > { %7262 = vxpose.xlu2.b32.cont [4/16] (narrow) %v5900_v0, 8  ;;  %v6106_v0 = vperm.slane %v6100_v28, %v10671_v37  ;;  %v6211_v9 = vrot.slane %v19858_v60, 4  ;;  %v19863_v60 = vld [vmem:[#allocation241_spill] sm:$0xff] }
 0x833   : > { %v6123_v39 = vrot.slane %v6106_v0, 4  ;;  %v6126_v46 = vsel %vm523_vm0, %v6106_v0, %v6125_v1  ;;  %v19864_v0 = vld [vmem:[#allocation482_spill] sm:$0xff] }
 0x834   : > { %v6300_v1 = vsel %vm523_vm0, %v6299_v4, %v19864_v0 }
 0x835   : > { %v6124_v28 = vsel %vm523_vm0, %v6123_v39, %v6082_v54  ;;  %v6306_v54 = vperm.slane %v6300_v1, %v10671_v37  ;;  %v19866_v39 = vld [vmem:[#allocation495_spill] sm:$0xff] }
 0x836   : > { %7295 = vxpose.xlu0.b32.cont [5/16] (narrow) %v6014_v21, 8  ;;  %v19860_v21 = vld [vmem:[#allocation476_spill] sm:$0xff] }
 0x837   : > { %v6212_v51 = vsel %vm523_vm0, %v6211_v9, %v19860_v21  ;;  %v6411_v21 = vrot.slane %v19866_v39, 4  ;;  %v6349_v4 = vrot.slane %v6306_v54, 4 }
 0x838   : > { %4949 = vxpose.xlu1.b32.cont [3/16] (narrow) %v19857_v58, 8  ;;  %v6218_v52 = vperm.slane %v6212_v51, %v10671_v37 }
 0x839   : > { %7263 = vxpose.xlu2.b32.cont [5/16] (narrow) %v6012_v63, 8  ;;  %v19862_v63 = vld [vmem:[#allocation486_spill] sm:$0xff] }
 0x83a   : > { %v6323_v58 = vrot.slane %v19862_v63, 4  ;;  %v6235_v33 = vrot.slane %v6218_v52, 4  ;;  %v6238_v9 = vsel %vm523_vm0, %v6218_v52, %v6237_v12  ;;  %v19868_v63 = vld [vmem:[#allocation497_spill] sm:$0xff]  ;;  %v19869_v52 = vld [vmem:[#allocation492_spill] sm:$0xff] }
 0x83b   : > { %v6412_v12 = vsel %vm523_vm0, %v6411_v21, %v19869_v52 }
 0x83c   : > { %v6236_v51 = vsel %vm523_vm0, %v6235_v33, %v6194_v11  ;;  %v6418_v11 = vperm.slane %v6412_v12, %v10671_v37  ;;  %v19871_v33 = vld [vmem:[#allocation508_spill] sm:$0xff] }
 0x83e   : > { %7296 = vxpose.xlu0.b32.cont [6/16] (narrow) %v6126_v46, 8  ;;  %v19865_v46 = vld [vmem:[#allocation342_spill] sm:$0xff]  ;;  %v6461_v21 = vrot.slane %v6418_v11, 4 }
 0x83f   : > { %v6324_v47 = vsel %vm523_vm0, %v6323_v58, %v19865_v46  ;;  %v6523_v46 = vrot.slane %v19871_v33, 4 }
 0x840   : > { %4950 = vxpose.xlu1.b32.cont [4/16] (narrow) %v19863_v60, 8  ;;  %v6330_v35 = vperm.slane %v6324_v47, %v10671_v37  ;;  %v6435_v60 = vrot.slane %v19868_v63, 4  ;;  %v19873_v63 = vld [vmem:[#allocation264_spill] sm:$0xff] }
 0x841   : > { %7264 = vxpose.xlu2.b32.cont [6/16] (narrow) %v6124_v28, 8  ;;  %v19867_v28 = vld [vmem:[#allocation245_spill] sm:$0xff] }
 0x842   : > { %v6347_v0 = vrot.slane %v6330_v35, 4  ;;  %v6350_v58 = vsel %vm523_vm0, %v6330_v35, %v6349_v4  ;;  %v19874_v35 = vld [vmem:[#allocation505_spill] sm:$0xff] }
 0x843   : > { %v6524_v4 = vsel %vm523_vm0, %v6523_v46, %v19874_v35 }
 0x844   : > { %v6348_v47 = vsel %vm523_vm0, %v6347_v0, %v6306_v54  ;;  %v6530_v54 = vperm.slane %v6524_v4, %v10671_v37 }
 0x846   : > { %7297 = vxpose.xlu0.b32.cont [7/16] (narrow) %v6238_v9, 8  ;;  %v19870_v9 = vld [vmem:[#allocation496_spill] sm:$0xff]  ;;  %v6573_v46 = vrot.slane %v6530_v54, 4 }
 0x847   : > { %v6436_v1 = vsel %vm523_vm0, %v6435_v60, %v19870_v9 }
 0x848   : > { %4951 = vxpose.xlu1.b32.cont [5/16] (narrow) %v19867_v28, 8  ;;  %v6442_v39 = vperm.slane %v6436_v1, %v10671_v37  ;;  %v19876_v1 = vld [vmem:[#allocation517_spill] sm:$0xff] }
 0x849   : > { %7265 = vxpose.xlu2.b32.cont [7/16] (narrow) %v6236_v51, 8  ;;  %v19872_v51 = vld [vmem:[#allocation510_spill] sm:$0xff]  ;;  %v6659_v33 = vrot.slane %v19876_v1, 4 }
 0x84a   : > { %v6547_v28 = vrot.slane %v19872_v51, 4  ;;  %v6459_v52 = vrot.slane %v6442_v39, 4  ;;  %v6462_v60 = vsel %vm523_vm0, %v6442_v39, %v6461_v21  ;;  %v19878_v51 = vld [vmem:[#allocation515_spill] sm:$0xff]  ;;  %v19879_v39 = vld [vmem:[#allocation389_spill] sm:$0xff]  ;;  %v19882_v1 = vld [vmem:[#allocation278_spill] sm:$0xff] }
 0x84c   : > { %v6460_v0 = vsel %vm523_vm0, %v6459_v52, %v6418_v11  ;;  %v19881_v52 = vld [vmem:[#allocation395_spill] sm:$0xff] }
 0x84e   : > { %7298 = vxpose.xlu0.b32.cont [8/16] (narrow) %v6350_v58, 8  ;;  %v19875_v58 = vld [vmem:[#allocation368_spill] sm:$0xff] }
 0x84f   : > { %v6548_v12 = vsel %vm523_vm0, %v6547_v28, %v19875_v58  ;;  %v6747_v58 = vrot.slane %v19881_v52, 4 }
 0x850   : > { %4952 = vxpose.xlu1.b32.cont [6/16] (narrow) %v19873_v63, 8  ;;  %v6554_v9 = vperm.slane %v6548_v12, %v10671_v37  ;;  %v6635_v63 = vrot.slane %v19878_v51, 4 }
 0x851   : > { %7266 = vxpose.xlu2.b32.cont [8/16] (narrow) %v6348_v47, 8  ;;  %v19877_v47 = vld [vmem:[#allocation274_spill] sm:$0xff] }
 0x852   : > { %v6571_v35 = vrot.slane %v6554_v9, 4  ;;  %v6636_v21 = vsel %vm523_vm0, %v6635_v63, %v19879_v39  ;;  %v6574_v28 = vsel %vm523_vm0, %v6554_v9, %v6573_v46  ;;  %v19884_v9 = vld [vmem:[#allocation400_spill] sm:$0xff] }
 0x853   : > { %v6642_v11 = vperm.slane %v6636_v21, %v10671_v37  ;;  %v6748_v46 = vsel %vm523_vm0, %v6747_v58, %v19884_v9 }
 0x854   : > { %v6572_v12 = vsel %vm523_vm0, %v6571_v35, %v6530_v54  ;;  %v6754_v54 = vperm.slane %v6748_v46, %v10671_v37  ;;  %v19886_v35 = vld [vmem:[#allocation540_spill] sm:$0xff] }
 0x855   : > { %v6685_v63 = vrot.slane %v6642_v11, 4 }
 0x856   : > { %7299 = vxpose.xlu0.b32.cont [9/16] (narrow) %v6462_v60, 8  ;;  %v19880_v60 = vld [vmem:[#allocation516_spill] sm:$0xff]  ;;  %v6797_v58 = vrot.slane %v6754_v54, 4 }
 0x857   : > { %v6660_v4 = vsel %vm523_vm0, %v6659_v33, %v19880_v60  ;;  %v6859_v60 = vrot.slane %v19886_v35, 4 }
 0x858   : > { %4953 = vxpose.xlu1.b32.cont [7/16] (narrow) %v19877_v47, 8  ;;  %v19883_v47 = vld [vmem:[#allocation531_spill] sm:$0xff] }
 0x859   : > { %7267 = vxpose.xlu2.b32.cont [9/16] (narrow) %v6460_v0, 8  ;;  %v6666_v0 = vperm.slane %v6660_v4, %v10671_v37  ;;  %v6771_v51 = vrot.slane %v19883_v47, 4  ;;  %v19888_v47 = vld [vmem:[#allocation296_spill] sm:$0xff] }
 0x85b   : > { %v6683_v39 = vrot.slane %v6666_v0, 4  ;;  %v6686_v33 = vsel %vm523_vm0, %v6666_v0, %v6685_v63  ;;  %v19889_v0 = vld [vmem:[#allocation538_spill] sm:$0xff] }
 0x85c   : > { %v6860_v63 = vsel %vm523_vm0, %v6859_v60, %v19889_v0 }
 0x85d   : > { %v6684_v4 = vsel %vm523_vm0, %v6683_v39, %v6642_v11  ;;  %v6866_v11 = vperm.slane %v6860_v63, %v10671_v37 }
 0x85e   : > { %7300 = vxpose.xlu0.b32.cont [10/16] (narrow) %v6574_v28, 8  ;;  %v19885_v28 = vld [vmem:[#allocation529_spill] sm:$0xff] }
 0x85f   : > { %v6772_v21 = vsel %vm523_vm0, %v6771_v51, %v19885_v28  ;;  %v6909_v60 = vrot.slane %v6866_v11, 4 }
 0x860   : > { %4954 = vxpose.xlu1.b32.cont [8/16] (narrow) %v19882_v1, 8  ;;  %v6778_v52 = vperm.slane %v6772_v21, %v10671_v37  ;;  %v19891_v21 = vld [vmem:[#allocation413_spill] sm:$0xff] }
 0x861   : > { %7268 = vxpose.xlu2.b32.cont [10/16] (narrow) %v6572_v12, 8  ;;  %v19887_v12 = vld [vmem:[#allocation542_spill] sm:$0xff]  ;;  %v6995_v35 = vrot.slane %v19891_v21, 4  ;;  %v19897_v21 = vld [vmem:[#allocation319_spill] sm:$0xff] }
 0x862   : > { %v6883_v1 = vrot.slane %v19887_v12, 4  ;;  %v6795_v9 = vrot.slane %v6778_v52, 4  ;;  %v6798_v51 = vsel %vm523_vm0, %v6778_v52, %v6797_v58  ;;  %v19893_v12 = vld [vmem:[#allocation545_spill] sm:$0xff]  ;;  %v19894_v52 = vld [vmem:[#allocation411_spill] sm:$0xff] }
 0x864   : > { %v6796_v39 = vsel %vm523_vm0, %v6795_v9, %v6754_v54  ;;  %v19896_v9 = vld [vmem:[#allocation40_spill] sm:$0xff] }
 0x866   : > { %7301 = vxpose.xlu0.b32.cont [11/16] (narrow) %v6686_v33, 8  ;;  %v19890_v33 = vld [vmem:[#allocation399_spill] sm:$0xff] }
 0x867   : > { %v6884_v46 = vsel %vm523_vm0, %v6883_v1, %v19890_v33  ;;  %v7083_v33 = vrot.slane %v19896_v9, 4 }
 0x868   : > { %4955 = vxpose.xlu1.b32.cont [9/16] (narrow) %v19888_v47, 8  ;;  %v6890_v28 = vperm.slane %v6884_v46, %v10671_v37  ;;  %v6971_v47 = vrot.slane %v19893_v12, 4 }
 0x869   : > { %7269 = vxpose.xlu2.b32.cont [11/16] (narrow) %v6684_v4, 8  ;;  %v19892_v4 = vld [vmem:[#allocation300_spill] sm:$0xff] }
 0x86a   : > { %v6907_v0 = vrot.slane %v6890_v28, 4  ;;  %v6972_v58 = vsel %vm523_vm0, %v6971_v47, %v19894_v52  ;;  %v6910_v1 = vsel %vm523_vm0, %v6890_v28, %v6909_v60  ;;  %v19899_v28 = vld [vmem:[#allocation407_spill] sm:$0xff] }
 0x86b   : > { %v6978_v54 = vperm.slane %v6972_v58, %v10671_v37  ;;  %v7084_v60 = vsel %vm523_vm0, %v7083_v33, %v19899_v28 }
 0x86c   : > { %v6908_v46 = vsel %vm523_vm0, %v6907_v0, %v6866_v11  ;;  %v7090_v11 = vperm.slane %v7084_v60, %v10671_v37  ;;  %v19901_v0 = vld [vmem:[#allocation73_spill] sm:$0xff] }
 0x86d   : > { %v7021_v47 = vrot.slane %v6978_v54, 4 }
 0x86e   : > { %7302 = vxpose.xlu0.b32.cont [12/16] (narrow) %v6798_v51, 8  ;;  %v19895_v51 = vld [vmem:[#allocation546_spill] sm:$0xff]  ;;  %v7133_v33 = vrot.slane %v7090_v11, 4 }
 0x86f   : > { %v6996_v63 = vsel %vm523_vm0, %v6995_v35, %v19895_v51  ;;  %v7195_v51 = vrot.slane %v19901_v0, 4 }
 0x870   : > { %4956 = vxpose.xlu1.b32.cont [10/16] (narrow) %v19892_v4, 8  ;;  %v19898_v4 = vld [vmem:[#allocation51_spill] sm:$0xff] }
 0x871   : > { %7270 = vxpose.xlu2.b32.cont [12/16] (narrow) %v6796_v39, 8  ;;  %v7002_v39 = vperm.slane %v6996_v63, %v10671_v37  ;;  %v7107_v12 = vrot.slane %v19898_v4, 4  ;;  %v19903_v4 = vld [vmem:[#allocation329_spill] sm:$0xff] }
 0x873   : > { %v7019_v52 = vrot.slane %v7002_v39, 4  ;;  %v7022_v35 = vsel %vm523_vm0, %v7002_v39, %v7021_v47  ;;  %v19904_v39 = vld [vmem:[#allocation74_spill] sm:$0xff] }
 0x874   : > { %v7196_v47 = vsel %vm523_vm0, %v7195_v51, %v19904_v39  ;;  %v19911_v39 = vld [vmem:[#allocation363_spill] sm:$0xff] }
 0x875   : > { %v7020_v63 = vsel %vm523_vm0, %v7019_v52, %v6978_v54  ;;  %v7202_v54 = vperm.slane %v7196_v47, %v10671_v37  ;;  %v19912_v47 = vld [vmem:[#allocation439_spill] sm:$0xff] }
 0x876   : > { %7303 = vxpose.xlu0.b32.cont [13/16] (narrow) %v6910_v1, 8  ;;  %v19900_v1 = vld [vmem:[#allocation410_spill] sm:$0xff] }
 0x877   : > { %v7108_v58 = vsel %vm523_vm0, %v7107_v12, %v19900_v1  ;;  %v7245_v0 = vrot.slane %v7202_v54, 4 }
 0x878   : > { %4957 = vxpose.xlu1.b32.cont [11/16] (narrow) %v19897_v21, 8  ;;  %v7114_v9 = vperm.slane %v7108_v58, %v10671_v37  ;;  %v19906_v58 = vld [vmem:[#allocation333_spill] sm:$0xff] }
 0x879   : > { %7271 = vxpose.xlu2.b32.cont [13/16] (narrow) %v6908_v46, 8  ;;  %v19902_v46 = vld [vmem:[#allocation100_spill] sm:$0xff] }
 0x87a   : > { %v7219_v21 = vrot.slane %v19902_v46, 4  ;;  %v7131_v28 = vrot.slane %v7114_v9, 4  ;;  %v7134_v12 = vsel %vm523_vm0, %v7114_v9, %v7133_v33  ;;  %v19907_v9 = vld [vmem:[#allocation353_spill] sm:$0xff]  ;;  %v19909_v33 = vld [vmem:[#allocation391_spill] sm:$0xff] }
 0x87c   : > { %v7132_v52 = vsel %vm523_vm0, %v7131_v28, %v7090_v11  ;;  %v19910_v11 = vld [vmem:[#allocation386_spill] sm:$0xff] }
 0x87e   : > { %7304 = vxpose.xlu0.b32.cont [14/16] (narrow) %v7022_v35, 8  ;;  %v19905_v35 = vld [vmem:[#allocation86_spill] sm:$0xff] }
 0x87f   : > { %v7220_v60 = vsel %vm523_vm0, %v7219_v21, %v19905_v35  ;;  %v19908_v21 = vld [vmem:[#allocation390_spill] sm:$0xff]  ;;  %v19913_v35 = vld [vmem:[#allocation429_spill] sm:$0xff] }
 0x880   : > { %4958 = vxpose.xlu1.b32.cont [12/16] (narrow) %v19903_v4, 8  ;;  %v7226_v1 = vperm.slane %v7220_v60, %v10671_v37  ;;  %v5571_v4 = vrot.slane %v19908_v21, 4  ;;  %v19914_v60 = vld [vmem:[#allocation433_spill] sm:$0xff] }
 0x881   : > { %7272 = vxpose.xlu2.b32.cont [14/16] (narrow) %v7020_v63, 8 }
 0x882   : > { %v7243_v63 = vrot.slane %v7226_v1, 4  ;;  %v7246_v46 = vsel %vm523_vm0, %v7226_v1, %v7245_v0  ;;  %v5572_v28 = vsel %vm523_vm0, %v5571_v4, %v19910_v11  ;;  %v19916_v1 = vld [vmem:[#allocation438_spill] sm:$0xff]  ;;  %v19917_v0 = vld [vmem:[#allocation432_spill] sm:$0xff] }
 0x883   : > { %v19921_v4 = vld [vmem:[#allocation220_spill] sm:$0xff] }
 0x884   : > { %v7244_v51 = vsel %vm523_vm0, %v7243_v63, %v7202_v54  ;;  %v19918_v63 = vld [vmem:[#allocation434_spill] sm:$0xff] }
 0x886   : > { %7305 = vxpose.xlu0.b32.cont [15/16] (narrow) %v7134_v12, 8  ;;  %v5683_v12 = vrot.slane %v19912_v47, 4 }
 0x888   : > { %4959 = vxpose.xlu1.b32.cont [13/16] (narrow) %v19906_v58, 8  ;;  %v5684_v54 = vsel %vm523_vm0, %v5683_v12, %v19914_v60  ;;  %v5795_v58 = vrot.slane %v19916_v1, 4  ;;  %v19925_v12 = vld [vmem:[#allocation458_spill] sm:$0xff] }
 0x889   : > { %7273 = vxpose.xlu2.b32.cont [15/16] (narrow) %v7132_v52, 8  ;;  %v19915_v52 = vld [vmem:[#allocation370_spill] sm:$0xff] }
 0x88e   : > { %7306 = vxpose.xlu0.b32.end [16/16] (narrow) %v7246_v46, 8  ;;  %v5796_v46 = vsel %vm523_vm0, %v5795_v58, %v19918_v63  ;;  %v19929_v58 = vld [vmem:[#allocation467_spill] sm:$0xff] }
 0x890   : > { %4960 = vxpose.xlu1.b32.cont [14/16] (narrow) %v19907_v9, 8  ;;  %v19920_v9 = vld [vmem:[#allocation446_spill] sm:$0xff] }
 0x891   : > { %7274 = vxpose.xlu2.b32.end [16/16] (narrow) %v7244_v51, 8  ;;  %v19919_v51 = vld [vmem:[#allocation393_spill] sm:$0xff]  ;;  %v5907_v21 = vrot.slane %v19920_v9, 4 }
 0x896   : > { %7355 = vxpose.xlu0.b32.start [1/16] (narrow) %v19909_v33, 8  ;;  %v19922_v33 = vld [vmem:[#allocation298_spill] sm:$0xff] }
 0x897   : > { %v5908_v11 = vsel %vm523_vm0, %v5907_v21, %v19922_v33  ;;  %v19933_v21 = vld [vmem:[#allocation480_spill] sm:$0xff] }
 0x898   : > { %4961 = vxpose.xlu1.b32.cont [15/16] (narrow) %v19911_v39, 8  ;;  %v19924_v39 = vld [vmem:[#allocation457_spill] sm:$0xff] }
 0x899   : > { %7387 = vxpose.xlu2.b32.start [1/16] (narrow) %v5572_v28, 8  ;;  %v19923_v28 = vld [vmem:[#allocation435_spill] sm:$0xff]  ;;  %v6019_v47 = vrot.slane %v19924_v39, 4 }
 0x89e   : > { %7356 = vxpose.xlu0.b32.cont [2/16] (narrow) %v19913_v35, 8  ;;  %v19926_v35 = vld [vmem:[#allocation455_spill] sm:$0xff] }
 0x89f   : > { %v6020_v60 = vsel %vm523_vm0, %v6019_v47, %v19926_v35  ;;  %v19937_v47 = vld [vmem:[#allocation490_spill] sm:$0xff] }
 0x8a0   : > { %4962 = vxpose.xlu1.b32.end [16/16] (narrow) %v19915_v52, 8  ;;  %v19928_v52 = vld [vmem:[#allocation468_spill] sm:$0xff] }
 0x8a1   : > { %7388 = vxpose.xlu2.b32.cont [2/16] (narrow) %v5684_v54, 8  ;;  %v19927_v54 = vld [vmem:[#allocation436_spill] sm:$0xff]  ;;  %v6131_v1 = vrot.slane %v19928_v52, 4 }
 0x8a6   : > { %7357 = vxpose.xlu0.b32.cont [3/16] (narrow) %v19917_v0, 8  ;;  %v19930_v0 = vld [vmem:[#allocation466_spill] sm:$0xff] }
 0x8a7   : > { %v6132_v63 = vsel %vm523_vm0, %v6131_v1, %v19930_v0  ;;  %v19941_v1 = vld [vmem:[#allocation499_spill] sm:$0xff] }
 0x8a8   : > { %7323 = vxpose.xlu1.b32.start [1/16] (narrow) %v19919_v51, 8  ;;  %v19932_v51 = vld [vmem:[#allocation477_spill] sm:$0xff] }
 0x8a9   : > { %7389 = vxpose.xlu2.b32.cont [3/16] (narrow) %v5796_v46, 8  ;;  %v19931_v46 = vld [vmem:[#allocation450_spill] sm:$0xff]  ;;  %v6243_v9 = vrot.slane %v19932_v51, 4 }
 0x8ae   : > { %7358 = vxpose.xlu0.b32.cont [4/16] (narrow) %v19921_v4, 8  ;;  %v19934_v4 = vld [vmem:[#allocation475_spill] sm:$0xff] }
 0x8af   : > { %v6244_v33 = vsel %vm523_vm0, %v6243_v9, %v19934_v4  ;;  %v19945_v9 = vld [vmem:[#allocation380_spill] sm:$0xff] }
 0x8b0   : > { %7324 = vxpose.xlu1.b32.cont [2/16] (narrow) %v19923_v28, 8  ;;  %v19936_v28 = vld [vmem:[#allocation489_spill] sm:$0xff] }
 0x8b1   : > { %7390 = vxpose.xlu2.b32.cont [4/16] (narrow) %v5908_v11, 8  ;;  %v19935_v11 = vld [vmem:[#allocation461_spill] sm:$0xff]  ;;  %v6355_v39 = vrot.slane %v19936_v28, 4 }
 0x8b6   : > { %7359 = vxpose.xlu0.b32.cont [5/16] (narrow) %v19925_v12, 8  ;;  %v19938_v12 = vld [vmem:[#allocation487_spill] sm:$0xff] }
 0x8b7   : > { %v6356_v35 = vsel %vm523_vm0, %v6355_v39, %v19938_v12  ;;  %v19949_v39 = vld [vmem:[#allocation521_spill] sm:$0xff] }
 0x8b8   : > { %7325 = vxpose.xlu1.b32.cont [3/16] (narrow) %v19927_v54, 8  ;;  %v19940_v54 = vld [vmem:[#allocation501_spill] sm:$0xff] }
 0x8b9   : > { %7391 = vxpose.xlu2.b32.cont [5/16] (narrow) %v6020_v60, 8  ;;  %v19939_v60 = vld [vmem:[#allocation469_spill] sm:$0xff]  ;;  %v6467_v52 = vrot.slane %v19940_v54, 4 }
 0x8be   : > { %7360 = vxpose.xlu0.b32.cont [6/16] (narrow) %v19929_v58, 8  ;;  %v19942_v58 = vld [vmem:[#allocation500_spill] sm:$0xff] }
 0x8bf   : > { %v6468_v0 = vsel %vm523_vm0, %v6467_v52, %v19942_v58  ;;  %v19953_v52 = vld [vmem:[#allocation397_spill] sm:$0xff] }
 0x8c0   : > { %7326 = vxpose.xlu1.b32.cont [4/16] (narrow) %v19931_v46, 8  ;;  %v19944_v46 = vld [vmem:[#allocation376_spill] sm:$0xff] }
 0x8c1   : > { %7392 = vxpose.xlu2.b32.cont [6/16] (narrow) %v6132_v63, 8  ;;  %v19943_v63 = vld [vmem:[#allocation483_spill] sm:$0xff]  ;;  %v6579_v51 = vrot.slane %v19944_v46, 4 }
 0x8c6   : > { %7361 = vxpose.xlu0.b32.cont [7/16] (narrow) %v19933_v21, 8  ;;  %v19946_v21 = vld [vmem:[#allocation384_spill] sm:$0xff] }
 0x8c7   : > { %v6580_v4 = vsel %vm523_vm0, %v6579_v51, %v19946_v21  ;;  %v19957_v51 = vld [vmem:[#allocation401_spill] sm:$0xff] }
 0x8c8   : > { %7327 = vxpose.xlu1.b32.cont [5/16] (narrow) %v19935_v11, 8  ;;  %v19948_v11 = vld [vmem:[#allocation523_spill] sm:$0xff] }
 0x8c9   : > { %7393 = vxpose.xlu2.b32.cont [7/16] (narrow) %v6244_v33, 8  ;;  %v19947_v33 = vld [vmem:[#allocation493_spill] sm:$0xff]  ;;  %v6691_v28 = vrot.slane %v19948_v11, 4 }
 0x8ce   : > { %7362 = vxpose.xlu0.b32.cont [8/16] (narrow) %v19937_v47, 8  ;;  %v19950_v47 = vld [vmem:[#allocation519_spill] sm:$0xff] }
 0x8cf   : > { %v6692_v12 = vsel %vm523_vm0, %v6691_v28, %v19950_v47  ;;  %v19961_v28 = vld [vmem:[#allocation33_spill] sm:$0xff] }
 0x8d0   : > { %7328 = vxpose.xlu1.b32.cont [6/16] (narrow) %v19939_v60, 8  ;;  %v19952_v60 = vld [vmem:[#allocation530_spill] sm:$0xff] }
 0x8d1   : > { %7394 = vxpose.xlu2.b32.cont [8/16] (narrow) %v6356_v35, 8  ;;  %v19951_v35 = vld [vmem:[#allocation506_spill] sm:$0xff]  ;;  %v6803_v54 = vrot.slane %v19952_v60, 4 }
 0x8d6   : > { %7363 = vxpose.xlu0.b32.cont [9/16] (narrow) %v19941_v1, 8  ;;  %v19954_v1 = vld [vmem:[#allocation528_spill] sm:$0xff] }
 0x8d7   : > { %v6804_v58 = vsel %vm523_vm0, %v6803_v54, %v19954_v1  ;;  %v19965_v54 = vld [vmem:[#allocation78_spill] sm:$0xff] }
 0x8d8   : > { %7329 = vxpose.xlu1.b32.cont [7/16] (narrow) %v19943_v63, 8  ;;  %v19956_v63 = vld [vmem:[#allocation23_spill] sm:$0xff] }
 0x8d9   : > { %7395 = vxpose.xlu2.b32.cont [9/16] (narrow) %v6468_v0, 8  ;;  %v19955_v0 = vld [vmem:[#allocation513_spill] sm:$0xff]  ;;  %v6915_v46 = vrot.slane %v19956_v63, 4 }
 0x8de   : > { %7364 = vxpose.xlu0.b32.cont [10/16] (narrow) %v19945_v9, 8  ;;  %v19958_v9 = vld [vmem:[#allocation408_spill] sm:$0xff] }
 0x8df   : > { %v6916_v21 = vsel %vm523_vm0, %v6915_v46, %v19958_v9  ;;  %v19969_v46 = vld [vmem:[#allocation551_spill] sm:$0xff] }
 0x8e0   : > { %7330 = vxpose.xlu1.b32.cont [8/16] (narrow) %v19947_v33, 8  ;;  %v19960_v33 = vld [vmem:[#allocation30_spill] sm:$0xff] }
 0x8e1   : > { %7396 = vxpose.xlu2.b32.cont [10/16] (narrow) %v6580_v4, 8  ;;  %v19959_v4 = vld [vmem:[#allocation524_spill] sm:$0xff]  ;;  %v7027_v11 = vrot.slane %v19960_v33, 4  ;;  %v19972_v33 = vld [vmem:[#allocation415_spill] sm:$0xff] }
 0x8e6   : > { %7365 = vxpose.xlu0.b32.cont [11/16] (narrow) %v19949_v39, 8  ;;  %v19962_v39 = vld [vmem:[#allocation31_spill] sm:$0xff] }
 0x8e7   : > { %v7028_v47 = vsel %vm523_vm0, %v7027_v11, %v19962_v39  ;;  %v19973_v11 = vld [vmem:[#allocation425_spill] sm:$0xff] }
 0x8e8   : > { %7331 = vxpose.xlu1.b32.cont [9/16] (narrow) %v19951_v35, 8  ;;  %v19964_v35 = vld [vmem:[#allocation52_spill] sm:$0xff]  ;;  %v19974_v39 = vld [vmem:[#allocation409_spill] sm:$0xff] }
 0x8e9   : > { %7397 = vxpose.xlu2.b32.cont [11/16] (narrow) %v6692_v12, 8  ;;  %v19963_v12 = vld [vmem:[#allocation536_spill] sm:$0xff]  ;;  %v7139_v60 = vrot.slane %v19964_v35, 4 }
 0x8ee   : > { %7366 = vxpose.xlu0.b32.cont [12/16] (narrow) %v19953_v52, 8  ;;  %v19966_v52 = vld [vmem:[#allocation53_spill] sm:$0xff] }
 0x8ef   : > { %v7140_v1 = vsel %vm523_vm0, %v7139_v60, %v19966_v52  ;;  %v19976_v60 = vld [vmem:[#allocation75_spill] sm:$0xff] }
 0x8f0   : > { %7332 = vxpose.xlu1.b32.cont [10/16] (narrow) %v19955_v0, 8  ;;  %v19968_v0 = vld [vmem:[#allocation97_spill] sm:$0xff] }
 0x8f1   : > { %7398 = vxpose.xlu2.b32.cont [12/16] (narrow) %v6804_v58, 8  ;;  %v19967_v58 = vld [vmem:[#allocation20_spill] sm:$0xff]  ;;  %v7251_v63 = vrot.slane %v19968_v0, 4 }
 0x8f6   : > { %7367 = vxpose.xlu0.b32.cont [13/16] (narrow) %v19957_v51, 8  ;;  %v19970_v51 = vld [vmem:[#allocation85_spill] sm:$0xff] }
 0x8f7   : > { %v7252_v9 = vsel %vm523_vm0, %v7251_v63, %v19970_v51  ;;  %v19978_v63 = vld [vmem:[#allocation111_spill] sm:$0xff]  ;;  %v19980_v51 = vld [vmem:[#allocation394_spill] sm:$0xff] }
 0x8f8   : > { %7333 = vxpose.xlu1.b32.cont [11/16] (narrow) %v19959_v4, 8 }
 0x8f9   : > { %7399 = vxpose.xlu2.b32.cont [13/16] (narrow) %v6916_v21, 8  ;;  %v19971_v21 = vld [vmem:[#allocation428_spill] sm:$0xff] }
 0x8fa   : > { %v5641_v4 = vrot.slane %v19971_v21, 4  ;;  %v19982_v21 = vld [vmem:[#allocation452_spill] sm:$0xff] }
 0x8fe   : > { %7368 = vxpose.xlu0.b32.cont [14/16] (narrow) %v19961_v28, 8  ;;  %v5642_v28 = vsel %vm523_vm0, %v19973_v11, %v5641_v4  ;;  %v19983_v4 = vld [vmem:[#allocation440_spill] sm:$0xff]  ;;  %v19985_v11 = vld [vmem:[#allocation459_spill] sm:$0xff] }
 0x8ff   : > { %v5650_v35 = vperm.slane %v5642_v28, %v10671_v37  ;;  %v19986_v28 = vld [vmem:[#allocation441_spill] sm:$0xff] }
 0x900   : > { %7334 = vxpose.xlu1.b32.cont [12/16] (narrow) %v19963_v12, 8  ;;  %v19975_v12 = vld [vmem:[#allocation392_spill] sm:$0xff] }
 0x901   : > { %7400 = vxpose.xlu2.b32.cont [14/16] (narrow) %v7028_v47, 8  ;;  %v5674_v47 = vperm.slane %v19974_v39, %v10671_v37  ;;  %v19987_v39 = vld [vmem:[#allocation456_spill] sm:$0xff] }
 0x903   : > { %v5687_v52 = vrot.slane %v5674_v47, 4 }
 0x906   : > { %7369 = vxpose.xlu0.b32.cont [15/16] (narrow) %v19965_v54, 8  ;;  %v19977_v54 = vld [vmem:[#allocation388_spill] sm:$0xff] }
 0x908   : > { %7335 = vxpose.xlu1.b32.cont [13/16] (narrow) %v19967_v58, 8  ;;  %v5688_v58 = vsel %vm523_vm0, %v5687_v52, %v5650_v35  ;;  %v19993_v52 = vld [vmem:[#allocation481_spill] sm:$0xff] }
 0x909   : > { %7401 = vxpose.xlu2.b32.cont [15/16] (narrow) %v7140_v1, 8  ;;  %v5689_v1 = vrot.slane %v5650_v35, 4  ;;  %v19990_v35 = vld [vmem:[#allocation471_spill] sm:$0xff] }
 0x90b   : > { %v5690_v0 = vsel %vm523_vm0, %v5674_v47, %v5689_v1  ;;  %v19988_v47 = vld [vmem:[#allocation473_spill] sm:$0xff]  ;;  %v19994_v1 = vld [vmem:[#allocation491_spill] sm:$0xff] }
 0x90e   : > { %7370 = vxpose.xlu0.b32.end [16/16] (narrow) %v19969_v46, 8  ;;  %v19979_v46 = vld [vmem:[#allocation443_spill] sm:$0xff] }
 0x910   : > { %7336 = vxpose.xlu1.b32.cont [14/16] (narrow) %v19972_v33, 8  ;;  %v19984_v33 = vld [vmem:[#allocation449_spill] sm:$0xff] }
 0x911   : > { %7402 = vxpose.xlu2.b32.end [16/16] (narrow) %v7252_v9, 8  ;;  %v19981_v9 = vld [vmem:[#allocation444_spill] sm:$0xff] }
 0x916   : > { %7451 = vxpose.xlu0.b32.start [1/16] (narrow) %v19975_v12, 8  ;;  %v19989_v12 = vld [vmem:[#allocation448_spill] sm:$0xff] }
 0x918   : > { %7337 = vxpose.xlu1.b32.cont [15/16] (narrow) %v19976_v60, 8  ;;  %v19991_v60 = vld [vmem:[#allocation484_spill] sm:$0xff] }
 0x919   : > { %7483 = vxpose.xlu2.b32.start [1/16] (narrow) %v19977_v54, 8  ;;  %v19992_v54 = vld [vmem:[#allocation462_spill] sm:$0xff] }
 0x91e   : > { %7452 = vxpose.xlu0.b32.cont [2/16] (narrow) %v5688_v58, 8  ;;  %v19995_v58 = vld [vmem:[#allocation470_spill] sm:$0xff] }
 0x920   : > { %7338 = vxpose.xlu1.b32.end [16/16] (narrow) %v19978_v63, 8  ;;  %v19997_v63 = vld [vmem:[#allocation507_spill] sm:$0xff] }
 0x921   : > { %7484 = vxpose.xlu2.b32.cont [2/16] (narrow) %v5690_v0, 8  ;;  %v19996_v0 = vld [vmem:[#allocation488_spill] sm:$0xff] }
 0x926   : > { %7453 = vxpose.xlu0.b32.cont [3/16] (narrow) %v19979_v46, 8  ;;  %v19998_v46 = vld [vmem:[#allocation479_spill] sm:$0xff] }
 0x928   : > { %7419 = vxpose.xlu1.b32.start [1/16] (narrow) %v19980_v51, 8  ;;  %v19999_v51 = vld [vmem:[#allocation503_spill] sm:$0xff] }
 0x929   : > { %7485 = vxpose.xlu2.b32.cont [3/16] (narrow) %v19981_v9, 8  ;;  %v20000_v9 = vld [vmem:[#allocation512_spill] sm:$0xff] }
 0x92e   : > { %7454 = vxpose.xlu0.b32.cont [4/16] (narrow) %v19982_v21, 8  ;;  %v20001_v21 = vld [vmem:[#allocation494_spill] sm:$0xff] }
 0x930   : > { %7420 = vxpose.xlu1.b32.cont [2/16] (narrow) %v19983_v4, 8  ;;  %v20002_v4 = vld [vmem:[#allocation511_spill] sm:$0xff] }
 0x931   : > { %7486 = vxpose.xlu2.b32.cont [4/16] (narrow) %v19984_v33, 8  ;;  %v20003_v33 = vld [vmem:[#allocation527_spill] sm:$0xff] }
 0x936   : > { %7455 = vxpose.xlu0.b32.cont [5/16] (narrow) %v19985_v11, 8  ;;  %v20004_v11 = vld [vmem:[#allocation381_spill] sm:$0xff] }
 0x938   : > { %7421 = vxpose.xlu1.b32.cont [3/16] (narrow) %v19986_v28, 8  ;;  %v20005_v28 = vld [vmem:[#allocation382_spill] sm:$0xff] }
 0x939   : > { %7487 = vxpose.xlu2.b32.cont [5/16] (narrow) %v19987_v39, 8  ;;  %v20006_v39 = vld [vmem:[#allocation539_spill] sm:$0xff] }
 0x93e   : > { %7456 = vxpose.xlu0.b32.cont [6/16] (narrow) %v19988_v47, 8  ;;  %v20007_v47 = vld [vmem:[#allocation514_spill] sm:$0xff] }
 0x940   : > { %7422 = vxpose.xlu1.b32.cont [4/16] (narrow) %v19989_v12, 8  ;;  %v20008_v12 = vld [vmem:[#allocation535_spill] sm:$0xff] }
 0x941   : > { %7488 = vxpose.xlu2.b32.cont [6/16] (narrow) %v19990_v35, 8  ;;  %v20009_v35 = vld [vmem:[#allocation405_spill] sm:$0xff] }
 0x946   : > { %7457 = vxpose.xlu0.b32.cont [7/16] (narrow) %v19991_v60, 8  ;;  %v20010_v60 = vld [vmem:[#allocation525_spill] sm:$0xff] }
 0x948   : > { %7423 = vxpose.xlu1.b32.cont [5/16] (narrow) %v19992_v54, 8  ;;  %v20011_v54 = vld [vmem:[#allocation543_spill] sm:$0xff] }
 0x949   : > { %7489 = vxpose.xlu2.b32.cont [7/16] (narrow) %v19993_v52, 8  ;;  %v20012_v52 = vld [vmem:[#allocation547_spill] sm:$0xff] }
 0x94e   : > { %7458 = vxpose.xlu0.b32.cont [8/16] (narrow) %v19994_v1, 8  ;;  %v20013_v1 = vld [vmem:[#allocation533_spill] sm:$0xff] }
 0x950   : > { %7424 = vxpose.xlu1.b32.cont [6/16] (narrow) %v19995_v58, 8  ;;  %v20014_v58 = vld [vmem:[#allocation41_spill] sm:$0xff] }
 0x951   : > { %7490 = vxpose.xlu2.b32.cont [8/16] (narrow) %v19996_v0, 8  ;;  %v20015_v0 = vld [vmem:[#allocation548_spill] sm:$0xff] }
 0x956   : > { %7459 = vxpose.xlu0.b32.cont [9/16] (narrow) %v19997_v63, 8  ;;  %v20016_v63 = vld [vmem:[#allocation118_spill] sm:$0xff] }
 0x958   : > { %7425 = vxpose.xlu1.b32.cont [7/16] (narrow) %v19998_v46, 8  ;;  %v7987_v46 = vrot.slane %v20016_v63, 4  ;;  %v20026_v63 = vld [vmem:[#allocation130_spill] sm:$0xff] }
 0x959   : > { %7491 = vxpose.xlu2.b32.cont [9/16] (narrow) %v19999_v51, 8  ;;  %v20017_v51 = vld [vmem:[#allocation544_spill] sm:$0xff] }
 0x95e   : > { %7460 = vxpose.xlu0.b32.cont [10/16] (narrow) %v20000_v9, 8  ;;  %v20018_v9 = vld [vmem:[#allocation414_spill] sm:$0xff] }
 0x960   : > { %7426 = vxpose.xlu1.b32.cont [8/16] (narrow) %v20001_v21, 8  ;;  %v20019_v21 = vld [vmem:[#allocation144_spill] sm:$0xff] }
 0x961   : > { %7492 = vxpose.xlu2.b32.cont [10/16] (narrow) %v20002_v4, 8  ;;  %v8011_v4 = vrot.slane %v20019_v21, 4 }
 0x966   : > { %7461 = vxpose.xlu0.b32.cont [11/16] (narrow) %v20003_v33, 8  ;;  %v20020_v33 = vld [vmem:[#allocation117_spill] sm:$0xff] }
 0x968   : > { %7427 = vxpose.xlu1.b32.cont [9/16] (narrow) %v20004_v11, 8  ;;  %v7988_v11 = vsel %vm523_vm0, %v7987_v46, %v20020_v33  ;;  %v20028_v33 = vld [vmem:[#allocation64_spill] sm:$0xff] }
 0x969   : > { %7493 = vxpose.xlu2.b32.cont [11/16] (narrow) %v20005_v28, 8  ;;  %v20021_v28 = vld [vmem:[#allocation95_spill] sm:$0xff] }
 0x96e   : > { %7462 = vxpose.xlu0.b32.cont [12/16] (narrow) %v20006_v39, 8  ;;  %v7994_v39 = vperm.slane %v7988_v11, %v10671_v37  ;;  %v20029_v11 = vld [vmem:[#allocation174_spill] sm:$0xff] }
 0x970   : > { %7428 = vxpose.xlu1.b32.cont [10/16] (narrow) %v20007_v47, 8  ;;  %v8099_v47 = vrot.slane %v15982_v31, 4 }
 0x971   : > { %7494 = vxpose.xlu2.b32.cont [12/16] (narrow) %v20008_v12, 8  ;;  %v20022_v12 = vld [vmem:[#allocation45_spill] sm:$0xff] }
 0x976   : > { %7463 = vxpose.xlu0.b32.cont [13/16] (narrow) %v20009_v35, 8  ;;  %v20023_v35 = vld [vmem:[#allocation96_spill] sm:$0xff] }
 0x978   : > { %7429 = vxpose.xlu1.b32.cont [11/16] (narrow) %v20010_v60, 8  ;;  %v20024_v60 = vld [vmem:[#allocation141_spill] sm:$0xff] }
 0x979   : > { %7495 = vxpose.xlu2.b32.cont [13/16] (narrow) %v20011_v54, 8  ;;  %v8039_v54 = vrot.slane %v20024_v60, 4  ;;  %v20031_v60 = vld [vmem:[#allocation163_spill] sm:$0xff] }
 0x97b   : > { %v8040_v46 = vsel %vm523_vm0, %v8039_v54, %v20026_v63  ;;  %v8130_v54 = vperm.slane %v20031_v60, %v10671_v37  ;;  %v9607_v60 = vrot.slane %v16972_v5, 4 }
 0x97d   : > { %v8147_v63 = vrot.slane %v8130_v54, 4 }
 0x97e   : > { %7464 = vxpose.xlu0.b32.cont [14/16] (narrow) %v20012_v52, 8  ;;  %v20025_v52 = vld [vmem:[#allocation129_spill] sm:$0xff] }
 0x980   : > { %7430 = vxpose.xlu1.b32.cont [12/16] (narrow) %v20013_v1, 8  ;;  %v8012_v1 = vsel %vm523_vm0, %v8011_v4, %v20025_v52  ;;  %v20032_v52 = vld [vmem:[#allocation552_spill] sm:$0xff] }
 0x981   : > { %7496 = vxpose.xlu2.b32.cont [14/16] (narrow) %v20014_v58, 8  ;;  %v8018_v58 = vperm.slane %v8012_v1, %v10671_v37 }
 0x983   : > { %v8035_v1 = vrot.slane %v8018_v58, 4 }
 0x986   : > { %7465 = vxpose.xlu0.b32.cont [15/16] (narrow) %v20015_v0, 8  ;;  %v8037_v0 = vrot.slane %v7994_v39, 4 }
 0x988   : > { %7431 = vxpose.xlu1.b32.cont [13/16] (narrow) %v20017_v51, 8  ;;  %v20027_v51 = vld [vmem:[#allocation162_spill] sm:$0xff]  ;;  %v8038_v31 = vsel %vm523_vm0, %v8018_v58, %v8037_v0  ;;  %v8036_v0 = vsel %vm523_vm0, %v8035_v1, %v7994_v39 }
 0x989   : > { %7497 = vxpose.xlu2.b32.cont [15/16] (narrow) %v20018_v9, 8  ;;  %v8100_v9 = vsel %vm523_vm0, %v8099_v47, %v20027_v51 }
 0x98a   : > { %v8106_v21 = vperm.slane %v8100_v9, %v10671_v37  ;;  %v20043_v9 = vld [vmem:[#allocation114_spill] sm:$0xff] }
 0x98c   : > { %v8149_v4 = vrot.slane %v8106_v21, 4 }
 0x98e   : > { %7466 = vxpose.xlu0.b32.end [16/16] (narrow) %v20021_v28, 8  ;;  %v8151_v28 = vrot.slane %v20029_v11, 4  ;;  %v8150_v47 = vsel %vm523_vm0, %v8130_v54, %v8149_v4  ;;  %v20046_v54 = vld [vmem:[#allocation103_spill] sm:$0xff] }
 0x990   : > { %7432 = vxpose.xlu1.b32.cont [14/16] (narrow) %v20022_v12, 8  ;;  %v20030_v12 = vld [vmem:[#allocation177_spill] sm:$0xff] }
 0x991   : > { %7498 = vxpose.xlu2.b32.end [16/16] (narrow) %v20023_v35, 8  ;;  %v8152_v35 = vsel %vm523_vm0, %v8151_v28, %v20030_v12  ;;  %v20045_v28 = vld [vmem:[#allocation101_spill] sm:$0xff] }
 0x996   : > { %9795 = vxpose.xlu0.b32.start [1/16] (narrow) %v8040_v46, 8  ;;  %v8148_v46 = vsel %vm523_vm0, %v8147_v63, %v8106_v21  ;;  %v20044_v21 = vld [vmem:[#allocation71_spill] sm:$0xff]  ;;  %v9667_v63 = vrot.slane %v17010_v59, 4  ;;  %v9719_v59 = vrot.slane %v17051_v36, 4 }
 0x998   : > { %7433 = vxpose.xlu1.b32.cont [15/16] (narrow) %v20028_v33, 8  ;;  %v9668_v5 = vsel %vm523_vm0, %v9667_v63, %v16999_v62  ;;  %v20064_v63 = vld [vmem:[#allocation186_spill] sm:$0xff] }
 0x999   : > { %9763 = vxpose.xlu2.b32.start [1/16] (narrow) %v8038_v31, 8  ;;  %v9579_v31 = vrot.slane %v20043_v9, 4 }
 0x99e   : > { %9796 = vxpose.xlu0.b32.cont [2/16] (narrow) %v8152_v35, 8 }
 0x9a0   : > { %7434 = vxpose.xlu1.b32.end [16/16] (narrow) %v20032_v52, 8 }
 0x9a1   : > { %9764 = vxpose.xlu2.b32.cont [2/16] (narrow) %v8150_v47, 8  ;;  %v9580_v47 = vsel %vm523_vm0, %v9579_v31, %v20046_v54 }
 0x9a6   : > { %9797 = vxpose.xlu0.b32.cont [3/16] (narrow) %v16063_v53, 8 }
 0x9a8   : > { %9731 = vxpose.xlu1.b32.start [1/16] (narrow) %v8036_v0, 8  ;;  %v9586_v0 = vperm.slane %v9580_v47, %v10671_v37  ;;  %v20061_v47 = vld [vmem:[#allocation24_spill] sm:$0xff] }
 0x9a9   : > { %9765 = vxpose.xlu2.b32.cont [3/16] (narrow) %v16044_v49, 8  ;;  %v9243_v49 = vrot.slane %v16697_v61, 4 }
 0x9ab   : > { %v9244_v53 = vsel %vm523_vm0, %v9243_v49, %v16679_v34  ;;  %v20039_v34 = vld [vmem:[#allocation168_spill] sm:$0xff]  ;;  %v20047_v49 = vld [vmem:[#allocation498_spill] sm:$0xff] }
 0x9ae   : > { %9798 = vxpose.xlu0.b32.cont [4/16] (narrow) %v16140_v40, 8  ;;  %v9226_v40 = vperm.slane %v16660_v10, %v10671_v37 }
 0x9b0   : > { %9732 = vxpose.xlu1.b32.cont [2/16] (narrow) %v8148_v46, 8  ;;  %v9691_v46 = vrot.slane %v17036_v7, 4 }
 0x9b1   : > { %9766 = vxpose.xlu2.b32.cont [4/16] (narrow) %v16143_v48, 8  ;;  %v9250_v48 = vperm.slane %v9244_v53, %v10671_v37 }
 0x9b2   : > { %v9692_v7 = vsel %vm523_vm0, %v9691_v46, %v17013_v20  ;;  %v20065_v46 = vld [vmem:[#allocation58_spill] sm:$0xff] }
 0x9b3   : > { %v9267_v58 = vrot.slane %v9250_v48, 4  ;;  %v9698_v62 = vperm.slane %v9692_v7, %v10671_v37  ;;  %v20075_v7 = vld [vmem:[#allocation110_spill] sm:$0xff] }
 0x9b5   : > { %v9268_v12 = vsel %vm523_vm0, %v9267_v58, %v9226_v40  ;;  %v9715_v9 = vrot.slane %v9698_v62, 4 }
 0x9b6   : > { %9799 = vxpose.xlu0.b32.cont [5/16] (narrow) %v16195_v14, 8  ;;  %v9355_v14 = vrot.slane %v16769_v8, 4  ;;  %v20042_v8 = vld [vmem:[#allocation378_spill] sm:$0xff] }
 0x9b7   : > { %v9555_v39 = vrot.slane %v20042_v8, 4 }
 0x9b8   : > { %9733 = vxpose.xlu1.b32.cont [3/16] (narrow) %v16058_v2, 8  ;;  %v9271_v2 = vrot.slane %v16709_v6, 4  ;;  %v20041_v6 = vld [vmem:[#allocation54_spill] sm:$0xff] }
 0x9b9   : > { %9767 = vxpose.xlu2.b32.cont [5/16] (narrow) %v16198_v55, 8  ;;  %v9556_v4 = vsel %vm523_vm0, %v9555_v39, %v20045_v28  ;;  %v20057_v39 = vld [vmem:[#allocation161_spill] sm:$0xff] }
 0x9ba   : > { %v9272_v55 = vsel %vm523_vm0, %v9271_v2, %v16692_v27  ;;  %v20040_v27 = vld [vmem:[#allocation79_spill] sm:$0xff]  ;;  %v9562_v52 = vperm.slane %v9556_v4, %v10671_v37  ;;  %v9608_v2 = vsel %vm523_vm0, %v9607_v60, %v20047_v49  ;;  %v8142_v58 = vperm.slane %v20057_v39, %v10671_v37  ;;  %v20060_v60 = vld [vmem:[#allocation172_spill] sm:$0xff] }
 0x9bb   : > { %v9495_v61 = vrot.slane %v20040_v27, 4  ;;  %v20066_v49 = vld [vmem:[#allocation67_spill] sm:$0xff] }
 0x9bc   : > { %v9605_v53 = vrot.slane %v9562_v52, 4 }
 0x9bd   : > { %v9496_v33 = vsel %vm523_vm0, %v9495_v61, %v20044_v21  ;;  %v8155_v21 = vrot.slane %v8142_v58, 4 }
 0x9be   : > { %9800 = vxpose.xlu0.b32.cont [6/16] (narrow) %v16297_v3, 8  ;;  %v20033_v3 = vld [vmem:[#allocation185_spill] sm:$0xff] }
 0x9c0   : > { %9734 = vxpose.xlu1.b32.cont [4/16] (narrow) %v16154_v50, 8  ;;  %v9331_v50 = vrot.slane %v16742_v30, 4 }
 0x9c1   : > { %9768 = vxpose.xlu2.b32.cont [6/16] (narrow) %v16277_v42, 8 }
 0x9c2   : > { %v9332_v42 = vsel %vm523_vm0, %v9331_v50, %v16736_v45  ;;  %v20048_v50 = vld [vmem:[#allocation128_spill] sm:$0xff] }
 0x9c6   : > { %9801 = vxpose.xlu0.b32.cont [7/16] (narrow) %v16362_v38, 8  ;;  %v9383_v38 = vrot.slane %v20033_v3, 4  ;;  %v9720_v3 = vsel %vm523_vm0, %v9719_v59, %v17030_v24  ;;  %v20074_v59 = vld [vmem:[#allocation113_spill] sm:$0xff] }
 0x9c8   : > { %9735 = vxpose.xlu1.b32.cont [5/16] (narrow) %v16210_v41, 8  ;;  %v9269_v41 = vrot.slane %v9226_v40, 4 }
 0x9c9   : > { %9769 = vxpose.xlu2.b32.cont [7/16] (narrow) %v16365_v19, 8  ;;  %v20034_v19 = vld [vmem:[#allocation188_spill] sm:$0xff] }
 0x9ce   : > { %9802 = vxpose.xlu0.b32.cont [8/16] (narrow) %v16421_v43, 8  ;;  %v9338_v43 = vperm.slane %v9332_v42, %v10671_v37  ;;  %v9674_v42 = vperm.slane %v9668_v5, %v10671_v37  ;;  %v20069_v5 = vld [vmem:[#allocation77_spill] sm:$0xff] }
 0x9d0   : > { %9736 = vxpose.xlu1.b32.cont [6/16] (narrow) %v16292_v22, 8  ;;  %v9270_v22 = vsel %vm523_vm0, %v9250_v48, %v9269_v41  ;;  %v9606_v48 = vsel %vm523_vm0, %v9586_v0, %v9605_v53  ;;  %v9717_v20 = vrot.slane %v9674_v42, 4  ;;  %v20068_v53 = vld [vmem:[#allocation55_spill] sm:$0xff] }
 0x9d1   : > { %9770 = vxpose.xlu2.b32.cont [8/16] (narrow) %v16424_v56, 8  ;;  %v20035_v56 = vld [vmem:[#allocation59_spill] sm:$0xff] }
 0x9d6   : > { %9803 = vxpose.xlu0.b32.cont [9/16] (narrow) %v16507_v32, 8 }
 0x9d8   : > { %9737 = vxpose.xlu1.b32.cont [7/16] (narrow) %v16374_v18, 8  ;;  %v9356_v18 = vsel %vm523_vm0, %v9355_v14, %v20034_v19  ;;  %v8023_v14 = vrot.slane %v20048_v50, 4  ;;  %v20072_v50 = vld [vmem:[#allocation88_spill] sm:$0xff] }
 0x9d9   : > { %9771 = vxpose.xlu2.b32.cont [9/16] (narrow) %v16510_v44, 8  ;;  %v9362_v32 = vperm.slane %v9356_v18, %v10671_v37  ;;  %v20036_v44 = vld [vmem:[#allocation191_spill] sm:$0xff]  ;;  %v20051_v18 = vld [vmem:[#allocation140_spill] sm:$0xff] }
 0x9db   : > { %v9379_v1 = vrot.slane %v9362_v32, 4 }
 0x9dd   : > { %v9380_v40 = vsel %vm523_vm0, %v9379_v1, %v9338_v43  ;;  %v20062_v1 = vld [vmem:[#allocation34_spill] sm:$0xff] }
 0x9de   : > { %9804 = vxpose.xlu0.b32.cont [10/16] (narrow) %v16560_v25, 8  ;;  %v9384_v25 = vsel %vm523_vm0, %v9383_v38, %v20036_v44  ;;  %v20050_v38 = vld [vmem:[#allocation133_spill] sm:$0xff] }
 0x9df   : > { %v8024_v19 = vsel %vm523_vm0, %v8023_v14, %v20050_v38  ;;  %v20073_v14 = vld [vmem:[#allocation57_spill] sm:$0xff]  ;;  %v20082_v38 = vld [vmem:[#allocation122_spill] sm:$0xff] }
 0x9e0   : > { %9738 = vxpose.xlu1.b32.cont [8/16] (narrow) %v16436_v29, 8  ;;  %v9443_v29 = vrot.slane %v20035_v56, 4  ;;  %v20052_v56 = vld [vmem:[#allocation151_spill] sm:$0xff] }
 0x9e1   : > { %9772 = vxpose.xlu2.b32.cont [10/16] (narrow) %v16563_v23, 8  ;;  %v20037_v23 = vld [vmem:[#allocation68_spill] sm:$0xff] }
 0x9e6   : > { %9805 = vxpose.xlu0.b32.cont [11/16] (narrow) %v16654_v15, 8 }
 0x9e8   : > { %9739 = vxpose.xlu1.b32.cont [9/16] (narrow) %v16521_v16, 8  ;;  %v9381_v16 = vrot.slane %v9338_v43, 4  ;;  %v8053_v43 = vrot.slane %v20051_v18, 4  ;;  %v20084_v18 = vld [vmem:[#allocation165_spill] sm:$0xff] }
 0x9e9   : > { %9773 = vxpose.xlu2.b32.cont [11/16] (narrow) %v16634_v17, 8  ;;  %v9467_v17 = vrot.slane %v20037_v23, 4  ;;  %v20054_v23 = vld [vmem:[#allocation150_spill] sm:$0xff] }
 0x9ea   : > { %v9382_v10 = vsel %vm523_vm0, %v9362_v32, %v9381_v16  ;;  %v8030_v16 = vperm.slane %v8024_v19, %v10671_v37  ;;  %v20083_v19 = vld [vmem:[#allocation145_spill] sm:$0xff] }
 0x9eb   : > { %v9468_v45 = vsel %vm523_vm0, %v9467_v17, %v20041_v6  ;;  %v8054_v17 = vsel %vm523_vm0, %v20054_v23, %v8053_v43  ;;  %v20056_v6 = vld [vmem:[#allocation139_spill] sm:$0xff]  ;;  %v20093_v23 = vld [vmem:[#allocation398_spill] sm:$0xff] }
 0x9ec   : > { %v9474_v51 = vperm.slane %v9468_v45, %v10671_v37  ;;  %v17676_v27 = vperm.slane %v8054_v17, %v10647_v13  ;;  %v20085_v43 = vld [vmem:[#allocation131_spill] sm:$0xff] }
 0x9ee   : > { %9806 = vxpose.xlu0.b32.cont [12/16] (narrow) %v9272_v55, 8  ;;  %v20049_v55 = vld [vmem:[#allocation154_spill] sm:$0xff] }
 0x9ef   : > { %v8065_v41 = vrot.slane %v20049_v55, 4  ;;  %v20076_v55 = vld [vmem:[#allocation76_spill] sm:$0xff] }
 0x9f0   : > { %9740 = vxpose.xlu1.b32.cont [10/16] (narrow) %v16574_v26, 8  ;;  %v20038_v26 = vld [vmem:[#allocation48_spill] sm:$0xff] }
 0x9f1   : > { %9774 = vxpose.xlu2.b32.cont [12/16] (narrow) %v9270_v22, 8  ;;  %v9444_v15 = vsel %vm523_vm0, %v9443_v29, %v20038_v26  ;;  %v9491_v22 = vrot.slane %v9474_v51, 4  ;;  %v8066_v36 = vsel %vm523_vm0, %v20052_v56, %v8065_v41  ;;  %v20053_v29 = vld [vmem:[#allocation121_spill] sm:$0xff]  ;;  %v20055_v26 = vld [vmem:[#allocation119_spill] sm:$0xff]  ;;  %v20077_v41 = vld [vmem:[#allocation112_spill] sm:$0xff] }
 0x9f2   : > { %v9450_v30 = vperm.slane %v9444_v15, %v10671_v37  ;;  %v7999_v32 = vrot.slane %v20053_v29, 4  ;;  %v17669_v24 = vperm.slane %v8066_v36, %v10647_v13  ;;  %v20086_v56 = vld [vmem:[#allocation178_spill] sm:$0xff] }
 0x9f3   : > { %v20087_v36 = vld [vmem:[#allocation26_spill] sm:$0xff] }
 0x9f4   : > { %v9493_v11 = vrot.slane %v9450_v30, 4  ;;  %v9492_v44 = vsel %vm523_vm0, %v9491_v22, %v9450_v30  ;;  %v8000_v15 = vsel %vm523_vm0, %v7999_v32, %v20055_v26  ;;  %v8111_v61 = vrot.slane %v17669_v24, 4  ;;  %v20079_v22 = vld [vmem:[#allocation98_spill] sm:$0xff]  ;;  %v20090_v32 = vld [vmem:[#allocation509_spill] sm:$0xff] }
 0x9f5   : > { %v8006_v45 = vperm.slane %v8000_v15, %v10671_v37  ;;  %v20089_v29 = vld [vmem:[#allocation46_spill] sm:$0xff] }
 0x9f6   : > { %9807 = vxpose.xlu0.b32.cont [13/16] (narrow) %v9384_v25, 8  ;;  %v9494_v35 = vsel %vm523_vm0, %v9474_v51, %v9493_v11  ;;  %v9718_v25 = vsel %vm523_vm0, %v9698_v62, %v9717_v20  ;;  %v8112_v51 = vsel %vm523_vm0, %v8111_v61, %v17676_v27  ;;  %v9716_v11 = vsel %vm523_vm0, %v9715_v9, %v9674_v42  ;;  %v20078_v42 = vld [vmem:[#allocation125_spill] sm:$0xff]  ;;  %v20080_v62 = vld [vmem:[#allocation146_spill] sm:$0xff]  ;;  %v20088_v20 = vld [vmem:[#allocation155_spill] sm:$0xff] }
 0x9f7   : > { %v8118_v31 = vperm.slane %v8112_v51, %v10671_v37  ;;  %v8045_v4 = vrot.slane %v8006_v45, 4  ;;  %v20094_v26 = vld [vmem:[#allocation126_spill] sm:$0xff]  ;;  %v8113_v51 = vrot.slane %v17676_v27, 4  ;;  %v20100_v9 = vld [vmem:[#allocation504_spill] sm:$0xff] }
 0x9f8   : > { %9741 = vxpose.xlu1.b32.cont [11/16] (narrow) %v20039_v34, 8  ;;  %v8043_v34 = vrot.slane %v8030_v16, 4  ;;  %v20096_v61 = vld [vmem:[#allocation38_spill] sm:$0xff] }
 0x9f9   : > { %9775 = vxpose.xlu2.b32.cont [13/16] (narrow) %v9382_v10, 8  ;;  %v9603_v10 = vrot.slane %v9586_v0, 4  ;;  %v8156_v28 = vsel %vm523_vm0, %v8155_v21, %v8118_v31  ;;  %v8157_v54 = vrot.slane %v8118_v31, 4  ;;  %v20063_v0 = vld [vmem:[#allocation32_spill] sm:$0xff]  ;;  %v8114_v31 = vsel %vm523_vm0, %v17669_v24, %v8113_v51  ;;  %v20101_v21 = vld [vmem:[#allocation166_spill] sm:$0xff]  ;;  %v20117_v51 = vld [vmem:[#allocation99_spill] sm:$0xff] }
 0x9fa   : > { %v8044_v8 = vsel %vm523_vm0, %v8043_v34, %v8006_v45  ;;  %v20098_v45 = vld [vmem:[#allocation502_spill] sm:$0xff] }
 0x9fb   : > { %v9604_v30 = vsel %vm523_vm0, %v9603_v10, %v9562_v52  ;;  %v8158_v52 = vsel %vm523_vm0, %v8142_v58, %v8157_v54  ;;  %v20095_v10 = vld [vmem:[#allocation526_spill] sm:$0xff] }
 0x9fc   : > { %v9679_v34 = vrot.slane %v20095_v10, 4  ;;  %v20114_v10 = vld [vmem:[#allocation90_spill] sm:$0xff] }
 0x9fe   : > { %9808 = vxpose.xlu0.b32.cont [14/16] (narrow) %v9496_v33, 8  ;;  %v20058_v33 = vld [vmem:[#allocation173_spill] sm:$0xff] }
 0xa00   : > { %9742 = vxpose.xlu1.b32.cont [12/16] (narrow) %v9268_v12, 8  ;;  %v20059_v12 = vld [vmem:[#allocation187_spill] sm:$0xff] }
 0xa01   : > { %9776 = vxpose.xlu2.b32.cont [14/16] (narrow) %v9494_v35, 8  ;;  %v8046_v35 = vsel %vm523_vm0, %v8030_v16, %v8045_v4  ;;  %v20092_v16 = vld [vmem:[#allocation81_spill] sm:$0xff]  ;;  %v20103_v4 = vld [vmem:[#allocation123_spill] sm:$0xff] }
 0xa06   : > { %9809 = vxpose.xlu0.b32.cont [15/16] (narrow) %v9608_v2, 8  ;;  %v20067_v2 = vld [vmem:[#allocation22_spill] sm:$0xff] }
 0xa08   : > { %9743 = vxpose.xlu1.b32.cont [13/16] (narrow) %v9380_v40, 8  ;;  %v20070_v40 = vld [vmem:[#allocation43_spill] sm:$0xff] }
 0xa09   : > { %9777 = vxpose.xlu2.b32.cont [15/16] (narrow) %v9606_v48, 8  ;;  %v20071_v48 = vld [vmem:[#allocation91_spill] sm:$0xff] }
 0xa0e   : > { %9810 = vxpose.xlu0.b32.end [16/16] (narrow) %v9720_v3, 8  ;;  %v20081_v3 = vld [vmem:[#allocation143_spill] sm:$0xff] }
 0xa10   : > { %9744 = vxpose.xlu1.b32.cont [14/16] (narrow) %v9492_v44, 8  ;;  %v9703_v44 = vrot.slane %v17045_v57, 4  ;;  %v9680_v57 = vsel %vm523_vm0, %v9679_v34, %v20098_v45 }
 0xa11   : > { %9778 = vxpose.xlu2.b32.end [16/16] (narrow) %v9718_v25, 8  ;;  %v20091_v25 = vld [vmem:[#allocation179_spill] sm:$0xff]  ;;  %v9686_v39 = vperm.slane %v9680_v57, %v10671_v37 }
 0xa12   : > { %v9704_v17 = vsel %vm523_vm0, %v9703_v44, %v20093_v23  ;;  %v20113_v44 = vld [vmem:[#allocation70_spill] sm:$0xff] }
 0xa13   : > { %v9710_v15 = vperm.slane %v9704_v17, %v10671_v37  ;;  %v9725_v54 = vrot.slane %v9686_v39, 4 }
 0xa16   : > { %9827 = vxpose.xlu0.b32.start [1/16] (narrow) %v20056_v6, 8  ;;  %v20097_v6 = vld [vmem:[#allocation518_spill] sm:$0xff] }
 0xa18   : > { %9745 = vxpose.xlu1.b32.cont [15/16] (narrow) %v9604_v30, 8  ;;  %v9723_v30 = vrot.slane %v9710_v15, 4 }
 0xa19   : > { %9859 = vxpose.xlu2.b32.start [1/16] (narrow) %v8044_v8, 8  ;;  %v20099_v8 = vld [vmem:[#allocation134_spill] sm:$0xff] }
 0xa1a   : > { %v9724_v58 = vsel %vm523_vm0, %v9723_v30, %v9686_v39 }
 0xa1e   : > { %9828 = vxpose.xlu0.b32.cont [2/16] (narrow) %v20058_v33, 8  ;;  %v8146_v33 = vperm.slane %v20101_v21, %v10671_v37 }
 0xa20   : > { %9746 = vxpose.xlu1.b32.end [16/16] (narrow) %v9716_v11, 8  ;;  %v20102_v11 = vld [vmem:[#allocation152_spill] sm:$0xff] }
 0xa21   : > { %9860 = vxpose.xlu2.b32.cont [2/16] (narrow) %v8156_v28, 8  ;;  %v8122_v28 = vperm.slane %v8114_v31, %v10671_v37 }
 0xa26   : > { %9829 = vxpose.xlu0.b32.cont [3/16] (narrow) %v20059_v12, 8  ;;  %v20104_v12 = vld [vmem:[#allocation423_spill] sm:$0xff] }
 0xa28   : > { %9891 = vxpose.xlu1.b32.start [1/16] (narrow) %v8046_v35, 8  ;;  %v8159_v35 = vrot.slane %v8146_v33, 4 }
 0xa29   : > { %9861 = vxpose.xlu2.b32.cont [3/16] (narrow) %v20060_v60, 8  ;;  %v8161_v60 = vrot.slane %v8122_v28, 4 }
 0xa2a   : > { %v8160_v27 = vsel %vm523_vm0, %v8159_v35, %v8122_v28 }
 0xa2b   : > { %v8162_v24 = vsel %vm523_vm0, %v8146_v33, %v8161_v60 }
 0xa2e   : > { %9830 = vxpose.xlu0.b32.cont [4/16] (narrow) %v20061_v47, 8  ;;  %v9726_v47 = vsel %vm523_vm0, %v9710_v15, %v9725_v54 }
 0xa30   : > { %9892 = vxpose.xlu1.b32.cont [2/16] (narrow) %v8158_v52, 8  ;;  %v20105_v52 = vld [vmem:[#allocation184_spill] sm:$0xff] }
 0xa31   : > { %9862 = vxpose.xlu2.b32.cont [4/16] (narrow) %v20062_v1, 8  ;;  %v2395_v1 = vpop.trf.xlu2 }
 0xa36   : > { %9831 = vxpose.xlu0.b32.cont [5/16] (narrow) %v20063_v0, 8  ;;  %v20106_v0 = vld [vmem:[#allocation183_spill] sm:$0xff] }
 0xa38   : > { %9893 = vxpose.xlu1.b32.cont [3/16] (narrow) %v20064_v63, 8  ;;  %v2331_v63 = vpop.trf.xlu0 }
 0xa39   : > { %9863 = vxpose.xlu2.b32.cont [5/16] (narrow) %v20065_v46, 8  ;;  %v20107_v46 = vld [vmem:[#allocation37_spill] sm:$0xff] }
 0xa3e   : > { %9832 = vxpose.xlu0.b32.cont [6/16] (narrow) %v20066_v49, 8  ;;  %v20108_v49 = vld [vmem:[#allocation25_spill] sm:$0xff] }
 0xa40   : > { %9894 = vxpose.xlu1.b32.cont [4/16] (narrow) %v20067_v2, 8  ;;  %v2571_v2 = vrot.slane %v2395_v1, 4 }
 0xa41   : > { %9864 = vxpose.xlu2.b32.cont [6/16] (narrow) %v20068_v53, 8  ;;  %v2459_v53 = vpop.trf.xlu2 }
 0xa46   : > { %9833 = vxpose.xlu0.b32.cont [7/16] (narrow) %v20069_v5, 8  ;;  %v2427_v5 = vpop.trf.xlu0 }
 0xa48   : > { %9895 = vxpose.xlu1.b32.cont [5/16] (narrow) %v20070_v40, 8  ;;  %v2577_v40 = vrot.slane %v2427_v5, 4 }
 0xa49   : > { %9865 = vxpose.xlu2.b32.cont [7/16] (narrow) %v20071_v48, 8  ;;  %v2363_v48 = vpop.trf.xlu1 }
 0xa4e   : > { %9834 = vxpose.xlu0.b32.cont [8/16] (narrow) %v20072_v50, 8  ;;  %v2578_v50 = vsel %vm523_vm0, %v2577_v40, %v2363_v48 }
 0xa50   : > { %9896 = vxpose.xlu1.b32.cont [6/16] (narrow) %v20073_v14, 8  ;;  %v2572_v14 = vsel %vm523_vm0, %v2571_v2, %v2331_v63 }
 0xa51   : > { %9866 = vxpose.xlu2.b32.cont [8/16] (narrow) %v20074_v59, 8  ;;  %v2582_v59 = vperm.slane %v2578_v50, %v10647_v13  ;;  %v20121_v50 = vld [vmem:[#allocation132_spill] sm:$0xff] }
 0xa56   : > { %9835 = vxpose.xlu0.b32.cont [9/16] (narrow) %v20075_v7, 8  ;;  %v20109_v7 = vld [vmem:[#allocation44_spill] sm:$0xff] }
 0xa58   : > { %9897 = vxpose.xlu1.b32.cont [7/16] (narrow) %v20076_v55, 8  ;;  %v2576_v55 = vperm.slane %v2572_v14, %v10647_v13 }
 0xa59   : > { %9867 = vxpose.xlu2.b32.cont [9/16] (narrow) %v20077_v41, 8  ;;  %v2595_v41 = vrot.slane %v2582_v59, 4 }
 0xa5e   : > { %9836 = vxpose.xlu0.b32.cont [10/16] (narrow) %v20078_v42, 8  ;;  %v20110_v42 = vld [vmem:[#allocation47_spill] sm:$0xff] }
 0xa60   : > { %9898 = vxpose.xlu1.b32.cont [8/16] (narrow) %v20079_v22, 8  ;;  %v2555_v22 = vpop.trf.xlu2 }
 0xa61   : > { %9868 = vxpose.xlu2.b32.cont [10/16] (narrow) %v20080_v62, 8  ;;  %v2523_v62 = vpop.trf.xlu0 }
 0xa66   : > { %9837 = vxpose.xlu0.b32.cont [11/16] (narrow) %v20081_v3, 8  ;;  %v2583_v3 = vrot.slane %v2523_v62, 4 }
 0xa68   : > { %9899 = vxpose.xlu1.b32.cont [9/16] (narrow) %v20082_v38, 8  ;;  %v2589_v38 = vrot.slane %v2555_v22, 4 }
 0xa69   : > { %9869 = vxpose.xlu2.b32.cont [11/16] (narrow) %v20083_v19, 8  ;;  %v2596_v19 = vsel %vm523_vm0, %v2595_v41, %v2576_v55 }
 0xa6e   : > { %9838 = vxpose.xlu0.b32.cont [12/16] (narrow) %v20084_v18, 8  ;;  %v2584_v18 = vsel %vm523_vm0, %v2583_v3, %v2459_v53 }
 0xa70   : > { %9900 = vxpose.xlu1.b32.cont [10/16] (narrow) %v20085_v43, 8  ;;  %v20111_v43 = vld [vmem:[#allocation65_spill] sm:$0xff] }
 0xa71   : > { %9870 = vxpose.xlu2.b32.cont [12/16] (narrow) %v20086_v56, 8  ;;  %v2491_v56 = vpop.trf.xlu1 }
 0xa76   : > { %9839 = vxpose.xlu0.b32.cont [13/16] (narrow) %v20087_v36, 8  ;;  %v2600_v36 = vperm.slane %v2596_v19, %v10671_v37 }
 0xa78   : > { %9901 = vxpose.xlu1.b32.cont [11/16] (narrow) %v20088_v20, 8  ;;  %v2590_v20 = vsel %vm523_vm0, %v2589_v38, %v2491_v56  ;;  %v2609_v17 = vrot.slane %v2600_v36, 4 }
 0xa79   : > { %9871 = vxpose.xlu2.b32.cont [13/16] (narrow) %v20089_v29, 8  ;;  %v2588_v29 = vperm.slane %v2584_v18, %v10647_v13 }
 0xa7e   : > { %9840 = vxpose.xlu0.b32.cont [14/16] (narrow) %v20090_v32, 8  ;;  %v2594_v32 = vperm.slane %v2590_v20, %v10647_v13  ;;  %v20124_v20 = vld [vmem:[#allocation153_spill] sm:$0xff] }
 0xa80   : > { %9902 = vxpose.xlu1.b32.cont [12/16] (narrow) %v20091_v25, 8  ;;  %v4867_v25 = vpop.trf.xlu2  ;;  %v2601_v23 = vrot.slane %v2594_v32, 4 }
 0xa81   : > { %9872 = vxpose.xlu2.b32.cont [14/16] (narrow) %v20092_v16, 8  ;;  %v4803_v16 = vpop.trf.xlu0  ;;  %v5043_v57 = vrot.slane %v4867_v25, 4 }
 0xa86   : > { %9841 = vxpose.xlu0.b32.cont [15/16] (narrow) %v20094_v26, 8  ;;  %v2602_v26 = vsel %vm523_vm0, %v2601_v23, %v2588_v29 }
 0xa87   : > { %v2606_v15 = vperm.slane %v2602_v26, %v10671_v37 }
 0xa88   : > { %9903 = vxpose.xlu1.b32.cont [13/16] (narrow) %v20096_v61, 8  ;;  %v4931_v30 = vpop.trf.xlu2 }
 0xa89   : > { %9873 = vxpose.xlu2.b32.cont [15/16] (narrow) %v20097_v6, 8  ;;  %v2607_v34 = vrot.slane %v2606_v15, 4  ;;  %v2610_v61 = vsel %vm523_vm0, %v2606_v15, %v2609_v17  ;;  %v20116_v6 = vld [vmem:[#allocation80_spill] sm:$0xff] }
 0xa8a   : > { %2612 = vst [vmem:[%s17777_s7 + $0x8] sm:$0xff] %v2610_v61  ;;  %v20125_v61 = vld [vmem:[#allocation175_spill] sm:$0xff] }
 0xa8b   : > { %v2608_v45 = vsel %vm523_vm0, %v2607_v34, %v2600_v36 }
 0xa8c   : > { %2611 = vst [vmem:[%s17777_s7] sm:$0xff] %v2608_v45 }
 0xa8e   : > { %9842 = vxpose.xlu0.b32.end [16/16] (narrow) %v20099_v8, 8  ;;  %v4899_v8 = vpop.trf.xlu0 }
 0xa8f   : > { %v5049_v39 = vrot.slane %v4899_v8, 4 }
 0xa90   : > { %9904 = vxpose.xlu1.b32.cont [14/16] (narrow) %v20100_v9, 8  ;;  %v4835_v9 = vpop.trf.xlu1  ;;  %v5027_v28 = vpop.trf.xlu2 }
 0xa91   : > { %9874 = vxpose.xlu2.b32.end [16/16] (narrow) %v9724_v58, 8  ;;  %v5044_v58 = vsel %vm523_vm0, %v5043_v57, %v4803_v16  ;;  %v5050_v31 = vsel %vm523_vm0, %v5049_v39, %v4835_v9  ;;  %v5061_v60 = vrot.slane %v5027_v28, 4  ;;  %v20126_v57 = vld [vmem:[#allocation164_spill] sm:$0xff]  ;;  %v20132_v28 = vld [vmem:[#allocation109_spill] sm:$0xff] }
 0xa92   : > { %v5048_v21 = vperm.slane %v5044_v58, %v10647_v13  ;;  %v5054_v33 = vperm.slane %v5050_v31, %v10647_v13  ;;  %v20128_v31 = vld [vmem:[#allocation21_spill] sm:$0xff] }
 0xa96   : > { %9923 = vxpose.xlu0.b32.start [1/16] (narrow) %v20102_v11, 8  ;;  %v20118_v11 = vld [vmem:[#allocation102_spill] sm:$0xff] }
 0xa98   : > { %9905 = vxpose.xlu1.b32.cont [15/16] (narrow) %v20103_v4, 8  ;;  %v4995_v4 = vpop.trf.xlu0 }
 0xa99   : > { %9955 = vxpose.xlu2.b32.start [1/16] (narrow) %v20104_v12, 8  ;;  %v5067_v12 = vrot.slane %v5054_v33, 4  ;;  %v5055_v35 = vrot.slane %v4995_v4, 4  ;;  %v20130_v33 = vld [vmem:[#allocation92_spill] sm:$0xff]  ;;  %v20133_v4 = vld [vmem:[#allocation147_spill] sm:$0xff] }
 0xa9b   : > { %v5056_v54 = vsel %vm523_vm0, %v5055_v35, %v4931_v30 }
 0xa9e   : > { %9924 = vxpose.xlu0.b32.cont [2/16] (narrow) %v8160_v27, 8  ;;  %v5068_v27 = vsel %vm523_vm0, %v5067_v12, %v5048_v21  ;;  %v20129_v21 = vld [vmem:[#allocation87_spill] sm:$0xff]  ;;  %v20134_v12 = vld [vmem:[#allocation136_spill] sm:$0xff] }
 0xaa0   : > { %9906 = vxpose.xlu1.b32.end [16/16] (narrow) %v9726_v47, 8  ;;  %v20119_v47 = vld [vmem:[#allocation120_spill] sm:$0xff]  ;;  %v7307_v2 = vpop.trf.xlu0 }
 0xaa1   : > { %9956 = vxpose.xlu2.b32.cont [2/16] (narrow) %v8162_v24, 8  ;;  %v4963_v24 = vpop.trf.xlu1 }
 0xaa2   : > { %v5062_v1 = vsel %vm523_vm0, %v5061_v60, %v4963_v24 }
 0xaa3   : > { %v5066_v63 = vperm.slane %v5062_v1, %v10647_v13 }
 0xaa5   : > { %v5073_v53 = vrot.slane %v5066_v63, 4 }
 0xaa6   : > { %9925 = vxpose.xlu0.b32.cont [3/16] (narrow) %v20105_v52, 8  ;;  %v5072_v52 = vperm.slane %v5068_v27, %v10671_v37 }
 0xaa8   : > { %v5081_v5 = vrot.slane %v5072_v52, 4 }
 0xaa9   : > { %9957 = vxpose.xlu2.b32.cont [3/16] (narrow) %v20106_v0, 8  ;;  %v5060_v0 = vperm.slane %v5056_v54, %v10647_v13  ;;  %v7339_v62 = vpop.trf.xlu1 }
 0xaaa   : > { %v7515_v3 = vrot.slane %v7339_v62, 4 }
 0xaab   : > { %v5074_v40 = vsel %vm523_vm0, %v5073_v53, %v5060_v0 }
 0xaac   : > { %v5078_v48 = vperm.slane %v5074_v40, %v10671_v37 }
 0xaae   : > { %9926 = vxpose.xlu0.b32.cont [4/16] (narrow) %v20107_v46, 8  ;;  %v20120_v46 = vld [vmem:[#allocation430_spill] sm:$0xff]  ;;  %v5079_v14 = vrot.slane %v5078_v48, 4  ;;  %v5082_v59 = vsel %vm523_vm0, %v5078_v48, %v5081_v5 }
 0xaaf   : > { %5084 = vst [vmem:[%s17777_s7 + $0x18] sm:$0xff] %v5082_v59 }
 0xab0   : > { %v5080_v55 = vsel %vm523_vm0, %v5079_v14, %v5072_v52 }
 0xab1   : > { %9958 = vxpose.xlu2.b32.cont [4/16] (narrow) %v20108_v49, 8  ;;  %v7275_v49 = vpop.trf.xlu2  ;;  %5083 = vst [vmem:[%s17777_s7 + $0x10] sm:$0xff] %v5080_v55  ;;  %v7435_v23 = vpop.trf.xlu1 }
 0xab2   : > { %v7516_v18 = vsel %vm523_vm0, %v7515_v3, %v7275_v49 }
 0xab3   : > { %v7520_v56 = vperm.slane %v7516_v18, %v10647_v13 }
 0xab6   : > { %9927 = vxpose.xlu0.b32.cont [5/16] (narrow) %v20109_v7, 8  ;;  %v20122_v7 = vld [vmem:[#allocation135_spill] sm:$0xff] }
 0xab9   : > { %9959 = vxpose.xlu2.b32.cont [5/16] (narrow) %v20110_v42, 8  ;;  %v7403_v41 = vpop.trf.xlu2  ;;  %v7371_v42 = vpop.trf.xlu0 }
 0xaba   : > { %v7521_v22 = vrot.slane %v7371_v42, 4 }
 0xabc   : > { %v7522_v38 = vsel %vm523_vm0, %v7521_v22, %v7307_v2 }
 0xabd   : > { %v7526_v19 = vperm.slane %v7522_v38, %v10647_v13 }
 0xabe   : > { %9928 = vxpose.xlu0.b32.cont [6/16] (narrow) %v20111_v43, 8  ;;  %v20123_v43 = vld [vmem:[#allocation158_spill] sm:$0xff] }
 0xabf   : > { %v7539_v36 = vrot.slane %v7526_v19, 4 }
 0xac1   : > { %9960 = vxpose.xlu2.b32.cont [6/16] (narrow) %v20113_v44, 8  ;;  %v7540_v29 = vsel %vm523_vm0, %v7539_v36, %v7520_v56  ;;  %v7499_v32 = vpop.trf.xlu2  ;;  %v7467_v44 = vpop.trf.xlu0 }
 0xac2   : > { %v7533_v25 = vrot.slane %v7499_v32, 4  ;;  %v7527_v16 = vrot.slane %v7467_v44, 4  ;;  %v7544_v17 = vperm.slane %v7540_v29, %v10671_v37 }
 0xac4   : > { %v7528_v26 = vsel %vm523_vm0, %v7527_v16, %v7403_v41  ;;  %v7534_v15 = vsel %vm523_vm0, %v7533_v25, %v7435_v23  ;;  %v7553_v45 = vrot.slane %v7544_v17, 4 }
 0xac5   : > { %v7538_v34 = vperm.slane %v7534_v15, %v10647_v13 }
 0xac6   : > { %9929 = vxpose.xlu0.b32.cont [7/16] (narrow) %v20114_v10, 8  ;;  %v7532_v10 = vperm.slane %v7528_v26, %v10647_v13 }
 0xac9   : > { %9961 = vxpose.xlu2.b32.cont [7/16] (narrow) %v20116_v6, 8  ;;  %v7545_v6 = vrot.slane %v7538_v34, 4  ;;  %v9811_v35 = vpop.trf.xlu0  ;;  %v9779_v60 = vpop.trf.xlu2 }
 0xaca   : > { %v9987_v52 = vrot.slane %v9811_v35, 4 }
 0xacb   : > { %v7546_v30 = vsel %vm523_vm0, %v7545_v6, %v7532_v10 }
 0xacc   : > { %v7550_v8 = vperm.slane %v7546_v30, %v10671_v37 }
 0xace   : > { %9930 = vxpose.xlu0.b32.cont [8/16] (narrow) %v20117_v51, 8  ;;  %v7551_v39 = vrot.slane %v7550_v8, 4  ;;  %v7554_v58 = vsel %vm523_vm0, %v7550_v8, %v7553_v45  ;;  %v20127_v51 = vld [vmem:[#allocation35_spill] sm:$0xff] }
 0xacf   : > { %7556 = vst [vmem:[%s17777_s7 + $0x28] sm:$0xff] %v7554_v58 }
 0xad0   : > { %v7552_v9 = vsel %vm523_vm0, %v7551_v39, %v7544_v17 }
 0xad1   : > { %9962 = vxpose.xlu2.b32.cont [8/16] (narrow) %v20118_v11, 8  ;;  %7555 = vst [vmem:[%s17777_s7 + $0x20] sm:$0xff] %v7552_v9  ;;  %v20131_v11 = vld [vmem:[#allocation522_spill] sm:$0xff]  ;;  %v9843_v27 = vpop.trf.xlu0  ;;  %v9875_v54 = vpop.trf.xlu2 }
 0xad2   : > { %v9993_v24 = vrot.slane %v9843_v27, 4 }
 0xad4   : > { %v9994_v1 = vsel %vm523_vm0, %v9993_v24, %v9779_v60 }
 0xad5   : > { %v9998_v0 = vperm.slane %v9994_v1, %v10647_v13 }
 0xad6   : > { %9931 = vxpose.xlu0.b32.cont [9/16] (narrow) %v20119_v47, 8  ;;  %v9747_v47 = vpop.trf.xlu1 }
 0xad7   : > { %v9988_v49 = vsel %vm523_vm0, %v9987_v52, %v9747_v47  ;;  %v10011_v5 = vrot.slane %v9998_v0, 4 }
 0xad8   : > { %v9992_v40 = vperm.slane %v9988_v49, %v10647_v13 }
 0xad9   : > { %9963 = vxpose.xlu2.b32.cont [9/16] (narrow) %v20120_v46, 8 }
 0xade   : > { %9932 = vxpose.xlu0.b32.cont [10/16] (narrow) %v20121_v50, 8  ;;  %v9907_v46 = vpop.trf.xlu1  ;;  %v10012_v50 = vsel %vm523_vm0, %v10011_v5, %v9992_v40 }
 0xadf   : > { %v10016_v55 = vperm.slane %v10012_v50, %v10671_v37 }
 0xae1   : > { %9964 = vxpose.xlu2.b32.cont [10/16] (narrow) %v20122_v7, 8  ;;  %v10025_v62 = vrot.slane %v10016_v55, 4 }
 0xae6   : > { %9933 = vxpose.xlu0.b32.cont [11/16] (narrow) %v20123_v43, 8 }
 0xae9   : > { %9965 = vxpose.xlu2.b32.cont [11/16] (narrow) %v20124_v20, 8 }
 0xaee   : > { %9934 = vxpose.xlu0.b32.cont [12/16] (narrow) %v20125_v61, 8 }
 0xaf1   : > { %9966 = vxpose.xlu2.b32.cont [12/16] (narrow) %v20126_v57, 8 }
 0xaf6   : > { %9935 = vxpose.xlu0.b32.cont [13/16] (narrow) %v20127_v51, 8 }
 0xaf9   : > { %9967 = vxpose.xlu2.b32.cont [13/16] (narrow) %v20128_v31, 8 }
 0xafe   : > { %9936 = vxpose.xlu0.b32.cont [14/16] (narrow) %v20129_v21, 8 }
 0xb01   : > { %9968 = vxpose.xlu2.b32.cont [14/16] (narrow) %v20130_v33, 8 }
 0xb06   : > { %9937 = vxpose.xlu0.b32.cont [15/16] (narrow) %v20131_v11, 8 }
 0xb09   : > { %9969 = vxpose.xlu2.b32.cont [15/16] (narrow) %v20132_v28, 8 }
 0xb0e   : > { %9938 = vxpose.xlu0.b32.end [16/16] (narrow) %v20133_v4, 8 }
 0xb11   : > { %9970 = vxpose.xlu2.b32.end [16/16] (narrow) %v20134_v12, 8 }
 0xb32   : > { %v9971_v63 = vpop.trf.xlu2 }
 0xb33   : > { %v10005_v2 = vrot.slane %v9971_v63, 4 }
 0xb35   : > { %v10006_v53 = vsel %vm523_vm0, %v10005_v2, %v9907_v46 }
 0xb36   : > { %v10010_v48 = vperm.slane %v10006_v53, %v10647_v13 }
 0xb38   : > { %v10017_v7 = vrot.slane %v10010_v48, 4 }
 0xb3a   : > { %v9939_v14 = vpop.trf.xlu0 }
 0xb3b   : > { %v9999_v59 = vrot.slane %v9939_v14, 4 }
 0xb3d   : > { %v10000_v41 = vsel %vm523_vm0, %v9999_v59, %v9875_v54 }
 0xb3e   : > { %v10004_v42 = vperm.slane %v10000_v41, %v10647_v13 }
 0xb40   : > { %v10018_v22 = vsel %vm523_vm0, %v10017_v7, %v10004_v42 }
 0xb41   : > { %v10022_v3 = vperm.slane %v10018_v22, %v10671_v37 }
 0xb43   : > { %v10023_v38 = vrot.slane %v10022_v3, 4  ;;  %v10026_v19 = vsel %vm523_vm0, %v10022_v3, %v10025_v62 }
 0xb44   : > { %10028 = vst [vmem:[%s17777_s7 + $0x38] sm:$0xff] %v10026_v19 }
 0xb45   : > { %v10024_v13 = vsel %vm523_vm0, %v10023_v38, %v10016_v55 }
 0xb46   : > { %10027 = vst [vmem:[%s17777_s7 + $0x30] sm:$0xff] %v10024_v13 }
 0xb47   : > { %10322 = shalt.err (!%p10319_p4)
}
 0xb48   : > { %s10430_s3 = smov 256  }
 0xb49   : > { %10141 = dma.vmem_to_hbm [thread:$0]  (%p10491_p11), %s10044_s0, 1024, %s10046_s21, %s10030_s25, %s10430_s3, %s10430_s3, %s19004_s14  }
 0xb4a PF: > { %s20138_s11 = sld [smem:[#allocation8_spill]] }
 0xb4b   : > { %s20140_s16 = sld [smem:[#allocation11_spill]] }
 0xb50   : > { %s10060_s20 = sand.u32 1, %s20138_s11  }
 0xb51   : > { %p20141_p7 = scmp.ge.s32.totalorder %s20140_s16, 2  ;;  %s10061_s23 = scalar_lea.sflag [#allocation4], %s10060_s20 }
 0xb53   : > { %p10148_p5 = pnand %p20141_p7, %p10495_p12 }
 0xb55   : > { %p10149_p8 = pneg %p10148_p5 }
 0xb57   : > { %10344 = dma.done.wait (%p10149_p8), %s10061_s23, 1024  }
 0xb58   : > { %10346 = vsyncadd (%p10149_p8), %s10061_s23, 4294966272  ;;  %s20142_s9 = sld [smem:[#allocation13_spill]] }
 0xb59   : > { %s20143_s6 = sld [smem:[#allocation9_spill]] }
 0xb5a   : > { %s20144_s7 = sld [smem:[#allocation10_spill]] }
 0xb5b   : > { %s20145_s8 = sld [smem:[#allocation14_spill]] }
 0xb5e   : > { %p14_p10 = scmp.ge.s32.totalorder %s20142_s9, 4  }
 0xb60   :  { %16 = sbr.rel (!%p14_p10) target bundleno = 8 (0x8), region = 69 }
 0xb65   :  { %10067 = vsyncpa [#allocation3], 1 }
 0xb66   :  { %10069 = vsyncpa [#allocation3 + $0x1], 1 }
 0xb67   :  { %10070 = vsyncpa [#allocation4], 1 }
 0xb68   :  { %10072 = vsyncpa [#allocation4 + $0x1], 1 }

</bundles_post_ra>
